<compile_context>
chip_gen: v6e
topology: v6e:2x2x1
jax: 0.10.0
libtpu: 0.0.40
codegen_flags: <defaults>
</compile_context>

<pallas_src>
import jax
import jax.numpy as jnp
from jax import lax
from jax.experimental import pallas as pl
from jax.experimental.pallas import tpu as pltpu


# Geometry implied by the module (fc1 in-features 9216 = 64*12*12 pins 28x28).
H_IN = 28
H1 = H_IN - 2        # 26, conv1 output
H2 = H1 - 2          # 24, conv2 output
HP = H2 // 2         # 12, pooled output
C1 = 32
C2 = 64
FC1_IN = C2 * HP * HP    # 9216
FC1_OUT = 128
N_CLASSES = 10

K1 = 3 * H_IN        # 84   conv1 folded K  (dj*28 + h)
N1 = H1 * C1         # 832  conv1 folded N  (r*32 + c)
K2 = 3 * C1          # 96   conv2 folded K  (di*32 + c)
N2 = 3 * C2          # 192  conv2 folded N  (dj*64 + o)


# ---------------------------------------------------------------------------
# Kernel A: fused conv1 + ReLU + conv2 + ReLU + 2x2 max-pool (Bblk images/step)
# ---------------------------------------------------------------------------

def _conv_pool_kernel(x_ref, g1_ref, b1r_ref, w2n_ref, b2_ref, sel_ref,
                      o_ref, s1_ref):
    # x_ref : (Bblk, 32, 84)          bf16  conv1 LHS  [b, w, dj*28+h]
    # g1_ref: (84, 832)               bf16  banded conv1 weights
    # b1r_ref: (1, 832)               f32   conv1 bias tiled over the 26 rows
    # w2n_ref: (96, 192)              bf16  conv2 weights [di*32+c, dj*64+o]
    # b2_ref: (1, 64)                 f32
    # sel_ref: (2*Bblk*12, Bblk*24)   bf16  even/odd width-pool selection
    # o_ref : (12, Bblk*12, 64)       bf16  pooled output [ph, b*12+pw, c]
    # s1_ref: (Bblk, 32, 832)         f32   conv1 activation [b, w, r*32+c]
    bblk = x_ref.shape[0]

    # ---- conv1 (+ ReLU) as one banded MXU matmul (no VPU accumulator) ----
    lhs1 = x_ref[...].reshape(bblk * 32, K1)
    y1 = jnp.dot(lhs1, g1_ref[...], preferred_element_type=jnp.float32)
    y1 = y1.reshape(bblk, 32, N1)                               # [b, w, r*32+c]
    act = jnp.maximum(y1[:, 0:H1, :] + b1r_ref[...], 0.0)       # (Bblk, 26, 832)
    s1_ref[:, 0:H1, :] = act
    s1_ref[:, H1:32, :] = jnp.zeros((bblk, 32 - H1, N1), jnp.float32)

    w2n = w2n_ref[...]
    sel = sel_ref[...]
    b2 = b2_ref[...]

    def conv2_row(r):
        # K=96 (height taps x channels) comes from one contiguous lane slice
        # of the conv1 activation; width taps sit in N and are reduced by the
        # three shifted adds below.  One MXU matmul per conv2 row.
        lhs = s1_ref[:, :, r * C1:r * C1 + K2].astype(jnp.bfloat16)
        lhs = lhs.reshape(bblk * 32, K2)
        part = jnp.dot(lhs, w2n, preferred_element_type=jnp.float32)
        part = part.reshape(bblk, 32, N2)
        return (part[:, 0:H2, 0:64] + part[:, 1:H2 + 1, 64:128]
                + part[:, 2:H2 + 2, 128:192])                   # (Bblk, 24, 64)

    for ph in range(HP):                    # fully unrolled pooled-row loop
        o0 = conv2_row(2 * ph)
        o1 = conv2_row(2 * ph + 1)
        rmax = jnp.maximum(o0, o1)                              # height pool
        rflat = rmax.reshape(bblk * H2, C2).astype(jnp.bfloat16)
        y = jnp.dot(sel, rflat, preferred_element_type=jnp.float32)
        pooled = jnp.maximum(y[:bblk * HP], y[bblk * HP:])      # width pool
        pooled = jnp.maximum(pooled + b2, 0.0)                  # bias + ReLU
        o_ref[ph] = pooled.astype(o_ref.dtype)                  # (Bblk*12, 64)


def conv_pool_features(x_nchw, g1, b1r, w2n, b2):
    """(B,1,28,28) f32 -> (B, 9216) bf16 features (NHWC flatten order)."""
    batch = x_nchw.shape[0]
    bblk = min(batch, 8)
    pad = (-batch) % bblk
    bp = batch + pad

    xb = x_nchw[:, 0]                                   # (B, 28, 28); C == 1
    if pad:
        xb = jnp.pad(xb, ((0, pad), (0, 0), (0, 0)))
    # Transposed image with the 3 width taps stacked along K (tiny im2col of
    # the 3 KiB input, done once in XLA): xlhs[b, w, dj*28+h] = x[b, h, w+dj].
    xt = jnp.transpose(xb, (0, 2, 1))                   # (Bp, W=28, H=28)
    xt = jnp.pad(xt, ((0, 0), (0, 6), (0, 0)))          # (Bp, 34, 28)
    xlhs = jnp.concatenate([xt[:, dj:dj + 32, :] for dj in range(3)],
                           axis=-1).astype(jnp.bfloat16)  # (Bp, 32, 84)

    # Even/odd 0/1 width-pool selection matrix (resident bf16 kernel input).
    q = jnp.arange(bblk * HP)
    cols = jnp.arange(bblk * H2)[None, :]
    base = (q // HP) * H2 + (q % HP) * 2
    sel = jnp.concatenate([
        (cols == base[:, None]).astype(jnp.bfloat16),
        (cols == (base + 1)[:, None]).astype(jnp.bfloat16)], axis=0)

    out = pl.pallas_call(
        _conv_pool_kernel,
        out_shape=jax.ShapeDtypeStruct((HP, bp * HP, C2), jnp.bfloat16),
        grid=(bp // bblk,),
        in_specs=[
            pl.BlockSpec((bblk, 32, K1), lambda i: (i, 0, 0)),
            pl.BlockSpec((K1, N1), lambda i: (0, 0)),          # resident
            pl.BlockSpec((1, N1), lambda i: (0, 0)),
            pl.BlockSpec((K2, N2), lambda i: (0, 0)),          # resident
            pl.BlockSpec((1, C2), lambda i: (0, 0)),
            pl.BlockSpec((2 * bblk * HP, bblk * H2), lambda i: (0, 0)),
        ],
        out_specs=pl.BlockSpec((HP, bblk * HP, C2), lambda i: (0, i, 0)),
        scratch_shapes=[pltpu.VMEM((bblk, 32, N1), jnp.float32)],
        compiler_params=pltpu.CompilerParams(
            dimension_semantics=("parallel",),
            vmem_limit_bytes=32 * 1024 * 1024,
        ),
    )(xlhs, g1, b1r, w2n, b2, sel)

    # (ph, b*12+pw, c) -> (b, ph, pw, c) -> flattened features.
    out = out.reshape(HP, bp, HP, C2).transpose(1, 0, 2, 3)
    return out.reshape(bp, FC1_IN)[:batch]


# ---------------------------------------------------------------------------
# Kernel B: fused fc1 + ReLU + fc2 + ReLU + log_softmax (M-tiled)
# ---------------------------------------------------------------------------

def _mlp_head_kernel(x_ref, w1_ref, b1_ref, w2_ref, b2_ref, o_ref):
    h = jnp.dot(x_ref[...], w1_ref[...], preferred_element_type=jnp.float32)
    h = jnp.maximum(h + b1_ref[...], 0.0)                     # fc1 + ReLU
    z = jnp.dot(h.astype(jnp.bfloat16), w2_ref[...],
                preferred_element_type=jnp.float32)
    z = jnp.maximum(z + b2_ref[...], 0.0)                     # fc2 + ReLU (spec)
    m = jnp.max(z, axis=-1, keepdims=True)
    lse = m + jnp.log(jnp.sum(jnp.exp(z - m), axis=-1, keepdims=True))
    o_ref[...] = z - lse                                      # log_softmax


def _pick_tm(batch):
    if batch <= 8:
        return batch
    # >=2 grid steps so both v7x TensorCores get work; up to 512 rows for
    # v5e/v6e roofline tiles (~23 MiB VMEM incl. double buffering, < 32 MiB).
    return min(512, ((pl.cdiv(batch, 2) + 7) // 8) * 8)


def mlp_head(feats, w1, b1, w2, b2):
    batch = feats.shape[0]
    tm = _pick_tm(batch)
    return pl.pallas_call(
        _mlp_head_kernel,
        out_shape=jax.ShapeDtypeStruct((batch, N_CLASSES), jnp.float32),
        grid=(pl.cdiv(batch, tm),),
        in_specs=[
            pl.BlockSpec((tm, FC1_IN), lambda i: (i, 0)),
            pl.BlockSpec((FC1_IN, FC1_OUT), lambda i: (0, 0)),       # resident
            pl.BlockSpec((1, FC1_OUT), lambda i: (0, 0)),
            pl.BlockSpec((FC1_OUT, N_CLASSES), lambda i: (0, 0)),    # resident
            pl.BlockSpec((1, N_CLASSES), lambda i: (0, 0)),
        ],
        out_specs=pl.BlockSpec((tm, N_CLASSES), lambda i: (i, 0)),
        compiler_params=pltpu.CompilerParams(
            dimension_semantics=("parallel",),
            vmem_limit_bytes=32 * 1024 * 1024,
        ),
    )(feats, w1, b1, w2, b2)


# ---------------------------------------------------------------------------
# Parameters & forward pass
# ---------------------------------------------------------------------------

def init_params(key):
    """Synthetic parameters in PyTorch-native layouts/shapes."""
    ks = jax.random.split(key, 8)
    s = 0.05
    return {
        "conv1_w": jax.random.normal(ks[0], (C1, 1, 3, 3), jnp.float32) * s,
        "conv1_b": jax.random.normal(ks[1], (C1,), jnp.float32) * s,
        "conv2_w": jax.random.normal(ks[2], (C2, C1, 3, 3), jnp.float32) * s,
        "conv2_b": jax.random.normal(ks[3], (C2,), jnp.float32) * s,
        "fc1_w": jax.random.normal(ks[4], (FC1_OUT, FC1_IN), jnp.float32) * s,
        "fc1_b": jax.random.normal(ks[5], (FC1_OUT,), jnp.float32) * s,
        "fc2_w": jax.random.normal(ks[6], (N_CLASSES, FC1_OUT), jnp.float32) * s,
        "fc2_b": jax.random.normal(ks[7], (N_CLASSES,), jnp.float32) * s,
    }


def prepare_params(p):
    """One-time offline prep: folded/banded conv weights, bf16 MXU operands,
    and fc1 rows permuted so they consume the (h, w, c) flatten directly."""
    # conv1 banded matrix: g1[dj*28+h, r*32+c] = w1[c, 0, h-r, dj] (0<=h-r<=2).
    w1hw = jnp.transpose(p["conv1_w"][:, 0], (1, 2, 0))       # (di, dj, c)
    h = jnp.arange(H_IN)
    r = jnp.arange(H1)
    di = h[:, None] - r[None, :]                              # (28, 26)
    valid = (di >= 0) & (di <= 2)
    vals = w1hw[jnp.clip(di, 0, 2)]                           # (28, 26, 3, 32)
    vals = jnp.where(valid[:, :, None, None], vals, 0.0)
    g1 = jnp.transpose(vals, (2, 0, 1, 3)).reshape(K1, N1)    # (84, 832)

    # conv2 folded weights: w2n[di*32+c, dj*64+o] = w2[o, c, di, dj].
    w2n = jnp.transpose(p["conv2_w"], (2, 1, 3, 0)).reshape(K2, N2)

    # torch.flatten order is (c, h, w); the kernel produces (h, w, c).
    fc1 = p["fc1_w"].reshape(FC1_OUT, C2, HP, HP)
    fc1 = jnp.transpose(fc1, (0, 2, 3, 1)).reshape(FC1_OUT, FC1_IN)
    return {
        "g1": g1.astype(jnp.bfloat16),
        "b1r": jnp.tile(p["conv1_b"], H1).reshape(1, N1).astype(jnp.float32),
        "w2n": w2n.astype(jnp.bfloat16),
        "b2": p["conv2_b"].reshape(1, C2).astype(jnp.float32),
        "fc1_w": jnp.transpose(fc1, (1, 0)).astype(jnp.bfloat16),   # (9216,128)
        "fc1_b": p["fc1_b"].reshape(1, FC1_OUT).astype(jnp.float32),
        "fc2_w": jnp.transpose(p["fc2_w"], (1, 0)).astype(jnp.bfloat16),
        "fc2_b": p["fc2_b"].reshape(1, N_CLASSES).astype(jnp.float32),
    }


@jax.jit
def net_forward(prep, x_nchw):
    """Forward pass of `Net`. x: (B, 1, 28, 28) float32, NCHW."""
    feats = conv_pool_features(x_nchw, prep["g1"], prep["b1r"],
                               prep["w2n"], prep["b2"])
    return mlp_head(feats, prep["fc1_w"], prep["fc1_b"],
                    prep["fc2_w"], prep["fc2_b"])


def reference_forward(p, x):
    """Pure-XLA f32 reference with PyTorch layouts (for validation)."""
    dn = ("NCHW", "OIHW", "NCHW")
    y = lax.conv_general_dilated(x, p["conv1_w"], (1, 1), "VALID",
                                 dimension_numbers=dn)
    y = jax.nn.relu(y + p["conv1_b"][None, :, None, None])
    y = lax.conv_general_dilated(y, p["conv2_w"], (1, 1), "VALID",
                                 dimension_numbers=dn)
    y = jax.nn.relu(y + p["conv2_b"][None, :, None, None])
    y = lax.reduce_window(y, -jnp.inf, lax.max, (1, 1, 2, 2), (1, 1, 2, 2),
                          "VALID")
    y = y.reshape(y.shape[0], -1)                       # torch.flatten(x, 1)
    y = jax.nn.relu(y @ p["fc1_w"].T + p["fc1_b"])
    y = jax.nn.relu(y @ p["fc2_w"].T + p["fc2_b"])
    return jax.nn.log_softmax(y, axis=-1)


if __name__ == "__main__":
    key = jax.random.PRNGKey(0)
    pkey, xkey = jax.random.split(key)
    params = init_params(pkey)
    prep = prepare_params(params)
    # fc1 expects 9216 = 64*12*12 features, which pins the input to 28x28.
    x = jax.random.normal(xkey, (2, 1, 28, 28), jnp.float32)

    out = jax.block_until_ready(net_forward(prep, x))
    assert out.shape == (2, N_CLASSES) and out.dtype == jnp.float32
    # log_softmax rows must normalize.
    assert jnp.allclose(jnp.sum(jnp.exp(out), axis=1), 1.0, atol=1e-4)
    # Compare against the pure-XLA f32 reference (bf16 MXU operands in the
    # Pallas kernels -> loose tolerance).
    ref = reference_forward(params, x)
    assert jnp.max(jnp.abs(out - ref)) < 0.1, float(jnp.max(jnp.abs(out - ref)))
    print("KERNEL_OK")
</pallas_src>

<mosaic_0001>
module attributes {stable_mosaic.version = 11 : i64} {
  func.func @_conv_pool_kernel(%arg0: i32, %arg1: memref<2x32x84xbf16, #tpu.memory_space<vmem>>, %arg2: memref<84x832xbf16, #tpu.memory_space<vmem>>, %arg3: memref<1x832xf32, #tpu.memory_space<vmem>>, %arg4: memref<96x192xbf16, #tpu.memory_space<vmem>>, %arg5: memref<1x64xf32, #tpu.memory_space<vmem>>, %arg6: memref<48x48xbf16, #tpu.memory_space<vmem>>, %arg7: memref<12x24x64xbf16, #tpu.memory_space<vmem>>, %arg8: memref<2x32x832xf32, #tpu.memory_space<vmem>>) attributes {dimension_semantics = [#tpu.dimension_semantics<parallel>], iteration_bounds = array<i64: 1>, scalar_prefetch = 0 : i64, scratch_operands = 1 : i64, tpu.core_type = #tpu.core_type<tc>, window_params = [{transform_indices = @transform_0, window_bounds = array<i64: 2, 32, 84>}, {pipeline_mode = #tpu.pipeline_mode<synchronous>, transform_indices = @transform_1, window_bounds = array<i64: 84, 832>}, {pipeline_mode = #tpu.pipeline_mode<synchronous>, transform_indices = @transform_2, window_bounds = array<i64: 1, 832>}, {pipeline_mode = #tpu.pipeline_mode<synchronous>, transform_indices = @transform_3, window_bounds = array<i64: 96, 192>}, {pipeline_mode = #tpu.pipeline_mode<synchronous>, transform_indices = @transform_4, window_bounds = array<i64: 1, 64>}, {pipeline_mode = #tpu.pipeline_mode<synchronous>, transform_indices = @transform_5, window_bounds = array<i64: 48, 48>}, {transform_indices = @transform_6, window_bounds = array<i64: 12, 24, 64>}]} {
    %c0 = arith.constant 0 : index
    %c0_0 = arith.constant 0 : index
    %c0_1 = arith.constant 0 : index
    %0 = vector.load %arg1[%c0, %c0_0, %c0_1] : memref<2x32x84xbf16, #tpu.memory_space<vmem>>, vector<2x32x84xbf16>
    %1 = vector.shape_cast %0 : vector<2x32x84xbf16> to vector<64x84xbf16>
    %c0_2 = arith.constant 0 : index
    %c0_3 = arith.constant 0 : index
    %2 = vector.load %arg2[%c0_2, %c0_3] : memref<84x832xbf16, #tpu.memory_space<vmem>>, vector<84x832xbf16>
    %cst = arith.constant dense<0.000000e+00> : vector<64x832xf32>
    %3 = tpu.matmul %1, %2, %cst {dimension_numbers = #tpu.dot_dimension_numbers<[1], [0], [0], [1], [0, 0, 1, 1], [], []>} : vector<64x84xbf16>, vector<84x832xbf16>, vector<64x832xf32> -> vector<64x832xf32>
    %4 = vector.shape_cast %3 : vector<64x832xf32> to vector<2x32x832xf32>
    %5 = vector.extract_strided_slice %4 {offsets = [0, 0, 0], sizes = [2, 26, 832], strides = [1, 1, 1]} : vector<2x32x832xf32> to vector<2x26x832xf32>
    %c0_4 = arith.constant 0 : index
    %c0_5 = arith.constant 0 : index
    %6 = vector.load %arg3[%c0_4, %c0_5] : memref<1x832xf32, #tpu.memory_space<vmem>>, vector<1x832xf32>
    %7 = vector.shape_cast %6 : vector<1x832xf32> to vector<1x1x832xf32>
    %8 = vector.broadcast %7 : vector<1x1x832xf32> to vector<2x26x832xf32>
    %9 = arith.addf %5, %8 : vector<2x26x832xf32>
    %cst_6 = arith.constant 0.000000e+00 : f32
    %10 = vector.broadcast %cst_6 : f32 to vector<2x26x832xf32>
    %11 = arith.maximumf %9, %10 : vector<2x26x832xf32>
    %c0_7 = arith.constant 0 : index
    %c0_8 = arith.constant 0 : index
    %c0_9 = arith.constant 0 : index
    %12 = vector.load %arg8[%c0_7, %c0_8, %c0_9] : memref<2x32x832xf32, #tpu.memory_space<vmem>>, vector<2x26x832xf32>
    tpu.vector_store %arg8[%c0_7, %c0_8, %c0_9], %11 {strides = array<i32>} : memref<2x32x832xf32, #tpu.memory_space<vmem>>, vector<2x26x832xf32>,
    %cst_10 = arith.constant 0.000000e+00 : f32
    %13 = vector.broadcast %cst_10 : f32 to vector<2x6x832xf32>
    %c0_11 = arith.constant 0 : index
    %c26 = arith.constant 26 : index
    %c0_12 = arith.constant 0 : index
    %14 = vector.load %arg8[%c0_11, %c26, %c0_12] : memref<2x32x832xf32, #tpu.memory_space<vmem>>, vector<2x6x832xf32>
    tpu.vector_store %arg8[%c0_11, %c26, %c0_12], %13 {strides = array<i32>} : memref<2x32x832xf32, #tpu.memory_space<vmem>>, vector<2x6x832xf32>,
    %c0_13 = arith.constant 0 : index
    %c0_14 = arith.constant 0 : index
    %15 = vector.load %arg4[%c0_13, %c0_14] : memref<96x192xbf16, #tpu.memory_space<vmem>>, vector<96x192xbf16>
    %c0_15 = arith.constant 0 : index
    %c0_16 = arith.constant 0 : index
    %16 = vector.load %arg6[%c0_15, %c0_16] : memref<48x48xbf16, #tpu.memory_space<vmem>>, vector<48x48xbf16>
    %c0_17 = arith.constant 0 : index
    %c0_18 = arith.constant 0 : index
    %17 = vector.load %arg5[%c0_17, %c0_18] : memref<1x64xf32, #tpu.memory_space<vmem>>, vector<1x64xf32>
    %c0_19 = arith.constant 0 : index
    %c0_20 = arith.constant 0 : index
    %c0_21 = arith.constant 0 : index
    %18 = vector.load %arg8[%c0_19, %c0_20, %c0_21] : memref<2x32x832xf32, #tpu.memory_space<vmem>>, vector<2x32x96xf32>
    %19 = arith.truncf %18 : vector<2x32x96xf32> to vector<2x32x96xbf16>
    %20 = vector.shape_cast %19 : vector<2x32x96xbf16> to vector<64x96xbf16>
    %cst_22 = arith.constant dense<0.000000e+00> : vector<64x192xf32>
    %21 = tpu.matmul %20, %15, %cst_22 {dimension_numbers = #tpu.dot_dimension_numbers<[1], [0], [0], [1], [0, 0, 1, 1], [], []>} : vector<64x96xbf16>, vector<96x192xbf16>, vector<64x192xf32> -> vector<64x192xf32>
    %22 = vector.shape_cast %21 : vector<64x192xf32> to vector<2x32x192xf32>
    %23 = vector.extract_strided_slice %22 {offsets = [0, 0, 0], sizes = [2, 24, 64], strides = [1, 1, 1]} : vector<2x32x192xf32> to vector<2x24x64xf32>
    %24 = vector.extract_strided_slice %22 {offsets = [0, 1, 64], sizes = [2, 24, 64], strides = [1, 1, 1]} : vector<2x32x192xf32> to vector<2x24x64xf32>
    %25 = arith.addf %23, %24 : vector<2x24x64xf32>
    %26 = vector.extract_strided_slice %22 {offsets = [0, 2, 128], sizes = [2, 24, 64], strides = [1, 1, 1]} : vector<2x32x192xf32> to vector<2x24x64xf32>
    %27 = arith.addf %25, %26 : vector<2x24x64xf32>
    %c0_23 = arith.constant 0 : index
    %c0_24 = arith.constant 0 : index
    %c32 = arith.constant 32 : index
    %28 = vector.load %arg8[%c0_23, %c0_24, %c32] : memref<2x32x832xf32, #tpu.memory_space<vmem>>, vector<2x32x96xf32>
    %29 = arith.truncf %28 : vector<2x32x96xf32> to vector<2x32x96xbf16>
    %30 = vector.shape_cast %29 : vector<2x32x96xbf16> to vector<64x96xbf16>
    %cst_25 = arith.constant dense<0.000000e+00> : vector<64x192xf32>
    %31 = tpu.matmul %30, %15, %cst_25 {dimension_numbers = #tpu.dot_dimension_numbers<[1], [0], [0], [1], [0, 0, 1, 1], [], []>} : vector<64x96xbf16>, vector<96x192xbf16>, vector<64x192xf32> -> vector<64x192xf32>
    %32 = vector.shape_cast %31 : vector<64x192xf32> to vector<2x32x192xf32>
    %33 = vector.extract_strided_slice %32 {offsets = [0, 0, 0], sizes = [2, 24, 64], strides = [1, 1, 1]} : vector<2x32x192xf32> to vector<2x24x64xf32>
    %34 = vector.extract_strided_slice %32 {offsets = [0, 1, 64], sizes = [2, 24, 64], strides = [1, 1, 1]} : vector<2x32x192xf32> to vector<2x24x64xf32>
    %35 = arith.addf %33, %34 : vector<2x24x64xf32>
    %36 = vector.extract_strided_slice %32 {offsets = [0, 2, 128], sizes = [2, 24, 64], strides = [1, 1, 1]} : vector<2x32x192xf32> to vector<2x24x64xf32>
    %37 = arith.addf %35, %36 : vector<2x24x64xf32>
    %38 = arith.maximumf %27, %37 : vector<2x24x64xf32>
    %39 = vector.shape_cast %38 : vector<2x24x64xf32> to vector<48x64xf32>
    %40 = arith.truncf %39 : vector<48x64xf32> to vector<48x64xbf16>
    %cst_26 = arith.constant dense<0.000000e+00> : vector<48x64xf32>
    %41 = tpu.matmul %16, %40, %cst_26 {dimension_numbers = #tpu.dot_dimension_numbers<[1], [0], [0], [1], [0, 0, 1, 1], [], []>} : vector<48x48xbf16>, vector<48x64xbf16>, vector<48x64xf32> -> vector<48x64xf32>
    %42 = vector.extract_strided_slice %41 {offsets = [0, 0], sizes = [24, 64], strides = [1, 1]} : vector<48x64xf32> to vector<24x64xf32>
    %43 = vector.extract_strided_slice %41 {offsets = [24, 0], sizes = [24, 64], strides = [1, 1]} : vector<48x64xf32> to vector<24x64xf32>
    %44 = arith.maximumf %42, %43 : vector<24x64xf32>
    %45 = vector.broadcast %17 : vector<1x64xf32> to vector<24x64xf32>
    %46 = arith.addf %44, %45 : vector<24x64xf32>
    %cst_27 = arith.constant 0.000000e+00 : f32
    %47 = vector.broadcast %cst_27 : f32 to vector<24x64xf32>
    %48 = arith.maximumf %46, %47 : vector<24x64xf32>
    %49 = arith.truncf %48 : vector<24x64xf32> to vector<24x64xbf16>
    %c0_28 = arith.constant 0 : index
    %c0_29 = arith.constant 0 : index
    %c0_30 = arith.constant 0 : index
    %50 = vector.load %arg7[%c0_28, %c0_29, %c0_30] : memref<12x24x64xbf16, #tpu.memory_space<vmem>>, vector<1x24x64xbf16>
    %51 = vector.shape_cast %50 : vector<1x24x64xbf16> to vector<24x64xbf16>
    %52 = vector.shape_cast %49 : vector<24x64xbf16> to vector<1x24x64xbf16>
    tpu.vector_store %arg7[%c0_28, %c0_29, %c0_30], %52 {strides = array<i32>} : memref<12x24x64xbf16, #tpu.memory_space<vmem>>, vector<1x24x64xbf16>,
    %c0_31 = arith.constant 0 : index
    %c0_32 = arith.constant 0 : index
    %c64 = arith.constant 64 : index
    %53 = vector.load %arg8[%c0_31, %c0_32, %c64] : memref<2x32x832xf32, #tpu.memory_space<vmem>>, vector<2x32x96xf32>
    %54 = arith.truncf %53 : vector<2x32x96xf32> to vector<2x32x96xbf16>
    %55 = vector.shape_cast %54 : vector<2x32x96xbf16> to vector<64x96xbf16>
    %cst_33 = arith.constant dense<0.000000e+00> : vector<64x192xf32>
    %56 = tpu.matmul %55, %15, %cst_33 {dimension_numbers = #tpu.dot_dimension_numbers<[1], [0], [0], [1], [0, 0, 1, 1], [], []>} : vector<64x96xbf16>, vector<96x192xbf16>, vector<64x192xf32> -> vector<64x192xf32>
    %57 = vector.shape_cast %56 : vector<64x192xf32> to vector<2x32x192xf32>
    %58 = vector.extract_strided_slice %57 {offsets = [0, 0, 0], sizes = [2, 24, 64], strides = [1, 1, 1]} : vector<2x32x192xf32> to vector<2x24x64xf32>
    %59 = vector.extract_strided_slice %57 {offsets = [0, 1, 64], sizes = [2, 24, 64], strides = [1, 1, 1]} : vector<2x32x192xf32> to vector<2x24x64xf32>
    %60 = arith.addf %58, %59 : vector<2x24x64xf32>
    %61 = vector.extract_strided_slice %57 {offsets = [0, 2, 128], sizes = [2, 24, 64], strides = [1, 1, 1]} : vector<2x32x192xf32> to vector<2x24x64xf32>
    %62 = arith.addf %60, %61 : vector<2x24x64xf32>
    %c0_34 = arith.constant 0 : index
    %c0_35 = arith.constant 0 : index
    %c96 = arith.constant 96 : index
    %63 = vector.load %arg8[%c0_34, %c0_35, %c96] : memref<2x32x832xf32, #tpu.memory_space<vmem>>, vector<2x32x96xf32>
    %64 = arith.truncf %63 : vector<2x32x96xf32> to vector<2x32x96xbf16>
    %65 = vector.shape_cast %64 : vector<2x32x96xbf16> to vector<64x96xbf16>
    %cst_36 = arith.constant dense<0.000000e+00> : vector<64x192xf32>
    %66 = tpu.matmul %65, %15, %cst_36 {dimension_numbers = #tpu.dot_dimension_numbers<[1], [0], [0], [1], [0, 0, 1, 1], [], []>} : vector<64x96xbf16>, vector<96x192xbf16>, vector<64x192xf32> -> vector<64x192xf32>
    %67 = vector.shape_cast %66 : vector<64x192xf32> to vector<2x32x192xf32>
    %68 = vector.extract_strided_slice %67 {offsets = [0, 0, 0], sizes = [2, 24, 64], strides = [1, 1, 1]} : vector<2x32x192xf32> to vector<2x24x64xf32>
    %69 = vector.extract_strided_slice %67 {offsets = [0, 1, 64], sizes = [2, 24, 64], strides = [1, 1, 1]} : vector<2x32x192xf32> to vector<2x24x64xf32>
    %70 = arith.addf %68, %69 : vector<2x24x64xf32>
    %71 = vector.extract_strided_slice %67 {offsets = [0, 2, 128], sizes = [2, 24, 64], strides = [1, 1, 1]} : vector<2x32x192xf32> to vector<2x24x64xf32>
    %72 = arith.addf %70, %71 : vector<2x24x64xf32>
    %73 = arith.maximumf %62, %72 : vector<2x24x64xf32>
    %74 = vector.shape_cast %73 : vector<2x24x64xf32> to vector<48x64xf32>
    %75 = arith.truncf %74 : vector<48x64xf32> to vector<48x64xbf16>
    %cst_37 = arith.constant dense<0.000000e+00> : vector<48x64xf32>
    %76 = tpu.matmul %16, %75, %cst_37 {dimension_numbers = #tpu.dot_dimension_numbers<[1], [0], [0], [1], [0, 0, 1, 1], [], []>} : vector<48x48xbf16>, vector<48x64xbf16>, vector<48x64xf32> -> vector<48x64xf32>
    %77 = vector.extract_strided_slice %76 {offsets = [0, 0], sizes = [24, 64], strides = [1, 1]} : vector<48x64xf32> to vector<24x64xf32>
    %78 = vector.extract_strided_slice %76 {offsets = [24, 0], sizes = [24, 64], strides = [1, 1]} : vector<48x64xf32> to vector<24x64xf32>
    %79 = arith.maximumf %77, %78 : vector<24x64xf32>
    %80 = vector.broadcast %17 : vector<1x64xf32> to vector<24x64xf32>
    %81 = arith.addf %79, %80 : vector<24x64xf32>
    %cst_38 = arith.constant 0.000000e+00 : f32
    %82 = vector.broadcast %cst_38 : f32 to vector<24x64xf32>
    %83 = arith.maximumf %81, %82 : vector<24x64xf32>
    %84 = arith.truncf %83 : vector<24x64xf32> to vector<24x64xbf16>
    %c1 = arith.constant 1 : index
    %c0_39 = arith.constant 0 : index
    %c0_40 = arith.constant 0 : index
    %85 = vector.load %arg7[%c1, %c0_39, %c0_40] : memref<12x24x64xbf16, #tpu.memory_space<vmem>>, vector<1x24x64xbf16>
    %86 = vector.shape_cast %85 : vector<1x24x64xbf16> to vector<24x64xbf16>
    %87 = vector.shape_cast %84 : vector<24x64xbf16> to vector<1x24x64xbf16>
    tpu.vector_store %arg7[%c1, %c0_39, %c0_40], %87 {strides = array<i32>} : memref<12x24x64xbf16, #tpu.memory_space<vmem>>, vector<1x24x64xbf16>,
    %c0_41 = arith.constant 0 : index
    %c0_42 = arith.constant 0 : index
    %c128 = arith.constant 128 : index
    %88 = vector.load %arg8[%c0_41, %c0_42, %c128] : memref<2x32x832xf32, #tpu.memory_space<vmem>>, vector<2x32x96xf32>
    %89 = arith.truncf %88 : vector<2x32x96xf32> to vector<2x32x96xbf16>
    %90 = vector.shape_cast %89 : vector<2x32x96xbf16> to vector<64x96xbf16>
    %cst_43 = arith.constant dense<0.000000e+00> : vector<64x192xf32>
    %91 = tpu.matmul %90, %15, %cst_43 {dimension_numbers = #tpu.dot_dimension_numbers<[1], [0], [0], [1], [0, 0, 1, 1], [], []>} : vector<64x96xbf16>, vector<96x192xbf16>, vector<64x192xf32> -> vector<64x192xf32>
    %92 = vector.shape_cast %91 : vector<64x192xf32> to vector<2x32x192xf32>
    %93 = vector.extract_strided_slice %92 {offsets = [0, 0, 0], sizes = [2, 24, 64], strides = [1, 1, 1]} : vector<2x32x192xf32> to vector<2x24x64xf32>
    %94 = vector.extract_strided_slice %92 {offsets = [0, 1, 64], sizes = [2, 24, 64], strides = [1, 1, 1]} : vector<2x32x192xf32> to vector<2x24x64xf32>
    %95 = arith.addf %93, %94 : vector<2x24x64xf32>
    %96 = vector.extract_strided_slice %92 {offsets = [0, 2, 128], sizes = [2, 24, 64], strides = [1, 1, 1]} : vector<2x32x192xf32> to vector<2x24x64xf32>
    %97 = arith.addf %95, %96 : vector<2x24x64xf32>
    %c0_44 = arith.constant 0 : index
    %c0_45 = arith.constant 0 : index
    %c160 = arith.constant 160 : index
    %98 = vector.load %arg8[%c0_44, %c0_45, %c160] : memref<2x32x832xf32, #tpu.memory_space<vmem>>, vector<2x32x96xf32>
    %99 = arith.truncf %98 : vector<2x32x96xf32> to vector<2x32x96xbf16>
    %100 = vector.shape_cast %99 : vector<2x32x96xbf16> to vector<64x96xbf16>
    %cst_46 = arith.constant dense<0.000000e+00> : vector<64x192xf32>
    %101 = tpu.matmul %100, %15, %cst_46 {dimension_numbers = #tpu.dot_dimension_numbers<[1], [0], [0], [1], [0, 0, 1, 1], [], []>} : vector<64x96xbf16>, vector<96x192xbf16>, vector<64x192xf32> -> vector<64x192xf32>
    %102 = vector.shape_cast %101 : vector<64x192xf32> to vector<2x32x192xf32>
    %103 = vector.extract_strided_slice %102 {offsets = [0, 0, 0], sizes = [2, 24, 64], strides = [1, 1, 1]} : vector<2x32x192xf32> to vector<2x24x64xf32>
    %104 = vector.extract_strided_slice %102 {offsets = [0, 1, 64], sizes = [2, 24, 64], strides = [1, 1, 1]} : vector<2x32x192xf32> to vector<2x24x64xf32>
    %105 = arith.addf %103, %104 : vector<2x24x64xf32>
    %106 = vector.extract_strided_slice %102 {offsets = [0, 2, 128], sizes = [2, 24, 64], strides = [1, 1, 1]} : vector<2x32x192xf32> to vector<2x24x64xf32>
    %107 = arith.addf %105, %106 : vector<2x24x64xf32>
    %108 = arith.maximumf %97, %107 : vector<2x24x64xf32>
    %109 = vector.shape_cast %108 : vector<2x24x64xf32> to vector<48x64xf32>
    %110 = arith.truncf %109 : vector<48x64xf32> to vector<48x64xbf16>
    %cst_47 = arith.constant dense<0.000000e+00> : vector<48x64xf32>
    %111 = tpu.matmul %16, %110, %cst_47 {dimension_numbers = #tpu.dot_dimension_numbers<[1], [0], [0], [1], [0, 0, 1, 1], [], []>} : vector<48x48xbf16>, vector<48x64xbf16>, vector<48x64xf32> -> vector<48x64xf32>
    %112 = vector.extract_strided_slice %111 {offsets = [0, 0], sizes = [24, 64], strides = [1, 1]} : vector<48x64xf32> to vector<24x64xf32>
    %113 = vector.extract_strided_slice %111 {offsets = [24, 0], sizes = [24, 64], strides = [1, 1]} : vector<48x64xf32> to vector<24x64xf32>
    %114 = arith.maximumf %112, %113 : vector<24x64xf32>
    %115 = vector.broadcast %17 : vector<1x64xf32> to vector<24x64xf32>
    %116 = arith.addf %114, %115 : vector<24x64xf32>
    %cst_48 = arith.constant 0.000000e+00 : f32
    %117 = vector.broadcast %cst_48 : f32 to vector<24x64xf32>
    %118 = arith.maximumf %116, %117 : vector<24x64xf32>
    %119 = arith.truncf %118 : vector<24x64xf32> to vector<24x64xbf16>
    %c2 = arith.constant 2 : index
    %c0_49 = arith.constant 0 : index
    %c0_50 = arith.constant 0 : index
    %120 = vector.load %arg7[%c2, %c0_49, %c0_50] : memref<12x24x64xbf16, #tpu.memory_space<vmem>>, vector<1x24x64xbf16>
    %121 = vector.shape_cast %120 : vector<1x24x64xbf16> to vector<24x64xbf16>
    %122 = vector.shape_cast %119 : vector<24x64xbf16> to vector<1x24x64xbf16>
    tpu.vector_store %arg7[%c2, %c0_49, %c0_50], %122 {strides = array<i32>} : memref<12x24x64xbf16, #tpu.memory_space<vmem>>, vector<1x24x64xbf16>,
    %c0_51 = arith.constant 0 : index
    %c0_52 = arith.constant 0 : index
    %c192 = arith.constant 192 : index
    %123 = vector.load %arg8[%c0_51, %c0_52, %c192] : memref<2x32x832xf32, #tpu.memory_space<vmem>>, vector<2x32x96xf32>
    %124 = arith.truncf %123 : vector<2x32x96xf32> to vector<2x32x96xbf16>
    %125 = vector.shape_cast %124 : vector<2x32x96xbf16> to vector<64x96xbf16>
    %cst_53 = arith.constant dense<0.000000e+00> : vector<64x192xf32>
    %126 = tpu.matmul %125, %15, %cst_53 {dimension_numbers = #tpu.dot_dimension_numbers<[1], [0], [0], [1], [0, 0, 1, 1], [], []>} : vector<64x96xbf16>, vector<96x192xbf16>, vector<64x192xf32> -> vector<64x192xf32>
    %127 = vector.shape_cast %126 : vector<64x192xf32> to vector<2x32x192xf32>
    %128 = vector.extract_strided_slice %127 {offsets = [0, 0, 0], sizes = [2, 24, 64], strides = [1, 1, 1]} : vector<2x32x192xf32> to vector<2x24x64xf32>
    %129 = vector.extract_strided_slice %127 {offsets = [0, 1, 64], sizes = [2, 24, 64], strides = [1, 1, 1]} : vector<2x32x192xf32> to vector<2x24x64xf32>
    %130 = arith.addf %128, %129 : vector<2x24x64xf32>
    %131 = vector.extract_strided_slice %127 {offsets = [0, 2, 128], sizes = [2, 24, 64], strides = [1, 1, 1]} : vector<2x32x192xf32> to vector<2x24x64xf32>
    %132 = arith.addf %130, %131 : vector<2x24x64xf32>
    %c0_54 = arith.constant 0 : index
    %c0_55 = arith.constant 0 : index
    %c224 = arith.constant 224 : index
    %133 = vector.load %arg8[%c0_54, %c0_55, %c224] : memref<2x32x832xf32, #tpu.memory_space<vmem>>, vector<2x32x96xf32>
    %134 = arith.truncf %133 : vector<2x32x96xf32> to vector<2x32x96xbf16>
    %135 = vector.shape_cast %134 : vector<2x32x96xbf16> to vector<64x96xbf16>
    %cst_56 = arith.constant dense<0.000000e+00> : vector<64x192xf32>
    %136 = tpu.matmul %135, %15, %cst_56 {dimension_numbers = #tpu.dot_dimension_numbers<[1], [0], [0], [1], [0, 0, 1, 1], [], []>} : vector<64x96xbf16>, vector<96x192xbf16>, vector<64x192xf32> -> vector<64x192xf32>
    %137 = vector.shape_cast %136 : vector<64x192xf32> to vector<2x32x192xf32>
    %138 = vector.extract_strided_slice %137 {offsets = [0, 0, 0], sizes = [2, 24, 64], strides = [1, 1, 1]} : vector<2x32x192xf32> to vector<2x24x64xf32>
    %139 = vector.extract_strided_slice %137 {offsets = [0, 1, 64], sizes = [2, 24, 64], strides = [1, 1, 1]} : vector<2x32x192xf32> to vector<2x24x64xf32>
    %140 = arith.addf %138, %139 : vector<2x24x64xf32>
    %141 = vector.extract_strided_slice %137 {offsets = [0, 2, 128], sizes = [2, 24, 64], strides = [1, 1, 1]} : vector<2x32x192xf32> to vector<2x24x64xf32>
    %142 = arith.addf %140, %141 : vector<2x24x64xf32>
    %143 = arith.maximumf %132, %142 : vector<2x24x64xf32>
    %144 = vector.shape_cast %143 : vector<2x24x64xf32> to vector<48x64xf32>
    %145 = arith.truncf %144 : vector<48x64xf32> to vector<48x64xbf16>
    %cst_57 = arith.constant dense<0.000000e+00> : vector<48x64xf32>
    %146 = tpu.matmul %16, %145, %cst_57 {dimension_numbers = #tpu.dot_dimension_numbers<[1], [0], [0], [1], [0, 0, 1, 1], [], []>} : vector<48x48xbf16>, vector<48x64xbf16>, vector<48x64xf32> -> vector<48x64xf32>
    %147 = vector.extract_strided_slice %146 {offsets = [0, 0], sizes = [24, 64], strides = [1, 1]} : vector<48x64xf32> to vector<24x64xf32>
    %148 = vector.extract_strided_slice %146 {offsets = [24, 0], sizes = [24, 64], strides = [1, 1]} : vector<48x64xf32> to vector<24x64xf32>
    %149 = arith.maximumf %147, %148 : vector<24x64xf32>
    %150 = vector.broadcast %17 : vector<1x64xf32> to vector<24x64xf32>
    %151 = arith.addf %149, %150 : vector<24x64xf32>
    %cst_58 = arith.constant 0.000000e+00 : f32
    %152 = vector.broadcast %cst_58 : f32 to vector<24x64xf32>
    %153 = arith.maximumf %151, %152 : vector<24x64xf32>
    %154 = arith.truncf %153 : vector<24x64xf32> to vector<24x64xbf16>
    %c3 = arith.constant 3 : index
    %c0_59 = arith.constant 0 : index
    %c0_60 = arith.constant 0 : index
    %155 = vector.load %arg7[%c3, %c0_59, %c0_60] : memref<12x24x64xbf16, #tpu.memory_space<vmem>>, vector<1x24x64xbf16>
    %156 = vector.shape_cast %155 : vector<1x24x64xbf16> to vector<24x64xbf16>
    %157 = vector.shape_cast %154 : vector<24x64xbf16> to vector<1x24x64xbf16>
    tpu.vector_store %arg7[%c3, %c0_59, %c0_60], %157 {strides = array<i32>} : memref<12x24x64xbf16, #tpu.memory_space<vmem>>, vector<1x24x64xbf16>,
    %c0_61 = arith.constant 0 : index
    %c0_62 = arith.constant 0 : index
    %c256 = arith.constant 256 : index
    %158 = vector.load %arg8[%c0_61, %c0_62, %c256] : memref<2x32x832xf32, #tpu.memory_space<vmem>>, vector<2x32x96xf32>
    %159 = arith.truncf %158 : vector<2x32x96xf32> to vector<2x32x96xbf16>
    %160 = vector.shape_cast %159 : vector<2x32x96xbf16> to vector<64x96xbf16>
    %cst_63 = arith.constant dense<0.000000e+00> : vector<64x192xf32>
    %161 = tpu.matmul %160, %15, %cst_63 {dimension_numbers = #tpu.dot_dimension_numbers<[1], [0], [0], [1], [0, 0, 1, 1], [], []>} : vector<64x96xbf16>, vector<96x192xbf16>, vector<64x192xf32> -> vector<64x192xf32>
    %162 = vector.shape_cast %161 : vector<64x192xf32> to vector<2x32x192xf32>
    %163 = vector.extract_strided_slice %162 {offsets = [0, 0, 0], sizes = [2, 24, 64], strides = [1, 1, 1]} : vector<2x32x192xf32> to vector<2x24x64xf32>
    %164 = vector.extract_strided_slice %162 {offsets = [0, 1, 64], sizes = [2, 24, 64], strides = [1, 1, 1]} : vector<2x32x192xf32> to vector<2x24x64xf32>
    %165 = arith.addf %163, %164 : vector<2x24x64xf32>
    %166 = vector.extract_strided_slice %162 {offsets = [0, 2, 128], sizes = [2, 24, 64], strides = [1, 1, 1]} : vector<2x32x192xf32> to vector<2x24x64xf32>
    %167 = arith.addf %165, %166 : vector<2x24x64xf32>
    %c0_64 = arith.constant 0 : index
    %c0_65 = arith.constant 0 : index
    %c288 = arith.constant 288 : index
    %168 = vector.load %arg8[%c0_64, %c0_65, %c288] : memref<2x32x832xf32, #tpu.memory_space<vmem>>, vector<2x32x96xf32>
    %169 = arith.truncf %168 : vector<2x32x96xf32> to vector<2x32x96xbf16>
    %170 = vector.shape_cast %169 : vector<2x32x96xbf16> to vector<64x96xbf16>
    %cst_66 = arith.constant dense<0.000000e+00> : vector<64x192xf32>
    %171 = tpu.matmul %170, %15, %cst_66 {dimension_numbers = #tpu.dot_dimension_numbers<[1], [0], [0], [1], [0, 0, 1, 1], [], []>} : vector<64x96xbf16>, vector<96x192xbf16>, vector<64x192xf32> -> vector<64x192xf32>
    %172 = vector.shape_cast %171 : vector<64x192xf32> to vector<2x32x192xf32>
    %173 = vector.extract_strided_slice %172 {offsets = [0, 0, 0], sizes = [2, 24, 64], strides = [1, 1, 1]} : vector<2x32x192xf32> to vector<2x24x64xf32>
    %174 = vector.extract_strided_slice %172 {offsets = [0, 1, 64], sizes = [2, 24, 64], strides = [1, 1, 1]} : vector<2x32x192xf32> to vector<2x24x64xf32>
    %175 = arith.addf %173, %174 : vector<2x24x64xf32>
    %176 = vector.extract_strided_slice %172 {offsets = [0, 2, 128], sizes = [2, 24, 64], strides = [1, 1, 1]} : vector<2x32x192xf32> to vector<2x24x64xf32>
    %177 = arith.addf %175, %176 : vector<2x24x64xf32>
    %178 = arith.maximumf %167, %177 : vector<2x24x64xf32>
    %179 = vector.shape_cast %178 : vector<2x24x64xf32> to vector<48x64xf32>
    %180 = arith.truncf %179 : vector<48x64xf32> to vector<48x64xbf16>
    %cst_67 = arith.constant dense<0.000000e+00> : vector<48x64xf32>
    %181 = tpu.matmul %16, %180, %cst_67 {dimension_numbers = #tpu.dot_dimension_numbers<[1], [0], [0], [1], [0, 0, 1, 1], [], []>} : vector<48x48xbf16>, vector<48x64xbf16>, vector<48x64xf32> -> vector<48x64xf32>
    %182 = vector.extract_strided_slice %181 {offsets = [0, 0], sizes = [24, 64], strides = [1, 1]} : vector<48x64xf32> to vector<24x64xf32>
    %183 = vector.extract_strided_slice %181 {offsets = [24, 0], sizes = [24, 64], strides = [1, 1]} : vector<48x64xf32> to vector<24x64xf32>
    %184 = arith.maximumf %182, %183 : vector<24x64xf32>
    %185 = vector.broadcast %17 : vector<1x64xf32> to vector<24x64xf32>
    %186 = arith.addf %184, %185 : vector<24x64xf32>
    %cst_68 = arith.constant 0.000000e+00 : f32
    %187 = vector.broadcast %cst_68 : f32 to vector<24x64xf32>
    %188 = arith.maximumf %186, %187 : vector<24x64xf32>
    %189 = arith.truncf %188 : vector<24x64xf32> to vector<24x64xbf16>
    %c4 = arith.constant 4 : index
    %c0_69 = arith.constant 0 : index
    %c0_70 = arith.constant 0 : index
    %190 = vector.load %arg7[%c4, %c0_69, %c0_70] : memref<12x24x64xbf16, #tpu.memory_space<vmem>>, vector<1x24x64xbf16>
    %191 = vector.shape_cast %190 : vector<1x24x64xbf16> to vector<24x64xbf16>
    %192 = vector.shape_cast %189 : vector<24x64xbf16> to vector<1x24x64xbf16>
    tpu.vector_store %arg7[%c4, %c0_69, %c0_70], %192 {strides = array<i32>} : memref<12x24x64xbf16, #tpu.memory_space<vmem>>, vector<1x24x64xbf16>,
    %c0_71 = arith.constant 0 : index
    %c0_72 = arith.constant 0 : index
    %c320 = arith.constant 320 : index
    %193 = vector.load %arg8[%c0_71, %c0_72, %c320] : memref<2x32x832xf32, #tpu.memory_space<vmem>>, vector<2x32x96xf32>
    %194 = arith.truncf %193 : vector<2x32x96xf32> to vector<2x32x96xbf16>
    %195 = vector.shape_cast %194 : vector<2x32x96xbf16> to vector<64x96xbf16>
    %cst_73 = arith.constant dense<0.000000e+00> : vector<64x192xf32>
    %196 = tpu.matmul %195, %15, %cst_73 {dimension_numbers = #tpu.dot_dimension_numbers<[1], [0], [0], [1], [0, 0, 1, 1], [], []>} : vector<64x96xbf16>, vector<96x192xbf16>, vector<64x192xf32> -> vector<64x192xf32>
    %197 = vector.shape_cast %196 : vector<64x192xf32> to vector<2x32x192xf32>
    %198 = vector.extract_strided_slice %197 {offsets = [0, 0, 0], sizes = [2, 24, 64], strides = [1, 1, 1]} : vector<2x32x192xf32> to vector<2x24x64xf32>
    %199 = vector.extract_strided_slice %197 {offsets = [0, 1, 64], sizes = [2, 24, 64], strides = [1, 1, 1]} : vector<2x32x192xf32> to vector<2x24x64xf32>
    %200 = arith.addf %198, %199 : vector<2x24x64xf32>
    %201 = vector.extract_strided_slice %197 {offsets = [0, 2, 128], sizes = [2, 24, 64], strides = [1, 1, 1]} : vector<2x32x192xf32> to vector<2x24x64xf32>
    %202 = arith.addf %200, %201 : vector<2x24x64xf32>
    %c0_74 = arith.constant 0 : index
    %c0_75 = arith.constant 0 : index
    %c352 = arith.constant 352 : index
    %203 = vector.load %arg8[%c0_74, %c0_75, %c352] : memref<2x32x832xf32, #tpu.memory_space<vmem>>, vector<2x32x96xf32>
    %204 = arith.truncf %203 : vector<2x32x96xf32> to vector<2x32x96xbf16>
    %205 = vector.shape_cast %204 : vector<2x32x96xbf16> to vector<64x96xbf16>
    %cst_76 = arith.constant dense<0.000000e+00> : vector<64x192xf32>
    %206 = tpu.matmul %205, %15, %cst_76 {dimension_numbers = #tpu.dot_dimension_numbers<[1], [0], [0], [1], [0, 0, 1, 1], [], []>} : vector<64x96xbf16>, vector<96x192xbf16>, vector<64x192xf32> -> vector<64x192xf32>
    %207 = vector.shape_cast %206 : vector<64x192xf32> to vector<2x32x192xf32>
    %208 = vector.extract_strided_slice %207 {offsets = [0, 0, 0], sizes = [2, 24, 64], strides = [1, 1, 1]} : vector<2x32x192xf32> to vector<2x24x64xf32>
    %209 = vector.extract_strided_slice %207 {offsets = [0, 1, 64], sizes = [2, 24, 64], strides = [1, 1, 1]} : vector<2x32x192xf32> to vector<2x24x64xf32>
    %210 = arith.addf %208, %209 : vector<2x24x64xf32>
    %211 = vector.extract_strided_slice %207 {offsets = [0, 2, 128], sizes = [2, 24, 64], strides = [1, 1, 1]} : vector<2x32x192xf32> to vector<2x24x64xf32>
    %212 = arith.addf %210, %211 : vector<2x24x64xf32>
    %213 = arith.maximumf %202, %212 : vector<2x24x64xf32>
    %214 = vector.shape_cast %213 : vector<2x24x64xf32> to vector<48x64xf32>
    %215 = arith.truncf %214 : vector<48x64xf32> to vector<48x64xbf16>
    %cst_77 = arith.constant dense<0.000000e+00> : vector<48x64xf32>
    %216 = tpu.matmul %16, %215, %cst_77 {dimension_numbers = #tpu.dot_dimension_numbers<[1], [0], [0], [1], [0, 0, 1, 1], [], []>} : vector<48x48xbf16>, vector<48x64xbf16>, vector<48x64xf32> -> vector<48x64xf32>
    %217 = vector.extract_strided_slice %216 {offsets = [0, 0], sizes = [24, 64], strides = [1, 1]} : vector<48x64xf32> to vector<24x64xf32>
    %218 = vector.extract_strided_slice %216 {offsets = [24, 0], sizes = [24, 64], strides = [1, 1]} : vector<48x64xf32> to vector<24x64xf32>
    %219 = arith.maximumf %217, %218 : vector<24x64xf32>
    %220 = vector.broadcast %17 : vector<1x64xf32> to vector<24x64xf32>
    %221 = arith.addf %219, %220 : vector<24x64xf32>
    %cst_78 = arith.constant 0.000000e+00 : f32
    %222 = vector.broadcast %cst_78 : f32 to vector<24x64xf32>
    %223 = arith.maximumf %221, %222 : vector<24x64xf32>
    %224 = arith.truncf %223 : vector<24x64xf32> to vector<24x64xbf16>
    %c5 = arith.constant 5 : index
    %c0_79 = arith.constant 0 : index
    %c0_80 = arith.constant 0 : index
    %225 = vector.load %arg7[%c5, %c0_79, %c0_80] : memref<12x24x64xbf16, #tpu.memory_space<vmem>>, vector<1x24x64xbf16>
    %226 = vector.shape_cast %225 : vector<1x24x64xbf16> to vector<24x64xbf16>
    %227 = vector.shape_cast %224 : vector<24x64xbf16> to vector<1x24x64xbf16>
    tpu.vector_store %arg7[%c5, %c0_79, %c0_80], %227 {strides = array<i32>} : memref<12x24x64xbf16, #tpu.memory_space<vmem>>, vector<1x24x64xbf16>,
    %c0_81 = arith.constant 0 : index
    %c0_82 = arith.constant 0 : index
    %c384 = arith.constant 384 : index
    %228 = vector.load %arg8[%c0_81, %c0_82, %c384] : memref<2x32x832xf32, #tpu.memory_space<vmem>>, vector<2x32x96xf32>
    %229 = arith.truncf %228 : vector<2x32x96xf32> to vector<2x32x96xbf16>
    %230 = vector.shape_cast %229 : vector<2x32x96xbf16> to vector<64x96xbf16>
    %cst_83 = arith.constant dense<0.000000e+00> : vector<64x192xf32>
    %231 = tpu.matmul %230, %15, %cst_83 {dimension_numbers = #tpu.dot_dimension_numbers<[1], [0], [0], [1], [0, 0, 1, 1], [], []>} : vector<64x96xbf16>, vector<96x192xbf16>, vector<64x192xf32> -> vector<64x192xf32>
    %232 = vector.shape_cast %231 : vector<64x192xf32> to vector<2x32x192xf32>
    %233 = vector.extract_strided_slice %232 {offsets = [0, 0, 0], sizes = [2, 24, 64], strides = [1, 1, 1]} : vector<2x32x192xf32> to vector<2x24x64xf32>
    %234 = vector.extract_strided_slice %232 {offsets = [0, 1, 64], sizes = [2, 24, 64], strides = [1, 1, 1]} : vector<2x32x192xf32> to vector<2x24x64xf32>
    %235 = arith.addf %233, %234 : vector<2x24x64xf32>
    %236 = vector.extract_strided_slice %232 {offsets = [0, 2, 128], sizes = [2, 24, 64], strides = [1, 1, 1]} : vector<2x32x192xf32> to vector<2x24x64xf32>
    %237 = arith.addf %235, %236 : vector<2x24x64xf32>
    %c0_84 = arith.constant 0 : index
    %c0_85 = arith.constant 0 : index
    %c416 = arith.constant 416 : index
    %238 = vector.load %arg8[%c0_84, %c0_85, %c416] : memref<2x32x832xf32, #tpu.memory_space<vmem>>, vector<2x32x96xf32>
    %239 = arith.truncf %238 : vector<2x32x96xf32> to vector<2x32x96xbf16>
    %240 = vector.shape_cast %239 : vector<2x32x96xbf16> to vector<64x96xbf16>
    %cst_86 = arith.constant dense<0.000000e+00> : vector<64x192xf32>
    %241 = tpu.matmul %240, %15, %cst_86 {dimension_numbers = #tpu.dot_dimension_numbers<[1], [0], [0], [1], [0, 0, 1, 1], [], []>} : vector<64x96xbf16>, vector<96x192xbf16>, vector<64x192xf32> -> vector<64x192xf32>
    %242 = vector.shape_cast %241 : vector<64x192xf32> to vector<2x32x192xf32>
    %243 = vector.extract_strided_slice %242 {offsets = [0, 0, 0], sizes = [2, 24, 64], strides = [1, 1, 1]} : vector<2x32x192xf32> to vector<2x24x64xf32>
    %244 = vector.extract_strided_slice %242 {offsets = [0, 1, 64], sizes = [2, 24, 64], strides = [1, 1, 1]} : vector<2x32x192xf32> to vector<2x24x64xf32>
    %245 = arith.addf %243, %244 : vector<2x24x64xf32>
    %246 = vector.extract_strided_slice %242 {offsets = [0, 2, 128], sizes = [2, 24, 64], strides = [1, 1, 1]} : vector<2x32x192xf32> to vector<2x24x64xf32>
    %247 = arith.addf %245, %246 : vector<2x24x64xf32>
    %248 = arith.maximumf %237, %247 : vector<2x24x64xf32>
    %249 = vector.shape_cast %248 : vector<2x24x64xf32> to vector<48x64xf32>
    %250 = arith.truncf %249 : vector<48x64xf32> to vector<48x64xbf16>
    %cst_87 = arith.constant dense<0.000000e+00> : vector<48x64xf32>
    %251 = tpu.matmul %16, %250, %cst_87 {dimension_numbers = #tpu.dot_dimension_numbers<[1], [0], [0], [1], [0, 0, 1, 1], [], []>} : vector<48x48xbf16>, vector<48x64xbf16>, vector<48x64xf32> -> vector<48x64xf32>
    %252 = vector.extract_strided_slice %251 {offsets = [0, 0], sizes = [24, 64], strides = [1, 1]} : vector<48x64xf32> to vector<24x64xf32>
    %253 = vector.extract_strided_slice %251 {offsets = [24, 0], sizes = [24, 64], strides = [1, 1]} : vector<48x64xf32> to vector<24x64xf32>
    %254 = arith.maximumf %252, %253 : vector<24x64xf32>
    %255 = vector.broadcast %17 : vector<1x64xf32> to vector<24x64xf32>
    %256 = arith.addf %254, %255 : vector<24x64xf32>
    %cst_88 = arith.constant 0.000000e+00 : f32
    %257 = vector.broadcast %cst_88 : f32 to vector<24x64xf32>
    %258 = arith.maximumf %256, %257 : vector<24x64xf32>
    %259 = arith.truncf %258 : vector<24x64xf32> to vector<24x64xbf16>
    %c6 = arith.constant 6 : index
    %c0_89 = arith.constant 0 : index
    %c0_90 = arith.constant 0 : index
    %260 = vector.load %arg7[%c6, %c0_89, %c0_90] : memref<12x24x64xbf16, #tpu.memory_space<vmem>>, vector<1x24x64xbf16>
    %261 = vector.shape_cast %260 : vector<1x24x64xbf16> to vector<24x64xbf16>
    %262 = vector.shape_cast %259 : vector<24x64xbf16> to vector<1x24x64xbf16>
    tpu.vector_store %arg7[%c6, %c0_89, %c0_90], %262 {strides = array<i32>} : memref<12x24x64xbf16, #tpu.memory_space<vmem>>, vector<1x24x64xbf16>,
    %c0_91 = arith.constant 0 : index
    %c0_92 = arith.constant 0 : index
    %c448 = arith.constant 448 : index
    %263 = vector.load %arg8[%c0_91, %c0_92, %c448] : memref<2x32x832xf32, #tpu.memory_space<vmem>>, vector<2x32x96xf32>
    %264 = arith.truncf %263 : vector<2x32x96xf32> to vector<2x32x96xbf16>
    %265 = vector.shape_cast %264 : vector<2x32x96xbf16> to vector<64x96xbf16>
    %cst_93 = arith.constant dense<0.000000e+00> : vector<64x192xf32>
    %266 = tpu.matmul %265, %15, %cst_93 {dimension_numbers = #tpu.dot_dimension_numbers<[1], [0], [0], [1], [0, 0, 1, 1], [], []>} : vector<64x96xbf16>, vector<96x192xbf16>, vector<64x192xf32> -> vector<64x192xf32>
    %267 = vector.shape_cast %266 : vector<64x192xf32> to vector<2x32x192xf32>
    %268 = vector.extract_strided_slice %267 {offsets = [0, 0, 0], sizes = [2, 24, 64], strides = [1, 1, 1]} : vector<2x32x192xf32> to vector<2x24x64xf32>
    %269 = vector.extract_strided_slice %267 {offsets = [0, 1, 64], sizes = [2, 24, 64], strides = [1, 1, 1]} : vector<2x32x192xf32> to vector<2x24x64xf32>
    %270 = arith.addf %268, %269 : vector<2x24x64xf32>
    %271 = vector.extract_strided_slice %267 {offsets = [0, 2, 128], sizes = [2, 24, 64], strides = [1, 1, 1]} : vector<2x32x192xf32> to vector<2x24x64xf32>
    %272 = arith.addf %270, %271 : vector<2x24x64xf32>
    %c0_94 = arith.constant 0 : index
    %c0_95 = arith.constant 0 : index
    %c480 = arith.constant 480 : index
    %273 = vector.load %arg8[%c0_94, %c0_95, %c480] : memref<2x32x832xf32, #tpu.memory_space<vmem>>, vector<2x32x96xf32>
    %274 = arith.truncf %273 : vector<2x32x96xf32> to vector<2x32x96xbf16>
    %275 = vector.shape_cast %274 : vector<2x32x96xbf16> to vector<64x96xbf16>
    %cst_96 = arith.constant dense<0.000000e+00> : vector<64x192xf32>
    %276 = tpu.matmul %275, %15, %cst_96 {dimension_numbers = #tpu.dot_dimension_numbers<[1], [0], [0], [1], [0, 0, 1, 1], [], []>} : vector<64x96xbf16>, vector<96x192xbf16>, vector<64x192xf32> -> vector<64x192xf32>
    %277 = vector.shape_cast %276 : vector<64x192xf32> to vector<2x32x192xf32>
    %278 = vector.extract_strided_slice %277 {offsets = [0, 0, 0], sizes = [2, 24, 64], strides = [1, 1, 1]} : vector<2x32x192xf32> to vector<2x24x64xf32>
    %279 = vector.extract_strided_slice %277 {offsets = [0, 1, 64], sizes = [2, 24, 64], strides = [1, 1, 1]} : vector<2x32x192xf32> to vector<2x24x64xf32>
    %280 = arith.addf %278, %279 : vector<2x24x64xf32>
    %281 = vector.extract_strided_slice %277 {offsets = [0, 2, 128], sizes = [2, 24, 64], strides = [1, 1, 1]} : vector<2x32x192xf32> to vector<2x24x64xf32>
    %282 = arith.addf %280, %281 : vector<2x24x64xf32>
    %283 = arith.maximumf %272, %282 : vector<2x24x64xf32>
    %284 = vector.shape_cast %283 : vector<2x24x64xf32> to vector<48x64xf32>
    %285 = arith.truncf %284 : vector<48x64xf32> to vector<48x64xbf16>
    %cst_97 = arith.constant dense<0.000000e+00> : vector<48x64xf32>
    %286 = tpu.matmul %16, %285, %cst_97 {dimension_numbers = #tpu.dot_dimension_numbers<[1], [0], [0], [1], [0, 0, 1, 1], [], []>} : vector<48x48xbf16>, vector<48x64xbf16>, vector<48x64xf32> -> vector<48x64xf32>
    %287 = vector.extract_strided_slice %286 {offsets = [0, 0], sizes = [24, 64], strides = [1, 1]} : vector<48x64xf32> to vector<24x64xf32>
    %288 = vector.extract_strided_slice %286 {offsets = [24, 0], sizes = [24, 64], strides = [1, 1]} : vector<48x64xf32> to vector<24x64xf32>
    %289 = arith.maximumf %287, %288 : vector<24x64xf32>
    %290 = vector.broadcast %17 : vector<1x64xf32> to vector<24x64xf32>
    %291 = arith.addf %289, %290 : vector<24x64xf32>
    %cst_98 = arith.constant 0.000000e+00 : f32
    %292 = vector.broadcast %cst_98 : f32 to vector<24x64xf32>
    %293 = arith.maximumf %291, %292 : vector<24x64xf32>
    %294 = arith.truncf %293 : vector<24x64xf32> to vector<24x64xbf16>
    %c7 = arith.constant 7 : index
    %c0_99 = arith.constant 0 : index
    %c0_100 = arith.constant 0 : index
    %295 = vector.load %arg7[%c7, %c0_99, %c0_100] : memref<12x24x64xbf16, #tpu.memory_space<vmem>>, vector<1x24x64xbf16>
    %296 = vector.shape_cast %295 : vector<1x24x64xbf16> to vector<24x64xbf16>
    %297 = vector.shape_cast %294 : vector<24x64xbf16> to vector<1x24x64xbf16>
    tpu.vector_store %arg7[%c7, %c0_99, %c0_100], %297 {strides = array<i32>} : memref<12x24x64xbf16, #tpu.memory_space<vmem>>, vector<1x24x64xbf16>,
    %c0_101 = arith.constant 0 : index
    %c0_102 = arith.constant 0 : index
    %c512 = arith.constant 512 : index
    %298 = vector.load %arg8[%c0_101, %c0_102, %c512] : memref<2x32x832xf32, #tpu.memory_space<vmem>>, vector<2x32x96xf32>
    %299 = arith.truncf %298 : vector<2x32x96xf32> to vector<2x32x96xbf16>
    %300 = vector.shape_cast %299 : vector<2x32x96xbf16> to vector<64x96xbf16>
    %cst_103 = arith.constant dense<0.000000e+00> : vector<64x192xf32>
    %301 = tpu.matmul %300, %15, %cst_103 {dimension_numbers = #tpu.dot_dimension_numbers<[1], [0], [0], [1], [0, 0, 1, 1], [], []>} : vector<64x96xbf16>, vector<96x192xbf16>, vector<64x192xf32> -> vector<64x192xf32>
    %302 = vector.shape_cast %301 : vector<64x192xf32> to vector<2x32x192xf32>
    %303 = vector.extract_strided_slice %302 {offsets = [0, 0, 0], sizes = [2, 24, 64], strides = [1, 1, 1]} : vector<2x32x192xf32> to vector<2x24x64xf32>
    %304 = vector.extract_strided_slice %302 {offsets = [0, 1, 64], sizes = [2, 24, 64], strides = [1, 1, 1]} : vector<2x32x192xf32> to vector<2x24x64xf32>
    %305 = arith.addf %303, %304 : vector<2x24x64xf32>
    %306 = vector.extract_strided_slice %302 {offsets = [0, 2, 128], sizes = [2, 24, 64], strides = [1, 1, 1]} : vector<2x32x192xf32> to vector<2x24x64xf32>
    %307 = arith.addf %305, %306 : vector<2x24x64xf32>
    %c0_104 = arith.constant 0 : index
    %c0_105 = arith.constant 0 : index
    %c544 = arith.constant 544 : index
    %308 = vector.load %arg8[%c0_104, %c0_105, %c544] : memref<2x32x832xf32, #tpu.memory_space<vmem>>, vector<2x32x96xf32>
    %309 = arith.truncf %308 : vector<2x32x96xf32> to vector<2x32x96xbf16>
    %310 = vector.shape_cast %309 : vector<2x32x96xbf16> to vector<64x96xbf16>
    %cst_106 = arith.constant dense<0.000000e+00> : vector<64x192xf32>
    %311 = tpu.matmul %310, %15, %cst_106 {dimension_numbers = #tpu.dot_dimension_numbers<[1], [0], [0], [1], [0, 0, 1, 1], [], []>} : vector<64x96xbf16>, vector<96x192xbf16>, vector<64x192xf32> -> vector<64x192xf32>
    %312 = vector.shape_cast %311 : vector<64x192xf32> to vector<2x32x192xf32>
    %313 = vector.extract_strided_slice %312 {offsets = [0, 0, 0], sizes = [2, 24, 64], strides = [1, 1, 1]} : vector<2x32x192xf32> to vector<2x24x64xf32>
    %314 = vector.extract_strided_slice %312 {offsets = [0, 1, 64], sizes = [2, 24, 64], strides = [1, 1, 1]} : vector<2x32x192xf32> to vector<2x24x64xf32>
    %315 = arith.addf %313, %314 : vector<2x24x64xf32>
    %316 = vector.extract_strided_slice %312 {offsets = [0, 2, 128], sizes = [2, 24, 64], strides = [1, 1, 1]} : vector<2x32x192xf32> to vector<2x24x64xf32>
    %317 = arith.addf %315, %316 : vector<2x24x64xf32>
    %318 = arith.maximumf %307, %317 : vector<2x24x64xf32>
    %319 = vector.shape_cast %318 : vector<2x24x64xf32> to vector<48x64xf32>
    %320 = arith.truncf %319 : vector<48x64xf32> to vector<48x64xbf16>
    %cst_107 = arith.constant dense<0.000000e+00> : vector<48x64xf32>
    %321 = tpu.matmul %16, %320, %cst_107 {dimension_numbers = #tpu.dot_dimension_numbers<[1], [0], [0], [1], [0, 0, 1, 1], [], []>} : vector<48x48xbf16>, vector<48x64xbf16>, vector<48x64xf32> -> vector<48x64xf32>
    %322 = vector.extract_strided_slice %321 {offsets = [0, 0], sizes = [24, 64], strides = [1, 1]} : vector<48x64xf32> to vector<24x64xf32>
    %323 = vector.extract_strided_slice %321 {offsets = [24, 0], sizes = [24, 64], strides = [1, 1]} : vector<48x64xf32> to vector<24x64xf32>
    %324 = arith.maximumf %322, %323 : vector<24x64xf32>
    %325 = vector.broadcast %17 : vector<1x64xf32> to vector<24x64xf32>
    %326 = arith.addf %324, %325 : vector<24x64xf32>
    %cst_108 = arith.constant 0.000000e+00 : f32
    %327 = vector.broadcast %cst_108 : f32 to vector<24x64xf32>
    %328 = arith.maximumf %326, %327 : vector<24x64xf32>
    %329 = arith.truncf %328 : vector<24x64xf32> to vector<24x64xbf16>
    %c8 = arith.constant 8 : index
    %c0_109 = arith.constant 0 : index
    %c0_110 = arith.constant 0 : index
    %330 = vector.load %arg7[%c8, %c0_109, %c0_110] : memref<12x24x64xbf16, #tpu.memory_space<vmem>>, vector<1x24x64xbf16>
    %331 = vector.shape_cast %330 : vector<1x24x64xbf16> to vector<24x64xbf16>
    %332 = vector.shape_cast %329 : vector<24x64xbf16> to vector<1x24x64xbf16>
    tpu.vector_store %arg7[%c8, %c0_109, %c0_110], %332 {strides = array<i32>} : memref<12x24x64xbf16, #tpu.memory_space<vmem>>, vector<1x24x64xbf16>,
    %c0_111 = arith.constant 0 : index
    %c0_112 = arith.constant 0 : index
    %c576 = arith.constant 576 : index
    %333 = vector.load %arg8[%c0_111, %c0_112, %c576] : memref<2x32x832xf32, #tpu.memory_space<vmem>>, vector<2x32x96xf32>
    %334 = arith.truncf %333 : vector<2x32x96xf32> to vector<2x32x96xbf16>
    %335 = vector.shape_cast %334 : vector<2x32x96xbf16> to vector<64x96xbf16>
    %cst_113 = arith.constant dense<0.000000e+00> : vector<64x192xf32>
    %336 = tpu.matmul %335, %15, %cst_113 {dimension_numbers = #tpu.dot_dimension_numbers<[1], [0], [0], [1], [0, 0, 1, 1], [], []>} : vector<64x96xbf16>, vector<96x192xbf16>, vector<64x192xf32> -> vector<64x192xf32>
    %337 = vector.shape_cast %336 : vector<64x192xf32> to vector<2x32x192xf32>
    %338 = vector.extract_strided_slice %337 {offsets = [0, 0, 0], sizes = [2, 24, 64], strides = [1, 1, 1]} : vector<2x32x192xf32> to vector<2x24x64xf32>
    %339 = vector.extract_strided_slice %337 {offsets = [0, 1, 64], sizes = [2, 24, 64], strides = [1, 1, 1]} : vector<2x32x192xf32> to vector<2x24x64xf32>
    %340 = arith.addf %338, %339 : vector<2x24x64xf32>
    %341 = vector.extract_strided_slice %337 {offsets = [0, 2, 128], sizes = [2, 24, 64], strides = [1, 1, 1]} : vector<2x32x192xf32> to vector<2x24x64xf32>
    %342 = arith.addf %340, %341 : vector<2x24x64xf32>
    %c0_114 = arith.constant 0 : index
    %c0_115 = arith.constant 0 : index
    %c608 = arith.constant 608 : index
    %343 = vector.load %arg8[%c0_114, %c0_115, %c608] : memref<2x32x832xf32, #tpu.memory_space<vmem>>, vector<2x32x96xf32>
    %344 = arith.truncf %343 : vector<2x32x96xf32> to vector<2x32x96xbf16>
    %345 = vector.shape_cast %344 : vector<2x32x96xbf16> to vector<64x96xbf16>
    %cst_116 = arith.constant dense<0.000000e+00> : vector<64x192xf32>
    %346 = tpu.matmul %345, %15, %cst_116 {dimension_numbers = #tpu.dot_dimension_numbers<[1], [0], [0], [1], [0, 0, 1, 1], [], []>} : vector<64x96xbf16>, vector<96x192xbf16>, vector<64x192xf32> -> vector<64x192xf32>
    %347 = vector.shape_cast %346 : vector<64x192xf32> to vector<2x32x192xf32>
    %348 = vector.extract_strided_slice %347 {offsets = [0, 0, 0], sizes = [2, 24, 64], strides = [1, 1, 1]} : vector<2x32x192xf32> to vector<2x24x64xf32>
    %349 = vector.extract_strided_slice %347 {offsets = [0, 1, 64], sizes = [2, 24, 64], strides = [1, 1, 1]} : vector<2x32x192xf32> to vector<2x24x64xf32>
    %350 = arith.addf %348, %349 : vector<2x24x64xf32>
    %351 = vector.extract_strided_slice %347 {offsets = [0, 2, 128], sizes = [2, 24, 64], strides = [1, 1, 1]} : vector<2x32x192xf32> to vector<2x24x64xf32>
    %352 = arith.addf %350, %351 : vector<2x24x64xf32>
    %353 = arith.maximumf %342, %352 : vector<2x24x64xf32>
    %354 = vector.shape_cast %353 : vector<2x24x64xf32> to vector<48x64xf32>
    %355 = arith.truncf %354 : vector<48x64xf32> to vector<48x64xbf16>
    %cst_117 = arith.constant dense<0.000000e+00> : vector<48x64xf32>
    %356 = tpu.matmul %16, %355, %cst_117 {dimension_numbers = #tpu.dot_dimension_numbers<[1], [0], [0], [1], [0, 0, 1, 1], [], []>} : vector<48x48xbf16>, vector<48x64xbf16>, vector<48x64xf32> -> vector<48x64xf32>
    %357 = vector.extract_strided_slice %356 {offsets = [0, 0], sizes = [24, 64], strides = [1, 1]} : vector<48x64xf32> to vector<24x64xf32>
    %358 = vector.extract_strided_slice %356 {offsets = [24, 0], sizes = [24, 64], strides = [1, 1]} : vector<48x64xf32> to vector<24x64xf32>
    %359 = arith.maximumf %357, %358 : vector<24x64xf32>
    %360 = vector.broadcast %17 : vector<1x64xf32> to vector<24x64xf32>
    %361 = arith.addf %359, %360 : vector<24x64xf32>
    %cst_118 = arith.constant 0.000000e+00 : f32
    %362 = vector.broadcast %cst_118 : f32 to vector<24x64xf32>
    %363 = arith.maximumf %361, %362 : vector<24x64xf32>
    %364 = arith.truncf %363 : vector<24x64xf32> to vector<24x64xbf16>
    %c9 = arith.constant 9 : index
    %c0_119 = arith.constant 0 : index
    %c0_120 = arith.constant 0 : index
    %365 = vector.load %arg7[%c9, %c0_119, %c0_120] : memref<12x24x64xbf16, #tpu.memory_space<vmem>>, vector<1x24x64xbf16>
    %366 = vector.shape_cast %365 : vector<1x24x64xbf16> to vector<24x64xbf16>
    %367 = vector.shape_cast %364 : vector<24x64xbf16> to vector<1x24x64xbf16>
    tpu.vector_store %arg7[%c9, %c0_119, %c0_120], %367 {strides = array<i32>} : memref<12x24x64xbf16, #tpu.memory_space<vmem>>, vector<1x24x64xbf16>,
    %c0_121 = arith.constant 0 : index
    %c0_122 = arith.constant 0 : index
    %c640 = arith.constant 640 : index
    %368 = vector.load %arg8[%c0_121, %c0_122, %c640] : memref<2x32x832xf32, #tpu.memory_space<vmem>>, vector<2x32x96xf32>
    %369 = arith.truncf %368 : vector<2x32x96xf32> to vector<2x32x96xbf16>
    %370 = vector.shape_cast %369 : vector<2x32x96xbf16> to vector<64x96xbf16>
    %cst_123 = arith.constant dense<0.000000e+00> : vector<64x192xf32>
    %371 = tpu.matmul %370, %15, %cst_123 {dimension_numbers = #tpu.dot_dimension_numbers<[1], [0], [0], [1], [0, 0, 1, 1], [], []>} : vector<64x96xbf16>, vector<96x192xbf16>, vector<64x192xf32> -> vector<64x192xf32>
    %372 = vector.shape_cast %371 : vector<64x192xf32> to vector<2x32x192xf32>
    %373 = vector.extract_strided_slice %372 {offsets = [0, 0, 0], sizes = [2, 24, 64], strides = [1, 1, 1]} : vector<2x32x192xf32> to vector<2x24x64xf32>
    %374 = vector.extract_strided_slice %372 {offsets = [0, 1, 64], sizes = [2, 24, 64], strides = [1, 1, 1]} : vector<2x32x192xf32> to vector<2x24x64xf32>
    %375 = arith.addf %373, %374 : vector<2x24x64xf32>
    %376 = vector.extract_strided_slice %372 {offsets = [0, 2, 128], sizes = [2, 24, 64], strides = [1, 1, 1]} : vector<2x32x192xf32> to vector<2x24x64xf32>
    %377 = arith.addf %375, %376 : vector<2x24x64xf32>
    %c0_124 = arith.constant 0 : index
    %c0_125 = arith.constant 0 : index
    %c672 = arith.constant 672 : index
    %378 = vector.load %arg8[%c0_124, %c0_125, %c672] : memref<2x32x832xf32, #tpu.memory_space<vmem>>, vector<2x32x96xf32>
    %379 = arith.truncf %378 : vector<2x32x96xf32> to vector<2x32x96xbf16>
    %380 = vector.shape_cast %379 : vector<2x32x96xbf16> to vector<64x96xbf16>
    %cst_126 = arith.constant dense<0.000000e+00> : vector<64x192xf32>
    %381 = tpu.matmul %380, %15, %cst_126 {dimension_numbers = #tpu.dot_dimension_numbers<[1], [0], [0], [1], [0, 0, 1, 1], [], []>} : vector<64x96xbf16>, vector<96x192xbf16>, vector<64x192xf32> -> vector<64x192xf32>
    %382 = vector.shape_cast %381 : vector<64x192xf32> to vector<2x32x192xf32>
    %383 = vector.extract_strided_slice %382 {offsets = [0, 0, 0], sizes = [2, 24, 64], strides = [1, 1, 1]} : vector<2x32x192xf32> to vector<2x24x64xf32>
    %384 = vector.extract_strided_slice %382 {offsets = [0, 1, 64], sizes = [2, 24, 64], strides = [1, 1, 1]} : vector<2x32x192xf32> to vector<2x24x64xf32>
    %385 = arith.addf %383, %384 : vector<2x24x64xf32>
    %386 = vector.extract_strided_slice %382 {offsets = [0, 2, 128], sizes = [2, 24, 64], strides = [1, 1, 1]} : vector<2x32x192xf32> to vector<2x24x64xf32>
    %387 = arith.addf %385, %386 : vector<2x24x64xf32>
    %388 = arith.maximumf %377, %387 : vector<2x24x64xf32>
    %389 = vector.shape_cast %388 : vector<2x24x64xf32> to vector<48x64xf32>
    %390 = arith.truncf %389 : vector<48x64xf32> to vector<48x64xbf16>
    %cst_127 = arith.constant dense<0.000000e+00> : vector<48x64xf32>
    %391 = tpu.matmul %16, %390, %cst_127 {dimension_numbers = #tpu.dot_dimension_numbers<[1], [0], [0], [1], [0, 0, 1, 1], [], []>} : vector<48x48xbf16>, vector<48x64xbf16>, vector<48x64xf32> -> vector<48x64xf32>
    %392 = vector.extract_strided_slice %391 {offsets = [0, 0], sizes = [24, 64], strides = [1, 1]} : vector<48x64xf32> to vector<24x64xf32>
    %393 = vector.extract_strided_slice %391 {offsets = [24, 0], sizes = [24, 64], strides = [1, 1]} : vector<48x64xf32> to vector<24x64xf32>
    %394 = arith.maximumf %392, %393 : vector<24x64xf32>
    %395 = vector.broadcast %17 : vector<1x64xf32> to vector<24x64xf32>
    %396 = arith.addf %394, %395 : vector<24x64xf32>
    %cst_128 = arith.constant 0.000000e+00 : f32
    %397 = vector.broadcast %cst_128 : f32 to vector<24x64xf32>
    %398 = arith.maximumf %396, %397 : vector<24x64xf32>
    %399 = arith.truncf %398 : vector<24x64xf32> to vector<24x64xbf16>
    %c10 = arith.constant 10 : index
    %c0_129 = arith.constant 0 : index
    %c0_130 = arith.constant 0 : index
    %400 = vector.load %arg7[%c10, %c0_129, %c0_130] : memref<12x24x64xbf16, #tpu.memory_space<vmem>>, vector<1x24x64xbf16>
    %401 = vector.shape_cast %400 : vector<1x24x64xbf16> to vector<24x64xbf16>
    %402 = vector.shape_cast %399 : vector<24x64xbf16> to vector<1x24x64xbf16>
    tpu.vector_store %arg7[%c10, %c0_129, %c0_130], %402 {strides = array<i32>} : memref<12x24x64xbf16, #tpu.memory_space<vmem>>, vector<1x24x64xbf16>,
    %c0_131 = arith.constant 0 : index
    %c0_132 = arith.constant 0 : index
    %c704 = arith.constant 704 : index
    %403 = vector.load %arg8[%c0_131, %c0_132, %c704] : memref<2x32x832xf32, #tpu.memory_space<vmem>>, vector<2x32x96xf32>
    %404 = arith.truncf %403 : vector<2x32x96xf32> to vector<2x32x96xbf16>
    %405 = vector.shape_cast %404 : vector<2x32x96xbf16> to vector<64x96xbf16>
    %cst_133 = arith.constant dense<0.000000e+00> : vector<64x192xf32>
    %406 = tpu.matmul %405, %15, %cst_133 {dimension_numbers = #tpu.dot_dimension_numbers<[1], [0], [0], [1], [0, 0, 1, 1], [], []>} : vector<64x96xbf16>, vector<96x192xbf16>, vector<64x192xf32> -> vector<64x192xf32>
    %407 = vector.shape_cast %406 : vector<64x192xf32> to vector<2x32x192xf32>
    %408 = vector.extract_strided_slice %407 {offsets = [0, 0, 0], sizes = [2, 24, 64], strides = [1, 1, 1]} : vector<2x32x192xf32> to vector<2x24x64xf32>
    %409 = vector.extract_strided_slice %407 {offsets = [0, 1, 64], sizes = [2, 24, 64], strides = [1, 1, 1]} : vector<2x32x192xf32> to vector<2x24x64xf32>
    %410 = arith.addf %408, %409 : vector<2x24x64xf32>
    %411 = vector.extract_strided_slice %407 {offsets = [0, 2, 128], sizes = [2, 24, 64], strides = [1, 1, 1]} : vector<2x32x192xf32> to vector<2x24x64xf32>
    %412 = arith.addf %410, %411 : vector<2x24x64xf32>
    %c0_134 = arith.constant 0 : index
    %c0_135 = arith.constant 0 : index
    %c736 = arith.constant 736 : index
    %413 = vector.load %arg8[%c0_134, %c0_135, %c736] : memref<2x32x832xf32, #tpu.memory_space<vmem>>, vector<2x32x96xf32>
    %414 = arith.truncf %413 : vector<2x32x96xf32> to vector<2x32x96xbf16>
    %415 = vector.shape_cast %414 : vector<2x32x96xbf16> to vector<64x96xbf16>
    %cst_136 = arith.constant dense<0.000000e+00> : vector<64x192xf32>
    %416 = tpu.matmul %415, %15, %cst_136 {dimension_numbers = #tpu.dot_dimension_numbers<[1], [0], [0], [1], [0, 0, 1, 1], [], []>} : vector<64x96xbf16>, vector<96x192xbf16>, vector<64x192xf32> -> vector<64x192xf32>
    %417 = vector.shape_cast %416 : vector<64x192xf32> to vector<2x32x192xf32>
    %418 = vector.extract_strided_slice %417 {offsets = [0, 0, 0], sizes = [2, 24, 64], strides = [1, 1, 1]} : vector<2x32x192xf32> to vector<2x24x64xf32>
    %419 = vector.extract_strided_slice %417 {offsets = [0, 1, 64], sizes = [2, 24, 64], strides = [1, 1, 1]} : vector<2x32x192xf32> to vector<2x24x64xf32>
    %420 = arith.addf %418, %419 : vector<2x24x64xf32>
    %421 = vector.extract_strided_slice %417 {offsets = [0, 2, 128], sizes = [2, 24, 64], strides = [1, 1, 1]} : vector<2x32x192xf32> to vector<2x24x64xf32>
    %422 = arith.addf %420, %421 : vector<2x24x64xf32>
    %423 = arith.maximumf %412, %422 : vector<2x24x64xf32>
    %424 = vector.shape_cast %423 : vector<2x24x64xf32> to vector<48x64xf32>
    %425 = arith.truncf %424 : vector<48x64xf32> to vector<48x64xbf16>
    %cst_137 = arith.constant dense<0.000000e+00> : vector<48x64xf32>
    %426 = tpu.matmul %16, %425, %cst_137 {dimension_numbers = #tpu.dot_dimension_numbers<[1], [0], [0], [1], [0, 0, 1, 1], [], []>} : vector<48x48xbf16>, vector<48x64xbf16>, vector<48x64xf32> -> vector<48x64xf32>
    %427 = vector.extract_strided_slice %426 {offsets = [0, 0], sizes = [24, 64], strides = [1, 1]} : vector<48x64xf32> to vector<24x64xf32>
    %428 = vector.extract_strided_slice %426 {offsets = [24, 0], sizes = [24, 64], strides = [1, 1]} : vector<48x64xf32> to vector<24x64xf32>
    %429 = arith.maximumf %427, %428 : vector<24x64xf32>
    %430 = vector.broadcast %17 : vector<1x64xf32> to vector<24x64xf32>
    %431 = arith.addf %429, %430 : vector<24x64xf32>
    %cst_138 = arith.constant 0.000000e+00 : f32
    %432 = vector.broadcast %cst_138 : f32 to vector<24x64xf32>
    %433 = arith.maximumf %431, %432 : vector<24x64xf32>
    %434 = arith.truncf %433 : vector<24x64xf32> to vector<24x64xbf16>
    %c11 = arith.constant 11 : index
    %c0_139 = arith.constant 0 : index
    %c0_140 = arith.constant 0 : index
    %435 = vector.load %arg7[%c11, %c0_139, %c0_140] : memref<12x24x64xbf16, #tpu.memory_space<vmem>>, vector<1x24x64xbf16>
    %436 = vector.shape_cast %435 : vector<1x24x64xbf16> to vector<24x64xbf16>
    %437 = vector.shape_cast %434 : vector<24x64xbf16> to vector<1x24x64xbf16>
    tpu.vector_store %arg7[%c11, %c0_139, %c0_140], %437 {strides = array<i32>} : memref<12x24x64xbf16, #tpu.memory_space<vmem>>, vector<1x24x64xbf16>,
    return
  }
  func.func @transform_0(%arg0: i32) -> (i32, i32, i32) {
    %c0_i32 = arith.constant 0 : i32
    %c0_i32_0 = arith.constant 0 : i32
    %c0_i32_1 = arith.constant 0 : i32
    return %arg0, %c0_i32, %c0_i32_0 : i32, i32, i32
  }
  func.func @transform_1(%arg0: i32) -> (i32, i32) {
    %c0_i32 = arith.constant 0 : i32
    %c0_i32_0 = arith.constant 0 : i32
    %c0_i32_1 = arith.constant 0 : i32
    return %c0_i32, %c0_i32_0 : i32, i32
  }
  func.func @transform_2(%arg0: i32) -> (i32, i32) {
    %c0_i32 = arith.constant 0 : i32
    %c0_i32_0 = arith.constant 0 : i32
    %c0_i32_1 = arith.constant 0 : i32
    return %c0_i32, %c0_i32_0 : i32, i32
  }
  func.func @transform_3(%arg0: i32) -> (i32, i32) {
    %c0_i32 = arith.constant 0 : i32
    %c0_i32_0 = arith.constant 0 : i32
    %c0_i32_1 = arith.constant 0 : i32
    return %c0_i32, %c0_i32_0 : i32, i32
  }
  func.func @transform_4(%arg0: i32) -> (i32, i32) {
    %c0_i32 = arith.constant 0 : i32
    %c0_i32_0 = arith.constant 0 : i32
    %c0_i32_1 = arith.constant 0 : i32
    return %c0_i32, %c0_i32_0 : i32, i32
  }
  func.func @transform_5(%arg0: i32) -> (i32, i32) {
    %c0_i32 = arith.constant 0 : i32
    %c0_i32_0 = arith.constant 0 : i32
    %c0_i32_1 = arith.constant 0 : i32
    return %c0_i32, %c0_i32_0 : i32, i32
  }
  func.func @transform_6(%arg0: i32) -> (i32, i32, i32) {
    %c0_i32 = arith.constant 0 : i32
    %c0_i32_0 = arith.constant 0 : i32
    %c0_i32_1 = arith.constant 0 : i32
    return %c0_i32, %arg0, %c0_i32_0 : i32, i32, i32
  }
}

module attributes {stable_mosaic.version = 11 : i64} {
  func.func @_mlp_head_kernel(%arg0: i32, %arg1: memref<2x9216xbf16, #tpu.memory_space<vmem>>, %arg2: memref<9216x128xbf16, #tpu.memory_space<vmem>>, %arg3: memref<1x128xf32, #tpu.memory_space<vmem>>, %arg4: memref<128x10xbf16, #tpu.memory_space<vmem>>, %arg5: memref<1x10xf32, #tpu.memory_space<vmem>>, %arg6: memref<2x10xf32, #tpu.memory_space<vmem>>) attributes {dimension_semantics = [#tpu.dimension_semantics<parallel>], iteration_bounds = array<i64: 1>, scalar_prefetch = 0 : i64, scratch_operands = 0 : i64, tpu.core_type = #tpu.core_type<tc>, window_params = [{transform_indices = @transform_0, window_bounds = array<i64: 2, 9216>}, {pipeline_mode = #tpu.pipeline_mode<synchronous>, transform_indices = @transform_1, window_bounds = array<i64: 9216, 128>}, {pipeline_mode = #tpu.pipeline_mode<synchronous>, transform_indices = @transform_2, window_bounds = array<i64: 1, 128>}, {pipeline_mode = #tpu.pipeline_mode<synchronous>, transform_indices = @transform_3, window_bounds = array<i64: 128, 10>}, {pipeline_mode = #tpu.pipeline_mode<synchronous>, transform_indices = @transform_4, window_bounds = array<i64: 1, 10>}, {transform_indices = @transform_5, window_bounds = array<i64: 2, 10>}]} {
    %c0 = arith.constant 0 : index
    %c0_0 = arith.constant 0 : index
    %0 = vector.load %arg1[%c0, %c0_0] : memref<2x9216xbf16, #tpu.memory_space<vmem>>, vector<2x9216xbf16>
    %c0_1 = arith.constant 0 : index
    %c0_2 = arith.constant 0 : index
    %1 = vector.load %arg2[%c0_1, %c0_2] : memref<9216x128xbf16, #tpu.memory_space<vmem>>, vector<9216x128xbf16>
    %cst = arith.constant dense<0.000000e+00> : vector<2x128xf32>
    %2 = tpu.matmul %0, %1, %cst {dimension_numbers = #tpu.dot_dimension_numbers<[1], [0], [0], [1], [0, 0, 1, 1], [], []>} : vector<2x9216xbf16>, vector<9216x128xbf16>, vector<2x128xf32> -> vector<2x128xf32>
    %c0_3 = arith.constant 0 : index
    %c0_4 = arith.constant 0 : index
    %3 = vector.load %arg3[%c0_3, %c0_4] : memref<1x128xf32, #tpu.memory_space<vmem>>, vector<1x128xf32>
    %4 = vector.broadcast %3 : vector<1x128xf32> to vector<2x128xf32>
    %5 = arith.addf %2, %4 : vector<2x128xf32>
    %cst_5 = arith.constant 0.000000e+00 : f32
    %6 = vector.broadcast %cst_5 : f32 to vector<2x128xf32>
    %7 = arith.maximumf %5, %6 : vector<2x128xf32>
    %8 = arith.truncf %7 : vector<2x128xf32> to vector<2x128xbf16>
    %c0_6 = arith.constant 0 : index
    %c0_7 = arith.constant 0 : index
    %9 = vector.load %arg4[%c0_6, %c0_7] : memref<128x10xbf16, #tpu.memory_space<vmem>>, vector<128x10xbf16>
    %cst_8 = arith.constant dense<0.000000e+00> : vector<2x10xf32>
    %10 = tpu.matmul %8, %9, %cst_8 {dimension_numbers = #tpu.dot_dimension_numbers<[1], [0], [0], [1], [0, 0, 1, 1], [], []>} : vector<2x128xbf16>, vector<128x10xbf16>, vector<2x10xf32> -> vector<2x10xf32>
    %c0_9 = arith.constant 0 : index
    %c0_10 = arith.constant 0 : index
    %11 = vector.load %arg5[%c0_9, %c0_10] : memref<1x10xf32, #tpu.memory_space<vmem>>, vector<1x10xf32>
    %12 = vector.broadcast %11 : vector<1x10xf32> to vector<2x10xf32>
    %13 = arith.addf %10, %12 : vector<2x10xf32>
    %cst_11 = arith.constant 0.000000e+00 : f32
    %14 = vector.broadcast %cst_11 : f32 to vector<2x10xf32>
    %15 = arith.maximumf %13, %14 : vector<2x10xf32>
    %cst_12 = arith.constant dense<0xFF800000> : vector<2xf32>
    %16 = vector.multi_reduction <maximumf>, %15, %cst_12 [1] : vector<2x10xf32> to vector<2xf32>
    %17 = vector.shape_cast %16 : vector<2xf32> to vector<2x1xf32>
    %18 = vector.broadcast %17 : vector<2x1xf32> to vector<2x10xf32>
    %19 = arith.subf %15, %18 : vector<2x10xf32>
    %20 = math.exp %19 : vector<2x10xf32>
    %cst_13 = arith.constant dense<0.000000e+00> : vector<2xf32>
    %21 = vector.multi_reduction <add>, %20, %cst_13 [1] : vector<2x10xf32> to vector<2xf32>
    %22 = vector.shape_cast %21 : vector<2xf32> to vector<2x1xf32>
    %23 = math.log %22 : vector<2x1xf32>
    %24 = arith.addf %17, %23 : vector<2x1xf32>
    %25 = vector.broadcast %24 : vector<2x1xf32> to vector<2x10xf32>
    %26 = arith.subf %15, %25 : vector<2x10xf32>
    %c0_14 = arith.constant 0 : index
    %c0_15 = arith.constant 0 : index
    %27 = vector.load %arg6[%c0_14, %c0_15] : memref<2x10xf32, #tpu.memory_space<vmem>>, vector<2x10xf32>
    tpu.vector_store %arg6[%c0_14, %c0_15], %26 {strides = array<i32>} : memref<2x10xf32, #tpu.memory_space<vmem>>, vector<2x10xf32>,
    return
  }
  func.func @transform_0(%arg0: i32) -> (i32, i32) {
    %c0_i32 = arith.constant 0 : i32
    %c0_i32_0 = arith.constant 0 : i32
    return %arg0, %c0_i32 : i32, i32
  }
  func.func @transform_1(%arg0: i32) -> (i32, i32) {
    %c0_i32 = arith.constant 0 : i32
    %c0_i32_0 = arith.constant 0 : i32
    %c0_i32_1 = arith.constant 0 : i32
    return %c0_i32, %c0_i32_0 : i32, i32
  }
  func.func @transform_2(%arg0: i32) -> (i32, i32) {
    %c0_i32 = arith.constant 0 : i32
    %c0_i32_0 = arith.constant 0 : i32
    %c0_i32_1 = arith.constant 0 : i32
    return %c0_i32, %c0_i32_0 : i32, i32
  }
  func.func @transform_3(%arg0: i32) -> (i32, i32) {
    %c0_i32 = arith.constant 0 : i32
    %c0_i32_0 = arith.constant 0 : i32
    %c0_i32_1 = arith.constant 0 : i32
    return %c0_i32, %c0_i32_0 : i32, i32
  }
  func.func @transform_4(%arg0: i32) -> (i32, i32) {
    %c0_i32 = arith.constant 0 : i32
    %c0_i32_0 = arith.constant 0 : i32
    %c0_i32_1 = arith.constant 0 : i32
    return %c0_i32, %c0_i32_0 : i32, i32
  }
  func.func @transform_5(%arg0: i32) -> (i32, i32) {
    %c0_i32 = arith.constant 0 : i32
    %c0_i32_0 = arith.constant 0 : i32
    return %arg0, %c0_i32 : i32, i32
  }
}

</mosaic_0001>

<bundles_post_ra>
// kernel: net_forward.2
= control target key start
LH: loop header
LB: loop body
LE: loop exit
PB: predicated region body
PF: predicated region fallthrough
CT: control target
= control target key end

     0   :  { %11 = vsyncpa [#allocation4], 0  ;;  %s10828_s0 = inlined_call_operand.vmem [shape: bf16[2,32,84], index: 0, kind: input, shape index: {}]   ;;  %s10829_s1 = inlined_call_operand.hbm [shape: bf16[84,832], index: 1, kind: input, shape index: {}]   ;;  %s10830_s2 = inlined_call_operand.hbm [shape: f32[1,832], index: 2, kind: input, shape index: {}]   ;;  %s10831_s3 = inlined_call_operand.hbm [shape: bf16[96,192], index: 3, kind: input, shape index: {}]   ;;  %s10832_s4 = inlined_call_operand.hbm [shape: f32[1,64], index: 4, kind: input, shape index: {}]   ;;  %s10833_s5 = inlined_call_operand.vmem [shape: bf16[48,48], index: 5, kind: input, shape index: {}]   ;;  %s10834_s6 = inlined_call_operand.vmem [shape: bf16[12,24,64], index: 6, kind: output, shape index: {}]  }
   0x1   :  { %12 = vsyncpa [#allocation6], 0 }
   0x2   :  { %13 = vsyncpa [#allocation9], 0  ;;  %s7559_s21 = smov [#allocation5]   ;;  %s7560_s23 = smov [#allocation3]  }
   0x3   :  { %s34_s22 = sshll.u32 %s7559_s21, 4  ;;  %s21_s24 = sshll.u32 %s7560_s23, 4  ;;  %s35_s22 = int_to_ptr.vmem [resolvable:$true] %s34_s22  ;;  %s22_s24 = int_to_ptr.vmem [resolvable:$true] %s21_s24 }
   0x4   :  { %s7481_s25 = scalar_lea.vmem %s35_s22, 112  ;;  %s7485_s26 = scalar_lea.vmem %s35_s22, 128 }
   0x5   :  { %p7482_p0 = scmp.ne.s32.totalorder %s35_s22, %s7481_s25  ;;  %p7486_p1 = scmp.lt.s32.totalorder %s35_s22, %s35_s22 }
   0x6   :  { %p7487_p2 = scmp.lt.s32.totalorder %s7485_s26, %s7481_s25 }
   0x8   :  { %p7488_p3 = por %p7487_p2, %p7486_p1 }
   0xa   :  { %p7489_p4 = pnand %p7488_p3, %p7482_p0 }
   0xc   :  { %7492 = shalt.err (!%p7489_p4)
}
   0xd   :  { %37 = dma.hbm_to_vmem [thread:$0]  %s10830_s2, 112, %s35_s22, [#allocation6]  }
   0xe   :  { %s7501_s29 = scalar_lea.vmem %s22_s24, 4928  ;;  %p7506_p6 = scmp.lt.s32.totalorder %s22_s24, %s22_s24 }
   0xf   :  { %p7502_p5 = scmp.ne.s32.totalorder %s22_s24, %s7501_s29  ;;  %p7507_p7 = scmp.lt.s32.totalorder %s7501_s29, %s7501_s29 }
  0x11   :  { %p7508_p8 = por %p7507_p7, %p7506_p6 }
  0x13   :  { %p7509_p9 = pnand %p7508_p8, %p7502_p5 }
  0x15   :  { %7512 = shalt.err (!%p7509_p9)
}
  0x16   :  { %s7561_s30 = smov 448   ;;  %s7562_s7 = smov 28  }
  0x17   :  { %27 = dma.hbm_to_vmem [thread:$0]  %s10829_s1, 4928, %s22_s24, [#allocation4], %s7561_s30, %s7561_s30, %s7562_s7  }
  0x18   :  { %s7563_s10 = smov [#allocation7]  }
  0x19   :  { %s43_s11 = sshll.u32 %s7563_s10, 4  ;;  %s44_s11 = int_to_ptr.vmem [resolvable:$true] %s43_s11 }
  0x1a   :  { %s7521_s12 = scalar_lea.vmem %s44_s11, 1536  ;;  %p7526_p11 = scmp.lt.s32.totalorder %s44_s11, %s44_s11 }
  0x1b   :  { %p7522_p10 = scmp.ne.s32.totalorder %s44_s11, %s7521_s12  ;;  %p7527_p12 = scmp.lt.s32.totalorder %s7521_s12, %s7521_s12 }
  0x1d   :  { %p7528_p13 = por %p7527_p12, %p7526_p11 }
  0x1f   :  { %p7529_p0 = pnand %p7528_p13, %p7522_p10 }
  0x21   :  { %7532 = shalt.err (!%p7529_p0)
}
  0x22   :  { %s7564_s2 = smov 128   ;;  %s7565_s13 = smov 8  }
  0x23   :  { %49 = dma.hbm_to_vmem [thread:$0]  %s10831_s3, 1536, %s44_s11, [#allocation6], %s7564_s2, %s7564_s2, %s7565_s13  }
  0x24   :  { %s7566_s16 = smov [#allocation8]  }
  0x25   :  { %s56_s17 = sshll.u32 %s7566_s16, 4  ;;  %s57_s17 = int_to_ptr.vmem [resolvable:$true] %s56_s17 }
  0x26   :  { %s7541_s1 = scalar_lea.vmem %s57_s17, 16  ;;  %s7545_s18 = scalar_lea.vmem %s57_s17, 32 }
  0x27   :  { %p7542_p1 = scmp.ne.s32.totalorder %s57_s17, %s7541_s1  ;;  %p7546_p2 = scmp.lt.s32.totalorder %s57_s17, %s57_s17 }
  0x28   :  { %p7547_p3 = scmp.lt.s32.totalorder %s7545_s18, %s7541_s1 }
  0x2a   :  { %p7548_p4 = por %p7547_p3, %p7546_p2 }
  0x2c   :  { %p7549_p5 = pnand %p7548_p4, %p7542_p1 }
  0x2e   :  { %7552 = shalt.err (!%p7549_p5)
}
  0x2f   :  { %59 = dma.hbm_to_vmem [thread:$0]  %s10832_s4, 16, %s57_s17, [#allocation9]  }
  0x30   :  { %7553 = dma.done.wait [#allocation4], 4928  }
  0x31   :  { %7554 = vsyncadd [#allocation4], 4294962368 }
  0x32   :  { %7555 = dma.done.wait [#allocation6], 1648  }
  0x33   :  { %7556 = vsyncadd [#allocation6], 4294965648 }
  0x34   :  { %7557 = dma.done.wait [#allocation9], 16  }
  0x35   :  { %7558 = vsyncadd [#allocation9], 4294967280  ;;  %v10835_v0 = vmov 0   ;;  %v123_v1 = vld [vmem:[#allocation3 + $0x118] sm:$0x33]  ;;  %vm358_vm0 = vcmask 1041408  }
  0x36   :  { %412 = vmatprep.mubr.bf16.mxu0 %v10835_v0  ;;  %485 = vmatprep.mubr.bf16.mxu1 %v10835_v0  ;;  %v6688_v2 = vcombine.high %v123_v1, %v123_v1  ;;  %v6687_v3 = vcombine.low %v123_v1, %v123_v1  ;;  %v7301_v4 = vld [vmem:[#allocation3 + $0xe4] ss:$28 sps:$4 sm:$0xff]   ;;  %v7304_v7 = vld [vmem:[#allocation3 + $0xac] ss:$28 sps:$4 sm:$0xff]   ;;  %v7307_v9 = vld [vmem:[#allocation3 + $0x74] ss:$28 sps:$4 sm:$0xff]  }
  0x37   :  { %v7303_v6 = vld [vmem:[#allocation3 + $0xe0] ss:$28 sps:$4 sm:$0xff]   ;;  %v7306_v8 = vld [vmem:[#allocation3 + $0xa8] ss:$28 sps:$4 sm:$0xff]   ;;  %v7309_v11 = vld [vmem:[#allocation3 + $0x70] ss:$28 sps:$4 sm:$0xff]  }
  0x38   :  { %6694 = vmatprep.subr.msk.bf16.mxu0 %vm358_vm0, %v6688_v2  ;;  %v360_v5 = vsel %vm358_vm0, %v6687_v3, 0  ;;  %v124_v10 = vld [vmem:[#allocation3 + $0x120] sm:$0x33]  ;;  %v7322_v14 = vld [vmem:[#allocation3 + $0xec] ss:$28 sps:$4 sm:$0xff]   ;;  %vm345_vm1 = vcmask 687104  }
  0x39   :  { %385 = vmatpush1.bf16.msra.mxu0 %v360_v5  ;;  %v6690_v12 = vcombine.high %v124_v10, %v124_v10  ;;  %v6689_v13 = vcombine.low %v124_v10, %v124_v10  ;;  %v7310_v15 = vld [vmem:[#allocation3 + $0x3c] ss:$28 sps:$4 sm:$0xff]   ;;  %v7324_v17 = vld [vmem:[#allocation3 + $0xe8] ss:$28 sps:$4 sm:$0xff]   ;;  %v7325_v19 = vld [vmem:[#allocation3 + $0xb4] ss:$28 sps:$4 sm:$0xff]  }
  0x3a   :  { %386 = vmatprep.subr.bf16.mxu0 %v7301_v4  ;;  %v7312_v18 = vld [vmem:[#allocation3 + $0x38] ss:$28 sps:$4 sm:$0xff]   ;;  %v7313_v20 = vld [vmem:[#allocation3 + $0x4] ss:$28 sps:$4 sm:$0xff]   ;;  %v7327_v22 = vld [vmem:[#allocation3 + $0xb0] ss:$28 sps:$4 sm:$0xff]   ;;  %v666_v4 = vlaneseq }
  0x3b   :  { %6699 = vmatprep.subr.msk.bf16.mxu1 %vm358_vm0, %v6690_v12  ;;  %v366_v16 = vsel %vm358_vm0, %v6689_v13, 0  ;;  %v7315_v21 = vld [vmem:[#allocation3] ss:$28 sps:$4 sm:$0xff]   ;;  %v7330_v25 = vld [vmem:[#allocation3 + $0x78] ss:$28 sps:$4 sm:$0xff]   ;;  %v7637_v29 = vld [vmem:[%s10828_s0 + $0x8] sm:$0xff]  }
  0x3c   :  { %458 = vmatpush1.bf16.msra.mxu1 %v366_v16  ;;  %v7328_v23 = vld [vmem:[#allocation3 + $0x7c] ss:$28 sps:$4 sm:$0xff]   ;;  %v7629_v24 = vld [vmem:[%s10828_s0] sm:$0xff]   ;;  %v7334_v28 = vld [vmem:[#allocation3 + $0xc] ss:$28 sps:$4 sm:$0xff]   ;;  %v10837_v52 = vmov 0.0  }
  0x3d   :  { %387 = vmatpush1.bf16.msra.mxu0 %v7303_v6  ;;  %459 = vmatprep.subr.bf16.mxu1 %v7322_v14  ;;  %v7331_v26 = vld [vmem:[#allocation3 + $0x44] ss:$28 sps:$4 sm:$0xff]   ;;  %v7337_v31 = vld [vmem:[#allocation3 + $0x130] ss:$0 sps:$4 sm:$0x33]   ;;  %v7660_v37 = vld [vmem:[%s10828_s0 + $0x18] sm:$0xff]  }
  0x3e   :  { %388 = vmatprep.subr.bf16.mxu0 %v7304_v7  ;;  %v7333_v27 = vld [vmem:[#allocation3 + $0x40] ss:$28 sps:$4 sm:$0xff]   ;;  %v7336_v30 = vld [vmem:[#allocation3 + $0x8] ss:$28 sps:$4 sm:$0xff]   ;;  %v378_v32 = vsel %vm358_vm0, %v7337_v31, 0  ;;  %v7649_v34 = vld [vmem:[%s10828_s0 + $0x10] sm:$0xff]  }
  0x3f   :  { %v7338_v33 = vld [vmem:[#allocation3 + $0xf8] ss:$28 sps:$4 sm:$0xff]   ;;  %v7339_v35 = vld [vmem:[#allocation3 + $0xc0] ss:$28 sps:$4 sm:$0xff]   ;;  %v7340_v36 = vld [vmem:[#allocation3 + $0x88] ss:$28 sps:$4 sm:$0xff]  }
  0x40   :  { %460 = vmatpush1.bf16.msra.mxu1 %v7324_v17  ;;  %v7341_v38 = vld [vmem:[#allocation3 + $0x50] ss:$28 sps:$4 sm:$0xff]   ;;  %v7342_v39 = vld [vmem:[#allocation3 + $0x18] ss:$28 sps:$4 sm:$0xff]   ;;  %v7678_v42 = vld [vmem:[#allocation7 + $0x44] ss:$8 sps:$4 sm:$0xff]  }
  0x41   :  { %389 = vmatpush1.bf16.msra.mxu0 %v7306_v8  ;;  %461 = vmatprep.subr.bf16.mxu1 %v7325_v19  ;;  %v7669_v40 = vld [vmem:[#allocation7 + $0x54] ss:$8 sps:$4 sm:$0xff]   ;;  %v7676_v41 = vld [vmem:[#allocation7 + $0x50] ss:$8 sps:$4 sm:$0xff]   ;;  %v7689_v43 = vld [vmem:[#allocation7 + $0x40] ss:$8 sps:$4 sm:$0xff]  }
  0x42   :  { %390 = vmatprep.subr.bf16.mxu0 %v7307_v9  ;;  %v7692_v44 = vld [vmem:[#allocation7 + $0x34] ss:$8 sps:$4 sm:$0xff]   ;;  %v7694_v45 = vld [vmem:[#allocation7 + $0x30] ss:$8 sps:$4 sm:$0xff]   ;;  %v7698_v46 = vld [vmem:[#allocation7 + $0x24] ss:$8 sps:$4 sm:$0xff]  }
  0x43   :  { %v7700_v47 = vld [vmem:[#allocation7 + $0x20] ss:$8 sps:$4 sm:$0xff]   ;;  %v7704_v48 = vld [vmem:[#allocation7 + $0x14] ss:$8 sps:$4 sm:$0xff]   ;;  %v7706_v49 = vld [vmem:[#allocation7 + $0x10] ss:$8 sps:$4 sm:$0xff]  }
  0x44   :  { %462 = vmatpush1.bf16.msra.mxu1 %v7327_v22  ;;  %v7710_v50 = vld [vmem:[#allocation7 + $0x4] ss:$8 sps:$4 sm:$0xff]   ;;  %v7712_v51 = vld [vmem:[#allocation7] ss:$8 sps:$4 sm:$0xff]   ;;  %871 = vst [vmem:[#allocation2 + $0xa8] sm:$0xfc] %v10837_v52 }
  0x45   :  { %391 = vmatpush1.bf16.msra.mxu0 %v7309_v11  ;;  %463 = vmatprep.subr.bf16.mxu1 %v7328_v23  ;;  %872 = vst [vmem:[#allocation2 + $0xb0] sm:$0xfc] %v10837_v52  ;;  %873 = vst [vmem:[#allocation2 + $0xb8] sm:$0xfc] %v10837_v52  ;;  %v125_v53 = vld [vmem:[#allocation3 + $0x128] sm:$0x33] }
  0x46   :  { %392 = vmatprep.subr.bf16.mxu0 %v7310_v15  ;;  %874 = vst [vmem:[#allocation2 + $0xc0] sm:$0xfc] %v10837_v52  ;;  %875 = vst [vmem:[#allocation2 + $0xc8] sm:$0xfc] %v10837_v52  ;;  %v6692_v54 = vcombine.high %v125_v53, %v125_v53  ;;  %v6691_v55 = vcombine.low %v125_v53, %v125_v53  ;;  %v7365_v56 = vld [vmem:[#allocation3 + $0xf4] ss:$28 sps:$4 sm:$0xff]  }
  0x47   :  { %876 = vst [vmem:[#allocation2 + $0xd0] sm:$0xfc] %v10837_v52  ;;  %879 = vst [vmem:[#allocation2 + $0x188] sm:$0xfc] %v10837_v52  ;;  %v7363_v58 = vld [vmem:[#allocation3 + $0xf0] ss:$28 sps:$4 sm:$0xff]  }
  0x48   :  { %464 = vmatpush1.bf16.msra.mxu1 %v7330_v25  ;;  %880 = vst [vmem:[#allocation2 + $0x190] sm:$0xfc] %v10837_v52  ;;  %881 = vst [vmem:[#allocation2 + $0x198] sm:$0xfc] %v10837_v52  ;;  %v372_v57 = vsel %vm358_vm0, %v6691_v55, 0  ;;  %v7756_v5 = vshrl.u32 %v666_v4, 7 }
  0x49   :  { %393 = vmatpush1.bf16.msra.mxu0 %v7312_v18  ;;  %465 = vmatprep.subr.bf16.mxu1 %v7331_v26  ;;  %882 = vst [vmem:[#allocation2 + $0x1a0] sm:$0xfc] %v10837_v52  ;;  %883 = vst [vmem:[#allocation2 + $0x1a8] sm:$0xfc] %v10837_v52  ;;  %v7368_v59 = vld [vmem:[#allocation3 + $0xbc] ss:$28 sps:$4 sm:$0xff]  }
  0x4a   :  { %394 = vmatprep.subr.bf16.mxu0 %v7313_v20  ;;  %884 = vst [vmem:[#allocation2 + $0x1b0] sm:$0xfc] %v10837_v52  ;;  %v7366_v60 = vld [vmem:[#allocation3 + $0xb8] ss:$28 sps:$4 sm:$0xff]   ;;  %v7371_v61 = vld [vmem:[#allocation3 + $0x84] ss:$28 sps:$4 sm:$0xff]  }
  0x4b   :  { %v7369_v62 = vld [vmem:[#allocation3 + $0x80] ss:$28 sps:$4 sm:$0xff]   ;;  %v7374_v63 = vld [vmem:[#allocation3 + $0x4c] ss:$28 sps:$4 sm:$0xff]   ;;  %v7377_v2 = vld [vmem:[#allocation3 + $0x14] ss:$28 sps:$4 sm:$0xff]  }
  0x4c   :  { %466 = vmatpush1.bf16.msra.mxu1 %v7333_v27  ;;  %v7372_v1 = vld [vmem:[#allocation3 + $0x48] ss:$28 sps:$4 sm:$0xff]   ;;  %v7375_v3 = vld [vmem:[#allocation3 + $0x10] ss:$28 sps:$4 sm:$0xff]   ;;  %v668_v6 = vsub.s32 0, %v7756_v5  ;;  %v672_v8 = vsub.s32 1, %v7756_v5 }
  0x4d   :  { %395 = vmatpush1.bf16.msra.mxu0 %v7315_v21  ;;  %467 = vmatprep.subr.bf16.mxu1 %v7334_v28  ;;  %v7759_v7 = vld [vmem:[#allocation5] sm:$0x7f]  ;;  %vm977_vm2 = vcmask 785408   ;;  %s7569_s0 = smov 96   ;;  %vm819_vm3 = vcmask 523264   ;;  %vm841_vm4 = vcmask 517120  }
  0x4e   :  { %6704 = vmatprep.subr.msk.bf16.mxu0 %vm358_vm0, %v6692_v54  ;;  %v7763_v9 = vrot.slane %v7759_v7, %v668_v6  ;;  %v7766_v10 = vrot.slane %v7759_v7, %v672_v8  ;;  %vm877_vm5 = vcmask 523266   ;;  %vm1071_vm6 = vcmask 1046528   ;;  %s7570_s27 = smov 64   ;;  %s7572_s28 = smov 32  }
  0x4f   :  { %878 = vst.msk [vmem:[#allocation2 + $0xd8] sm:$0xfc] %vm877_vm5, %v10837_v52  ;;  %885 = vst.msk [vmem:[#allocation2 + $0x1b8] sm:$0xfc] %vm877_vm5, %v10837_v52  ;;  %vm7571_vm7 = vmmov 0   ;;  %vm1118_vm8 = vcmask 1045504  }
  0x50   :  { %6695 = vmatmul.mubr.msk.bf16.vlgmr.msra.gmra.mxu0 %vm345_vm1, %v7629_v24  ;;  %468 = vmatpush1.bf16.msra.mxu1 %v7336_v30  ;;  %vm1346_vm9 = vcmask 392192   ;;  %vm1679_vm10 = vcmask 261120   ;;  %vm1441_vm11 = vcmask 519168  }
  0x51   :  { %422 = vmatprep.mubr.bf16.mxu0 %v10835_v0  ;;  %7284 = vmatprep.subr.msk.bf16.mxu1 %vm358_vm0, %v7337_v31 }
  0x52   :  { %531 = vmatpush1.bf16.msra.mxu0 %v372_v57 }
  0x53   :  { %6700 = vmatmul.mubr.msk.bf16.vlgmr.msra.gmra.mxu1 %vm345_vm1, %v7629_v24  ;;  %532 = vmatprep.subr.bf16.mxu0 %v7365_v56 }
  0x54   :  { %495 = vmatprep.mubr.bf16.mxu1 %v10835_v0  ;;  %7049 = vmatpush3.bf16.msra.mxu1 %v378_v32 }
  0x55   :  { %7050 = vmatprep.subr.bf16.mxu1 %v7338_v33 }
  0x56   :  { %533 = vmatpush1.bf16.msra.mxu0 %v7363_v58 }
  0x57   :  { %534 = vmatprep.subr.bf16.mxu0 %v7368_v59 }
  0x58   :  { %6696 = vmatmul.mubr.msk.bf16.gmra.mxu0 %vm345_vm1, %v7637_v29  ;;  %7051 = vmatpush3.bf16.msra.mxu1 %v7338_v33 }
  0x59   :  { %432 = vmatprep.mubr.bf16.mxu0 %v10835_v0  ;;  %7052 = vmatprep.subr.bf16.mxu1 %v7339_v35 }
  0x5a   :  { %535 = vmatpush1.bf16.msra.mxu0 %v7366_v60 }
  0x5b   :  { %6701 = vmatmul.mubr.msk.bf16.gmra.mxu1 %vm345_vm1, %v7637_v29  ;;  %536 = vmatprep.subr.bf16.mxu0 %v7371_v61 }
  0x5c   :  { %505 = vmatprep.mubr.bf16.mxu1 %v10835_v0  ;;  %7053 = vmatpush3.bf16.msra.mxu1 %v7339_v35 }
  0x5d   :  { %7054 = vmatprep.subr.bf16.mxu1 %v7340_v36 }
  0x5e   :  { %537 = vmatpush1.bf16.msra.mxu0 %v7369_v62 }
  0x5f   :  { %538 = vmatprep.subr.bf16.mxu0 %v7374_v63 }
  0x60   :  { %6697 = vmatmul.mubr.msk.bf16.gmra.mxu0 %vm345_vm1, %v7649_v34  ;;  %7055 = vmatpush3.bf16.msra.mxu1 %v7340_v36 }
  0x61   :  { %442 = vmatprep.mubr.bf16.mxu0 %v10835_v0  ;;  %7056 = vmatprep.subr.bf16.mxu1 %v7341_v38 }
  0x62   :  { %539 = vmatpush1.bf16.msra.mxu0 %v7372_v1 }
  0x63   :  { %6702 = vmatmul.mubr.msk.bf16.gmra.mxu1 %vm345_vm1, %v7649_v34  ;;  %540 = vmatprep.subr.bf16.mxu0 %v7377_v2 }
  0x64   :  { %515 = vmatprep.mubr.bf16.mxu1 %v10835_v0  ;;  %7057 = vmatpush3.bf16.msra.mxu1 %v7341_v38 }
  0x65   :  { %7058 = vmatprep.subr.bf16.mxu1 %v7342_v39 }
  0x66   :  { %541 = vmatpush1.bf16.msra.mxu0 %v7375_v3 }
  0x67   :  { %1173 = vmatprep.subr.bf16.mxu0 %v7669_v40 }
  0x68   :  { %6698 = vmatmul.mubr.msk.bf16.gmra.mxu0 %vm345_vm1, %v7660_v37  ;;  %7059 = vmatpush3.bf16.msra.mxu1 %v7342_v39 }
  0x69   :  { %558 = vmatprep.mubr.bf16.mxu0 %v10835_v0  ;;  %994 = vmatprep.subr.bf16.mxu1 %v7669_v40 }
  0x6b   :  { %6703 = vmatmul.mubr.msk.bf16.gmra.mxu1 %vm345_vm1, %v7660_v37 }
  0x6c   :  { %7060 = vmatprep.mubr.msk.bf16.mxu1 %vm345_vm1, %v7629_v24 }
  0x70   :  { %6705 = vmatmul.mubr.msk.bf16.vlgmr.msra.gmra.mxu0 %vm345_vm1, %v7629_v24 }
  0x71   :  { %568 = vmatprep.mubr.bf16.mxu0 %v10835_v0  ;;  %1174 = vmatpush1.bf16.msra.mxu0 %v7676_v41 }
  0x72   :  { %1175 = vmatprep.subr.bf16.mxu0 %v7678_v42 }
  0x73   :  { %7061 = vmatmul.mubr.msk.bf16.vlgmr.msra.gmra.mxu1 %vm345_vm1, %v7637_v29 }
  0x74   :  { %995 = vmatpush1.bf16.msra.mxu1 %v7676_v41  ;;  %7064 = vmatprep.mubr.msk.bf16.mxu1 %vm345_vm1, %v7649_v34 }
  0x75   :  { %996 = vmatprep.subr.bf16.mxu1 %v7678_v42  ;;  %1176 = vmatpush1.bf16.msra.mxu0 %v7689_v43 }
  0x76   :  { %1177 = vmatprep.subr.bf16.mxu0 %v7692_v44 }
  0x78   :  { %997 = vmatpush1.bf16.msra.mxu1 %v7689_v43  ;;  %6706 = vmatmul.mubr.msk.bf16.gmra.mxu0 %vm345_vm1, %v7637_v29 }
  0x79   :  { %998 = vmatprep.subr.bf16.mxu1 %v7692_v44  ;;  %578 = vmatprep.mubr.bf16.mxu0 %v10835_v0 }
  0x7a   :  { %1178 = vmatpush1.bf16.msra.mxu0 %v7694_v45 }
  0x7b   :  { %7065 = vmatmul.mubr.msk.bf16.gmra.mxu1 %vm345_vm1, %v7660_v37  ;;  %1179 = vmatprep.subr.bf16.mxu0 %v7698_v46 }
  0x7c   :  { %1022 = vmatprep.mubr.bf16.mxu1 %v10835_v0  ;;  %999 = vmatpush1.bf16.msra.mxu1 %v7694_v45 }
  0x7d   :  { %1000 = vmatprep.subr.bf16.mxu1 %v7698_v46 }
  0x7e   :  { %1180 = vmatpush1.bf16.msra.mxu0 %v7700_v47 }
  0x7f   :  { %1181 = vmatprep.subr.bf16.mxu0 %v7704_v48 }
  0x80   :  { %1001 = vmatpush1.bf16.msra.mxu1 %v7700_v47  ;;  %6707 = vmatmul.mubr.msk.bf16.gmra.mxu0 %vm345_vm1, %v7649_v34 }
  0x81   :  { %1002 = vmatprep.subr.bf16.mxu1 %v7704_v48  ;;  %588 = vmatprep.mubr.bf16.mxu0 %v10835_v0 }
  0x82   :  { %1182 = vmatpush1.bf16.msra.mxu0 %v7706_v49 }
  0x83   :  { %1183 = vmatprep.subr.bf16.mxu0 %v7710_v50 }
  0x84   :  { %1003 = vmatpush1.bf16.msra.mxu1 %v7706_v49 }
  0x85   :  { %1004 = vmatprep.subr.bf16.mxu1 %v7710_v50 }
  0x86   :  { %1184 = vmatpush1.bf16.msra.mxu0 %v7712_v51 }
  0x87   :  { %1514 = vmatprep.subr.bf16.mxu0 %v7669_v40 }
  0x88   :  { %1005 = vmatpush1.bf16.msra.mxu1 %v7712_v51  ;;  %6708 = vmatmul.mubr.msk.bf16.gmra.mxu0 %vm345_vm1, %v7660_v37 }
  0x89   :  { %7068 = vmatprep.subr.bf16.mxu1 %v10837_v52  ;;  %1201 = vmatprep.mubr.bf16.mxu0 %v10835_v0 }
 0x110   :  { %v414_v11 = vpop.f32.mrf.mxu0 }
 0x111   :  { %v701_v12 = vadd.f32 %v7763_v9, %v414_v11 }
 0x112   :  { %v416_v13 = vpop.f32.mrf.mxu0 }
 0x113   :  { %v757_v14 = vmax.f32 %v701_v12, 0.0  ;;  %v702_v15 = vadd.f32 %v7766_v10, %v416_v13  ;;  %v487_v12 = vpop.f32.mrf.mxu1 }
 0x114   :  { %v418_v16 = vpop.f32.mrf.mxu0 }
 0x115   :  { %v758_v17 = vmax.f32 %v702_v15, 0.0  ;;  %v708_v18 = vadd.f32 %v7763_v9, %v418_v16  ;;  %v676_v16 = vsub.s32 2, %v7756_v5 }
 0x116   :  { %v420_v19 = vpop.f32.mrf.mxu0 }
 0x117   :  { %814 = vst [vmem:[#allocation2 + $0x8] sm:$0xff] %v758_v17  ;;  %v764_v20 = vmax.f32 %v708_v18, 0.0  ;;  %v709_v21 = vadd.f32 %v7766_v10, %v420_v19  ;;  %v680_v18 = vsub.s32 3, %v7756_v5 }
 0x118   :  { %v424_v22 = vpop.f32.mrf.mxu0 }
 0x119   :  { %v765_v23 = vmax.f32 %v709_v21, 0.0  ;;  %v715_v24 = vadd.f32 %v7763_v9, %v424_v22  ;;  %v7773_v25 = vpack.c.bf16 %v764_v20, %v757_v14  ;;  %v7819_v21 = vrot.slane %v7759_v7, %v676_v16 }
 0x11a   :  { %v426_v26 = vpop.f32.mrf.mxu0  ;;  %v7822_v22 = vrot.slane %v7759_v7, %v680_v18 }
 0x11b   :  { %822 = vst [vmem:[#allocation2 + $0x40] sm:$0xff] %v765_v23  ;;  %v771_v27 = vmax.f32 %v715_v24, 0.0  ;;  %v7776_v28 = vadd.f32 %v7766_v10, %v426_v26  ;;  %1149 = vrot.lane.b32.xlu0 %v7773_v25, %s7569_s0  ;;  %6725 = vmatmul.mubr.msk.bf16.vlgmr.msra.gmra.mxu1 %vm977_vm2, %v7773_v25  ;;  %v7782_v29 = vpack.c.bf16 %v765_v23, %v758_v17  ;;  %v489_v17 = vpop.f32.mrf.mxu1 }
 0x11c   :  { %v428_v30 = vpop.f32.mrf.mxu0  ;;  %1032 = vmatprep.mubr.bf16.mxu1 %v10835_v0  ;;  %v703_v24 = vadd.f32 %v7819_v21, %v487_v12  ;;  %v704_v26 = vadd.f32 %v7822_v22, %v489_v17 }
 0x11d   :  { %v772_v31 = vmax.f32 %v7776_v28, 0.0  ;;  %v722_v32 = vadd.f32 %v7763_v9, %v428_v30  ;;  %v491_v23 = vpop.f32.mrf.mxu1 }
 0x11e   :  { %v430_v33 = vpop.f32.mrf.mxu0 }
 0x11f   :  { %829 = vst [vmem:[#allocation2 + $0x78] sm:$0xff] %v772_v31  ;;  %v778_v34 = vmax.f32 %v722_v32, 0.0  ;;  %v723_v35 = vadd.f32 %v7766_v10, %v430_v33  ;;  %v493_v30 = vpop.f32.mrf.mxu1  ;;  %v759_v32 = vmax.f32 %v703_v24, 0.0  ;;  %v760_v33 = vmax.f32 %v704_v26, 0.0 }
 0x120   :  { %v434_v36 = vpop.f32.mrf.mxu0 }
 0x121   :  { %835 = vst [vmem:[#allocation2 + $0xa8] sm:$0x3] %v778_v34  ;;  %v779_v37 = vmax.f32 %v723_v35, 0.0  ;;  %v729_v38 = vadd.f32 %v7763_v9, %v434_v36  ;;  %v497_v35 = vpop.f32.mrf.mxu1  ;;  %815 = vst [vmem:[#allocation2 + $0x10] sm:$0xff] %v759_v32 }
 0x122   :  { %v436_v39 = vpop.f32.mrf.mxu0  ;;  %816 = vst [vmem:[#allocation2 + $0x18] sm:$0xff] %v760_v33 }
 0x123   :  { %836 = vst [vmem:[#allocation2 + $0xb0] sm:$0x3] %v779_v37  ;;  %v785_v40 = vmax.f32 %v729_v38, 0.0  ;;  %v730_v53 = vadd.f32 %v7766_v10, %v436_v39  ;;  %v717_v37 = vadd.f32 %v7819_v21, %v497_v35  ;;  %v499_v38 = vpop.f32.mrf.mxu1 }
 0x124   :  { %v438_v54 = vpop.f32.mrf.mxu0 }
 0x125   :  { %v786_v55 = vmax.f32 %v730_v53, 0.0  ;;  %v736_v56 = vadd.f32 %v7763_v9, %v438_v54  ;;  %v773_v39 = vmax.f32 %v717_v37, 0.0  ;;  %v501_v54 = vpop.f32.mrf.mxu1 }
 0x126   :  { %v440_v57 = vpop.f32.mrf.mxu0 }
 0x127   :  { %844 = vst [vmem:[#allocation2 + $0xe8] sm:$0xff] %v786_v55  ;;  %v792_v58 = vmax.f32 %v736_v56, 0.0  ;;  %v737_v59 = vadd.f32 %v7766_v10, %v440_v57  ;;  %830 = vst [vmem:[#allocation2 + $0x80] sm:$0xff] %v773_v39  ;;  %v724_v57 = vadd.f32 %v7819_v21, %v501_v54 }
 0x128   :  { %v444_v60 = vpop.f32.mrf.mxu0  ;;  %v908_v61 = vld [vmem:[#allocation2 + $0xa8] sm:$0xff] }
 0x129   :  { %v793_v62 = vmax.f32 %v737_v59, 0.0  ;;  %v743_v63 = vadd.f32 %v7763_v9, %v444_v60  ;;  %v7795_v1 = vpack.c.bf16 %v908_v61, %v771_v27  ;;  %v7797_v2 = vpack.c.bf16 %v792_v58, %v785_v40  ;;  %v503_v58 = vpop.f32.mrf.mxu1 }
 0x12a   :  { %v446_v3 = vpop.f32.mrf.mxu0  ;;  %v710_v27 = vadd.f32 %v7819_v21, %v491_v23  ;;  %v718_v40 = vadd.f32 %v7822_v22, %v499_v38  ;;  %v780_v59 = vmax.f32 %v724_v57, 0.0  ;;  %v725_v60 = vadd.f32 %v7822_v22, %v503_v58 }
 0x12b   :  { %851 = vst [vmem:[#allocation2 + $0x120] sm:$0xff] %v793_v62  ;;  %v799_v4 = vmax.f32 %v743_v63, 0.0  ;;  %v7800_v6 = vadd.f32 %v7766_v10, %v446_v3  ;;  %1151 = vrot.lane.b32.xlu0 %v7795_v1, %s7569_s0  ;;  %6726 = vmatmul.mubr.msk.bf16.gmra.mxu1 %vm977_vm2, %v7795_v1  ;;  %v7806_v8 = vpack.c.bf16 %v793_v62, %v786_v55  ;;  %v507_v61 = vpop.f32.mrf.mxu1 }
 0x12c   :  { %v448_v11 = vpop.f32.mrf.mxu0  ;;  %1042 = vmatprep.mubr.bf16.mxu1 %v10835_v0  ;;  %1153 = vrot.lane.b32.xlu1 %v7797_v2, %s7569_s0  ;;  %v766_v34 = vmax.f32 %v710_v27, 0.0  ;;  %v774_v56 = vmax.f32 %v718_v40, 0.0  ;;  %837 = vst [vmem:[#allocation2 + $0xb8] sm:$0x3] %v780_v59  ;;  %v781_v62 = vmax.f32 %v725_v60, 0.0  ;;  %v731_v63 = vadd.f32 %v7819_v21, %v507_v61 }
 0x12d   :  { %v800_v13 = vmax.f32 %v7800_v6, 0.0  ;;  %v750_v14 = vadd.f32 %v7763_v9, %v448_v11  ;;  %v509_v3 = vpop.f32.mrf.mxu1 }
 0x12e   :  { %v450_v15 = vpop.f32.mrf.mxu0  ;;  %823 = vst [vmem:[#allocation2 + $0x48] sm:$0xff] %v766_v34  ;;  %831 = vst [vmem:[#allocation2 + $0x88] sm:$0xff] %v774_v56  ;;  %v732_v11 = vadd.f32 %v7822_v22, %v509_v3 }
 0x12f   :  { %858 = vst [vmem:[#allocation2 + $0x158] sm:$0xff] %v800_v13  ;;  %v806_v19 = vmax.f32 %v750_v14, 0.0  ;;  %v751_v20 = vadd.f32 %v7766_v10, %v450_v15  ;;  %v711_v10 = vadd.f32 %v7822_v22, %v493_v30  ;;  %838 = vst [vmem:[#allocation2 + $0xc0] sm:$0x3] %v781_v62  ;;  %v511_v12 = vpop.f32.mrf.mxu1 }
 0x130   :  { %v788_v14 = vmax.f32 %v732_v11, 0.0  ;;  %v738_v15 = vadd.f32 %v7819_v21, %v511_v12 }
 0x131   :  { %864 = vst [vmem:[#allocation2 + $0x188] sm:$0x3] %v806_v19  ;;  %v807_v9 = vmax.f32 %v751_v20, 0.0  ;;  %v767_v36 = vmax.f32 %v711_v10, 0.0  ;;  %v513_v16 = vpop.f32.mrf.mxu1 }
 0x132   :  { %846 = vst [vmem:[#allocation2 + $0xf8] sm:$0xff] %v788_v14  ;;  %v794_v17 = vmax.f32 %v738_v15, 0.0  ;;  %v739_v18 = vadd.f32 %v7822_v22, %v513_v16 }
 0x133   :  { %865 = vst [vmem:[#allocation2 + $0x190] sm:$0x3] %v807_v9  ;;  %6727 = vmatmul.mubr.msk.bf16.gmra.mxu1 %vm977_vm2, %v7797_v2  ;;  %824 = vst [vmem:[#allocation2 + $0x50] sm:$0xff] %v767_v36  ;;  %v517_v19 = vpop.f32.mrf.mxu1  ;;  %v692_v9 = vsub.s32 6, %v7756_v5 }
 0x134   :  { %1052 = vmatprep.mubr.bf16.mxu1 %v10835_v0  ;;  %852 = vst [vmem:[#allocation2 + $0x128] sm:$0xff] %v794_v17  ;;  %v795_v20 = vmax.f32 %v739_v18, 0.0  ;;  %v745_v23 = vadd.f32 %v7819_v21, %v517_v19 }
 0x135   :  { %v519_v24 = vpop.f32.mrf.mxu1  ;;  %v693_v33 = vrot.slane %v7759_v7, %v692_v9 }
 0x136   :  { %853 = vst [vmem:[#allocation2 + $0x130] sm:$0xff] %v795_v20  ;;  %v801_v26 = vmax.f32 %v745_v23, 0.0  ;;  %v746_v27 = vadd.f32 %v7822_v22, %v519_v24  ;;  %v684_v20 = vsub.s32 4, %v7756_v5  ;;  %v688_v23 = vsub.s32 5, %v7756_v5 }
 0x137   :  { %v521_v30 = vpop.f32.mrf.mxu1 }
 0x138   :  { %v912_v53 = vld [vmem:[#allocation2 + $0x188] sm:$0xff]  ;;  %859 = vst [vmem:[#allocation2 + $0x160] sm:$0xff] %v801_v26  ;;  %v802_v10 = vmax.f32 %v746_v27, 0.0  ;;  %v752_v32 = vadd.f32 %v7819_v21, %v521_v30  ;;  %v7866_v9 = vrot.slane %v7759_v7, %v684_v20  ;;  %v7871_v24 = vrot.slane %v7759_v7, %v688_v23  ;;  %v560_v26 = vpop.f32.mrf.mxu0 }
 0x139   :  { %v7833_v55 = vpack.c.bf16 %v912_v53, %v799_v4  ;;  %v787_v4 = vmax.f32 %v731_v63, 0.0  ;;  %v523_v34 = vpop.f32.mrf.mxu1 }
 0x13a   :  { %860 = vst [vmem:[#allocation2 + $0x168] sm:$0xff] %v802_v10  ;;  %v808_v35 = vmax.f32 %v752_v32, 0.0  ;;  %v753_v36 = vadd.f32 %v7822_v22, %v523_v34  ;;  %v705_v27 = vadd.f32 %v7866_v9, %v560_v26 }
 0x13b   :  { %1155 = vrot.lane.b32.xlu1 %v7833_v55, %s7569_s0  ;;  %6728 = vmatmul.mubr.msk.bf16.gmra.mxu1 %vm977_vm2, %v7833_v55  ;;  %845 = vst [vmem:[#allocation2 + $0xf0] sm:$0xff] %v787_v4  ;;  %v7062_v37 = vpop.f32.mrf.mxu1 }
 0x13c   :  { %866 = vst [vmem:[#allocation2 + $0x198] sm:$0x3] %v808_v35  ;;  %v809_v38 = vmax.f32 %v753_v36, 0.0  ;;  %v721_v39 = vadd.f32 %v7062_v37, %v693_v33  ;;  %7074 = vmatprep.mubr.msk.bf16.mxu1 %vm7571_vm7, %v10837_v52 }
 0x13d   :  { %v633_v40 = vpop.f32.mrf.mxu1 }
 0x13e   :  { %867 = vst [vmem:[#allocation2 + $0x1a0] sm:$0x3] %v809_v38  ;;  %v777_v53 = vmax.f32 %v721_v39, 0.0  ;;  %v707_v54 = vadd.f32 %v693_v33, %v633_v40 }
 0x13f   :  { %v7063_v56 = vpop.f32.mrf.mxu1 }
 0x140   :  { %834 = vst.msk [vmem:[#allocation2 + $0xa0] sm:$0xff] %vm819_vm3, %v777_v53  ;;  %v763_v21 = vmax.f32 %v707_v54, 0.0  ;;  %v728_v57 = vadd.f32 %v7063_v56, %v693_v33 }
 0x141   :  { %v636_v58 = vpop.f32.mrf.mxu1 }
 0x142   :  { %820 = vst.msk [vmem:[#allocation2 + $0x30] sm:$0xff] %vm819_vm3, %v763_v21  ;;  %v784_v59 = vmax.f32 %v728_v57, 0.0  ;;  %v714_v22 = vadd.f32 %v693_v33, %v636_v58 }
 0x143   :  { %v7066_v60 = vpop.f32.mrf.mxu1 }
 0x144   :  { %842 = vst.msk [vmem:[#allocation2 + $0xd8] sm:$0x3] %vm841_vm4, %v784_v59  ;;  %v770_v61 = vmax.f32 %v714_v22, 0.0  ;;  %v749_v62 = vadd.f32 %v7066_v60, %v693_v33 }
 0x145   :  { %v649_v63 = vpop.f32.mrf.mxu1 }
 0x146   :  { %827 = vst.msk [vmem:[#allocation2 + $0x68] sm:$0xff] %vm819_vm3, %v770_v61  ;;  %v805_v3 = vmax.f32 %v749_v62, 0.0  ;;  %v735_v4 = vadd.f32 %v693_v33, %v649_v63 }
 0x147   :  { %v7067_v11 = vpop.f32.mrf.mxu1 }
 0x148   :  { %863 = vst.msk [vmem:[#allocation2 + $0x180] sm:$0xff] %vm819_vm3, %v805_v3  ;;  %v791_v12 = vmax.f32 %v735_v4, 0.0  ;;  %v756_v14 = vadd.f32 %v7067_v11, %v693_v33 }
 0x149   :  { %v652_v15 = vpop.f32.mrf.mxu1 }
 0x14a   :  { %849 = vst.msk [vmem:[#allocation2 + $0x110] sm:$0xff] %vm819_vm3, %v791_v12  ;;  %v812_v16 = vmax.f32 %v756_v14, 0.0  ;;  %v742_v17 = vadd.f32 %v693_v33, %v652_v15 }
 0x14c   :  { %870 = vst.msk [vmem:[#allocation2 + $0x1b8] sm:$0x3] %vm841_vm4, %v812_v16  ;;  %v798_v18 = vmax.f32 %v742_v17, 0.0 }
 0x14e   :  { %856 = vst.msk [vmem:[#allocation2 + $0x148] sm:$0xff] %vm819_vm3, %v798_v18 }
 0x18d   :  { %v1150_v19 = vpop.permute.xlu0 %1149 }
 0x18e   :  { %6729 = vmatmul.mubr.msk.bf16.vlgmr.msra.gmra.mxu0 %vm977_vm2, %v1150_v19 }
 0x18f   :  { %1211 = vmatprep.mubr.bf16.mxu0 %v10835_v0  ;;  %1515 = vmatpush1.bf16.msra.mxu0 %v7676_v41  ;;  %v562_v41 = vpop.f32.mrf.mxu0 }
 0x190   :  { %1516 = vmatprep.subr.bf16.mxu0 %v7678_v42  ;;  %v761_v42 = vmax.f32 %v705_v27, 0.0  ;;  %v706_v5 = vadd.f32 %v7871_v24, %v562_v41 }
 0x191   :  { %v564_v30 = vpop.f32.mrf.mxu0 }
 0x192   :  { %817 = vst [vmem:[#allocation2 + $0x20] sm:$0xff] %v761_v42  ;;  %v762_v10 = vmax.f32 %v706_v5, 0.0 }
 0x193   :  { %1517 = vmatpush1.bf16.msra.mxu0 %v7689_v43  ;;  %v712_v43 = vadd.f32 %v7866_v9, %v564_v30 }
 0x194   :  { %1518 = vmatprep.subr.bf16.mxu0 %v7692_v44  ;;  %v566_v44 = vpop.f32.mrf.mxu0  ;;  %818 = vst [vmem:[#allocation2 + $0x28] sm:$0xff] %v762_v10 }
 0x195   :  { %v768_v32 = vmax.f32 %v712_v43, 0.0 }
 0x197   :  { %1519 = vmatpush1.bf16.msra.mxu0 %v7694_v45  ;;  %v713_v45 = vadd.f32 %v7871_v24, %v566_v44  ;;  %825 = vst [vmem:[#allocation2 + $0x58] sm:$0xff] %v768_v32 }
 0x198   :  { %1520 = vmatprep.subr.bf16.mxu0 %v7698_v46  ;;  %v570_v46 = vpop.f32.mrf.mxu0 }
 0x199   :  { %v769_v33 = vmax.f32 %v713_v45, 0.0  ;;  %v719_v34 = vadd.f32 %v7866_v9, %v570_v46 }
 0x19b   :  { %1521 = vmatpush1.bf16.msra.mxu0 %v7700_v47  ;;  %v572_v47 = vpop.f32.mrf.mxu0  ;;  %826 = vst [vmem:[#allocation2 + $0x60] sm:$0xff] %v769_v33 }
 0x19c   :  { %1522 = vmatprep.subr.bf16.mxu0 %v7704_v48  ;;  %v775_v48 = vmax.f32 %v719_v34, 0.0  ;;  %v720_v35 = vadd.f32 %v7871_v24, %v572_v47 }
 0x19d   :  { %v1152_v7 = vpop.permute.xlu0 %1151  ;;  %v574_v36 = vpop.f32.mrf.mxu0 }
 0x19e   :  { %6730 = vmatmul.mubr.msk.bf16.gmra.mxu0 %vm977_vm2, %v1152_v7  ;;  %832 = vst [vmem:[#allocation2 + $0x90] sm:$0xff] %v775_v48  ;;  %v776_v37 = vmax.f32 %v720_v35, 0.0  ;;  %v726_v38 = vadd.f32 %v7866_v9, %v574_v36  ;;  %v1154_v40 = vpop.permute.xlu1 %1153 }
 0x19f   :  { %1221 = vmatprep.mubr.bf16.mxu0 %v10835_v0  ;;  %1523 = vmatpush1.bf16.msra.mxu0 %v7706_v49  ;;  %v576_v39 = vpop.f32.mrf.mxu0 }
 0x1a0   :  { %1524 = vmatprep.subr.bf16.mxu0 %v7710_v50  ;;  %833 = vst [vmem:[#allocation2 + $0x98] sm:$0xff] %v776_v37  ;;  %v782_v49 = vmax.f32 %v726_v38, 0.0  ;;  %v727_v53 = vadd.f32 %v7871_v24, %v576_v39 }
 0x1a1   :  { %v580_v50 = vpop.f32.mrf.mxu0 }
 0x1a2   :  { %839 = vst [vmem:[#allocation2 + $0xc8] sm:$0x3] %v782_v49  ;;  %v783_v54 = vmax.f32 %v727_v53, 0.0  ;;  %v733_v56 = vadd.f32 %v7866_v9, %v580_v50 }
 0x1a3   :  { %1525 = vmatpush1.bf16.msra.mxu0 %v7712_v51  ;;  %v582_v21 = vpop.f32.mrf.mxu0 }
 0x1a4   :  { %7086 = vmatprep.subr.bf16.mxu0 %v10837_v52  ;;  %840 = vst [vmem:[#allocation2 + $0xd0] sm:$0x3] %v783_v54  ;;  %v789_v51 = vmax.f32 %v733_v56, 0.0  ;;  %v734_v57 = vadd.f32 %v7871_v24, %v582_v21 }
 0x1a5   :  { %v584_v58 = vpop.f32.mrf.mxu0 }
 0x1a6   :  { %6731 = vmatmul.mubr.msk.bf16.gmra.mxu0 %vm977_vm2, %v1154_v40  ;;  %847 = vst [vmem:[#allocation2 + $0x100] sm:$0xff] %v789_v51  ;;  %v790_v59 = vmax.f32 %v734_v57, 0.0  ;;  %v740_v22 = vadd.f32 %v7866_v9, %v584_v58 }
 0x1a7   :  { %1231 = vmatprep.mubr.bf16.mxu0 %v10835_v0  ;;  %v586_v60 = vpop.f32.mrf.mxu0 }
 0x1a8   :  { %848 = vst [vmem:[#allocation2 + $0x108] sm:$0xff] %v790_v59  ;;  %v796_v62 = vmax.f32 %v740_v22, 0.0  ;;  %v741_v63 = vadd.f32 %v7871_v24, %v586_v60 }
 0x1a9   :  { %v590_v3 = vpop.f32.mrf.mxu0 }
 0x1aa   :  { %854 = vst [vmem:[#allocation2 + $0x138] sm:$0xff] %v796_v62  ;;  %v797_v4 = vmax.f32 %v741_v63, 0.0  ;;  %v747_v11 = vadd.f32 %v7866_v9, %v590_v3 }
 0x1ab   :  { %v592_v12 = vpop.f32.mrf.mxu0 }
 0x1ac   :  { %855 = vst [vmem:[#allocation2 + $0x140] sm:$0xff] %v797_v4  ;;  %v803_v14 = vmax.f32 %v747_v11, 0.0  ;;  %v748_v15 = vadd.f32 %v7871_v24, %v592_v12 }
 0x1ad   :  { %v1156_v61 = vpop.permute.xlu1 %1155  ;;  %v594_v16 = vpop.f32.mrf.mxu0 }
 0x1ae   :  { %6732 = vmatmul.mubr.msk.bf16.gmra.mxu0 %vm977_vm2, %v1156_v61  ;;  %861 = vst [vmem:[#allocation2 + $0x170] sm:$0xff] %v803_v14  ;;  %v804_v17 = vmax.f32 %v748_v15, 0.0  ;;  %v754_v18 = vadd.f32 %v7866_v9, %v594_v16 }
 0x1af   :  { %1542 = vmatprep.mubr.bf16.mxu0 %v10835_v0  ;;  %v596_v19 = vpop.f32.mrf.mxu0 }
 0x1b0   :  { %862 = vst [vmem:[#allocation2 + $0x178] sm:$0xff] %v804_v17  ;;  %v810_v20 = vmax.f32 %v754_v18, 0.0  ;;  %v755_v23 = vadd.f32 %v7871_v24, %v596_v19 }
 0x1b2   :  { %868 = vst [vmem:[#allocation2 + $0x1a8] sm:$0x3] %v810_v20  ;;  %v811_v26 = vmax.f32 %v755_v23, 0.0 }
 0x1b4   :  { %869 = vst [vmem:[#allocation2 + $0x1b0] sm:$0x3] %v811_v26 }
 0x1db   :  { %v7905_v27 = vpop.f32.mrf.mxu1 }
 0x1dc   :  { %v1072_v20 = vrot.slane %v7905_v27, 1 }
 0x1dd   :  { %v7907_v41 = vpop.f32.mrf.mxu1 }
 0x1df   :  { %v7909_v42 = vpop.f32.mrf.mxu1 }
 0x1e0   :  { %v1073_v17 = vrot.slane %v7909_v42, 1 }
 0x1e1   :  { %v7911_v9 = vpop.f32.mrf.mxu1 }
 0x1eb   :  { %v7913_v5 = vpop.f32.mrf.mxu1 }
 0x1ec   :  { %v1075_v10 = vrot.slane %v7913_v5, 1 }
 0x1ed   :  { %v7915_v30 = vpop.f32.mrf.mxu1 }
 0x1ef   :  { %v1038_v24 = vpop.f32.mrf.mxu1 }
 0x1f0   :  { %v1077_v43 = vrot.slane %v1038_v24, 1  ;;  %v1074_v24 = vsel %vm1071_vm6, %v1072_v20, %v1073_v17 }
 0x1f1   :  { %v7918_v44 = vpop.f32.mrf.mxu1 }
 0x1f2   :  { %v1078_v7 = vsel %vm1071_vm6, %v1075_v10, %v1077_v43 }
 0x1f3   :  { %1090 = vrot.lane.b32.xlu0 %v1078_v7, %s7570_s27  ;;  %v7922_v32 = vpop.f32.mrf.mxu1 }
 0x1f4   :  { %v1079_v33 = vrot.slane %v7922_v32, 1 }
 0x1f5   :  { %v7924_v45 = vpop.f32.mrf.mxu1 }
 0x1f7   :  { %v7926_v46 = vpop.f32.mrf.mxu1 }
 0x1f8   :  { %v1080_v34 = vrot.slane %v7926_v46, 1 }
 0x1f9   :  { %v7930_v47 = vpop.f32.mrf.mxu1 }
 0x1fa   :  { %v1081_v48 = vsel %vm1071_vm6, %v1079_v33, %v1080_v34 }
 0x1fb   :  { %1092 = vrot.lane.b32.xlu1 %v1081_v48, %s7570_s27  ;;  %v7934_v35 = vpop.f32.mrf.mxu1 }
 0x1fc   :  { %v1082_v36 = vrot.slane %v7934_v35, 1 }
 0x1fd   :  { %v7937_v37 = vpop.f32.mrf.mxu1 }
 0x1fe   :  { %v1083_v38 = vsel %vm1071_vm6, %v1080_v34, %v1082_v36  ;;  %v1076_v34 = vsel %vm1071_vm6, %v1073_v17, %v1075_v10  ;;  %v8001_v10 = vld [vmem:[#allocation2 + $0xb0] sm:$0xff] }
 0x1ff   :  { %1094 = vrot.lane.b32.xlu0 %v1083_v38, %s7570_s27  ;;  %v1058_v39 = vpop.f32.mrf.mxu1 }
 0x200   :  { %v1084_v40 = vrot.slane %v1058_v39, 1 }
 0x202   :  { %v1085_v49 = vsel %vm1071_vm6, %v1082_v36, %v1084_v40  ;;  %v1464_v36 = vpack.c.bf16 %v8001_v10, %v772_v31 }
 0x203   :  { %1096 = vrot.lane.b32.xlu1 %v1085_v49, %s7570_s27 }
 0x24e   :  { %v7943_v53 = vpop.f32.mrf.mxu0 }
 0x24f   :  { %v1250_v7 = vrot.slane %v7943_v53, 1 }
 0x250   :  { %v7945_v50 = vpop.f32.mrf.mxu0 }
 0x252   :  { %v7947_v54 = vpop.f32.mrf.mxu0 }
 0x253   :  { %v1251_v26 = vrot.slane %v7947_v54, 1 }
 0x254   :  { %v7949_v56 = vpop.f32.mrf.mxu0 }
 0x255   :  { %v1252_v33 = vsel %vm1071_vm6, %v1250_v7, %v1251_v26 }
 0x25e   :  { %v7951_v21 = vpop.f32.mrf.mxu0 }
 0x25f   :  { %v1253_v58 = vrot.slane %v7951_v21, 1 }
 0x260   :  { %v7953_v51 = vpop.f32.mrf.mxu0 }
 0x261   :  { %v1254_v48 = vsel %vm1071_vm6, %v1251_v26, %v1253_v58  ;;  %v1299_v6 = vrot.slane %v7953_v51, 2 }
 0x262   :  { %v1217_v57 = vpop.f32.mrf.mxu0 }
 0x263   :  { %v1255_v59 = vrot.slane %v1217_v57, 1 }
 0x264   :  { %v7956_v22 = vpop.f32.mrf.mxu0 }
 0x265   :  { %v1256_v60 = vsel %vm1071_vm6, %v1253_v58, %v1255_v59  ;;  %v1127_v59 = vrot.slane %v7930_v47, 2  ;;  %v1060_v47 = vpop.f32.mrf.mxu1 }
 0x266   :  { %1268 = vrot.lane.b32.xlu0 %v1256_v60, %s7570_s27  ;;  %v7960_v61 = vpop.f32.mrf.mxu0 }
 0x267   :  { %v1257_v3 = vrot.slane %v7960_v61, 1 }
 0x268   :  { %v7962_v62 = vpop.f32.mrf.mxu0 }
 0x26a   :  { %v7964_v63 = vpop.f32.mrf.mxu0 }
 0x26b   :  { %v1258_v4 = vrot.slane %v7964_v63, 1 }
 0x26c   :  { %v7968_v11 = vpop.f32.mrf.mxu0 }
 0x26d   :  { %v1259_v12 = vsel %vm1071_vm6, %v1257_v3, %v1258_v4  ;;  %v1303_v3 = vrot.slane %v7962_v62, 2 }
 0x26e   :  { %1270 = vrot.lane.b32.xlu1 %v1259_v12, %s7570_s27  ;;  %v7972_v14 = vpop.f32.mrf.mxu0 }
 0x26f   :  { %v1260_v15 = vrot.slane %v7972_v14, 1 }
 0x270   :  { %v7975_v16 = vpop.f32.mrf.mxu0 }
 0x271   :  { %v1261_v18 = vsel %vm1071_vm6, %v1258_v4, %v1260_v15 }
 0x272   :  { %1272 = vrot.lane.b32.xlu0 %v1261_v18, %s7570_s27  ;;  %v1237_v19 = vpop.f32.mrf.mxu0  ;;  %v1306_v18 = vrot.slane %v7975_v16, 2 }
 0x273   :  { %v1262_v23 = vrot.slane %v1237_v19, 1 }
 0x275   :  { %v1263_v43 = vsel %vm1071_vm6, %v1260_v15, %v1262_v23  ;;  %v1129_v15 = vrot.slane %v7937_v37, 2 }
 0x276   :  { %1086 = vrot.lane.b32.xlu0 %v1074_v24, %s7570_s27  ;;  %1274 = vrot.lane.b32.xlu1 %v1263_v43, %s7570_s27  ;;  %v1131_v24 = vrot.slane %v1060_v47, 2  ;;  %v8103_v47 = vld [vmem:[#allocation7 + $0x44] ss:$8 sps:$4 sm:$0xff]  }
 0x27a   :  { %1264 = vrot.lane.b32.xlu0 %v1252_v33, %s7570_s27  ;;  %1088 = vrot.lane.b32.xlu1 %v1076_v34, %s7570_s27 }
 0x27e   :  { %1477 = vrot.lane.b32.xlu0 %v7773_v25, %s7570_s27  ;;  %1266 = vrot.lane.b32.xlu1 %v1254_v48, %s7570_s27 }
 0x282   :  { %1663 = vrot.lane.b32.xlu0 %v7773_v25, %s7572_s28  ;;  %1479 = vrot.lane.b32.xlu1 %v7782_v29, %s7570_s27  ;;  %v8020_v25 = vld [vmem:[#allocation2 + $0x190] sm:$0xff] }
 0x283   :  { %v1468_v28 = vpack.c.bf16 %v8020_v25, %v800_v13  ;;  %v1093_v13 = vpop.permute.xlu1 %1092 }
 0x284   :  { %v1107_v60 = vadd.f32 %v1093_v13, %v7922_v32  ;;  %v1239_v32 = vpop.f32.mrf.mxu0 }
 0x285   :  { %v1308_v37 = vrot.slane %v1239_v32, 2  ;;  %v8110_v32 = vld [vmem:[%s10833_s5 + $0x8] sm:$0xff]  }
 0x286   :  { %1481 = vrot.lane.b32.xlu0 %v7795_v1, %s7570_s27  ;;  %1665 = vrot.lane.b32.xlu1 %v7782_v29, %s7572_s28  ;;  %v1091_v29 = vpop.permute.xlu0 %1090 }
 0x287   :  { %v1106_v38 = vadd.f32 %v1091_v29, %v7913_v5  ;;  %v1097_v5 = vpop.permute.xlu1 %1096  ;;  %v1120_v29 = vrot.slane %v7911_v9, 2 }
 0x288   :  { %v1109_v16 = vadd.f32 %v1097_v5, %v7934_v35  ;;  %v1119_v35 = vrot.slane %v7907_v41, 2 }
 0x28a   :  { %1667 = vrot.lane.b32.xlu0 %v7795_v1, %s7572_s28  ;;  %1483 = vrot.lane.b32.xlu1 %v1464_v36, %s7570_s27  ;;  %v1095_v31 = vpop.permute.xlu0 %1094  ;;  %v1124_v1 = vrot.slane %v7918_v44, 2  ;;  %v1121_v9 = vsel %vm1118_vm8, %v1119_v35, %v1120_v29  ;;  %v1942_v35 = vld [vmem:[#allocation2 + $0x40] sm:$0xff] }
 0x28e   :  { %1485 = vrot.lane.b32.xlu0 %v7797_v2, %s7570_s27  ;;  %1669 = vrot.lane.b32.xlu1 %v1464_v36, %s7572_s28 }
 0x292   :  { %1671 = vrot.lane.b32.xlu0 %v7797_v2, %s7572_s28  ;;  %1487 = vrot.lane.b32.xlu1 %v7806_v8, %s7570_s27  ;;  %v1301_v2 = vrot.slane %v7956_v22, 2  ;;  %v1304_v22 = vrot.slane %v7968_v11, 2  ;;  %v1108_v11 = vadd.f32 %v1095_v31, %v7926_v46  ;;  %v1132_v31 = vsel %vm1118_vm8, %v1129_v15, %v1131_v24  ;;  %v8121_v24 = vld [vmem:[#allocation7 + $0x30] ss:$8 sps:$4 sm:$0xff]  }
 0x294   :  { %v1302_v44 = vsel %vm1118_vm8, %v1299_v6, %v1301_v2  ;;  %v1305_v19 = vsel %vm1118_vm8, %v1303_v3, %v1304_v22  ;;  %v1307_v43 = vsel %vm1118_vm8, %v1304_v22, %v1306_v18  ;;  %v1144_v2 = vadd.f32 %v1132_v31, %v1109_v16  ;;  %v8136_v16 = vld [vmem:[#allocation7 + $0x20] ss:$8 sps:$4 sm:$0xff]  }
 0x296   :  { %1489 = vrot.lane.b32.xlu0 %v7833_v55, %s7570_s27  ;;  %1673 = vrot.lane.b32.xlu1 %v7806_v8, %s7572_s28  ;;  %v1122_v8 = vrot.slane %v7915_v30, 2 }
 0x298   :  { %v1125_v40 = vsel %vm1118_vm8, %v1122_v8, %v1124_v1  ;;  %v1309_v1 = vsel %vm1118_vm8, %v1306_v18, %v1308_v37  ;;  %v8127_v37 = vld [vmem:[#allocation7 + $0x24] ss:$8 sps:$4 sm:$0xff]  }
 0x299   :  { %v1141_v49 = vadd.f32 %v1125_v40, %v1106_v38 }
 0x29a   :  { %1675 = vrot.lane.b32.xlu0 %v7833_v55, %s7572_s28  ;;  %1491 = vrot.lane.b32.xlu1 %v1468_v28, %s7570_s27 }
 0x29e   :  { %1677 = vrot.lane.b32.xlu1 %v1468_v28, %s7572_s28 }
 0x2d8   :  { %v1269_v39 = vpop.permute.xlu0 %1268 }
 0x2d9   :  { %v1284_v55 = vadd.f32 %v1269_v39, %v7951_v21  ;;  %v1126_v21 = vrot.slane %v7924_v45, 2  ;;  %v1296_v39 = vrot.slane %v7945_v50, 2  ;;  %v1123_v50 = vsel %vm1118_vm8, %v1120_v29, %v1122_v8  ;;  %v8089_v8 = vld [vmem:[%s10833_s5] sm:$0xff]  }
 0x2da   :  { %v8155_v29 = vld [vmem:[#allocation7] ss:$8 sps:$4 sm:$0xff]  }
 0x2db   :  { %v1318_v57 = vadd.f32 %v1302_v44, %v1284_v55  ;;  %v1128_v17 = vsel %vm1118_vm8, %v1126_v21, %v1127_v59 }
 0x2dc   :  { %v1142_v20 = vadd.f32 %v1128_v17, %v1107_v60 }
 0x2dd   :  { %v1324_v58 = vmax.f32 %v1141_v49, %v1318_v57 }
 0x2e0   :  { %v1271_v4 = vpop.permute.xlu1 %1270 }
 0x2e1   :  { %v1285_v12 = vadd.f32 %v1271_v4, %v7960_v61  ;;  %v1130_v61 = vsel %vm1118_vm8, %v1127_v59, %v1129_v15 }
 0x2e2   :  { %v1143_v7 = vadd.f32 %v1130_v61, %v1108_v11 }
 0x2e3   :  { %v1319_v23 = vadd.f32 %v1305_v19, %v1285_v12  ;;  %v8097_v19 = vld [vmem:[#allocation7 + $0x50] ss:$8 sps:$4 sm:$0xff]  }
 0x2e4   :  { %v1273_v45 = vpop.permute.xlu0 %1272 }
 0x2e5   :  { %v1325_v26 = vmax.f32 %v1142_v20, %v1319_v23  ;;  %v1286_v62 = vadd.f32 %v1273_v45, %v7964_v63  ;;  %v1297_v63 = vrot.slane %v7949_v56, 2  ;;  %v8112_v23 = vld [vmem:[#allocation7 + $0x40] ss:$8 sps:$4 sm:$0xff]   ;;  %v8115_v45 = vld [vmem:[#allocation7 + $0x34] ss:$8 sps:$4 sm:$0xff]  }
 0x2e7   :  { %v1320_v33 = vadd.f32 %v1307_v43, %v1286_v62  ;;  %v1329_v34 = vpack.c.bf16 %v1325_v26, %v1324_v58  ;;  %v1298_v56 = vsel %vm1118_vm8, %v1296_v39, %v1297_v63  ;;  %v1941_v39 = vld [vmem:[#allocation2 + $0x8] sm:$0xff] }
 0x2e8   :  { %v1087_v48 = vpop.permute.xlu0 %1086  ;;  %v1275_v36 = vpop.permute.xlu1 %1274 }
 0x2e9   :  { %v1326_v46 = vmax.f32 %v1143_v7, %v1320_v33  ;;  %v1287_v28 = vadd.f32 %v1275_v36, %v7972_v14  ;;  %v1104_v38 = vadd.f32 %v1087_v48, %v7905_v27  ;;  %v8134_v7 = vld [vmem:[%s10833_s5 + $0x10] sm:$0xff]  }
 0x2ea   :  { %v8139_v33 = vld [vmem:[#allocation7 + $0x14] ss:$8 sps:$4 sm:$0xff]  }
 0x2eb   :  { %v1321_v13 = vadd.f32 %v1309_v1, %v1287_v28  ;;  %v1139_v49 = vadd.f32 %v1121_v9, %v1104_v38  ;;  %v8150_v28 = vld [vmem:[#allocation7 + $0x4] ss:$8 sps:$4 sm:$0xff]  }
 0x2ec   :  { %v1265_v55 = vpop.permute.xlu0 %1264  ;;  %v1089_v40 = vpop.permute.xlu1 %1088  ;;  %v1945_v9 = vld [vmem:[#allocation2 + $0xe8] sm:$0xff] }
 0x2ed   :  { %v1327_v44 = vmax.f32 %v1144_v2, %v1321_v13  ;;  %v1282_v14 = vadd.f32 %v1265_v55, %v7943_v53  ;;  %v1105_v5 = vadd.f32 %v1089_v40, %v7909_v42  ;;  %v1300_v53 = vsel %vm1118_vm8, %v1297_v63, %v1299_v6  ;;  %v8091_v6 = vld [vmem:[#allocation7 + $0x54] ss:$8 sps:$4 sm:$0xff]  }
 0x2ee   :  { %v8184_v55 = vpack.c.bf16 %v1942_v35, %v1941_v39  ;;  %v8189_v40 = vld [vmem:[#allocation2 + $0x78] sm:$0xff] }
 0x2ef   :  { %v1316_v57 = vadd.f32 %v1298_v56, %v1282_v14  ;;  %v1330_v58 = vpack.c.bf16 %v1327_v44, %v1326_v46  ;;  %v1140_v60 = vadd.f32 %v1123_v50, %v1105_v5  ;;  %v8145_v46 = vld [vmem:[#allocation7 + $0x10] ss:$8 sps:$4 sm:$0xff]   ;;  %v8193_v44 = vpack.c.bf16 %v8001_v10, %v8189_v40  ;;  %v1946_v14 = vld [vmem:[#allocation2 + $0x120] sm:$0xff] }
 0x2f0   :  { %v1478_v27 = vpop.permute.xlu0 %1477  ;;  %v1267_v59 = vpop.permute.xlu1 %1266  ;;  %v8198_v56 = vpack.c.bf16 %v1946_v14, %v1945_v9 }
 0x2f1   :  { %v1322_v22 = vmax.f32 %v1139_v49, %v1316_v57  ;;  %v1283_v41 = vadd.f32 %v1267_v59, %v7947_v54  ;;  %7069 = vmatpush3.bf16.msra.mxu1 %v1330_v58  ;;  %v8203_v49 = vld [vmem:[#allocation2 + $0x158] sm:$0xff] }
 0x2f2   :  { %7070 = vmatprep.subr.bf16.mxu1 %v10837_v52  ;;  %10873 = vst [vmem:[#allocation13_spill] sm:$0xff] %v8198_v56  ;;  %10874 = vst [vmem:[#allocation14_spill] sm:$0xff] %v8203_v49  ;;  %v8207_v10 = vpack.c.bf16 %v8020_v25, %v8203_v49 }
 0x2f3   :  { %v1317_v21 = vadd.f32 %v1300_v53, %v1283_v41 }
 0x2f4   :  { %v8080_v42 = vpop.permute.xlu0 %1663  ;;  %v1480_v3 = vpop.permute.xlu1 %1479 }
 0x2f5   :  { %v1323_v4 = vmax.f32 %v1140_v60, %v1317_v21  ;;  %v1494_v12 = vsel %vm819_vm3, %v1478_v27, %v1480_v3  ;;  %7071 = vmatpush3.bf16.msra.mxu1 %v1329_v34 }
 0x2f6   :  { %6743 = vmatmul.mubr.msk.bf16.vlgmr.msra.gmra.mxu0 %vm977_vm2, %v1494_v12  ;;  %7072 = vmatprep.subr.bf16.mxu1 %v10837_v52 }
 0x2f7   :  { %v1328_v30 = vpack.c.bf16 %v1323_v4, %v1322_v22  ;;  %1552 = vmatprep.mubr.bf16.mxu0 %v10835_v0 }
 0x2f8   :  { %v1482_v54 = vpop.permute.xlu0 %1481  ;;  %v1666_v51 = vpop.permute.xlu1 %1665 }
 0x2f9   :  { %7073 = vmatpush3.bf16.msra.mxu1 %v1328_v30  ;;  %v1680_v63 = vsel %vm1679_vm10, %v8080_v42, %v1666_v51  ;;  %v8234_v51 = vld [vmem:[#allocation8] ss:$0 sm:$0xff] }
 0x2fa   :  { %1700 = vmatprep.subr.bf16.mxu1 %v8091_v6 }
 0x2fc   :  { %v1668_v15 = vpop.permute.xlu0 %1667  ;;  %v1484_v17 = vpop.permute.xlu1 %1483  ;;  %7075 = vmatmul.mubr.msk.bf16.vlgmr.msra.gmra.mxu1 %vm1346_vm9, %v8089_v8 }
 0x2fd   :  { %v1495_v18 = vsel %vm819_vm3, %v1482_v54, %v1484_v17  ;;  %1701 = vmatpush1.bf16.msra.mxu1 %v8097_v19  ;;  %7078 = vmatprep.mubr.msk.bf16.mxu1 %vm7571_vm7, %v10837_v52 }
 0x2fe   :  { %6744 = vmatmul.mubr.msk.bf16.gmra.mxu0 %vm977_vm2, %v1495_v18  ;;  %1702 = vmatprep.subr.bf16.mxu1 %v8103_v47 }
 0x2ff   :  { %1562 = vmatprep.mubr.bf16.mxu0 %v10835_v0 }
 0x300   :  { %v1486_v20 = vpop.permute.xlu0 %1485  ;;  %v1670_v11 = vpop.permute.xlu1 %1669 }
 0x301   :  { %1703 = vmatpush1.bf16.msra.mxu1 %v8112_v23  ;;  %v1681_v31 = vsel %vm1679_vm10, %v1668_v15, %v1670_v11 }
 0x302   :  { %1704 = vmatprep.subr.bf16.mxu1 %v8115_v45 }
 0x304   :  { %v1488_v26 = vpop.permute.xlu1 %1487  ;;  %7079 = vmatmul.mubr.msk.bf16.gmra.mxu1 %vm1346_vm9, %v8110_v32  ;;  %v1672_v61 = vpop.permute.xlu0 %1671 }
 0x305   :  { %v1496_v62 = vsel %vm819_vm3, %v1486_v20, %v1488_v26  ;;  %1705 = vmatpush1.bf16.msra.mxu1 %v8121_v24  ;;  %7082 = vmatprep.mubr.msk.bf16.mxu1 %vm7571_vm7, %v10837_v52 }
 0x306   :  { %6745 = vmatmul.mubr.msk.bf16.gmra.mxu0 %vm977_vm2, %v1496_v62  ;;  %1706 = vmatprep.subr.bf16.mxu1 %v8127_v37 }
 0x307   :  { %1572 = vmatprep.mubr.bf16.mxu0 %v10835_v0 }
 0x308   :  { %v1674_v43 = vpop.permute.xlu1 %1673  ;;  %v1490_v34 = vpop.permute.xlu0 %1489 }
 0x309   :  { %1707 = vmatpush1.bf16.msra.mxu1 %v8136_v16  ;;  %v1682_v1 = vsel %vm1679_vm10, %v1672_v61, %v1674_v43 }
 0x30a   :  { %1708 = vmatprep.subr.bf16.mxu1 %v8139_v33 }
 0x30c   :  { %v1492_v48 = vpop.permute.xlu1 %1491  ;;  %7083 = vmatmul.mubr.msk.bf16.gmra.mxu1 %vm1346_vm9, %v8134_v7  ;;  %v1676_v38 = vpop.permute.xlu0 %1675 }
 0x30d   :  { %v1497_v36 = vsel %vm819_vm3, %v1490_v34, %v1492_v48  ;;  %1709 = vmatpush1.bf16.msra.mxu1 %v8145_v46  ;;  %1728 = vmatprep.mubr.bf16.mxu1 %v10835_v0 }
 0x30e   :  { %6746 = vmatmul.mubr.msk.bf16.gmra.mxu0 %vm977_vm2, %v1497_v36  ;;  %1710 = vmatprep.subr.bf16.mxu1 %v8150_v28 }
 0x30f   :  { %7092 = vmatprep.mubr.msk.bf16.mxu0 %vm7571_vm7, %v10837_v52 }
 0x310   :  { %v1678_v2 = vpop.permute.xlu1 %1677 }
 0x311   :  { %1711 = vmatpush1.bf16.msra.mxu1 %v8155_v29  ;;  %v1683_v13 = vsel %vm1679_vm10, %v1676_v38, %v1678_v2 }
 0x312   :  { %1969 = vmatprep.subr.bf16.mxu1 %v8091_v6 }
 0x314   :  { %6747 = vmatmul.mubr.msk.bf16.vlgmr.msra.gmra.mxu1 %vm977_vm2, %v1680_v63 }
 0x315   :  { %1738 = vmatprep.mubr.bf16.mxu1 %v10835_v0  ;;  %1970 = vmatpush1.bf16.msra.mxu1 %v8097_v19 }
 0x316   :  { %1971 = vmatprep.subr.bf16.mxu1 %v8103_v47 }
 0x319   :  { %1972 = vmatpush1.bf16.msra.mxu1 %v8112_v23 }
 0x31a   :  { %1973 = vmatprep.subr.bf16.mxu1 %v8115_v45 }
 0x31c   :  { %6748 = vmatmul.mubr.msk.bf16.gmra.mxu1 %vm977_vm2, %v1681_v31 }
 0x31d   :  { %1748 = vmatprep.mubr.bf16.mxu1 %v10835_v0  ;;  %1974 = vmatpush1.bf16.msra.mxu1 %v8121_v24 }
 0x31e   :  { %1975 = vmatprep.subr.bf16.mxu1 %v8127_v37 }
 0x321   :  { %1976 = vmatpush1.bf16.msra.mxu1 %v8136_v16 }
 0x322   :  { %1977 = vmatprep.subr.bf16.mxu1 %v8139_v33 }
 0x324   :  { %6749 = vmatmul.mubr.msk.bf16.gmra.mxu1 %vm977_vm2, %v1682_v1 }
 0x325   :  { %1758 = vmatprep.mubr.bf16.mxu1 %v10835_v0  ;;  %1978 = vmatpush1.bf16.msra.mxu1 %v8145_v46 }
 0x326   :  { %1979 = vmatprep.subr.bf16.mxu1 %v8150_v28 }
 0x329   :  { %1980 = vmatpush1.bf16.msra.mxu1 %v8155_v29 }
 0x32a   :  { %7104 = vmatprep.subr.bf16.mxu1 %v10837_v52 }
 0x32c   :  { %6750 = vmatmul.mubr.msk.bf16.gmra.mxu1 %vm977_vm2, %v1683_v13 }
 0x32d   :  { %1997 = vmatprep.mubr.bf16.mxu1 %v10835_v0 }
 0x334   :  { %6760 = vmatmul.mubr.msk.bf16.vlgmr.msra.gmra.mxu1 %vm977_vm2, %v8184_v55 }
 0x335   :  { %2007 = vmatprep.mubr.bf16.mxu1 %v10835_v0 }
 0x33c   :  { %6761 = vmatmul.mubr.msk.bf16.gmra.mxu1 %vm977_vm2, %v8193_v44 }
 0x33d   :  { %2017 = vmatprep.mubr.bf16.mxu1 %v10835_v0 }
 0x344   :  { %6762 = vmatmul.mubr.msk.bf16.gmra.mxu1 %vm977_vm2, %v8198_v56 }
 0x345   :  { %2027 = vmatprep.mubr.bf16.mxu1 %v10835_v0 }
 0x34c   :  { %6763 = vmatmul.mubr.msk.bf16.gmra.mxu1 %vm977_vm2, %v8207_v10 }
 0x34d   :  { %7110 = vmatprep.mubr.msk.bf16.mxu1 %vm7571_vm7, %v10837_v52 }
 0x3b6   :  { %v8213_v57 = vpop.f32.mrf.mxu0 }
 0x3b8   :  { %v8215_v5 = vpop.f32.mrf.mxu0 }
 0x3ba   :  { %v8217_v58 = vpop.f32.mrf.mxu0 }
 0x3bc   :  { %v1390_v27 = vpop.f32.mrf.mxu1  ;;  %v8219_v59 = vpop.f32.mrf.mxu0 }
 0x3be   :  { %v7076_v22 = vpop.f32.mrf.mxu1  ;;  %v8221_v41 = vpop.f32.mrf.mxu0 }
 0x3bf   :  { %v1594_v21 = vrot.slane %v8221_v41, 1 }
 0x3c0   :  { %v1393_v25 = vpop.f32.mrf.mxu1  ;;  %v8223_v50 = vpop.f32.mrf.mxu0 }
 0x3c2   :  { %v7077_v53 = vpop.f32.mrf.mxu1  ;;  %v1558_v60 = vpop.f32.mrf.mxu0 }
 0x3c3   :  { %v1596_v42 = vrot.slane %v1558_v60, 1 }
 0x3c4   :  { %v1398_v3 = vpop.f32.mrf.mxu1  ;;  %v8226_v4 = vpop.f32.mrf.mxu0 }
 0x3c5   :  { %v1597_v12 = vsel %vm1071_vm6, %v1594_v21, %v1596_v42 }
 0x3c6   :  { %1609 = vrot.lane.b32.xlu0 %v1597_v12, %s7570_s27  ;;  %v7080_v30 = vpop.f32.mrf.mxu1  ;;  %v8232_v54 = vpop.f32.mrf.mxu0 }
 0x3c7   :  { %v1598_v26 = vrot.slane %v8232_v54, 1 }
 0x3c8   :  { %v1401_v15 = vpop.f32.mrf.mxu1  ;;  %v8236_v17 = vpop.f32.mrf.mxu0 }
 0x3c9   :  { %v1413_v18 = vmax.f32 %v1390_v27, %v1401_v15 }
 0x3ca   :  { %v7081_v20 = vpop.f32.mrf.mxu1  ;;  %v8238_v11 = vpop.f32.mrf.mxu0 }
 0x3cb   :  { %v1422_v62 = vadd.f32 %v8234_v51, %v1413_v18  ;;  %v1599_v61 = vrot.slane %v8238_v11, 1 }
 0x3cc   :  { %v1406_v43 = vpop.f32.mrf.mxu1  ;;  %v8243_v34 = vpop.f32.mrf.mxu0 }
 0x3cd   :  { %v1425_v48 = vmax.f32 %v1422_v62, 0.0  ;;  %v1414_v36 = vmax.f32 %v1393_v25, %v1406_v43  ;;  %v1600_v63 = vsel %vm1071_vm6, %v1598_v26, %v1599_v61 }
 0x3ce   :  { %1611 = vrot.lane.b32.xlu1 %v1600_v63, %s7570_s27  ;;  %v7084_v31 = vpop.f32.mrf.mxu1  ;;  %v8247_v1 = vpop.f32.mrf.mxu0 }
 0x3cf   :  { %v6930_v2 = vpack.c.bf16 %v1425_v48, %v1425_v48  ;;  %v1423_v38 = vadd.f32 %v8234_v51, %v1414_v36  ;;  %v1601_v13 = vrot.slane %v8247_v1, 1 }
 0x3d0   :  { %v1409_v35 = vpop.f32.mrf.mxu1  ;;  %v8251_v39 = vpop.f32.mrf.mxu0 }
 0x3d1   :  { %1442 = vst.msk [vmem:[%s10834_s6] sm:$0xf] %vm1441_vm11, %v6930_v2  ;;  %v1426_v14 = vmax.f32 %v1423_v38, 0.0  ;;  %v1415_v9 = vmax.f32 %v1398_v3, %v1409_v35  ;;  %v1602_v27 = vsel %vm1071_vm6, %v1599_v61, %v1601_v13 }
 0x3d2   :  { %1613 = vrot.lane.b32.xlu0 %v1602_v27, %s7570_s27  ;;  %v7085_v22 = vpop.f32.mrf.mxu1  ;;  %v1578_v25 = vpop.f32.mrf.mxu0 }
 0x3d3   :  { %v6931_v53 = vpack.c.bf16 %v1426_v14, %v1426_v14  ;;  %v1424_v60 = vadd.f32 %v8234_v51, %v1415_v9  ;;  %v1603_v42 = vrot.slane %v1578_v25, 1 }
 0x3d4   :  { %v8260_v12 = vpop.f32.mrf.mxu1 }
 0x3d5   :  { %1443 = vst.msk [vmem:[%s10834_s6 + $0x4] sm:$0xf] %vm1441_vm11, %v6931_v53  ;;  %v1427_v30 = vmax.f32 %v1424_v60, 0.0  ;;  %v1604_v3 = vsel %vm1071_vm6, %v1601_v13, %v1603_v42  ;;  %v1592_v60 = vrot.slane %v8217_v58, 1 }
 0x3d6   :  { %1615 = vrot.lane.b32.xlu1 %v1604_v3, %s7570_s27  ;;  %v8268_v15 = vpop.f32.mrf.mxu1  ;;  %v1591_v3 = vrot.slane %v8213_v57, 1 }
 0x3d7   :  { %v6932_v18 = vpack.c.bf16 %v1427_v30, %v1427_v30  ;;  %v1595_v0 = vsel %vm1071_vm6, %v1592_v60, %v1594_v21 }
 0x3d8   :  { %v8270_v20 = vpop.f32.mrf.mxu1 }
 0x3d9   :  { %1444 = vst.msk [vmem:[%s10834_s6 + $0x8] sm:$0xf] %vm1441_vm11, %v6932_v18 }
 0x3da   :  { %v8276_v26 = vpop.f32.mrf.mxu1 }
 0x3dc   :  { %v8278_v62 = vpop.f32.mrf.mxu1 }
 0x3dd   :  { %v1780_v48 = vrot.slane %v8278_v62, 1 }
 0x3de   :  { %v8280_v61 = vpop.f32.mrf.mxu1 }
 0x3e0   :  { %v1744_v43 = vpop.f32.mrf.mxu1 }
 0x3e1   :  { %v1782_v36 = vrot.slane %v1744_v43, 1 }
 0x3e2   :  { %v8283_v63 = vpop.f32.mrf.mxu1 }
 0x3e3   :  { %v1783_v31 = vsel %vm1071_vm6, %v1780_v48, %v1782_v36  ;;  %v1778_v36 = vrot.slane %v8270_v20, 1 }
 0x3e4   :  { %1795 = vrot.lane.b32.xlu0 %v1783_v31, %s7570_s27  ;;  %v8287_v2 = vpop.f32.mrf.mxu1  ;;  %v1593_v31 = vsel %vm1071_vm6, %v1591_v3, %v1592_v60 }
 0x3e5   :  { %v1784_v35 = vrot.slane %v8287_v2, 1 }
 0x3e6   :  { %v8289_v38 = vpop.f32.mrf.mxu1 }
 0x3e8   :  { %v8291_v13 = vpop.f32.mrf.mxu1 }
 0x3e9   :  { %v1785_v14 = vrot.slane %v8291_v13, 1 }
 0x3ea   :  { %v8295_v9 = vpop.f32.mrf.mxu1 }
 0x3eb   :  { %v1786_v27 = vsel %vm1071_vm6, %v1784_v35, %v1785_v14 }
 0x3ec   :  { %1797 = vrot.lane.b32.xlu1 %v1786_v27, %s7570_s27  ;;  %v8299_v22 = vpop.f32.mrf.mxu1 }
 0x3ed   :  { %v1787_v25 = vrot.slane %v8299_v22, 1 }
 0x3ee   :  { %v8302_v53 = vpop.f32.mrf.mxu1 }
 0x3ef   :  { %v1788_v42 = vsel %vm1071_vm6, %v1785_v14, %v1787_v25  ;;  %v1777_v14 = vrot.slane %v8260_v12, 1 }
 0x3f0   :  { %1799 = vrot.lane.b32.xlu0 %v1788_v42, %s7570_s27  ;;  %v1764_v30 = vpop.f32.mrf.mxu1 }
 0x3f1   :  { %v1789_v18 = vrot.slane %v1764_v30, 1  ;;  %v1779_v30 = vsel %vm1071_vm6, %v1777_v14, %v1778_v36 }
 0x3f2   :  { %v8308_v43 = vpop.f32.mrf.mxu1 }
 0x3f3   :  { %v1790_v35 = vsel %vm1071_vm6, %v1787_v25, %v1789_v18  ;;  %v1781_v18 = vsel %vm1071_vm6, %v1778_v36, %v1780_v48 }
 0x3f4   :  { %1605 = vrot.lane.b32.xlu0 %v1593_v31, %s7570_s27  ;;  %1801 = vrot.lane.b32.xlu1 %v1790_v35, %s7570_s27  ;;  %v8315_v27 = vpop.f32.mrf.mxu1 }
 0x3f6   :  { %v8318_v42 = vpop.f32.mrf.mxu1 }
 0x3f7   :  { %10875 = vst [vmem:[#allocation15_spill] sm:$0xff] %v8318_v42 }
 0x3f8   :  { %1791 = vrot.lane.b32.xlu0 %v1779_v30, %s7570_s27  ;;  %1607 = vrot.lane.b32.xlu1 %v1595_v0, %s7570_s27  ;;  %v8326_v25 = vpop.f32.mrf.mxu1 }
 0x3fa   :  { %v8328_v3 = vpop.f32.mrf.mxu1 }
 0x3fb   :  { %10876 = vst [vmem:[#allocation16_spill] sm:$0xff] %v8328_v3 }
 0x3fc   :  { %2122 = vrot.lane.b32.xlu0 %v8184_v55, %s7569_s0  ;;  %1793 = vrot.lane.b32.xlu1 %v1781_v18, %s7570_s27  ;;  %v8334_v31 = vpop.f32.mrf.mxu1 }
 0x3fd   :  { %v10839_v21 = vrot.slane %v8334_v31, 1 }
 0x3fe   :  { %v8336_v35 = vpop.f32.mrf.mxu1 }
 0x3ff   :  { %10877 = vst [vmem:[#allocation17_spill] sm:$0xff] %v8336_v35 }
 0x400   :  { %2126 = vrot.lane.b32.xlu0 %v8198_v56, %s7569_s0  ;;  %2124 = vrot.lane.b32.xlu1 %v8193_v44, %s7569_s0  ;;  %v2013_v0 = vpop.f32.mrf.mxu1 }
 0x401   :  { %v2051_v60 = vrot.slane %v2013_v0, 1 }
 0x402   :  { %v8343_v48 = vpop.f32.mrf.mxu1 }
 0x403   :  { %10878 = vst [vmem:[#allocation18_spill] sm:$0xff] %v8343_v48  ;;  %v2052_v36 = vsel %vm1071_vm6, %v10839_v21, %v2051_v60  ;;  %v1831_v48 = vrot.slane %v8295_v9, 2 }
 0x404   :  { %2128 = vrot.lane.b32.xlu1 %v8207_v10, %s7569_s0  ;;  %2064 = vrot.lane.b32.xlu0 %v2052_v36, %s7570_s27  ;;  %v8351_v14 = vpop.f32.mrf.mxu1 }
 0x405   :  { %10879 = vst [vmem:[#allocation19_spill] sm:$0xff] %v8351_v14  ;;  %v2053_v18 = vrot.slane %v8351_v14, 1 }
 0x406   :  { %v8353_v30 = vpop.f32.mrf.mxu1 }
 0x407   :  { %10880 = vst [vmem:[#allocation20_spill] sm:$0xff] %v8353_v30 }
 0x408   :  { %v8355_v44 = vpop.f32.mrf.mxu1 }
 0x409   :  { %10881 = vst [vmem:[#allocation21_spill] sm:$0xff] %v8355_v44  ;;  %v2054_v0 = vrot.slane %v8355_v44, 1 }
 0x40a   :  { %v8359_v52 = vpop.f32.mrf.mxu1 }
 0x40b   :  { %10882 = vst [vmem:[#allocation22_spill] sm:$0xff] %v8359_v52  ;;  %v2055_v42 = vsel %vm1071_vm6, %v2053_v18, %v2054_v0  ;;  %v1828_v52 = vrot.slane %v8283_v63, 2 }
 0x40c   :  { %2066 = vrot.lane.b32.xlu1 %v2055_v42, %s7570_s27  ;;  %v8363_v60 = vpop.f32.mrf.mxu1  ;;  %v1642_v42 = vrot.slane %v8226_v4, 2 }
 0x40d   :  { %10883 = vst [vmem:[#allocation23_spill] sm:$0xff] %v8363_v60  ;;  %v2056_v10 = vrot.slane %v8363_v60, 1 }
 0x40e   :  { %v8366_v36 = vpop.f32.mrf.mxu1 }
 0x40f   :  { %10884 = vst [vmem:[#allocation24_spill] sm:$0xff] %v8366_v36  ;;  %v2057_v21 = vsel %vm1071_vm6, %v2054_v0, %v2056_v10  ;;  %v10847_v36 = vrot.slane %v8223_v50, 2  ;;  %v1826_v0 = vrot.slane %v8280_v61, 2 }
 0x410   :  { %2068 = vrot.lane.b32.xlu0 %v2057_v21, %s7570_s27  ;;  %v2033_v3 = vpop.f32.mrf.mxu1 }
 0x411   :  { %v2058_v30 = vrot.slane %v2033_v3, 1  ;;  %v1829_v4 = vsel %vm1118_vm8, %v1826_v0, %v1828_v52  ;;  %v1833_v52 = vrot.slane %v8302_v53, 2 }
 0x413   :  { %v2059_v44 = vsel %vm1071_vm6, %v2056_v10, %v2058_v30  ;;  %v1643_v30 = vsel %vm1118_vm8, %v10847_v36, %v1642_v42  ;;  %v1647_v36 = vrot.slane %v8251_v39, 2 }
 0x414   :  { %2070 = vrot.lane.b32.xlu1 %v2059_v44, %s7570_s27 }
 0x438   :  { %v1610_v14 = vpop.permute.xlu0 %1609 }
 0x439   :  { %v1625_v60 = vadd.f32 %v1610_v14, %v8221_v41  ;;  %v1645_v14 = vrot.slane %v8243_v34, 2  ;;  %v1580_v34 = vpop.f32.mrf.mxu0 }
 0x43b   :  { %v1659_v44 = vadd.f32 %v1643_v30, %v1625_v60  ;;  %v1648_v39 = vsel %vm1118_vm8, %v1645_v14, %v1647_v36 }
 0x440   :  { %v1612_v35 = vpop.permute.xlu1 %1611 }
 0x441   :  { %v1626_v49 = vadd.f32 %v1612_v35, %v8232_v54 }
 0x444   :  { %v1614_v18 = vpop.permute.xlu0 %1613 }
 0x445   :  { %v1627_v9 = vadd.f32 %v1614_v18, %v8238_v11 }
 0x447   :  { %v1661_v53 = vadd.f32 %v1648_v39, %v1627_v9 }
 0x448   :  { %v1616_v10 = vpop.permute.xlu1 %1615 }
 0x456   :  { %v1796_v21 = vpop.permute.xlu0 %1795 }
 0x457   :  { %v1811_v3 = vadd.f32 %v1796_v21, %v8278_v62  ;;  %v1644_v62 = vrot.slane %v8236_v17, 2  ;;  %v1830_v21 = vrot.slane %v8289_v38, 2 }
 0x459   :  { %v1845_v63 = vadd.f32 %v1829_v4, %v1811_v3  ;;  %v1646_v60 = vsel %vm1118_vm8, %v1644_v62, %v1645_v14  ;;  %v1832_v3 = vsel %vm1118_vm8, %v1830_v21, %v1831_v48  ;;  %v1649_v4 = vrot.slane %v1580_v34, 2 }
 0x45a   :  { %v1660_v30 = vadd.f32 %v1646_v60, %v1626_v49 }
 0x45b   :  { %v1851_v41 = vmax.f32 %v1659_v44, %v1845_v63  ;;  %v1628_v44 = vadd.f32 %v1616_v10, %v8247_v1  ;;  %v1637_v1 = vrot.slane %v8215_v5, 2  ;;  %v1823_v10 = vrot.slane %v8268_v15, 2 }
 0x45c   :  { %v10885_v15 = vrot.slane %v8223_v50, 2 }
 0x45e   :  { %v1798_v56 = vpop.permute.xlu1 %1797 }
 0x45f   :  { %v1812_v42 = vadd.f32 %v1798_v56, %v8287_v2  ;;  %v1835_v56 = vrot.slane %v8308_v43, 2  ;;  %v1834_v2 = vsel %vm1118_vm8, %v1831_v48, %v1833_v52  ;;  %v1650_v43 = vsel %vm1118_vm8, %v1647_v36, %v1649_v4 }
 0x460   :  { %v1662_v60 = vadd.f32 %v1650_v43, %v1628_v44 }
 0x461   :  { %v1846_v54 = vadd.f32 %v1832_v3, %v1812_v42  ;;  %v1638_v42 = vrot.slane %v8219_v59, 2  ;;  %v1836_v14 = vsel %vm1118_vm8, %v1833_v52, %v1835_v56 }
 0x462   :  { %v1800_v35 = vpop.permute.xlu0 %1799 }
 0x463   :  { %v1852_v17 = vmax.f32 %v1660_v30, %v1846_v54  ;;  %v1813_v38 = vadd.f32 %v1800_v35, %v8291_v13  ;;  %v1824_v13 = vrot.slane %v8276_v26, 2  ;;  %v1639_v59 = vsel %vm1118_vm8, %v1637_v1, %v1638_v42 }
 0x465   :  { %v1847_v63 = vadd.f32 %v1834_v2, %v1813_v38  ;;  %v1856_v62 = vpack.c.bf16 %v1852_v17, %v1851_v41  ;;  %v1825_v26 = vsel %vm1118_vm8, %v1823_v10, %v1824_v13  ;;  %v1641_v17 = vsel %vm1118_vm8, %v1638_v42, %v10885_v15 }
 0x466   :  { %v1606_v49 = vpop.permute.xlu0 %1605  ;;  %v1802_v21 = vpop.permute.xlu1 %1801  ;;  %v10886_v38 = vmov 0.0  }
 0x467   :  { %v1853_v11 = vmax.f32 %v1661_v53, %v1847_v63  ;;  %v1814_v18 = vadd.f32 %v1802_v21, %v8299_v22  ;;  %v1623_v48 = vadd.f32 %v1606_v49, %v8213_v57 }
 0x469   :  { %v1848_v3 = vadd.f32 %v1836_v14, %v1814_v18  ;;  %v1657_v36 = vadd.f32 %v1639_v59, %v1623_v48 }
 0x46a   :  { %v1792_v41 = vpop.permute.xlu0 %1791  ;;  %v1608_v34 = vpop.permute.xlu1 %1607 }
 0x46b   :  { %v1854_v30 = vmax.f32 %v1662_v60, %v1848_v3  ;;  %v1809_v22 = vadd.f32 %v1792_v41, %v8260_v12  ;;  %v1624_v52 = vadd.f32 %v1608_v34, %v8217_v58  ;;  %v1827_v12 = vsel %vm1118_vm8, %v1824_v13, %v1826_v0 }
 0x46d   :  { %v1843_v9 = vadd.f32 %v1825_v26, %v1809_v22  ;;  %v1857_v54 = vpack.c.bf16 %v1854_v30, %v1853_v11  ;;  %v1658_v4 = vadd.f32 %v1641_v17, %v1624_v52 }
 0x46e   :  { %v1794_v57 = vpop.permute.xlu1 %1793 }
 0x46f   :  { %v1849_v35 = vmax.f32 %v1657_v36, %v1843_v9  ;;  %v1810_v5 = vadd.f32 %v1794_v57, %v8270_v20  ;;  %7087 = vmatpush3.bf16.msra.mxu0 %v1857_v54 }
 0x470   :  { %7088 = vmatprep.subr.bf16.mxu0 %v10886_v38 }
 0x471   :  { %v1844_v56 = vadd.f32 %v1827_v12, %v1810_v5  ;;  %v2047_v5 = vrot.slane %v8326_v25, 1  ;;  %v2046_v12 = vrot.slane %v8315_v27, 1 }
 0x473   :  { %v1850_v39 = vmax.f32 %v1658_v4, %v1844_v56  ;;  %7089 = vmatpush3.bf16.msra.mxu0 %v1856_v62 }
 0x474   :  { %7090 = vmatprep.subr.bf16.mxu0 %v10886_v38 }
 0x475   :  { %v1855_v58 = vpack.c.bf16 %v1850_v39, %v1849_v35  ;;  %v2048_v39 = vsel %vm1071_vm6, %v2046_v12, %v2047_v5 }
 0x477   :  { %7091 = vmatpush3.bf16.msra.mxu0 %v1855_v58 }
 0x478   :  { %2146 = vmatprep.subr.bf16.mxu0 %v8091_v6 }
 0x47a   :  { %7093 = vmatmul.mubr.msk.bf16.vlgmr.msra.gmra.mxu0 %vm1346_vm9, %v8089_v8  ;;  %v10887_v8 = vmov 0  }
 0x47b   :  { %2147 = vmatpush1.bf16.msra.mxu0 %v8097_v19  ;;  %7096 = vmatprep.mubr.msk.bf16.mxu0 %vm7571_vm7, %v10886_v38 }
 0x47c   :  { %2148 = vmatprep.subr.bf16.mxu0 %v8103_v47 }
 0x47f   :  { %2149 = vmatpush1.bf16.msra.mxu0 %v8112_v23 }
 0x480   :  { %2150 = vmatprep.subr.bf16.mxu0 %v8115_v45 }
 0x482   :  { %7097 = vmatmul.mubr.msk.bf16.gmra.mxu0 %vm1346_vm9, %v8110_v32  ;;  %v2123_v32 = vpop.permute.xlu0 %2122 }
 0x483   :  { %2151 = vmatpush1.bf16.msra.mxu0 %v8121_v24  ;;  %7100 = vmatprep.mubr.msk.bf16.mxu0 %vm7571_vm7, %v10886_v38 }
 0x484   :  { %2152 = vmatprep.subr.bf16.mxu0 %v8127_v37 }
 0x487   :  { %2153 = vmatpush1.bf16.msra.mxu0 %v8136_v16 }
 0x488   :  { %2154 = vmatprep.subr.bf16.mxu0 %v8139_v33 }
 0x48a   :  { %7101 = vmatmul.mubr.msk.bf16.gmra.mxu0 %vm1346_vm9, %v8134_v7  ;;  %v2125_v7 = vpop.permute.xlu1 %2124 }
 0x48b   :  { %2155 = vmatpush1.bf16.msra.mxu0 %v8145_v46  ;;  %2174 = vmatprep.mubr.bf16.mxu0 %v10887_v8 }
 0x48c   :  { %2156 = vmatprep.subr.bf16.mxu0 %v8150_v28 }
 0x48f   :  { %2157 = vmatpush1.bf16.msra.mxu0 %v8155_v29 }
 0x490   :  { %2455 = vmatprep.subr.bf16.mxu0 %v8091_v6  ;;  %v2127_v6 = vpop.permute.xlu0 %2126 }
 0x492   :  { %6764 = vmatmul.mubr.msk.bf16.vlgmr.msra.gmra.mxu0 %vm977_vm2, %v2123_v32 }
 0x493   :  { %2184 = vmatprep.mubr.bf16.mxu0 %v10887_v8  ;;  %2456 = vmatpush1.bf16.msra.mxu0 %v8097_v19  ;;  %v2129_v19 = vpop.permute.xlu1 %2128 }
 0x494   :  { %2457 = vmatprep.subr.bf16.mxu0 %v8103_v47 }
 0x497   :  { %2458 = vmatpush1.bf16.msra.mxu0 %v8112_v23 }
 0x498   :  { %2459 = vmatprep.subr.bf16.mxu0 %v8115_v45 }
 0x49a   :  { %6765 = vmatmul.mubr.msk.bf16.gmra.mxu0 %vm977_vm2, %v2125_v7 }
 0x49b   :  { %2194 = vmatprep.mubr.bf16.mxu0 %v10887_v8  ;;  %2460 = vmatpush1.bf16.msra.mxu0 %v8121_v24 }
 0x49c   :  { %2461 = vmatprep.subr.bf16.mxu0 %v8127_v37 }
 0x49f   :  { %2462 = vmatpush1.bf16.msra.mxu0 %v8136_v16 }
 0x4a0   :  { %2463 = vmatprep.subr.bf16.mxu0 %v8139_v33 }
 0x4a2   :  { %6766 = vmatmul.mubr.msk.bf16.gmra.mxu0 %vm977_vm2, %v2127_v6  ;;  %v10888_v6 = vrot.slane %v8334_v31, 1 }
 0x4a3   :  { %2204 = vmatprep.mubr.bf16.mxu0 %v10887_v8  ;;  %2464 = vmatpush1.bf16.msra.mxu0 %v8145_v46 }
 0x4a4   :  { %2465 = vmatprep.subr.bf16.mxu0 %v8150_v28 }
 0x4a7   :  { %2466 = vmatpush1.bf16.msra.mxu0 %v8155_v29 }
 0x4a8   :  { %7122 = vmatprep.subr.bf16.mxu0 %v10886_v38 }
 0x4aa   :  { %6767 = vmatmul.mubr.msk.bf16.gmra.mxu0 %vm977_vm2, %v2129_v19  ;;  %v2050_v19 = vsel %vm1071_vm6, %v2047_v5, %v10888_v6  ;;  %v10896_v6 = vld [vmem:[#allocation24_spill] sm:$0xff] }
 0x4ab   :  { %2483 = vmatprep.mubr.bf16.mxu0 %v10887_v8 }
 0x53a   :  { %v1892_v47 = vpop.f32.mrf.mxu0 }
 0x53c   :  { %v7094_v23 = vpop.f32.mrf.mxu0 }
 0x53d   :  { %v2388_v23 = vld [vmem:[#allocation2 + $0x10] sm:$0xff] }
 0x53e   :  { %v1895_v45 = vpop.f32.mrf.mxu0 }
 0x540   :  { %v7095_v24 = vpop.f32.mrf.mxu0 }
 0x542   :  { %v1900_v37 = vpop.f32.mrf.mxu0 }
 0x544   :  { %v7098_v16 = vpop.f32.mrf.mxu0 }
 0x546   :  { %v1903_v33 = vpop.f32.mrf.mxu0 }
 0x547   :  { %v1915_v50 = vmax.f32 %v1892_v47, %v1903_v33  ;;  %v2392_v33 = vld [vmem:[#allocation2 + $0x80] sm:$0xff] }
 0x548   :  { %v7099_v46 = vpop.f32.mrf.mxu0 }
 0x549   :  { %v1918_v28 = vadd.f32 %v8234_v51, %v1915_v50  ;;  %v2394_v50 = vld [vmem:[#allocation2 + $0xb8] sm:$0xff] }
 0x54a   :  { %v1908_v20 = vpop.f32.mrf.mxu0  ;;  %v8544_v46 = vpack.c.bf16 %v2394_v50, %v2392_v33 }
 0x54b   :  { %v1921_v29 = vmax.f32 %v1918_v28, 0.0  ;;  %v1916_v61 = vmax.f32 %v1895_v45, %v1908_v20  ;;  %v2390_v45 = vld [vmem:[#allocation2 + $0x48] sm:$0xff]  ;;  %v10889_v20 = vld [vmem:[#allocation13_spill] sm:$0xff] }
 0x54c   :  { %v7102_v0 = vpop.f32.mrf.mxu0  ;;  %v8534_v24 = vpack.c.bf16 %v2390_v45, %v2388_v23  ;;  %v2398_v28 = vld [vmem:[#allocation2 + $0x128] sm:$0xff] }
 0x54d   :  { %v6933_v2 = vpack.c.bf16 %v1921_v29, %v1921_v29  ;;  %v1919_v53 = vadd.f32 %v8234_v51, %v1916_v61  ;;  %v2401_v29 = vld [vmem:[#allocation2 + $0x190] sm:$0xff]  ;;  %v10890_v61 = vld [vmem:[#allocation14_spill] sm:$0xff] }
 0x54e   :  { %v1911_v44 = vpop.f32.mrf.mxu0  ;;  %v2409_v0 = vpack.c.bf16 %v2401_v29, %v10890_v61 }
 0x54f   :  { %6757 = vst.msk [vmem:[%s10834_s6 + $0xc] sm:$0xf] %vm1441_vm11, %v6933_v2  ;;  %v1922_v63 = vmax.f32 %v1919_v53, 0.0  ;;  %v1917_v62 = vmax.f32 %v1900_v37, %v1911_v44  ;;  %v2393_v37 = vld [vmem:[#allocation2 + $0xb0] sm:$0xff]  ;;  %v2400_v2 = vld [vmem:[#allocation2 + $0x160] sm:$0xff]  ;;  %v2402_v53 = vld [vmem:[#allocation2 + $0x198] sm:$0xff] }
 0x550   :  { %v7103_v49 = vpop.f32.mrf.mxu0  ;;  %v2405_v16 = vpack.c.bf16 %v2393_v37, %v8189_v40  ;;  %v8563_v44 = vpack.c.bf16 %v2402_v53, %v2400_v2  ;;  %v2035_v37 = vpop.f32.mrf.mxu1 }
 0x551   :  { %v6934_v21 = vpack.c.bf16 %v1922_v63, %v1922_v63  ;;  %v1920_v11 = vadd.f32 %v8234_v51, %v1917_v62  ;;  %v2065_v63 = vpop.permute.xlu0 %2064  ;;  %v10891_v49 = vld [vmem:[#allocation18_spill] sm:$0xff]  ;;  %v2104_v29 = vrot.slane %v2035_v37, 2 }
 0x552   :  { %v8472_v18 = vpop.f32.mrf.mxu0 }
 0x553   :  { %6758 = vst.msk [vmem:[%s10834_s6 + $0x10] sm:$0xf] %vm1441_vm11, %v6934_v21  ;;  %v1923_v42 = vmax.f32 %v1920_v11, 0.0  ;;  %v2223_v32 = vrot.slane %v8472_v18, 1  ;;  %v2097_v21 = vrot.slane %v10891_v49, 2 }
 0x554   :  { %v8478_v13 = vpop.f32.mrf.mxu0 }
 0x555   :  { %v6935_v43 = vpack.c.bf16 %v1923_v42, %v1923_v42  ;;  %v2069_v62 = vpop.permute.xlu0 %2068  ;;  %v2080_v42 = vadd.f32 %v2065_v63, %v8334_v31 }
 0x556   :  { %v8480_v14 = vpop.f32.mrf.mxu0 }
 0x557   :  { %6759 = vst.msk [vmem:[%s10834_s6 + $0x14] sm:$0xf] %vm1441_vm11, %v6935_v43  ;;  %v2224_v56 = vrot.slane %v8480_v14, 1  ;;  %v10892_v43 = vld [vmem:[#allocation17_spill] sm:$0xff] }
 0x558   :  { %v8486_v60 = vpop.f32.mrf.mxu0 }
 0x559   :  { %v2225_v7 = vsel %vm1071_vm6, %v2223_v32, %v2224_v56 }
 0x55a   :  { %v8488_v51 = vpop.f32.mrf.mxu0 }
 0x55b   :  { %v2226_v1 = vrot.slane %v8488_v51, 1 }
 0x55c   :  { %v8490_v48 = vpop.f32.mrf.mxu0 }
 0x55d   :  { %v2227_v47 = vsel %vm1071_vm6, %v2224_v56, %v2226_v1 }
 0x55e   :  { %v2190_v3 = vpop.f32.mrf.mxu0 }
 0x55f   :  { %v2228_v10 = vrot.slane %v2190_v3, 1  ;;  %v2095_v3 = vrot.slane %v10892_v43, 2 }
 0x560   :  { %v8493_v41 = vpop.f32.mrf.mxu0 }
 0x561   :  { %v2229_v34 = vsel %vm1071_vm6, %v2226_v1, %v2228_v10  ;;  %v2274_v11 = vrot.slane %v8493_v41, 2  ;;  %v2067_v1 = vpop.permute.xlu1 %2066  ;;  %v2272_v10 = vrot.slane %v8490_v48, 2 }
 0x562   :  { %2241 = vrot.lane.b32.xlu0 %v2229_v34, %s7570_s27  ;;  %v8497_v30 = vpop.f32.mrf.mxu0 }
 0x563   :  { %v2230_v26 = vrot.slane %v8497_v30, 1 }
 0x564   :  { %v8499_v22 = vpop.f32.mrf.mxu0 }
 0x565   :  { %v2071_v5 = vpop.permute.xlu1 %2070 }
 0x566   :  { %v8501_v59 = vpop.f32.mrf.mxu0 }
 0x567   :  { %v2231_v36 = vrot.slane %v8501_v59, 1 }
 0x568   :  { %v8505_v9 = vpop.f32.mrf.mxu0 }
 0x569   :  { %v2232_v52 = vsel %vm1071_vm6, %v2230_v26, %v2231_v36  ;;  %v2277_v12 = vrot.slane %v8505_v9, 2  ;;  %v10897_v9 = vld [vmem:[#allocation21_spill] sm:$0xff] }
 0x56a   :  { %2243 = vrot.lane.b32.xlu1 %v2232_v52, %s7570_s27  ;;  %v8509_v54 = vpop.f32.mrf.mxu0  ;;  %v2275_v52 = vsel %vm1118_vm8, %v2272_v10, %v2274_v11  ;;  %v2082_v33 = vadd.f32 %v2069_v62, %v10897_v9 }
 0x56b   :  { %v2233_v57 = vrot.slane %v8509_v54, 1 }
 0x56c   :  { %v8512_v35 = vpop.f32.mrf.mxu0 }
 0x56d   :  { %v2234_v15 = vsel %vm1071_vm6, %v2231_v36, %v2233_v57  ;;  %v2098_v36 = vsel %vm1118_vm8, %v2095_v3, %v2097_v21  ;;  %v2279_v23 = vrot.slane %v8512_v35, 2  ;;  %v10898_v35 = vld [vmem:[#allocation23_spill] sm:$0xff] }
 0x56e   :  { %2245 = vrot.lane.b32.xlu0 %v2234_v15, %s7570_s27  ;;  %v2210_v17 = vpop.f32.mrf.mxu0  ;;  %v10893_v15 = vld [vmem:[#allocation22_spill] sm:$0xff]  ;;  %v2083_v53 = vadd.f32 %v2071_v5, %v10898_v35  ;;  %v10900_v5 = vld [vmem:[#allocation15_spill] sm:$0xff] }
 0x56f   :  { %v2235_v4 = vrot.slane %v2210_v17, 1  ;;  %v2100_v17 = vrot.slane %v10893_v15, 2  ;;  %v2092_v15 = vrot.slane %v10900_v5, 2  ;;  %v8658_v35 = vld [vmem:[#allocation7 + $0x30] ss:$8 sps:$4 sm:$0xff]  }
 0x570   :  { %v2212_v50 = vpop.f32.mrf.mxu0 }
 0x571   :  { %v2236_v58 = vsel %vm1071_vm6, %v2233_v57, %v2235_v4  ;;  %v2114_v57 = vadd.f32 %v2098_v36, %v2080_v42  ;;  %v10894_v4 = vld [vmem:[#allocation19_spill] sm:$0xff]  ;;  %v2281_v61 = vrot.slane %v2212_v50, 2 }
 0x572   :  { %2060 = vrot.lane.b32.xlu0 %v2048_v39, %s7570_s27  ;;  %2247 = vrot.lane.b32.xlu1 %v2236_v58, %s7570_s27  ;;  %v2081_v56 = vadd.f32 %v2067_v1, %v10894_v4  ;;  %v10895_v39 = vld [vmem:[#allocation20_spill] sm:$0xff]  ;;  %v2276_v58 = vrot.slane %v8499_v22, 2 }
 0x573   :  { %v10899_v1 = vld [vmem:[#allocation16_spill] sm:$0xff]  ;;  %v2282_v36 = vsel %vm1118_vm8, %v2279_v23, %v2281_v61 }
 0x574   :  { %v2278_v45 = vsel %vm1118_vm8, %v2276_v58, %v2277_v12 }
 0x576   :  { %2237 = vrot.lane.b32.xlu0 %v2225_v7, %s7570_s27  ;;  %2062 = vrot.lane.b32.xlu1 %v2050_v19, %s7570_s27  ;;  %v2102_v19 = vrot.slane %v10896_v6, 2 }
 0x57a   :  { %2419 = vrot.lane.b32.xlu0 %v8184_v55, %s7570_s27  ;;  %2239 = vrot.lane.b32.xlu1 %v2227_v47, %s7570_s27 }
 0x57e   :  { %2604 = vrot.lane.b32.xlu0 %v8184_v55, %s7572_s28  ;;  %2421 = vrot.lane.b32.xlu1 %v8534_v24, %s7570_s27  ;;  %v2396_v55 = vld [vmem:[#allocation2 + $0xf0] sm:$0xff] }
 0x57f   :  { %v8553_v40 = vpack.c.bf16 %v2398_v28, %v2396_v55 }
 0x582   :  { %2423 = vrot.lane.b32.xlu0 %v2405_v16, %s7570_s27  ;;  %2606 = vrot.lane.b32.xlu1 %v8534_v24, %s7572_s28 }
 0x586   :  { %2608 = vrot.lane.b32.xlu0 %v2405_v16, %s7572_s28  ;;  %2425 = vrot.lane.b32.xlu1 %v8544_v46, %s7570_s27 }
 0x58a   :  { %2427 = vrot.lane.b32.xlu0 %v10889_v20, %s7570_s27  ;;  %2610 = vrot.lane.b32.xlu1 %v8544_v46, %s7572_s28 }
 0x58e   :  { %2612 = vrot.lane.b32.xlu0 %v10889_v20, %s7572_s28  ;;  %2429 = vrot.lane.b32.xlu1 %v8553_v40, %s7570_s27 }
 0x592   :  { %2431 = vrot.lane.b32.xlu0 %v2409_v0, %s7570_s27  ;;  %2614 = vrot.lane.b32.xlu1 %v8553_v40, %s7572_s28 }
 0x596   :  { %2616 = vrot.lane.b32.xlu0 %v2409_v0, %s7572_s28  ;;  %2433 = vrot.lane.b32.xlu1 %v8563_v44, %s7570_s27  ;;  %v2280_v0 = vsel %vm1118_vm8, %v2277_v12, %v2279_v23 }
 0x59a   :  { %2618 = vrot.lane.b32.xlu1 %v8563_v44, %s7572_s28 }
 0x5d4   :  { %v2242_v34 = vpop.permute.xlu0 %2241 }
 0x5d5   :  { %v2257_v26 = vadd.f32 %v2242_v34, %v8488_v51  ;;  %v2099_v51 = vrot.slane %v10895_v39, 2  ;;  %v2093_v34 = vrot.slane %v10899_v1, 2  ;;  %v8677_v1 = vld [vmem:[%s10833_s5 + $0x10] sm:$0xff]  }
 0x5d7   :  { %v2291_v41 = vadd.f32 %v2275_v52, %v2257_v26  ;;  %v2101_v47 = vsel %vm1118_vm8, %v2099_v51, %v2100_v17  ;;  %v2270_v26 = vrot.slane %v8486_v60, 2 }
 0x5d8   :  { %v2115_v16 = vadd.f32 %v2101_v47, %v2081_v56  ;;  %v2094_v56 = vsel %vm1118_vm8, %v2092_v15, %v2093_v34 }
 0x5d9   :  { %v2297_v31 = vmax.f32 %v2114_v57, %v2291_v41 }
 0x5dc   :  { %v2244_v32 = vpop.permute.xlu1 %2243 }
 0x5dd   :  { %v2258_v7 = vadd.f32 %v2244_v32, %v8497_v30  ;;  %v2103_v30 = vsel %vm1118_vm8, %v2100_v17, %v2102_v19 }
 0x5de   :  { %v2116_v2 = vadd.f32 %v2103_v30, %v2082_v33  ;;  %v8629_v33 = vld [vmem:[%s10833_s5] sm:$0xff]   ;;  %v8647_v30 = vld [vmem:[#allocation7 + $0x34] ss:$8 sps:$4 sm:$0xff]  }
 0x5df   :  { %v2292_v55 = vadd.f32 %v2278_v45, %v2258_v7 }
 0x5e0   :  { %v2246_v28 = vpop.permute.xlu0 %2245 }
 0x5e1   :  { %v2298_v20 = vmax.f32 %v2115_v16, %v2292_v55  ;;  %v2259_v22 = vadd.f32 %v2246_v28, %v8501_v59  ;;  %v2105_v59 = vsel %vm1118_vm8, %v2102_v19, %v2104_v29  ;;  %v8634_v55 = vld [vmem:[#allocation7 + $0x50] ss:$8 sps:$4 sm:$0xff]   ;;  %v8640_v28 = vld [vmem:[#allocation7 + $0x44] ss:$8 sps:$4 sm:$0xff]   ;;  %v8644_v29 = vld [vmem:[#allocation7 + $0x40] ss:$8 sps:$4 sm:$0xff]  }
 0x5e2   :  { %v2117_v52 = vadd.f32 %v2105_v59, %v2083_v53  ;;  %v8682_v59 = vld [vmem:[#allocation7 + $0x10] ss:$8 sps:$4 sm:$0xff]  }
 0x5e3   :  { %v2293_v63 = vadd.f32 %v2280_v0, %v2259_v22  ;;  %v2302_v49 = vpack.c.bf16 %v2298_v20, %v2297_v31  ;;  %v2269_v31 = vrot.slane %v8478_v13, 2  ;;  %v2096_v13 = vsel %vm1118_vm8, %v2093_v34, %v2095_v3  ;;  %v8623_v3 = vld [vmem:[#allocation7 + $0x54] ss:$8 sps:$4 sm:$0xff]   ;;  %v8653_v0 = vld [vmem:[%s10833_s5 + $0x8] sm:$0xff]  }
 0x5e4   :  { %v2061_v21 = vpop.permute.xlu0 %2060  ;;  %v2248_v11 = vpop.permute.xlu1 %2247 }
 0x5e5   :  { %v2299_v62 = vmax.f32 %v2116_v2, %v2293_v63  ;;  %v2260_v42 = vadd.f32 %v2248_v11, %v8509_v54  ;;  %v2078_v57 = vadd.f32 %v2061_v21, %v8315_v27  ;;  %v2271_v39 = vsel %vm1118_vm8, %v2269_v31, %v2270_v26  ;;  %v8664_v63 = vld [vmem:[#allocation7 + $0x24] ss:$8 sps:$4 sm:$0xff]   ;;  %v8668_v21 = vld [vmem:[#allocation7 + $0x20] ss:$8 sps:$4 sm:$0xff]   ;;  %v8671_v11 = vld [vmem:[#allocation7 + $0x14] ss:$8 sps:$4 sm:$0xff]  }
 0x5e7   :  { %v2294_v41 = vadd.f32 %v2282_v36, %v2260_v42  ;;  %v2112_v60 = vadd.f32 %v2094_v56, %v2078_v57  ;;  %v8692_v36 = vld [vmem:[#allocation7] ss:$8 sps:$4 sm:$0xff]  }
 0x5e8   :  { %v2238_v17 = vpop.permute.xlu0 %2237  ;;  %v2063_v12 = vpop.permute.xlu1 %2062 }
 0x5e9   :  { %v2300_v4 = vmax.f32 %v2117_v52, %v2294_v41  ;;  %v2255_v54 = vadd.f32 %v2238_v17, %v8472_v18  ;;  %v2079_v58 = vadd.f32 %v2063_v12, %v8326_v25  ;;  %v2273_v18 = vsel %vm1118_vm8, %v2270_v26, %v2272_v10  ;;  %v8687_v26 = vld [vmem:[#allocation7 + $0x4] ss:$8 sps:$4 sm:$0xff]  }
 0x5eb   :  { %v2289_v51 = vadd.f32 %v2271_v39, %v2255_v54  ;;  %v2303_v32 = vpack.c.bf16 %v2300_v4, %v2299_v62  ;;  %v2113_v47 = vadd.f32 %v2096_v13, %v2079_v58 }
 0x5ec   :  { %v2420_v27 = vpop.permute.xlu0 %2419  ;;  %v2240_v7 = vpop.permute.xlu1 %2239 }
 0x5ed   :  { %v2295_v6 = vmax.f32 %v2112_v60, %v2289_v51  ;;  %v2256_v19 = vadd.f32 %v2240_v7, %v8480_v14  ;;  %7105 = vmatpush3.bf16.msra.mxu1 %v2303_v32 }
 0x5ee   :  { %7106 = vmatprep.subr.bf16.mxu1 %v10886_v38 }
 0x5ef   :  { %v2290_v23 = vadd.f32 %v2273_v18, %v2256_v19 }
 0x5f0   :  { %v8617_v25 = vpop.permute.xlu0 %2604  ;;  %v2422_v45 = vpop.permute.xlu1 %2421 }
 0x5f1   :  { %v2296_v37 = vmax.f32 %v2113_v47, %v2290_v23  ;;  %v2435_v16 = vsel %vm819_vm3, %v2420_v27, %v2422_v45  ;;  %7107 = vmatpush3.bf16.msra.mxu1 %v2302_v49 }
 0x5f2   :  { %6777 = vmatmul.mubr.msk.bf16.vlgmr.msra.gmra.mxu0 %vm977_vm2, %v2435_v16  ;;  %7108 = vmatprep.subr.bf16.mxu1 %v10886_v38 }
 0x5f3   :  { %v2301_v14 = vpack.c.bf16 %v2296_v37, %v2295_v6  ;;  %2493 = vmatprep.mubr.bf16.mxu0 %v10887_v8 }
 0x5f4   :  { %v2424_v48 = vpop.permute.xlu0 %2423  ;;  %v2607_v43 = vpop.permute.xlu1 %2606 }
 0x5f5   :  { %7109 = vmatpush3.bf16.msra.mxu1 %v2301_v14  ;;  %v2620_v52 = vsel %vm1679_vm10, %v8617_v25, %v2607_v43  ;;  %v8760_v43 = vld [vmem:[#allocation8] ss:$0 sm:$0xff] }
 0x5f6   :  { %2640 = vmatprep.subr.bf16.mxu1 %v8623_v3 }
 0x5f8   :  { %v2609_v10 = vpop.permute.xlu0 %2608  ;;  %v2426_v9 = vpop.permute.xlu1 %2425  ;;  %7111 = vmatmul.mubr.msk.bf16.vlgmr.msra.gmra.mxu1 %vm1346_vm9, %v8629_v33 }
 0x5f9   :  { %v2436_v50 = vsel %vm819_vm3, %v2424_v48, %v2426_v9  ;;  %2641 = vmatpush1.bf16.msra.mxu1 %v8634_v55  ;;  %7114 = vmatprep.mubr.msk.bf16.mxu1 %vm7571_vm7, %v10886_v38 }
 0x5fa   :  { %6778 = vmatmul.mubr.msk.bf16.gmra.mxu0 %vm977_vm2, %v2436_v50  ;;  %2642 = vmatprep.subr.bf16.mxu1 %v8640_v28 }
 0x5fb   :  { %2503 = vmatprep.mubr.bf16.mxu0 %v10887_v8 }
 0x5fc   :  { %v2428_v20 = vpop.permute.xlu0 %2427  ;;  %v2611_v22 = vpop.permute.xlu1 %2610 }
 0x5fd   :  { %2643 = vmatpush1.bf16.msra.mxu1 %v8644_v29  ;;  %v2621_v57 = vsel %vm1679_vm10, %v2609_v10, %v2611_v22 }
 0x5fe   :  { %2644 = vmatprep.subr.bf16.mxu1 %v8647_v30 }
 0x600   :  { %v2430_v61 = vpop.permute.xlu1 %2429  ;;  %7115 = vmatmul.mubr.msk.bf16.gmra.mxu1 %vm1346_vm9, %v8653_v0  ;;  %v2613_v53 = vpop.permute.xlu0 %2612 }
 0x601   :  { %v2437_v2 = vsel %vm819_vm3, %v2428_v20, %v2430_v61  ;;  %2645 = vmatpush1.bf16.msra.mxu1 %v8658_v35  ;;  %7118 = vmatprep.mubr.msk.bf16.mxu1 %vm7571_vm7, %v10886_v38 }
 0x602   :  { %6779 = vmatmul.mubr.msk.bf16.gmra.mxu0 %vm977_vm2, %v2437_v2  ;;  %2646 = vmatprep.subr.bf16.mxu1 %v8664_v63 }
 0x603   :  { %2513 = vmatprep.mubr.bf16.mxu0 %v10887_v8 }
 0x604   :  { %v2615_v49 = vpop.permute.xlu1 %2614  ;;  %v2432_v62 = vpop.permute.xlu0 %2431 }
 0x605   :  { %2647 = vmatpush1.bf16.msra.mxu1 %v8668_v21  ;;  %v2622_v41 = vsel %vm1679_vm10, %v2613_v53, %v2615_v49 }
 0x606   :  { %2648 = vmatprep.subr.bf16.mxu1 %v8671_v11 }
 0x608   :  { %v2434_v42 = vpop.permute.xlu1 %2433  ;;  %7119 = vmatmul.mubr.msk.bf16.gmra.mxu1 %vm1346_vm9, %v8677_v1  ;;  %v2617_v15 = vpop.permute.xlu0 %2616 }
 0x609   :  { %v2438_v34 = vsel %vm819_vm3, %v2432_v62, %v2434_v42  ;;  %2649 = vmatpush1.bf16.msra.mxu1 %v8682_v59  ;;  %2668 = vmatprep.mubr.bf16.mxu1 %v10887_v8 }
 0x60a   :  { %6780 = vmatmul.mubr.msk.bf16.gmra.mxu0 %vm977_vm2, %v2438_v34  ;;  %2650 = vmatprep.subr.bf16.mxu1 %v8687_v26 }
 0x60b   :  { %7128 = vmatprep.mubr.msk.bf16.mxu0 %vm7571_vm7, %v10886_v38 }
 0x60c   :  { %v2619_v5 = vpop.permute.xlu1 %2618 }
 0x60d   :  { %2651 = vmatpush1.bf16.msra.mxu1 %v8692_v36  ;;  %v2623_v31 = vsel %vm1679_vm10, %v2617_v15, %v2619_v5 }
 0x60e   :  { %2909 = vmatprep.subr.bf16.mxu1 %v8623_v3 }
 0x610   :  { %6781 = vmatmul.mubr.msk.bf16.vlgmr.msra.gmra.mxu1 %vm977_vm2, %v2620_v52 }
 0x611   :  { %2678 = vmatprep.mubr.bf16.mxu1 %v10887_v8  ;;  %2910 = vmatpush1.bf16.msra.mxu1 %v8634_v55 }
 0x612   :  { %2911 = vmatprep.subr.bf16.mxu1 %v8640_v28 }
 0x615   :  { %2912 = vmatpush1.bf16.msra.mxu1 %v8644_v29 }
 0x616   :  { %2913 = vmatprep.subr.bf16.mxu1 %v8647_v30 }
 0x618   :  { %6782 = vmatmul.mubr.msk.bf16.gmra.mxu1 %vm977_vm2, %v2621_v57 }
 0x619   :  { %2688 = vmatprep.mubr.bf16.mxu1 %v10887_v8  ;;  %2914 = vmatpush1.bf16.msra.mxu1 %v8658_v35 }
 0x61a   :  { %2915 = vmatprep.subr.bf16.mxu1 %v8664_v63 }
 0x61d   :  { %2916 = vmatpush1.bf16.msra.mxu1 %v8668_v21 }
 0x61e   :  { %2917 = vmatprep.subr.bf16.mxu1 %v8671_v11 }
 0x620   :  { %6783 = vmatmul.mubr.msk.bf16.gmra.mxu1 %vm977_vm2, %v2622_v41 }
 0x621   :  { %2698 = vmatprep.mubr.bf16.mxu1 %v10887_v8  ;;  %2918 = vmatpush1.bf16.msra.mxu1 %v8682_v59 }
 0x622   :  { %2919 = vmatprep.subr.bf16.mxu1 %v8687_v26 }
 0x625   :  { %2920 = vmatpush1.bf16.msra.mxu1 %v8692_v36 }
 0x626   :  { %7140 = vmatprep.subr.bf16.mxu1 %v10886_v38 }
 0x628   :  { %6784 = vmatmul.mubr.msk.bf16.gmra.mxu1 %vm977_vm2, %v2623_v31 }
 0x629   :  { %2937 = vmatprep.mubr.bf16.mxu1 %v10887_v8 }
 0x630   :  { %6794 = vmatmul.mubr.msk.bf16.vlgmr.msra.gmra.mxu1 %vm977_vm2, %v8534_v24 }
 0x631   :  { %2947 = vmatprep.mubr.bf16.mxu1 %v10887_v8 }
 0x638   :  { %6795 = vmatmul.mubr.msk.bf16.gmra.mxu1 %vm977_vm2, %v8544_v46 }
 0x639   :  { %2957 = vmatprep.mubr.bf16.mxu1 %v10887_v8 }
 0x640   :  { %6796 = vmatmul.mubr.msk.bf16.gmra.mxu1 %vm977_vm2, %v8553_v40 }
 0x641   :  { %2967 = vmatprep.mubr.bf16.mxu1 %v10887_v8 }
 0x648   :  { %6797 = vmatmul.mubr.msk.bf16.gmra.mxu1 %vm977_vm2, %v8563_v44 }
 0x649   :  { %7146 = vmatprep.mubr.msk.bf16.mxu1 %vm7571_vm7, %v10886_v38 }
 0x6b2   :  { %v8734_v17 = vpop.f32.mrf.mxu0 }
 0x6b4   :  { %v8736_v12 = vpop.f32.mrf.mxu0 }
 0x6b6   :  { %v8738_v4 = vpop.f32.mrf.mxu0 }
 0x6b8   :  { %v2338_v54 = vpop.f32.mrf.mxu1  ;;  %v8740_v56 = vpop.f32.mrf.mxu0 }
 0x6ba   :  { %v7112_v39 = vpop.f32.mrf.mxu1  ;;  %v8742_v60 = vpop.f32.mrf.mxu0 }
 0x6bb   :  { %v2535_v7 = vrot.slane %v8742_v60, 1 }
 0x6bc   :  { %v2341_v51 = vpop.f32.mrf.mxu1  ;;  %v8744_v58 = vpop.f32.mrf.mxu0 }
 0x6be   :  { %v7113_v32 = vpop.f32.mrf.mxu1  ;;  %v2499_v27 = vpop.f32.mrf.mxu0 }
 0x6bf   :  { %v2537_v6 = vrot.slane %v2499_v27, 1 }
 0x6c0   :  { %v2346_v19 = vpop.f32.mrf.mxu1  ;;  %v8747_v13 = vpop.f32.mrf.mxu0 }
 0x6c1   :  { %v2538_v18 = vsel %vm1071_vm6, %v2535_v7, %v2537_v6 }
 0x6c2   :  { %2550 = vrot.lane.b32.xlu0 %v2538_v18, %s7570_s27  ;;  %v7116_v47 = vpop.f32.mrf.mxu1  ;;  %v8753_v23 = vpop.f32.mrf.mxu0 }
 0x6c3   :  { %v2539_v48 = vrot.slane %v8753_v23, 1 }
 0x6c4   :  { %v2349_v25 = vpop.f32.mrf.mxu1  ;;  %v8755_v45 = vpop.f32.mrf.mxu0 }
 0x6c5   :  { %v2361_v37 = vmax.f32 %v2338_v54, %v2349_v25 }
 0x6c6   :  { %v7117_v16 = vpop.f32.mrf.mxu1  ;;  %v8757_v14 = vpop.f32.mrf.mxu0 }
 0x6c7   :  { %v2364_v10 = vadd.f32 %v8760_v43, %v2361_v37  ;;  %v2540_v9 = vrot.slane %v8757_v14, 1 }
 0x6c8   :  { %v2354_v50 = vpop.f32.mrf.mxu1  ;;  %v8764_v20 = vpop.f32.mrf.mxu0 }
 0x6c9   :  { %v2367_v22 = vmax.f32 %v2364_v10, 0.0  ;;  %v2362_v61 = vmax.f32 %v2341_v51, %v2354_v50  ;;  %v2541_v2 = vsel %vm1071_vm6, %v2539_v48, %v2540_v9 }
 0x6ca   :  { %2552 = vrot.lane.b32.xlu1 %v2541_v2, %s7570_s27  ;;  %v7120_v53 = vpop.f32.mrf.mxu1  ;;  %v8768_v49 = vpop.f32.mrf.mxu0 }
 0x6cb   :  { %v6936_v62 = vpack.c.bf16 %v2367_v22, %v2367_v22  ;;  %v2365_v42 = vadd.f32 %v8760_v43, %v2362_v61  ;;  %v2542_v34 = vrot.slane %v8768_v49, 1 }
 0x6cc   :  { %v2357_v52 = vpop.f32.mrf.mxu1  ;;  %v8772_v57 = vpop.f32.mrf.mxu0 }
 0x6cd   :  { %6774 = vst.msk [vmem:[%s10834_s6 + $0x18] sm:$0xf] %vm1441_vm11, %v6936_v62  ;;  %v2368_v41 = vmax.f32 %v2365_v42, 0.0  ;;  %v2363_v5 = vmax.f32 %v2346_v19, %v2357_v52  ;;  %v2543_v15 = vsel %vm1071_vm6, %v2540_v9, %v2542_v34 }
 0x6ce   :  { %2554 = vrot.lane.b32.xlu0 %v2543_v15, %s7570_s27  ;;  %v7121_v31 = vpop.f32.mrf.mxu1  ;;  %v2519_v54 = vpop.f32.mrf.mxu0 }
 0x6cf   :  { %v6937_v39 = vpack.c.bf16 %v2368_v41, %v2368_v41  ;;  %v2366_v51 = vadd.f32 %v8760_v43, %v2363_v5  ;;  %v2544_v32 = vrot.slane %v2519_v54, 1  ;;  %v2533_v54 = vrot.slane %v8738_v4, 1 }
 0x6d0   :  { %v8781_v27 = vpop.f32.mrf.mxu1 }
 0x6d1   :  { %6775 = vst.msk [vmem:[%s10834_s6 + $0x1c] sm:$0xf] %vm1441_vm11, %v6937_v39  ;;  %v2369_v6 = vmax.f32 %v2366_v51, 0.0  ;;  %v2545_v19 = vsel %vm1071_vm6, %v2542_v34, %v2544_v32  ;;  %v2532_v32 = vrot.slane %v8734_v17, 1 }
 0x6d2   :  { %2556 = vrot.lane.b32.xlu1 %v2545_v19, %s7570_s27  ;;  %v8789_v18 = vpop.f32.mrf.mxu1 }
 0x6d3   :  { %v6938_v47 = vpack.c.bf16 %v2369_v6, %v2369_v6 }
 0x6d4   :  { %v8791_v25 = vpop.f32.mrf.mxu1 }
 0x6d5   :  { %6776 = vst.msk [vmem:[%s10834_s6 + $0x20] sm:$0xf] %vm1441_vm11, %v6938_v47  ;;  %v2718_v47 = vrot.slane %v8791_v25, 1 }
 0x6d6   :  { %v8797_v37 = vpop.f32.mrf.mxu1 }
 0x6d8   :  { %v8799_v16 = vpop.f32.mrf.mxu1 }
 0x6d9   :  { %v2720_v9 = vrot.slane %v8799_v16, 1 }
 0x6da   :  { %v8801_v48 = vpop.f32.mrf.mxu1 }
 0x6dc   :  { %v2684_v10 = vpop.f32.mrf.mxu1 }
 0x6dd   :  { %v2722_v50 = vrot.slane %v2684_v10, 1  ;;  %v2534_v10 = vsel %vm1071_vm6, %v2532_v32, %v2533_v54  ;;  %v2721_v32 = vsel %vm1071_vm6, %v2718_v47, %v2720_v9 }
 0x6de   :  { %v8804_v22 = vpop.f32.mrf.mxu1 }
 0x6df   :  { %v2723_v61 = vsel %vm1071_vm6, %v2720_v9, %v2722_v50 }
 0x6e0   :  { %2735 = vrot.lane.b32.xlu0 %v2723_v61, %s7570_s27  ;;  %v8808_v2 = vpop.f32.mrf.mxu1 }
 0x6e1   :  { %v2724_v42 = vrot.slane %v8808_v2, 1 }
 0x6e2   :  { %v8810_v53 = vpop.f32.mrf.mxu1 }
 0x6e4   :  { %v8812_v62 = vpop.f32.mrf.mxu1 }
 0x6e5   :  { %v2725_v34 = vrot.slane %v8812_v62, 1 }
 0x6e6   :  { %v8816_v52 = vpop.f32.mrf.mxu1 }
 0x6e7   :  { %v2726_v41 = vsel %vm1071_vm6, %v2724_v42, %v2725_v34  ;;  %v2717_v42 = vrot.slane %v8781_v27, 1 }
 0x6e8   :  { %2737 = vrot.lane.b32.xlu1 %v2726_v41, %s7570_s27  ;;  %v8820_v5 = vpop.f32.mrf.mxu1 }
 0x6e9   :  { %v2727_v15 = vrot.slane %v8820_v5, 1  ;;  %v2719_v41 = vsel %vm1071_vm6, %v2717_v42, %v2718_v47 }
 0x6ea   :  { %v8823_v31 = vpop.f32.mrf.mxu1 }
 0x6eb   :  { %v2728_v39 = vsel %vm1071_vm6, %v2725_v34, %v2727_v15 }
 0x6ec   :  { %2739 = vrot.lane.b32.xlu0 %v2728_v39, %s7570_s27  ;;  %v2704_v51 = vpop.f32.mrf.mxu1  ;;  %v2536_v39 = vsel %vm1071_vm6, %v2533_v54, %v2535_v7 }
 0x6ed   :  { %v2729_v6 = vrot.slane %v2704_v51, 1 }
 0x6ee   :  { %v8829_v19 = vpop.f32.mrf.mxu1 }
 0x6ef   :  { %v2730_v50 = vsel %vm1071_vm6, %v2727_v15, %v2729_v6 }
 0x6f0   :  { %2546 = vrot.lane.b32.xlu0 %v2534_v10, %s7570_s27  ;;  %2741 = vrot.lane.b32.xlu1 %v2730_v50, %s7570_s27  ;;  %v8836_v61 = vpop.f32.mrf.mxu1 }
 0x6f2   :  { %v8839_v34 = vpop.f32.mrf.mxu1 }
 0x6f3   :  { %10901 = vst [vmem:[#allocation13_spill] sm:$0xff] %v8839_v34 }
 0x6f4   :  { %2731 = vrot.lane.b32.xlu0 %v2719_v41, %s7570_s27  ;;  %2548 = vrot.lane.b32.xlu1 %v2536_v39, %s7570_s27  ;;  %v8847_v15 = vpop.f32.mrf.mxu1 }
 0x6f6   :  { %v8849_v51 = vpop.f32.mrf.mxu1 }
 0x6f7   :  { %10902 = vst [vmem:[#allocation14_spill] sm:$0xff] %v8849_v51 }
 0x6f8   :  { %3062 = vrot.lane.b32.xlu0 %v8534_v24, %s7569_s0  ;;  %2733 = vrot.lane.b32.xlu1 %v2721_v32, %s7570_s27  ;;  %v8855_v6 = vpop.f32.mrf.mxu1 }
 0x6f9   :  { %v10848_v54 = vrot.slane %v8855_v6, 1 }
 0x6fa   :  { %v8857_v10 = vpop.f32.mrf.mxu1 }
 0x6fb   :  { %10903 = vst [vmem:[#allocation18_spill] sm:$0xff] %v8857_v10 }
 0x6fc   :  { %3066 = vrot.lane.b32.xlu0 %v8553_v40, %s7569_s0  ;;  %3064 = vrot.lane.b32.xlu1 %v8544_v46, %s7569_s0  ;;  %v2953_v7 = vpop.f32.mrf.mxu1 }
 0x6fd   :  { %v2991_v50 = vrot.slane %v2953_v7, 1 }
 0x6fe   :  { %v8864_v9 = vpop.f32.mrf.mxu1 }
 0x6ff   :  { %10904 = vst [vmem:[#allocation17_spill] sm:$0xff] %v8864_v9  ;;  %v2992_v24 = vsel %vm1071_vm6, %v10848_v54, %v2991_v50 }
 0x700   :  { %3068 = vrot.lane.b32.xlu1 %v8563_v44, %s7569_s0  ;;  %3004 = vrot.lane.b32.xlu0 %v2992_v24, %s7570_s27  ;;  %v8872_v47 = vpop.f32.mrf.mxu1 }
 0x701   :  { %10905 = vst [vmem:[#allocation22_spill] sm:$0xff] %v8872_v47  ;;  %v2993_v42 = vrot.slane %v8872_v47, 1 }
 0x702   :  { %v8874_v40 = vpop.f32.mrf.mxu1 }
 0x703   :  { %10906 = vst [vmem:[#allocation19_spill] sm:$0xff] %v8874_v40  ;;  %v2768_v40 = vrot.slane %v8804_v22, 2 }
 0x704   :  { %v8876_v46 = vpop.f32.mrf.mxu1 }
 0x705   :  { %10907 = vst [vmem:[#allocation20_spill] sm:$0xff] %v8876_v46  ;;  %v2994_v41 = vrot.slane %v8876_v46, 1 }
 0x706   :  { %v8880_v39 = vpop.f32.mrf.mxu1 }
 0x707   :  { %10908 = vst [vmem:[#allocation24_spill] sm:$0xff] %v8880_v39  ;;  %v2995_v32 = vsel %vm1071_vm6, %v2993_v42, %v2994_v41  ;;  %v2771_v39 = vrot.slane %v8816_v52, 2 }
 0x708   :  { %3006 = vrot.lane.b32.xlu1 %v2995_v32, %s7570_s27  ;;  %v8884_v7 = vpop.f32.mrf.mxu1  ;;  %v2583_v32 = vrot.slane %v8747_v13, 2 }
 0x709   :  { %10909 = vst [vmem:[#allocation21_spill] sm:$0xff] %v8884_v7  ;;  %v2996_v44 = vrot.slane %v8884_v7, 1 }
 0x70a   :  { %v8887_v50 = vpop.f32.mrf.mxu1 }
 0x70b   :  { %10910 = vst [vmem:[#allocation23_spill] sm:$0xff] %v8887_v50  ;;  %v2997_v24 = vsel %vm1071_vm6, %v2994_v41, %v2996_v44  ;;  %v10853_v50 = vrot.slane %v8744_v58, 2  ;;  %v2766_v41 = vrot.slane %v8801_v48, 2 }
 0x70c   :  { %3008 = vrot.lane.b32.xlu0 %v2997_v24, %s7570_s27  ;;  %v2973_v54 = vpop.f32.mrf.mxu1 }
 0x70d   :  { %v2998_v34 = vrot.slane %v2973_v54, 1  ;;  %v2769_v13 = vsel %vm1118_vm8, %v2766_v41, %v2768_v40  ;;  %v2773_v40 = vrot.slane %v8823_v31, 2 }
 0x70f   :  { %v2999_v51 = vsel %vm1071_vm6, %v2996_v44, %v2998_v34  ;;  %v2584_v34 = vsel %vm1118_vm8, %v10853_v50, %v2583_v32  ;;  %v2588_v50 = vrot.slane %v8772_v57, 2  ;;  %v2774_v31 = vsel %vm1118_vm8, %v2771_v39, %v2773_v40 }
 0x710   :  { %3010 = vrot.lane.b32.xlu1 %v2999_v51, %s7570_s27 }
 0x734   :  { %v2551_v46 = vpop.permute.xlu0 %2550 }
 0x735   :  { %v2566_v7 = vadd.f32 %v2551_v46, %v8742_v60  ;;  %v2586_v46 = vrot.slane %v8764_v20, 2  ;;  %v2521_v20 = vpop.f32.mrf.mxu0 }
 0x737   :  { %v2600_v51 = vadd.f32 %v2584_v34, %v2566_v7  ;;  %v2589_v57 = vsel %vm1118_vm8, %v2586_v46, %v2588_v50 }
 0x73c   :  { %v2553_v47 = vpop.permute.xlu1 %2552 }
 0x73d   :  { %v2567_v10 = vadd.f32 %v2553_v47, %v8753_v23 }
 0x740   :  { %v2555_v42 = vpop.permute.xlu0 %2554 }
 0x741   :  { %v2568_v52 = vadd.f32 %v2555_v42, %v8757_v14 }
 0x744   :  { %v2557_v44 = vpop.permute.xlu1 %2556 }
 0x752   :  { %v2736_v24 = vpop.permute.xlu0 %2735 }
 0x753   :  { %v2751_v54 = vadd.f32 %v2736_v24, %v8799_v16  ;;  %v2585_v16 = vrot.slane %v8755_v45, 2  ;;  %v2770_v24 = vrot.slane %v8810_v53, 2 }
 0x755   :  { %v2785_v22 = vadd.f32 %v2769_v13, %v2751_v54  ;;  %v2587_v7 = vsel %vm1118_vm8, %v2585_v16, %v2586_v46  ;;  %v2772_v54 = vsel %vm1118_vm8, %v2770_v24, %v2771_v39  ;;  %v2590_v13 = vrot.slane %v2521_v20, 2 }
 0x756   :  { %v2601_v34 = vadd.f32 %v2587_v7, %v2567_v10 }
 0x757   :  { %v2791_v60 = vmax.f32 %v2600_v51, %v2785_v22  ;;  %v2569_v51 = vadd.f32 %v2557_v44, %v8768_v49  ;;  %v2578_v49 = vrot.slane %v8736_v12, 2  ;;  %v2763_v44 = vrot.slane %v8789_v18, 2 }
 0x758   :  { %v10911_v18 = vrot.slane %v8744_v58, 2 }
 0x75a   :  { %v2738_v9 = vpop.permute.xlu1 %2737 }
 0x75b   :  { %v2752_v32 = vadd.f32 %v2738_v9, %v8808_v2  ;;  %v2775_v2 = vrot.slane %v8829_v19, 2  ;;  %v2602_v9 = vadd.f32 %v2589_v57, %v2568_v52  ;;  %v2591_v19 = vsel %vm1118_vm8, %v2588_v50, %v2590_v13 }
 0x75c   :  { %v2603_v7 = vadd.f32 %v2591_v19, %v2569_v51 }
 0x75d   :  { %v2786_v23 = vadd.f32 %v2772_v54, %v2752_v32  ;;  %v2579_v32 = vrot.slane %v8740_v56, 2  ;;  %v2776_v46 = vsel %vm1118_vm8, %v2773_v40, %v2775_v2 }
 0x75e   :  { %v2740_v47 = vpop.permute.xlu0 %2739 }
 0x75f   :  { %v2792_v45 = vmax.f32 %v2601_v34, %v2786_v23  ;;  %v2753_v53 = vadd.f32 %v2740_v47, %v8812_v62  ;;  %v2764_v62 = vrot.slane %v8797_v37, 2  ;;  %v2580_v56 = vsel %vm1118_vm8, %v2578_v49, %v2579_v32 }
 0x761   :  { %v2787_v22 = vadd.f32 %v2774_v31, %v2753_v53  ;;  %v2796_v16 = vpack.c.bf16 %v2792_v45, %v2791_v60  ;;  %v2765_v37 = vsel %vm1118_vm8, %v2763_v44, %v2764_v62  ;;  %v2582_v45 = vsel %vm1118_vm8, %v2579_v32, %v10911_v18 }
 0x762   :  { %v2547_v10 = vpop.permute.xlu0 %2546  ;;  %v2742_v24 = vpop.permute.xlu1 %2741  ;;  %v2986_v18 = vrot.slane %v8836_v61, 1 }
 0x763   :  { %v2793_v14 = vmax.f32 %v2602_v9, %v2787_v22  ;;  %v2754_v42 = vadd.f32 %v2742_v24, %v8820_v5  ;;  %v2564_v39 = vadd.f32 %v2547_v10, %v8734_v17 }
 0x765   :  { %v2788_v54 = vadd.f32 %v2776_v46, %v2754_v42  ;;  %v2598_v50 = vadd.f32 %v2580_v56, %v2564_v39 }
 0x766   :  { %v2732_v60 = vpop.permute.xlu0 %2731  ;;  %v2549_v20 = vpop.permute.xlu1 %2548 }
 0x767   :  { %v2794_v34 = vmax.f32 %v2603_v7, %v2788_v54  ;;  %v2749_v5 = vadd.f32 %v2732_v60, %v8781_v27  ;;  %v2565_v40 = vadd.f32 %v2549_v20, %v8738_v4  ;;  %v2767_v27 = vsel %vm1118_vm8, %v2764_v62, %v2766_v41 }
 0x769   :  { %v2783_v52 = vadd.f32 %v2765_v37, %v2749_v5  ;;  %v2797_v23 = vpack.c.bf16 %v2794_v34, %v2793_v14  ;;  %v2599_v53 = vadd.f32 %v2582_v45, %v2565_v40 }
 0x76a   :  { %v2734_v17 = vpop.permute.xlu1 %2733 }
 0x76b   :  { %v2789_v47 = vmax.f32 %v2598_v50, %v2783_v52  ;;  %v2750_v12 = vadd.f32 %v2734_v17, %v8791_v25  ;;  %7123 = vmatpush3.bf16.msra.mxu0 %v2797_v23  ;;  %v2987_v17 = vrot.slane %v8847_v15, 1 }
 0x76c   :  { %7124 = vmatprep.subr.bf16.mxu0 %v10886_v38 }
 0x76d   :  { %v2784_v13 = vadd.f32 %v2767_v27, %v2750_v12 }
 0x76f   :  { %v2790_v2 = vmax.f32 %v2599_v53, %v2784_v13  ;;  %7125 = vmatpush3.bf16.msra.mxu0 %v2796_v16  ;;  %v2988_v53 = vsel %vm1071_vm6, %v2986_v18, %v2987_v17 }
 0x770   :  { %7126 = vmatprep.subr.bf16.mxu0 %v10886_v38 }
 0x771   :  { %v2795_v4 = vpack.c.bf16 %v2790_v2, %v2789_v47 }
 0x773   :  { %7127 = vmatpush3.bf16.msra.mxu0 %v2795_v4 }
 0x774   :  { %3086 = vmatprep.subr.bf16.mxu0 %v8623_v3 }
 0x776   :  { %7129 = vmatmul.mubr.msk.bf16.vlgmr.msra.gmra.mxu0 %vm1346_vm9, %v8629_v33  ;;  %v3063_v33 = vpop.permute.xlu0 %3062 }
 0x777   :  { %3087 = vmatpush1.bf16.msra.mxu0 %v8634_v55  ;;  %7132 = vmatprep.mubr.msk.bf16.mxu0 %vm7571_vm7, %v10886_v38 }
 0x778   :  { %3088 = vmatprep.subr.bf16.mxu0 %v8640_v28 }
 0x77b   :  { %3089 = vmatpush1.bf16.msra.mxu0 %v8644_v29 }
 0x77c   :  { %3090 = vmatprep.subr.bf16.mxu0 %v8647_v30 }
 0x77e   :  { %7133 = vmatmul.mubr.msk.bf16.gmra.mxu0 %vm1346_vm9, %v8653_v0  ;;  %v3065_v0 = vpop.permute.xlu1 %3064 }
 0x77f   :  { %3091 = vmatpush1.bf16.msra.mxu0 %v8658_v35  ;;  %7136 = vmatprep.mubr.msk.bf16.mxu0 %vm7571_vm7, %v10886_v38 }
 0x780   :  { %3092 = vmatprep.subr.bf16.mxu0 %v8664_v63 }
 0x783   :  { %3093 = vmatpush1.bf16.msra.mxu0 %v8668_v21 }
 0x784   :  { %3094 = vmatprep.subr.bf16.mxu0 %v8671_v11 }
 0x786   :  { %7137 = vmatmul.mubr.msk.bf16.gmra.mxu0 %vm1346_vm9, %v8677_v1 }
 0x787   :  { %3095 = vmatpush1.bf16.msra.mxu0 %v8682_v59  ;;  %3114 = vmatprep.mubr.bf16.mxu0 %v10887_v8 }
 0x788   :  { %3096 = vmatprep.subr.bf16.mxu0 %v8687_v26 }
 0x78b   :  { %3097 = vmatpush1.bf16.msra.mxu0 %v8692_v36 }
 0x78c   :  { %3395 = vmatprep.subr.bf16.mxu0 %v8623_v3  ;;  %v3067_v3 = vpop.permute.xlu0 %3066 }
 0x78e   :  { %6798 = vmatmul.mubr.msk.bf16.vlgmr.msra.gmra.mxu0 %vm977_vm2, %v3063_v33  ;;  %v10912_v33 = vrot.slane %v8855_v6, 1 }
 0x78f   :  { %3124 = vmatprep.mubr.bf16.mxu0 %v10887_v8  ;;  %3396 = vmatpush1.bf16.msra.mxu0 %v8634_v55  ;;  %v3069_v55 = vpop.permute.xlu1 %3068 }
 0x790   :  { %3397 = vmatprep.subr.bf16.mxu0 %v8640_v28 }
 0x793   :  { %3398 = vmatpush1.bf16.msra.mxu0 %v8644_v29 }
 0x794   :  { %3399 = vmatprep.subr.bf16.mxu0 %v8647_v30 }
 0x796   :  { %6799 = vmatmul.mubr.msk.bf16.gmra.mxu0 %vm977_vm2, %v3065_v0  ;;  %v2990_v0 = vsel %vm1071_vm6, %v2987_v17, %v10912_v33  ;;  %v10916_v33 = vld [vmem:[#allocation22_spill] sm:$0xff] }
 0x797   :  { %3134 = vmatprep.mubr.bf16.mxu0 %v10887_v8  ;;  %3400 = vmatpush1.bf16.msra.mxu0 %v8658_v35 }
 0x798   :  { %3401 = vmatprep.subr.bf16.mxu0 %v8664_v63 }
 0x79b   :  { %3402 = vmatpush1.bf16.msra.mxu0 %v8668_v21 }
 0x79c   :  { %3403 = vmatprep.subr.bf16.mxu0 %v8671_v11 }
 0x79e   :  { %6800 = vmatmul.mubr.msk.bf16.gmra.mxu0 %vm977_vm2, %v3067_v3  ;;  %v3327_v3 = vld [vmem:[#allocation2 + $0x10] sm:$0xff] }
 0x79f   :  { %3144 = vmatprep.mubr.bf16.mxu0 %v10887_v8  ;;  %3404 = vmatpush1.bf16.msra.mxu0 %v8682_v59 }
 0x7a0   :  { %3405 = vmatprep.subr.bf16.mxu0 %v8687_v26 }
 0x7a3   :  { %3406 = vmatpush1.bf16.msra.mxu0 %v8692_v36 }
 0x7a4   :  { %7158 = vmatprep.subr.bf16.mxu0 %v10886_v38 }
 0x7a6   :  { %6801 = vmatmul.mubr.msk.bf16.gmra.mxu0 %vm977_vm2, %v3069_v55  ;;  %v3329_v55 = vld [vmem:[#allocation2 + $0x48] sm:$0xff] }
 0x7a7   :  { %3423 = vmatprep.mubr.bf16.mxu0 %v10887_v8 }
 0x836   :  { %v2832_v28 = vpop.f32.mrf.mxu0 }
 0x838   :  { %v7130_v29 = vpop.f32.mrf.mxu0 }
 0x83a   :  { %v2835_v30 = vpop.f32.mrf.mxu0 }
 0x83c   :  { %v7131_v35 = vpop.f32.mrf.mxu0 }
 0x83d   :  { %v3330_v35 = vld [vmem:[#allocation2 + $0x50] sm:$0xff] }
 0x83e   :  { %v2840_v63 = vpop.f32.mrf.mxu0 }
 0x840   :  { %v7134_v21 = vpop.f32.mrf.mxu0 }
 0x841   :  { %v3331_v21 = vld [vmem:[#allocation2 + $0x80] sm:$0xff] }
 0x842   :  { %v2843_v11 = vpop.f32.mrf.mxu0 }
 0x843   :  { %v2855_v1 = vmax.f32 %v2832_v28, %v2843_v11  ;;  %v3343_v28 = vpack.c.bf16 %v3329_v55, %v3327_v3  ;;  %v3333_v11 = vld [vmem:[#allocation2 + $0xb8] sm:$0xff]  ;;  %v10917_v3 = vld [vmem:[#allocation19_spill] sm:$0xff] }
 0x844   :  { %v7135_v59 = vpop.f32.mrf.mxu0 }
 0x845   :  { %v2858_v26 = vadd.f32 %v8760_v43, %v2855_v1  ;;  %v3345_v1 = vpack.c.bf16 %v3333_v11, %v3331_v21  ;;  %v3332_v59 = vld [vmem:[#allocation2 + $0x88] sm:$0xff] }
 0x846   :  { %v2848_v58 = vpop.f32.mrf.mxu0 }
 0x847   :  { %v2861_v36 = vmax.f32 %v2858_v26, 0.0  ;;  %v2856_v25 = vmax.f32 %v2835_v30, %v2848_v58  ;;  %v3328_v30 = vld [vmem:[#allocation2 + $0x18] sm:$0xff]  ;;  %v3334_v26 = vld [vmem:[#allocation2 + $0xc0] sm:$0xff] }
 0x848   :  { %v7138_v48 = vpop.f32.mrf.mxu0  ;;  %v9062_v58 = vpack.c.bf16 %v3334_v26, %v3332_v59  ;;  %v2975_v59 = vpop.f32.mrf.mxu1 }
 0x849   :  { %v6939_v41 = vpack.c.bf16 %v2861_v36, %v2861_v36  ;;  %v2859_v57 = vadd.f32 %v8760_v43, %v2856_v25  ;;  %v3335_v36 = vld [vmem:[#allocation2 + $0xf0] sm:$0xff]  ;;  %v3337_v25 = vld [vmem:[#allocation2 + $0x128] sm:$0xff] }
 0x84a   :  { %v2851_v31 = vpop.f32.mrf.mxu0  ;;  %v3347_v48 = vpack.c.bf16 %v3337_v25, %v3335_v36 }
 0x84b   :  { %6791 = vst.msk [vmem:[%s10834_s6 + $0x24] sm:$0xf] %vm1441_vm11, %v6939_v41  ;;  %v2862_v9 = vmax.f32 %v2859_v57, 0.0  ;;  %v2857_v51 = vmax.f32 %v2840_v63, %v2851_v31  ;;  %v9054_v63 = vpack.c.bf16 %v3330_v35, %v3328_v30  ;;  %v3336_v41 = vld [vmem:[#allocation2 + $0xf8] sm:$0xff]  ;;  %v3338_v57 = vld [vmem:[#allocation2 + $0x130] sm:$0xff] }
 0x84c   :  { %v7139_v22 = vpop.f32.mrf.mxu0  ;;  %v9070_v31 = vpack.c.bf16 %v3338_v57, %v3336_v41  ;;  %v10918_v30 = vld [vmem:[#allocation23_spill] sm:$0xff] }
 0x84d   :  { %v6940_v16 = vpack.c.bf16 %v2862_v9, %v2862_v9  ;;  %v2860_v10 = vadd.f32 %v8760_v43, %v2857_v51  ;;  %v3339_v9 = vld [vmem:[#allocation2 + $0x160] sm:$0xff]  ;;  %v3341_v51 = vld [vmem:[#allocation2 + $0x198] sm:$0xff]  ;;  %v3042_v35 = vrot.slane %v10918_v30, 2 }
 0x84e   :  { %v8993_v24 = vpop.f32.mrf.mxu0  ;;  %v3349_v22 = vpack.c.bf16 %v3341_v51, %v3339_v9  ;;  %v3044_v9 = vrot.slane %v2975_v59, 2 }
 0x84f   :  { %6792 = vst.msk [vmem:[%s10834_s6 + $0x28] sm:$0xf] %vm1441_vm11, %v6940_v16  ;;  %v2863_v14 = vmax.f32 %v2860_v10, 0.0  ;;  %v3163_v2 = vrot.slane %v8993_v24, 1  ;;  %v3340_v16 = vld [vmem:[#allocation2 + $0x168] sm:$0xff]  ;;  %v3342_v10 = vld [vmem:[#allocation2 + $0x1a0] sm:$0xff] }
 0x850   :  { %v8999_v42 = vpop.f32.mrf.mxu0 }
 0x851   :  { %v6941_v32 = vpack.c.bf16 %v2863_v14, %v2863_v14  ;;  %v9078_v14 = vpack.c.bf16 %v3342_v10, %v3340_v16 }
 0x852   :  { %v9001_v62 = vpop.f32.mrf.mxu0 }
 0x853   :  { %6793 = vst.msk [vmem:[%s10834_s6 + $0x2c] sm:$0xf] %vm1441_vm11, %v6941_v32  ;;  %v3164_v27 = vrot.slane %v9001_v62, 1  ;;  %v3005_v32 = vpop.permute.xlu0 %3004 }
 0x854   :  { %v9007_v19 = vpop.f32.mrf.mxu0 }
 0x855   :  { %v3165_v4 = vsel %vm1071_vm6, %v3163_v2, %v3164_v27 }
 0x856   :  { %v9009_v43 = vpop.f32.mrf.mxu0 }
 0x857   :  { %v3166_v39 = vrot.slane %v9009_v43, 1 }
 0x858   :  { %v9011_v46 = vpop.f32.mrf.mxu0 }
 0x859   :  { %v3167_v29 = vsel %vm1071_vm6, %v3164_v27, %v3166_v39  ;;  %v3212_v17 = vrot.slane %v9011_v46, 2 }
 0x85a   :  { %v3130_v7 = vpop.f32.mrf.mxu0 }
 0x85b   :  { %v3168_v54 = vrot.slane %v3130_v7, 1  ;;  %v3009_v7 = vpop.permute.xlu0 %3008 }
 0x85c   :  { %v9014_v49 = vpop.f32.mrf.mxu0 }
 0x85d   :  { %v3169_v44 = vsel %vm1071_vm6, %v3166_v39, %v3168_v54  ;;  %v10913_v39 = vld [vmem:[#allocation17_spill] sm:$0xff] }
 0x85e   :  { %3181 = vrot.lane.b32.xlu0 %v3169_v44, %s7570_s27  ;;  %v9018_v60 = vpop.f32.mrf.mxu0  ;;  %v3037_v54 = vrot.slane %v10913_v39, 2  ;;  %v3214_v44 = vrot.slane %v9014_v49, 2 }
 0x85f   :  { %v3170_v5 = vrot.slane %v9018_v60, 1 }
 0x860   :  { %v9020_v20 = vpop.f32.mrf.mxu0 }
 0x861   :  { %v3216_v55 = vrot.slane %v9020_v20, 2 }
 0x862   :  { %v9022_v34 = vpop.f32.mrf.mxu0 }
 0x863   :  { %v3171_v56 = vrot.slane %v9022_v34, 1 }
 0x864   :  { %v9026_v37 = vpop.f32.mrf.mxu0 }
 0x865   :  { %v3172_v50 = vsel %vm1071_vm6, %v3170_v5, %v3171_v56  ;;  %v3020_v5 = vadd.f32 %v3005_v32, %v8855_v6 }
 0x866   :  { %3183 = vrot.lane.b32.xlu1 %v3172_v50, %s7570_s27  ;;  %v9030_v52 = vpop.f32.mrf.mxu0 }
 0x867   :  { %v3173_v40 = vrot.slane %v9030_v52, 1 }
 0x868   :  { %v9033_v23 = vpop.f32.mrf.mxu0 }
 0x869   :  { %v3174_v47 = vsel %vm1071_vm6, %v3171_v56, %v3173_v40  ;;  %v10914_v56 = vld [vmem:[#allocation18_spill] sm:$0xff]  ;;  %v3219_v11 = vrot.slane %v9033_v23, 2  ;;  %v10920_v23 = vld [vmem:[#allocation21_spill] sm:$0xff] }
 0x86a   :  { %3185 = vrot.lane.b32.xlu0 %v3174_v47, %s7570_s27  ;;  %v3150_v12 = vpop.f32.mrf.mxu0  ;;  %v3035_v50 = vrot.slane %v10914_v56, 2 }
 0x86b   :  { %v3175_v45 = vrot.slane %v3150_v12, 1 }
 0x86c   :  { %v3038_v18 = vsel %vm1118_vm8, %v3035_v50, %v3037_v54  ;;  %v3152_v25 = vpop.f32.mrf.mxu0 }
 0x86d   :  { %v3176_v13 = vsel %vm1071_vm6, %v3173_v40, %v3175_v45  ;;  %v3007_v40 = vpop.permute.xlu1 %3006  ;;  %v3215_v45 = vsel %vm1118_vm8, %v3212_v17, %v3214_v44  ;;  %v3054_v27 = vadd.f32 %v3038_v18, %v3020_v5  ;;  %v3221_v51 = vrot.slane %v3152_v25, 2 }
 0x86e   :  { %3000 = vrot.lane.b32.xlu0 %v2988_v53, %s7570_s27  ;;  %3187 = vrot.lane.b32.xlu1 %v3176_v13, %s7570_s27  ;;  %v10915_v13 = vld [vmem:[#allocation24_spill] sm:$0xff] }
 0x86f   :  { %v3040_v2 = vrot.slane %v10915_v13, 2  ;;  %v3222_v18 = vsel %vm1118_vm8, %v3219_v11, %v3221_v51 }
 0x871   :  { %v3011_v53 = vpop.permute.xlu1 %3010 }
 0x872   :  { %3177 = vrot.lane.b32.xlu0 %v3165_v4, %s7570_s27  ;;  %3002 = vrot.lane.b32.xlu1 %v2990_v0, %s7570_s27  ;;  %v3217_v4 = vrot.slane %v9026_v37, 2  ;;  %v3021_v0 = vadd.f32 %v3007_v40, %v10916_v33  ;;  %v10919_v37 = vld [vmem:[#allocation20_spill] sm:$0xff]  ;;  %v3023_v10 = vadd.f32 %v3011_v53, %v10920_v23  ;;  %v10921_v40 = vld [vmem:[#allocation14_spill] sm:$0xff]  ;;  %v10922_v53 = vld [vmem:[#allocation13_spill] sm:$0xff] }
 0x873   :  { %v3022_v36 = vadd.f32 %v3009_v7, %v10919_v37  ;;  %v3032_v13 = vrot.slane %v10922_v53, 2  ;;  %v9173_v23 = vld [vmem:[#allocation7 + $0x30] ss:$8 sps:$4 sm:$0xff]  }
 0x876   :  { %3359 = vrot.lane.b32.xlu0 %v3343_v28, %s7570_s27  ;;  %3179 = vrot.lane.b32.xlu1 %v3167_v29, %s7570_s27 }
 0x87a   :  { %3544 = vrot.lane.b32.xlu0 %v3343_v28, %s7572_s28  ;;  %3361 = vrot.lane.b32.xlu1 %v9054_v63, %s7570_s27 }
 0x87e   :  { %3363 = vrot.lane.b32.xlu0 %v3345_v1, %s7570_s27  ;;  %3546 = vrot.lane.b32.xlu1 %v9054_v63, %s7572_s28 }
 0x882   :  { %3548 = vrot.lane.b32.xlu0 %v3345_v1, %s7572_s28  ;;  %3365 = vrot.lane.b32.xlu1 %v9062_v58, %s7570_s27  ;;  %v3218_v1 = vsel %vm1118_vm8, %v3216_v55, %v3217_v4 }
 0x886   :  { %3367 = vrot.lane.b32.xlu0 %v3347_v48, %s7570_s27  ;;  %3550 = vrot.lane.b32.xlu1 %v9062_v58, %s7572_s28 }
 0x88a   :  { %3552 = vrot.lane.b32.xlu0 %v3347_v48, %s7572_s28  ;;  %3369 = vrot.lane.b32.xlu1 %v9070_v31, %s7570_s27 }
 0x88e   :  { %3371 = vrot.lane.b32.xlu0 %v3349_v22, %s7570_s27  ;;  %3554 = vrot.lane.b32.xlu1 %v9070_v31, %s7572_s28 }
 0x892   :  { %3556 = vrot.lane.b32.xlu0 %v3349_v22, %s7572_s28  ;;  %3373 = vrot.lane.b32.xlu1 %v9078_v14, %s7570_s27  ;;  %v3220_v22 = vsel %vm1118_vm8, %v3217_v4, %v3219_v11 }
 0x896   :  { %3558 = vrot.lane.b32.xlu1 %v9078_v14, %s7572_s28 }
 0x8d0   :  { %v3182_v47 = vpop.permute.xlu0 %3181 }
 0x8d1   :  { %v3197_v12 = vadd.f32 %v3182_v47, %v9009_v43  ;;  %v3039_v43 = vrot.slane %v10917_v3, 2  ;;  %v3033_v47 = vrot.slane %v10921_v40, 2  ;;  %v9192_v40 = vld [vmem:[%s10833_s5 + $0x10] sm:$0xff]  }
 0x8d3   :  { %v3231_v49 = vadd.f32 %v3215_v45, %v3197_v12  ;;  %v3041_v21 = vsel %vm1118_vm8, %v3039_v43, %v3040_v2  ;;  %v3210_v12 = vrot.slane %v9007_v19, 2 }
 0x8d4   :  { %v3055_v26 = vadd.f32 %v3041_v21, %v3021_v0  ;;  %v3034_v0 = vsel %vm1118_vm8, %v3032_v13, %v3033_v47 }
 0x8d5   :  { %v3237_v6 = vmax.f32 %v3054_v27, %v3231_v49 }
 0x8d8   :  { %v3184_v28 = vpop.permute.xlu1 %3183 }
 0x8d9   :  { %v3198_v29 = vadd.f32 %v3184_v28, %v9018_v60  ;;  %v3043_v60 = vsel %vm1118_vm8, %v3040_v2, %v3042_v35 }
 0x8da   :  { %v3056_v16 = vadd.f32 %v3043_v60, %v3022_v36  ;;  %v9144_v36 = vld [vmem:[%s10833_s5] sm:$0xff]   ;;  %v9162_v60 = vld [vmem:[#allocation7 + $0x34] ss:$8 sps:$4 sm:$0xff]  }
 0x8db   :  { %v3232_v48 = vadd.f32 %v3218_v1, %v3198_v29 }
 0x8dc   :  { %v3186_v41 = vpop.permute.xlu0 %3185 }
 0x8dd   :  { %v3238_v57 = vmax.f32 %v3055_v26, %v3232_v48  ;;  %v3199_v20 = vadd.f32 %v3186_v41, %v9022_v34  ;;  %v3045_v34 = vsel %vm1118_vm8, %v3042_v35, %v3044_v9  ;;  %v9149_v48 = vld [vmem:[#allocation7 + $0x50] ss:$8 sps:$4 sm:$0xff]   ;;  %v9155_v41 = vld [vmem:[#allocation7 + $0x44] ss:$8 sps:$4 sm:$0xff]   ;;  %v9159_v9 = vld [vmem:[#allocation7 + $0x40] ss:$8 sps:$4 sm:$0xff]  }
 0x8de   :  { %v3057_v45 = vadd.f32 %v3045_v34, %v3023_v10  ;;  %v9197_v34 = vld [vmem:[#allocation7 + $0x10] ss:$8 sps:$4 sm:$0xff]  }
 0x8df   :  { %v3233_v32 = vadd.f32 %v3220_v22, %v3199_v20  ;;  %v3242_v39 = vpack.c.bf16 %v3238_v57, %v3237_v6  ;;  %v3209_v6 = vrot.slane %v8999_v42, 2  ;;  %v3036_v42 = vsel %vm1118_vm8, %v3033_v47, %v3035_v50  ;;  %v9138_v50 = vld [vmem:[#allocation7 + $0x54] ss:$8 sps:$4 sm:$0xff]   ;;  %v9168_v22 = vld [vmem:[%s10833_s5 + $0x8] sm:$0xff]  }
 0x8e0   :  { %v3001_v54 = vpop.permute.xlu0 %3000  ;;  %v3188_v44 = vpop.permute.xlu1 %3187 }
 0x8e1   :  { %v3239_v7 = vmax.f32 %v3056_v16, %v3233_v32  ;;  %v3200_v5 = vadd.f32 %v3188_v44, %v9030_v52  ;;  %v3018_v27 = vadd.f32 %v3001_v54, %v8836_v61  ;;  %v3211_v3 = vsel %vm1118_vm8, %v3209_v6, %v3210_v12  ;;  %v9179_v32 = vld [vmem:[#allocation7 + $0x24] ss:$8 sps:$4 sm:$0xff]   ;;  %v9183_v54 = vld [vmem:[#allocation7 + $0x20] ss:$8 sps:$4 sm:$0xff]   ;;  %v9186_v44 = vld [vmem:[#allocation7 + $0x14] ss:$8 sps:$4 sm:$0xff]  }
 0x8e3   :  { %v3234_v49 = vadd.f32 %v3222_v18, %v3200_v5  ;;  %v3052_v19 = vadd.f32 %v3034_v0, %v3018_v27  ;;  %v9207_v18 = vld [vmem:[#allocation7] ss:$8 sps:$4 sm:$0xff]  }
 0x8e4   :  { %v3178_v2 = vpop.permute.xlu0 %3177  ;;  %v3003_v4 = vpop.permute.xlu1 %3002 }
 0x8e5   :  { %v3240_v33 = vmax.f32 %v3057_v45, %v3234_v49  ;;  %v3195_v52 = vadd.f32 %v3178_v2, %v8993_v24  ;;  %v3019_v55 = vadd.f32 %v3003_v4, %v8847_v15  ;;  %v3213_v24 = vsel %vm1118_vm8, %v3210_v12, %v3212_v17  ;;  %v9202_v12 = vld [vmem:[#allocation7 + $0x4] ss:$8 sps:$4 sm:$0xff]  }
 0x8e7   :  { %v3229_v43 = vadd.f32 %v3211_v3, %v3195_v52  ;;  %v3243_v28 = vpack.c.bf16 %v3240_v33, %v3239_v7  ;;  %v3053_v21 = vadd.f32 %v3036_v42, %v3019_v55 }
 0x8e8   :  { %v3360_v61 = vpop.permute.xlu0 %3359  ;;  %v3180_v29 = vpop.permute.xlu1 %3179 }
 0x8e9   :  { %v3235_v30 = vmax.f32 %v3052_v19, %v3229_v43  ;;  %v3196_v35 = vadd.f32 %v3180_v29, %v9001_v62  ;;  %7141 = vmatpush3.bf16.msra.mxu1 %v3243_v28 }
 0x8ea   :  { %7142 = vmatprep.subr.bf16.mxu1 %v10886_v38 }
 0x8eb   :  { %v3230_v11 = vadd.f32 %v3213_v24, %v3196_v35 }
 0x8ec   :  { %v9132_v15 = vpop.permute.xlu0 %3544  ;;  %v3362_v1 = vpop.permute.xlu1 %3361 }
 0x8ed   :  { %v3236_v59 = vmax.f32 %v3053_v21, %v3230_v11  ;;  %v3375_v26 = vsel %vm819_vm3, %v3360_v61, %v3362_v1  ;;  %7143 = vmatpush3.bf16.msra.mxu1 %v3242_v39 }
 0x8ee   :  { %6811 = vmatmul.mubr.msk.bf16.vlgmr.msra.gmra.mxu0 %vm977_vm2, %v3375_v26  ;;  %7144 = vmatprep.subr.bf16.mxu1 %v10886_v38 }
 0x8ef   :  { %v3241_v62 = vpack.c.bf16 %v3236_v59, %v3235_v30  ;;  %3433 = vmatprep.mubr.bf16.mxu0 %v10887_v8 }
 0x8f0   :  { %v3364_v46 = vpop.permute.xlu0 %3363  ;;  %v3547_v56 = vpop.permute.xlu1 %3546 }
 0x8f1   :  { %7145 = vmatpush3.bf16.msra.mxu1 %v3241_v62  ;;  %v3560_v45 = vsel %vm1679_vm10, %v9132_v15, %v3547_v56  ;;  %v9275_v56 = vld [vmem:[#allocation8] ss:$0 sm:$0xff] }
 0x8f2   :  { %3580 = vmatprep.subr.bf16.mxu1 %v9138_v50 }
 0x8f4   :  { %v3549_v17 = vpop.permute.xlu0 %3548  ;;  %v3366_v37 = vpop.permute.xlu1 %3365  ;;  %7147 = vmatmul.mubr.msk.bf16.vlgmr.msra.gmra.mxu1 %vm1346_vm9, %v9144_v36 }
 0x8f5   :  { %v3376_v25 = vsel %vm819_vm3, %v3364_v46, %v3366_v37  ;;  %3581 = vmatpush1.bf16.msra.mxu1 %v9149_v48  ;;  %7150 = vmatprep.mubr.msk.bf16.mxu1 %vm7571_vm7, %v10886_v38 }
 0x8f6   :  { %6812 = vmatmul.mubr.msk.bf16.gmra.mxu0 %vm977_vm2, %v3376_v25  ;;  %3582 = vmatprep.subr.bf16.mxu1 %v9155_v41 }
 0x8f7   :  { %3443 = vmatprep.mubr.bf16.mxu0 %v10887_v8 }
 0x8f8   :  { %v3368_v57 = vpop.permute.xlu0 %3367  ;;  %v3551_v20 = vpop.permute.xlu1 %3550 }
 0x8f9   :  { %3583 = vmatpush1.bf16.msra.mxu1 %v9159_v9  ;;  %v3561_v27 = vsel %vm1679_vm10, %v3549_v17, %v3551_v20 }
 0x8fa   :  { %3584 = vmatprep.subr.bf16.mxu1 %v9162_v60 }
 0x8fc   :  { %v3370_v51 = vpop.permute.xlu1 %3369  ;;  %7151 = vmatmul.mubr.msk.bf16.gmra.mxu1 %vm1346_vm9, %v9168_v22  ;;  %v3553_v10 = vpop.permute.xlu0 %3552 }
 0x8fd   :  { %v3377_v16 = vsel %vm819_vm3, %v3368_v57, %v3370_v51  ;;  %3585 = vmatpush1.bf16.msra.mxu1 %v9173_v23  ;;  %7154 = vmatprep.mubr.msk.bf16.mxu1 %vm7571_vm7, %v10886_v38 }
 0x8fe   :  { %6813 = vmatmul.mubr.msk.bf16.gmra.mxu0 %vm977_vm2, %v3377_v16  ;;  %3586 = vmatprep.subr.bf16.mxu1 %v9179_v32 }
 0x8ff   :  { %3453 = vmatprep.mubr.bf16.mxu0 %v10887_v8 }
 0x900   :  { %v3555_v39 = vpop.permute.xlu1 %3554  ;;  %v3372_v7 = vpop.permute.xlu0 %3371 }
 0x901   :  { %3587 = vmatpush1.bf16.msra.mxu1 %v9183_v54  ;;  %v3562_v49 = vsel %vm1679_vm10, %v3553_v10, %v3555_v39 }
 0x902   :  { %3588 = vmatprep.subr.bf16.mxu1 %v9186_v44 }
 0x904   :  { %v3374_v5 = vpop.permute.xlu1 %3373  ;;  %7155 = vmatmul.mubr.msk.bf16.gmra.mxu1 %vm1346_vm9, %v9192_v40  ;;  %v3557_v13 = vpop.permute.xlu0 %3556 }
 0x905   :  { %v3378_v47 = vsel %vm819_vm3, %v3372_v7, %v3374_v5  ;;  %3589 = vmatpush1.bf16.msra.mxu1 %v9197_v34  ;;  %3608 = vmatprep.mubr.bf16.mxu1 %v10887_v8 }
 0x906   :  { %6814 = vmatmul.mubr.msk.bf16.gmra.mxu0 %vm977_vm2, %v3378_v47  ;;  %3590 = vmatprep.subr.bf16.mxu1 %v9202_v12 }
 0x907   :  { %7164 = vmatprep.mubr.msk.bf16.mxu0 %vm7571_vm7, %v10886_v38 }
 0x908   :  { %v3559_v53 = vpop.permute.xlu1 %3558 }
 0x909   :  { %3591 = vmatpush1.bf16.msra.mxu1 %v9207_v18  ;;  %v3563_v6 = vsel %vm1679_vm10, %v3557_v13, %v3559_v53 }
 0x90a   :  { %3849 = vmatprep.subr.bf16.mxu1 %v9138_v50 }
 0x90c   :  { %6815 = vmatmul.mubr.msk.bf16.vlgmr.msra.gmra.mxu1 %vm977_vm2, %v3560_v45 }
 0x90d   :  { %3618 = vmatprep.mubr.bf16.mxu1 %v10887_v8  ;;  %3850 = vmatpush1.bf16.msra.mxu1 %v9149_v48 }
 0x90e   :  { %3851 = vmatprep.subr.bf16.mxu1 %v9155_v41 }
 0x911   :  { %3852 = vmatpush1.bf16.msra.mxu1 %v9159_v9 }
 0x912   :  { %3853 = vmatprep.subr.bf16.mxu1 %v9162_v60 }
 0x914   :  { %6816 = vmatmul.mubr.msk.bf16.gmra.mxu1 %vm977_vm2, %v3561_v27 }
 0x915   :  { %3628 = vmatprep.mubr.bf16.mxu1 %v10887_v8  ;;  %3854 = vmatpush1.bf16.msra.mxu1 %v9173_v23 }
 0x916   :  { %3855 = vmatprep.subr.bf16.mxu1 %v9179_v32 }
 0x919   :  { %3856 = vmatpush1.bf16.msra.mxu1 %v9183_v54 }
 0x91a   :  { %3857 = vmatprep.subr.bf16.mxu1 %v9186_v44 }
 0x91c   :  { %6817 = vmatmul.mubr.msk.bf16.gmra.mxu1 %vm977_vm2, %v3562_v49 }
 0x91d   :  { %3638 = vmatprep.mubr.bf16.mxu1 %v10887_v8  ;;  %3858 = vmatpush1.bf16.msra.mxu1 %v9197_v34 }
 0x91e   :  { %3859 = vmatprep.subr.bf16.mxu1 %v9202_v12 }
 0x921   :  { %3860 = vmatpush1.bf16.msra.mxu1 %v9207_v18 }
 0x922   :  { %7176 = vmatprep.subr.bf16.mxu1 %v10886_v38 }
 0x924   :  { %6818 = vmatmul.mubr.msk.bf16.gmra.mxu1 %vm977_vm2, %v3563_v6 }
 0x925   :  { %3877 = vmatprep.mubr.bf16.mxu1 %v10887_v8 }
 0x92c   :  { %6828 = vmatmul.mubr.msk.bf16.vlgmr.msra.gmra.mxu1 %vm977_vm2, %v9054_v63 }
 0x92d   :  { %3887 = vmatprep.mubr.bf16.mxu1 %v10887_v8 }
 0x934   :  { %6829 = vmatmul.mubr.msk.bf16.gmra.mxu1 %vm977_vm2, %v9062_v58 }
 0x935   :  { %3897 = vmatprep.mubr.bf16.mxu1 %v10887_v8 }
 0x93c   :  { %6830 = vmatmul.mubr.msk.bf16.gmra.mxu1 %vm977_vm2, %v9070_v31 }
 0x93d   :  { %3907 = vmatprep.mubr.bf16.mxu1 %v10887_v8 }
 0x944   :  { %6831 = vmatmul.mubr.msk.bf16.gmra.mxu1 %vm977_vm2, %v9078_v14 }
 0x945   :  { %7182 = vmatprep.mubr.msk.bf16.mxu1 %vm7571_vm7, %v10886_v38 }
 0x9ae   :  { %v9249_v2 = vpop.f32.mrf.mxu0 }
 0x9b0   :  { %v9251_v4 = vpop.f32.mrf.mxu0 }
 0x9b2   :  { %v9253_v33 = vpop.f32.mrf.mxu0 }
 0x9b4   :  { %v3278_v52 = vpop.f32.mrf.mxu1  ;;  %v9255_v0 = vpop.f32.mrf.mxu0 }
 0x9b6   :  { %v7148_v3 = vpop.f32.mrf.mxu1  ;;  %v9257_v19 = vpop.f32.mrf.mxu0 }
 0x9b7   :  { %v3475_v29 = vrot.slane %v9257_v19, 1 }
 0x9b8   :  { %v3281_v43 = vpop.f32.mrf.mxu1  ;;  %v9259_v55 = vpop.f32.mrf.mxu0 }
 0x9ba   :  { %v7149_v28 = vpop.f32.mrf.mxu1  ;;  %v3439_v61 = vpop.f32.mrf.mxu0 }
 0x9bb   :  { %v3477_v30 = vrot.slane %v3439_v61, 1 }
 0x9bc   :  { %v3286_v35 = vpop.f32.mrf.mxu1  ;;  %v9262_v42 = vpop.f32.mrf.mxu0 }
 0x9bd   :  { %v3478_v24 = vsel %vm1071_vm6, %v3475_v29, %v3477_v30 }
 0x9be   :  { %3490 = vrot.lane.b32.xlu0 %v3478_v24, %s7570_s27  ;;  %v7152_v21 = vpop.f32.mrf.mxu1  ;;  %v9268_v11 = vpop.f32.mrf.mxu0 }
 0x9bf   :  { %v3479_v46 = vrot.slane %v9268_v11, 1 }
 0x9c0   :  { %v3289_v15 = vpop.f32.mrf.mxu1  ;;  %v9270_v1 = vpop.f32.mrf.mxu0 }
 0x9c1   :  { %v3301_v59 = vmax.f32 %v3278_v52, %v3289_v15 }
 0x9c2   :  { %v7153_v26 = vpop.f32.mrf.mxu1  ;;  %v9272_v62 = vpop.f32.mrf.mxu0 }
 0x9c3   :  { %v3304_v17 = vadd.f32 %v9275_v56, %v3301_v59  ;;  %v3480_v37 = vrot.slane %v9272_v62, 1 }
 0x9c4   :  { %v3294_v25 = vpop.f32.mrf.mxu1  ;;  %v9279_v57 = vpop.f32.mrf.mxu0 }
 0x9c5   :  { %v3307_v20 = vmax.f32 %v3304_v17, 0.0  ;;  %v3302_v51 = vmax.f32 %v3281_v43, %v3294_v25  ;;  %v3481_v16 = vsel %vm1071_vm6, %v3479_v46, %v3480_v37 }
 0x9c6   :  { %3492 = vrot.lane.b32.xlu1 %v3481_v16, %s7570_s27  ;;  %v7156_v10 = vpop.f32.mrf.mxu1  ;;  %v9283_v39 = vpop.f32.mrf.mxu0 }
 0x9c7   :  { %v6942_v7 = vpack.c.bf16 %v3307_v20, %v3307_v20  ;;  %v3305_v5 = vadd.f32 %v9275_v56, %v3302_v51  ;;  %v3482_v47 = vrot.slane %v9283_v39, 1 }
 0x9c8   :  { %v3297_v45 = vpop.f32.mrf.mxu1  ;;  %v9287_v27 = vpop.f32.mrf.mxu0 }
 0x9c9   :  { %6808 = vst.msk [vmem:[%s10834_s6 + $0x30] sm:$0xf] %vm1441_vm11, %v6942_v7  ;;  %v3308_v49 = vmax.f32 %v3305_v5, 0.0  ;;  %v3303_v53 = vmax.f32 %v3286_v35, %v3297_v45  ;;  %v3483_v13 = vsel %vm1071_vm6, %v3480_v37, %v3482_v47 }
 0x9ca   :  { %3494 = vrot.lane.b32.xlu0 %v3483_v13, %s7570_s27  ;;  %v7157_v6 = vpop.f32.mrf.mxu1  ;;  %v3459_v52 = vpop.f32.mrf.mxu0 }
 0x9cb   :  { %v6943_v3 = vpack.c.bf16 %v3308_v49, %v3308_v49  ;;  %v3306_v43 = vadd.f32 %v9275_v56, %v3303_v53  ;;  %v3484_v28 = vrot.slane %v3459_v52, 1  ;;  %v3473_v52 = vrot.slane %v9253_v33, 1 }
 0x9cc   :  { %v9296_v61 = vpop.f32.mrf.mxu1 }
 0x9cd   :  { %6809 = vst.msk [vmem:[%s10834_s6 + $0x34] sm:$0xf] %vm1441_vm11, %v6943_v3  ;;  %v3309_v30 = vmax.f32 %v3306_v43, 0.0  ;;  %v3485_v35 = vsel %vm1071_vm6, %v3482_v47, %v3484_v28  ;;  %v3472_v28 = vrot.slane %v9249_v2, 1 }
 0x9ce   :  { %3496 = vrot.lane.b32.xlu1 %v3485_v35, %s7570_s27  ;;  %v9304_v24 = vpop.f32.mrf.mxu1 }
 0x9cf   :  { %v6944_v21 = vpack.c.bf16 %v3309_v30, %v3309_v30 }
 0x9d0   :  { %v9306_v15 = vpop.f32.mrf.mxu1 }
 0x9d1   :  { %6810 = vst.msk [vmem:[%s10834_s6 + $0x38] sm:$0xf] %vm1441_vm11, %v6944_v21  ;;  %v3658_v21 = vrot.slane %v9306_v15, 1 }
 0x9d2   :  { %v9312_v59 = vpop.f32.mrf.mxu1 }
 0x9d4   :  { %v9314_v26 = vpop.f32.mrf.mxu1 }
 0x9d5   :  { %v3660_v37 = vrot.slane %v9314_v26, 1 }
 0x9d6   :  { %v9316_v46 = vpop.f32.mrf.mxu1 }
 0x9d8   :  { %v3624_v17 = vpop.f32.mrf.mxu1 }
 0x9d9   :  { %v3662_v25 = vrot.slane %v3624_v17, 1  ;;  %v3474_v17 = vsel %vm1071_vm6, %v3472_v28, %v3473_v52  ;;  %v3661_v28 = vsel %vm1071_vm6, %v3658_v21, %v3660_v37 }
 0x9da   :  { %v9319_v20 = vpop.f32.mrf.mxu1 }
 0x9db   :  { %v3663_v51 = vsel %vm1071_vm6, %v3660_v37, %v3662_v25 }
 0x9dc   :  { %3675 = vrot.lane.b32.xlu0 %v3663_v51, %s7570_s27  ;;  %v9323_v16 = vpop.f32.mrf.mxu1 }
 0x9dd   :  { %v3664_v5 = vrot.slane %v9323_v16, 1 }
 0x9de   :  { %v9325_v10 = vpop.f32.mrf.mxu1 }
 0x9e0   :  { %v9327_v7 = vpop.f32.mrf.mxu1 }
 0x9e1   :  { %v3665_v47 = vrot.slane %v9327_v7, 1 }
 0x9e2   :  { %v9331_v45 = vpop.f32.mrf.mxu1 }
 0x9e3   :  { %v3666_v49 = vsel %vm1071_vm6, %v3664_v5, %v3665_v47  ;;  %v3657_v5 = vrot.slane %v9296_v61, 1 }
 0x9e4   :  { %3677 = vrot.lane.b32.xlu1 %v3666_v49, %s7570_s27  ;;  %v9335_v53 = vpop.f32.mrf.mxu1 }
 0x9e5   :  { %v3667_v13 = vrot.slane %v9335_v53, 1  ;;  %v3659_v49 = vsel %vm1071_vm6, %v3657_v5, %v3658_v21 }
 0x9e6   :  { %v9338_v6 = vpop.f32.mrf.mxu1 }
 0x9e7   :  { %v3668_v3 = vsel %vm1071_vm6, %v3665_v47, %v3667_v13 }
 0x9e8   :  { %3679 = vrot.lane.b32.xlu0 %v3668_v3, %s7570_s27  ;;  %v3644_v43 = vpop.f32.mrf.mxu1  ;;  %v3476_v3 = vsel %vm1071_vm6, %v3473_v52, %v3475_v29 }
 0x9e9   :  { %v3669_v30 = vrot.slane %v3644_v43, 1 }
 0x9ea   :  { %v9344_v35 = vpop.f32.mrf.mxu1 }
 0x9eb   :  { %v3670_v25 = vsel %vm1071_vm6, %v3667_v13, %v3669_v30 }
 0x9ec   :  { %3486 = vrot.lane.b32.xlu0 %v3474_v17, %s7570_s27  ;;  %3681 = vrot.lane.b32.xlu1 %v3670_v25, %s7570_s27  ;;  %v9351_v51 = vpop.f32.mrf.mxu1 }
 0x9ee   :  { %v9354_v47 = vpop.f32.mrf.mxu1 }
 0x9ef   :  { %10923 = vst [vmem:[#allocation16_spill] sm:$0xff] %v9354_v47 }
 0x9f0   :  { %3671 = vrot.lane.b32.xlu0 %v3659_v49, %s7570_s27  ;;  %3488 = vrot.lane.b32.xlu1 %v3476_v3, %s7570_s27  ;;  %v9362_v13 = vpop.f32.mrf.mxu1 }
 0x9f2   :  { %v9364_v43 = vpop.f32.mrf.mxu1 }
 0x9f3   :  { %10924 = vst [vmem:[#allocation15_spill] sm:$0xff] %v9364_v43 }
 0x9f4   :  { %4002 = vrot.lane.b32.xlu0 %v9054_v63, %s7569_s0  ;;  %3673 = vrot.lane.b32.xlu1 %v3661_v28, %s7570_s27  ;;  %v9370_v30 = vpop.f32.mrf.mxu1 }
 0x9f5   :  { %v10854_v52 = vrot.slane %v9370_v30, 1 }
 0x9f6   :  { %v9372_v17 = vpop.f32.mrf.mxu1 }
 0x9f7   :  { %10925 = vst [vmem:[#allocation17_spill] sm:$0xff] %v9372_v17 }
 0x9f8   :  { %4006 = vrot.lane.b32.xlu0 %v9070_v31, %s7569_s0  ;;  %4004 = vrot.lane.b32.xlu1 %v9062_v58, %s7569_s0  ;;  %v3893_v29 = vpop.f32.mrf.mxu1 }
 0x9f9   :  { %v3931_v25 = vrot.slane %v3893_v29, 1 }
 0x9fa   :  { %v9379_v37 = vpop.f32.mrf.mxu1 }
 0x9fb   :  { %10926 = vst [vmem:[#allocation18_spill] sm:$0xff] %v9379_v37  ;;  %v3932_v63 = vsel %vm1071_vm6, %v10854_v52, %v3931_v25 }
 0x9fc   :  { %4008 = vrot.lane.b32.xlu1 %v9078_v14, %s7569_s0  ;;  %3944 = vrot.lane.b32.xlu0 %v3932_v63, %s7570_s27  ;;  %v9387_v21 = vpop.f32.mrf.mxu1 }
 0x9fd   :  { %10927 = vst [vmem:[#allocation24_spill] sm:$0xff] %v9387_v21  ;;  %v3933_v5 = vrot.slane %v9387_v21, 1 }
 0x9fe   :  { %v9389_v31 = vpop.f32.mrf.mxu1 }
 0x9ff   :  { %10928 = vst [vmem:[#allocation22_spill] sm:$0xff] %v9389_v31  ;;  %v3708_v31 = vrot.slane %v9319_v20, 2 }
 0xa00   :  { %v9391_v58 = vpop.f32.mrf.mxu1 }
 0xa01   :  { %10929 = vst [vmem:[#allocation19_spill] sm:$0xff] %v9391_v58  ;;  %v3934_v49 = vrot.slane %v9391_v58, 1 }
 0xa02   :  { %v9395_v3 = vpop.f32.mrf.mxu1 }
 0xa03   :  { %10930 = vst [vmem:[#allocation23_spill] sm:$0xff] %v9395_v3  ;;  %v3935_v28 = vsel %vm1071_vm6, %v3933_v5, %v3934_v49  ;;  %v3711_v3 = vrot.slane %v9331_v45, 2 }
 0xa04   :  { %3946 = vrot.lane.b32.xlu1 %v3935_v28, %s7570_s27  ;;  %v9399_v29 = vpop.f32.mrf.mxu1  ;;  %v3523_v28 = vrot.slane %v9262_v42, 2 }
 0xa05   :  { %10931 = vst [vmem:[#allocation20_spill] sm:$0xff] %v9399_v29  ;;  %v3936_v14 = vrot.slane %v9399_v29, 1 }
 0xa06   :  { %v9402_v25 = vpop.f32.mrf.mxu1 }
 0xa07   :  { %10932 = vst [vmem:[#allocation21_spill] sm:$0xff] %v9402_v25  ;;  %v3937_v63 = vsel %vm1071_vm6, %v3934_v49, %v3936_v14  ;;  %v10859_v25 = vrot.slane %v9259_v55, 2  ;;  %v3706_v49 = vrot.slane %v9316_v46, 2 }
 0xa08   :  { %3948 = vrot.lane.b32.xlu0 %v3937_v63, %s7570_s27  ;;  %v3913_v52 = vpop.f32.mrf.mxu1 }
 0xa09   :  { %v3938_v47 = vrot.slane %v3913_v52, 1  ;;  %v3709_v42 = vsel %vm1118_vm8, %v3706_v49, %v3708_v31  ;;  %v3713_v31 = vrot.slane %v9338_v6, 2 }
 0xa0b   :  { %v3939_v43 = vsel %vm1071_vm6, %v3936_v14, %v3938_v47  ;;  %v3524_v47 = vsel %vm1118_vm8, %v10859_v25, %v3523_v28  ;;  %v3528_v25 = vrot.slane %v9287_v27, 2  ;;  %v3714_v6 = vsel %vm1118_vm8, %v3711_v3, %v3713_v31 }
 0xa0c   :  { %3950 = vrot.lane.b32.xlu1 %v3939_v43, %s7570_s27 }
 0xa30   :  { %v3491_v58 = vpop.permute.xlu0 %3490 }
 0xa31   :  { %v3506_v29 = vadd.f32 %v3491_v58, %v9257_v19  ;;  %v3526_v58 = vrot.slane %v9279_v57, 2  ;;  %v3461_v57 = vpop.f32.mrf.mxu0 }
 0xa33   :  { %v3540_v43 = vadd.f32 %v3524_v47, %v3506_v29  ;;  %v3529_v27 = vsel %vm1118_vm8, %v3526_v58, %v3528_v25 }
 0xa38   :  { %v3493_v21 = vpop.permute.xlu1 %3492 }
 0xa39   :  { %v3507_v17 = vadd.f32 %v3493_v21, %v9268_v11 }
 0xa3c   :  { %v3495_v5 = vpop.permute.xlu0 %3494 }
 0xa3d   :  { %v3508_v45 = vadd.f32 %v3495_v5, %v9272_v62 }
 0xa40   :  { %v3497_v14 = vpop.permute.xlu1 %3496 }
 0xa4e   :  { %v3676_v63 = vpop.permute.xlu0 %3675 }
 0xa4f   :  { %v3691_v52 = vadd.f32 %v3676_v63, %v9314_v26  ;;  %v3525_v26 = vrot.slane %v9270_v1, 2  ;;  %v3710_v63 = vrot.slane %v9325_v10, 2 }
 0xa51   :  { %v3725_v20 = vadd.f32 %v3709_v42, %v3691_v52  ;;  %v3527_v29 = vsel %vm1118_vm8, %v3525_v26, %v3526_v58  ;;  %v3712_v52 = vsel %vm1118_vm8, %v3710_v63, %v3711_v3  ;;  %v3530_v42 = vrot.slane %v3461_v57, 2 }
 0xa52   :  { %v3541_v47 = vadd.f32 %v3527_v29, %v3507_v17 }
 0xa53   :  { %v3731_v19 = vmax.f32 %v3540_v43, %v3725_v20  ;;  %v3509_v43 = vadd.f32 %v3497_v14, %v9283_v39  ;;  %v3518_v39 = vrot.slane %v9251_v4, 2  ;;  %v3703_v14 = vrot.slane %v9304_v24, 2 }
 0xa54   :  { %v10933_v24 = vrot.slane %v9259_v55, 2 }
 0xa56   :  { %v3678_v37 = vpop.permute.xlu1 %3677 }
 0xa57   :  { %v3692_v28 = vadd.f32 %v3678_v37, %v9323_v16  ;;  %v3715_v16 = vrot.slane %v9344_v35, 2  ;;  %v3542_v37 = vadd.f32 %v3529_v27, %v3508_v45  ;;  %v3531_v35 = vsel %vm1118_vm8, %v3528_v25, %v3530_v42 }
 0xa58   :  { %v3543_v29 = vadd.f32 %v3531_v35, %v3509_v43 }
 0xa59   :  { %v3726_v11 = vadd.f32 %v3712_v52, %v3692_v28  ;;  %v3519_v28 = vrot.slane %v9255_v0, 2  ;;  %v3716_v58 = vsel %vm1118_vm8, %v3713_v31, %v3715_v16 }
 0xa5a   :  { %v3680_v21 = vpop.permute.xlu0 %3679 }
 0xa5b   :  { %v3732_v1 = vmax.f32 %v3541_v47, %v3726_v11  ;;  %v3693_v10 = vadd.f32 %v3680_v21, %v9327_v7  ;;  %v3704_v7 = vrot.slane %v9312_v59, 2  ;;  %v3520_v0 = vsel %vm1118_vm8, %v3518_v39, %v3519_v28 }
 0xa5d   :  { %v3727_v20 = vadd.f32 %v3714_v6, %v3693_v10  ;;  %v3736_v26 = vpack.c.bf16 %v3732_v1, %v3731_v19  ;;  %v3705_v59 = vsel %vm1118_vm8, %v3703_v14, %v3704_v7  ;;  %v3522_v1 = vsel %vm1118_vm8, %v3519_v28, %v10933_v24 }
 0xa5e   :  { %v3487_v17 = vpop.permute.xlu0 %3486  ;;  %v3682_v63 = vpop.permute.xlu1 %3681  ;;  %v3926_v24 = vrot.slane %v9351_v51, 1 }
 0xa5f   :  { %v3733_v62 = vmax.f32 %v3542_v37, %v3727_v20  ;;  %v3694_v5 = vadd.f32 %v3682_v63, %v9335_v53  ;;  %v3504_v3 = vadd.f32 %v3487_v17, %v9249_v2 }
 0xa61   :  { %v3728_v52 = vadd.f32 %v3716_v58, %v3694_v5  ;;  %v3538_v25 = vadd.f32 %v3520_v0, %v3504_v3 }
 0xa62   :  { %v3672_v19 = vpop.permute.xlu0 %3671  ;;  %v3489_v57 = vpop.permute.xlu1 %3488 }
 0xa63   :  { %v3734_v47 = vmax.f32 %v3543_v29, %v3728_v52  ;;  %v3689_v53 = vadd.f32 %v3672_v19, %v9296_v61  ;;  %v3505_v31 = vadd.f32 %v3489_v57, %v9253_v33  ;;  %v3707_v61 = vsel %vm1118_vm8, %v3704_v7, %v3706_v49 }
 0xa65   :  { %v3723_v45 = vadd.f32 %v3705_v59, %v3689_v53  ;;  %v3737_v11 = vpack.c.bf16 %v3734_v47, %v3733_v62  ;;  %v3539_v10 = vadd.f32 %v3522_v1, %v3505_v31 }
 0xa66   :  { %v3674_v2 = vpop.permute.xlu1 %3673 }
 0xa67   :  { %v3729_v21 = vmax.f32 %v3538_v25, %v3723_v45  ;;  %v3690_v4 = vadd.f32 %v3674_v2, %v9306_v15  ;;  %7159 = vmatpush3.bf16.msra.mxu0 %v3737_v11  ;;  %v3927_v2 = vrot.slane %v9362_v13, 1 }
 0xa68   :  { %7160 = vmatprep.subr.bf16.mxu0 %v10886_v38 }
 0xa69   :  { %v3724_v42 = vadd.f32 %v3707_v61, %v3690_v4 }
 0xa6b   :  { %v3730_v16 = vmax.f32 %v3539_v10, %v3724_v42  ;;  %7161 = vmatpush3.bf16.msra.mxu0 %v3736_v26  ;;  %v3928_v10 = vsel %vm1071_vm6, %v3926_v24, %v3927_v2 }
 0xa6c   :  { %7162 = vmatprep.subr.bf16.mxu0 %v10886_v38 }
 0xa6d   :  { %v3735_v33 = vpack.c.bf16 %v3730_v16, %v3729_v21 }
 0xa6f   :  { %7163 = vmatpush3.bf16.msra.mxu0 %v3735_v33 }
 0xa70   :  { %4026 = vmatprep.subr.bf16.mxu0 %v9138_v50 }
 0xa72   :  { %7165 = vmatmul.mubr.msk.bf16.vlgmr.msra.gmra.mxu0 %vm1346_vm9, %v9144_v36  ;;  %v4003_v36 = vpop.permute.xlu0 %4002 }
 0xa73   :  { %4027 = vmatpush1.bf16.msra.mxu0 %v9149_v48  ;;  %7168 = vmatprep.mubr.msk.bf16.mxu0 %vm7571_vm7, %v10886_v38 }
 0xa74   :  { %4028 = vmatprep.subr.bf16.mxu0 %v9155_v41 }
 0xa77   :  { %4029 = vmatpush1.bf16.msra.mxu0 %v9159_v9 }
 0xa78   :  { %4030 = vmatprep.subr.bf16.mxu0 %v9162_v60 }
 0xa7a   :  { %7169 = vmatmul.mubr.msk.bf16.gmra.mxu0 %vm1346_vm9, %v9168_v22  ;;  %v4005_v22 = vpop.permute.xlu1 %4004 }
 0xa7b   :  { %4031 = vmatpush1.bf16.msra.mxu0 %v9173_v23  ;;  %7172 = vmatprep.mubr.msk.bf16.mxu0 %vm7571_vm7, %v10886_v38 }
 0xa7c   :  { %4032 = vmatprep.subr.bf16.mxu0 %v9179_v32 }
 0xa7f   :  { %4033 = vmatpush1.bf16.msra.mxu0 %v9183_v54 }
 0xa80   :  { %4034 = vmatprep.subr.bf16.mxu0 %v9186_v44 }
 0xa82   :  { %7173 = vmatmul.mubr.msk.bf16.gmra.mxu0 %vm1346_vm9, %v9192_v40 }
 0xa83   :  { %4035 = vmatpush1.bf16.msra.mxu0 %v9197_v34  ;;  %4054 = vmatprep.mubr.bf16.mxu0 %v10887_v8 }
 0xa84   :  { %4036 = vmatprep.subr.bf16.mxu0 %v9202_v12 }
 0xa87   :  { %4037 = vmatpush1.bf16.msra.mxu0 %v9207_v18 }
 0xa88   :  { %4335 = vmatprep.subr.bf16.mxu0 %v9138_v50  ;;  %v4007_v50 = vpop.permute.xlu0 %4006 }
 0xa8a   :  { %6832 = vmatmul.mubr.msk.bf16.vlgmr.msra.gmra.mxu0 %vm977_vm2, %v4003_v36  ;;  %v10934_v36 = vrot.slane %v9370_v30, 1 }
 0xa8b   :  { %4064 = vmatprep.mubr.bf16.mxu0 %v10887_v8  ;;  %4336 = vmatpush1.bf16.msra.mxu0 %v9149_v48  ;;  %v4009_v48 = vpop.permute.xlu1 %4008 }
 0xa8c   :  { %4337 = vmatprep.subr.bf16.mxu0 %v9155_v41 }
 0xa8f   :  { %4338 = vmatpush1.bf16.msra.mxu0 %v9159_v9 }
 0xa90   :  { %4339 = vmatprep.subr.bf16.mxu0 %v9162_v60 }
 0xa92   :  { %6833 = vmatmul.mubr.msk.bf16.gmra.mxu0 %vm977_vm2, %v4005_v22  ;;  %v3930_v22 = vsel %vm1071_vm6, %v3927_v2, %v10934_v36  ;;  %v10938_v36 = vld [vmem:[#allocation24_spill] sm:$0xff] }
 0xa93   :  { %4074 = vmatprep.mubr.bf16.mxu0 %v10887_v8  ;;  %4340 = vmatpush1.bf16.msra.mxu0 %v9173_v23 }
 0xa94   :  { %4341 = vmatprep.subr.bf16.mxu0 %v9179_v32 }
 0xa97   :  { %4342 = vmatpush1.bf16.msra.mxu0 %v9183_v54 }
 0xa98   :  { %4343 = vmatprep.subr.bf16.mxu0 %v9186_v44 }
 0xa9a   :  { %6834 = vmatmul.mubr.msk.bf16.gmra.mxu0 %vm977_vm2, %v4007_v50  ;;  %v4267_v50 = vld [vmem:[#allocation2 + $0x18] sm:$0xff] }
 0xa9b   :  { %4084 = vmatprep.mubr.bf16.mxu0 %v10887_v8  ;;  %4344 = vmatpush1.bf16.msra.mxu0 %v9197_v34 }
 0xa9c   :  { %4345 = vmatprep.subr.bf16.mxu0 %v9202_v12 }
 0xa9f   :  { %4346 = vmatpush1.bf16.msra.mxu0 %v9207_v18 }
 0xaa0   :  { %7194 = vmatprep.subr.bf16.mxu0 %v10886_v38 }
 0xaa2   :  { %6835 = vmatmul.mubr.msk.bf16.gmra.mxu0 %vm977_vm2, %v4009_v48  ;;  %v4269_v48 = vld [vmem:[#allocation2 + $0x50] sm:$0xff] }
 0xaa3   :  { %4363 = vmatprep.mubr.bf16.mxu0 %v10887_v8 }
 0xb32   :  { %v3772_v41 = vpop.f32.mrf.mxu0 }
 0xb34   :  { %v7166_v9 = vpop.f32.mrf.mxu0 }
 0xb36   :  { %v3775_v60 = vpop.f32.mrf.mxu0 }
 0xb38   :  { %v7167_v23 = vpop.f32.mrf.mxu0 }
 0xb39   :  { %v4270_v23 = vld [vmem:[#allocation2 + $0x58] sm:$0xff] }
 0xb3a   :  { %v3780_v32 = vpop.f32.mrf.mxu0 }
 0xb3c   :  { %v7170_v54 = vpop.f32.mrf.mxu0 }
 0xb3d   :  { %v4271_v54 = vld [vmem:[#allocation2 + $0x88] sm:$0xff] }
 0xb3e   :  { %v3783_v44 = vpop.f32.mrf.mxu0 }
 0xb3f   :  { %v3795_v40 = vmax.f32 %v3772_v41, %v3783_v44  ;;  %v4283_v41 = vpack.c.bf16 %v4269_v48, %v4267_v50  ;;  %v4273_v44 = vld [vmem:[#allocation2 + $0xc0] sm:$0xff] }
 0xb40   :  { %v7171_v34 = vpop.f32.mrf.mxu0  ;;  %v10939_v50 = vld [vmem:[#allocation22_spill] sm:$0xff] }
 0xb41   :  { %v3798_v12 = vadd.f32 %v9275_v56, %v3795_v40  ;;  %v4285_v40 = vpack.c.bf16 %v4273_v44, %v4271_v54  ;;  %v4272_v34 = vld [vmem:[#allocation2 + $0x90] sm:$0xff] }
 0xb42   :  { %v3788_v55 = vpop.f32.mrf.mxu0 }
 0xb43   :  { %v3801_v18 = vmax.f32 %v3798_v12, 0.0  ;;  %v3796_v15 = vmax.f32 %v3775_v60, %v3788_v55  ;;  %v4268_v60 = vld [vmem:[#allocation2 + $0x20] sm:$0xff]  ;;  %v4274_v12 = vld [vmem:[#allocation2 + $0xc8] sm:$0xff] }
 0xb44   :  { %v7174_v46 = vpop.f32.mrf.mxu0  ;;  %v9577_v55 = vpack.c.bf16 %v4274_v12, %v4272_v34  ;;  %v3915_v34 = vpop.f32.mrf.mxu1 }
 0xb45   :  { %v6945_v49 = vpack.c.bf16 %v3801_v18, %v3801_v18  ;;  %v3799_v27 = vadd.f32 %v9275_v56, %v3796_v15  ;;  %v4275_v18 = vld [vmem:[#allocation2 + $0xf8] sm:$0xff]  ;;  %v4277_v15 = vld [vmem:[#allocation2 + $0x130] sm:$0xff] }
 0xb46   :  { %v3791_v6 = vpop.f32.mrf.mxu0  ;;  %v4287_v46 = vpack.c.bf16 %v4277_v15, %v4275_v18 }
 0xb47   :  { %6825 = vst.msk [vmem:[%s10834_s6 + $0x3c] sm:$0xf] %vm1441_vm11, %v6945_v49  ;;  %v3802_v37 = vmax.f32 %v3799_v27, 0.0  ;;  %v3797_v43 = vmax.f32 %v3780_v32, %v3791_v6  ;;  %v9569_v32 = vpack.c.bf16 %v4270_v23, %v4268_v60  ;;  %v4276_v49 = vld [vmem:[#allocation2 + $0x100] sm:$0xff]  ;;  %v4278_v27 = vld [vmem:[#allocation2 + $0x138] sm:$0xff] }
 0xb48   :  { %v7175_v20 = vpop.f32.mrf.mxu0  ;;  %v9585_v6 = vpack.c.bf16 %v4278_v27, %v4276_v49  ;;  %v10940_v60 = vld [vmem:[#allocation21_spill] sm:$0xff] }
 0xb49   :  { %v6946_v26 = vpack.c.bf16 %v3802_v37, %v3802_v37  ;;  %v3800_v17 = vadd.f32 %v9275_v56, %v3797_v43  ;;  %v4279_v37 = vld [vmem:[#allocation2 + $0x168] sm:$0xff]  ;;  %v4281_v43 = vld [vmem:[#allocation2 + $0x1a0] sm:$0xff]  ;;  %v3982_v23 = vrot.slane %v10940_v60, 2 }
 0xb4a   :  { %v9508_v63 = vpop.f32.mrf.mxu0  ;;  %v4289_v20 = vpack.c.bf16 %v4281_v43, %v4279_v37  ;;  %v3984_v37 = vrot.slane %v3915_v34, 2 }
 0xb4b   :  { %6826 = vst.msk [vmem:[%s10834_s6 + $0x40] sm:$0xf] %vm1441_vm11, %v6946_v26  ;;  %v3803_v62 = vmax.f32 %v3800_v17, 0.0  ;;  %v4103_v16 = vrot.slane %v9508_v63, 1  ;;  %v4280_v26 = vld [vmem:[#allocation2 + $0x170] sm:$0xff]  ;;  %v4282_v17 = vld [vmem:[#allocation2 + $0x1a8] sm:$0xff] }
 0xb4c   :  { %v9514_v5 = vpop.f32.mrf.mxu0 }
 0xb4d   :  { %v6947_v28 = vpack.c.bf16 %v3803_v62, %v3803_v62  ;;  %v9593_v62 = vpack.c.bf16 %v4282_v17, %v4280_v26 }
 0xb4e   :  { %v9516_v7 = vpop.f32.mrf.mxu0 }
 0xb4f   :  { %6827 = vst.msk [vmem:[%s10834_s6 + $0x44] sm:$0xf] %vm1441_vm11, %v6947_v28  ;;  %v4104_v61 = vrot.slane %v9516_v7, 1  ;;  %v3945_v28 = vpop.permute.xlu0 %3944 }
 0xb50   :  { %v9522_v35 = vpop.f32.mrf.mxu0 }
 0xb51   :  { %v4105_v33 = vsel %vm1071_vm6, %v4103_v16, %v4104_v61 }
 0xb52   :  { %v9524_v56 = vpop.f32.mrf.mxu0 }
 0xb53   :  { %v4106_v3 = vrot.slane %v9524_v56, 1 }
 0xb54   :  { %v9526_v58 = vpop.f32.mrf.mxu0 }
 0xb55   :  { %v4107_v9 = vsel %vm1071_vm6, %v4104_v61, %v4106_v3  ;;  %v4152_v2 = vrot.slane %v9526_v58, 2 }
 0xb56   :  { %v4070_v29 = vpop.f32.mrf.mxu0 }
 0xb57   :  { %v4108_v52 = vrot.slane %v4070_v29, 1  ;;  %v3949_v29 = vpop.permute.xlu0 %3948 }
 0xb58   :  { %v9529_v39 = vpop.f32.mrf.mxu0 }
 0xb59   :  { %v4109_v14 = vsel %vm1071_vm6, %v4106_v3, %v4108_v52  ;;  %v10935_v3 = vld [vmem:[#allocation18_spill] sm:$0xff] }
 0xb5a   :  { %4121 = vrot.lane.b32.xlu0 %v4109_v14, %s7570_s27  ;;  %v9533_v19 = vpop.f32.mrf.mxu0  ;;  %v3977_v52 = vrot.slane %v10935_v3, 2  ;;  %v4154_v14 = vrot.slane %v9529_v39, 2 }
 0xb5b   :  { %v4110_v53 = vrot.slane %v9533_v19, 1 }
 0xb5c   :  { %v9535_v57 = vpop.f32.mrf.mxu0 }
 0xb5d   :  { %v4156_v48 = vrot.slane %v9535_v57, 2 }
 0xb5e   :  { %v9537_v47 = vpop.f32.mrf.mxu0 }
 0xb5f   :  { %v4111_v0 = vrot.slane %v9537_v47, 1 }
 0xb60   :  { %v9541_v59 = vpop.f32.mrf.mxu0 }
 0xb61   :  { %v4112_v25 = vsel %vm1071_vm6, %v4110_v53, %v4111_v0  ;;  %v3960_v53 = vadd.f32 %v3945_v28, %v9370_v30 }
 0xb62   :  { %4123 = vrot.lane.b32.xlu1 %v4112_v25, %s7570_s27  ;;  %v9545_v45 = vpop.f32.mrf.mxu0 }
 0xb63   :  { %v4113_v31 = vrot.slane %v9545_v45, 1 }
 0xb64   :  { %v9548_v11 = vpop.f32.mrf.mxu0 }
 0xb65   :  { %v4114_v21 = vsel %vm1071_vm6, %v4111_v0, %v4113_v31  ;;  %v10936_v0 = vld [vmem:[#allocation17_spill] sm:$0xff]  ;;  %v4159_v44 = vrot.slane %v9548_v11, 2  ;;  %v10942_v11 = vld [vmem:[#allocation20_spill] sm:$0xff] }
 0xb66   :  { %4125 = vrot.lane.b32.xlu0 %v4114_v21, %s7570_s27  ;;  %v4090_v4 = vpop.f32.mrf.mxu0  ;;  %v3975_v25 = vrot.slane %v10936_v0, 2 }
 0xb67   :  { %v4115_v1 = vrot.slane %v4090_v4, 1 }
 0xb68   :  { %v3978_v24 = vsel %vm1118_vm8, %v3975_v25, %v3977_v52  ;;  %v4092_v15 = vpop.f32.mrf.mxu0 }
 0xb69   :  { %v4116_v42 = vsel %vm1071_vm6, %v4113_v31, %v4115_v1  ;;  %v3947_v31 = vpop.permute.xlu1 %3946  ;;  %v4155_v1 = vsel %vm1118_vm8, %v4152_v2, %v4154_v14  ;;  %v3994_v61 = vadd.f32 %v3978_v24, %v3960_v53  ;;  %v4161_v43 = vrot.slane %v4092_v15, 2 }
 0xb6a   :  { %3940 = vrot.lane.b32.xlu0 %v3928_v10, %s7570_s27  ;;  %4127 = vrot.lane.b32.xlu1 %v4116_v42, %s7570_s27  ;;  %v10937_v42 = vld [vmem:[#allocation23_spill] sm:$0xff] }
 0xb6b   :  { %v3980_v16 = vrot.slane %v10937_v42, 2  ;;  %v4162_v24 = vsel %vm1118_vm8, %v4159_v44, %v4161_v43 }
 0xb6d   :  { %v3951_v10 = vpop.permute.xlu1 %3950 }
 0xb6e   :  { %4117 = vrot.lane.b32.xlu0 %v4105_v33, %s7570_s27  ;;  %3942 = vrot.lane.b32.xlu1 %v3930_v22, %s7570_s27  ;;  %v4157_v33 = vrot.slane %v9541_v59, 2  ;;  %v3961_v22 = vadd.f32 %v3947_v31, %v10938_v36  ;;  %v10941_v59 = vld [vmem:[#allocation19_spill] sm:$0xff]  ;;  %v3963_v17 = vadd.f32 %v3951_v10, %v10942_v11  ;;  %v10944_v10 = vld [vmem:[#allocation16_spill] sm:$0xff] }
 0xb6f   :  { %v3962_v18 = vadd.f32 %v3949_v29, %v10941_v59  ;;  %v10943_v31 = vld [vmem:[#allocation15_spill] sm:$0xff]  ;;  %v3972_v42 = vrot.slane %v10944_v10, 2 }
 0xb70   :  { %v9688_v11 = vld [vmem:[#allocation7 + $0x30] ss:$8 sps:$4 sm:$0xff]  }
 0xb72   :  { %4299 = vrot.lane.b32.xlu0 %v4283_v41, %s7570_s27  ;;  %4119 = vrot.lane.b32.xlu1 %v4107_v9, %s7570_s27 }
 0xb76   :  { %4484 = vrot.lane.b32.xlu0 %v4283_v41, %s7572_s28  ;;  %4301 = vrot.lane.b32.xlu1 %v9569_v32, %s7570_s27 }
 0xb7a   :  { %4303 = vrot.lane.b32.xlu0 %v4285_v40, %s7570_s27  ;;  %4486 = vrot.lane.b32.xlu1 %v9569_v32, %s7572_s28 }
 0xb7e   :  { %4488 = vrot.lane.b32.xlu0 %v4285_v40, %s7572_s28  ;;  %4305 = vrot.lane.b32.xlu1 %v9577_v55, %s7570_s27  ;;  %v4158_v40 = vsel %vm1118_vm8, %v4156_v48, %v4157_v33 }
 0xb82   :  { %4307 = vrot.lane.b32.xlu0 %v4287_v46, %s7570_s27  ;;  %4490 = vrot.lane.b32.xlu1 %v9577_v55, %s7572_s28 }
 0xb86   :  { %4492 = vrot.lane.b32.xlu0 %v4287_v46, %s7572_s28  ;;  %4309 = vrot.lane.b32.xlu1 %v9585_v6, %s7570_s27 }
 0xb8a   :  { %4311 = vrot.lane.b32.xlu0 %v4289_v20, %s7570_s27  ;;  %4494 = vrot.lane.b32.xlu1 %v9585_v6, %s7572_s28 }
 0xb8e   :  { %4496 = vrot.lane.b32.xlu0 %v4289_v20, %s7572_s28  ;;  %4313 = vrot.lane.b32.xlu1 %v9593_v62, %s7570_s27  ;;  %v4160_v20 = vsel %vm1118_vm8, %v4157_v33, %v4159_v44 }
 0xb92   :  { %4498 = vrot.lane.b32.xlu1 %v9593_v62, %s7572_s28 }
 0xbcc   :  { %v4122_v21 = vpop.permute.xlu0 %4121 }
 0xbcd   :  { %v4137_v4 = vadd.f32 %v4122_v21, %v9524_v56  ;;  %v3979_v56 = vrot.slane %v10939_v50, 2  ;;  %v3973_v21 = vrot.slane %v10943_v31, 2  ;;  %v9707_v31 = vld [vmem:[%s10833_s5 + $0x10] sm:$0xff]  }
 0xbcf   :  { %v4171_v39 = vadd.f32 %v4155_v1, %v4137_v4  ;;  %v3981_v54 = vsel %vm1118_vm8, %v3979_v56, %v3980_v16  ;;  %v4150_v4 = vrot.slane %v9522_v35, 2 }
 0xbd0   :  { %v3995_v12 = vadd.f32 %v3981_v54, %v3961_v22  ;;  %v3974_v22 = vsel %vm1118_vm8, %v3972_v42, %v3973_v21 }
 0xbd1   :  { %v4177_v30 = vmax.f32 %v3994_v61, %v4171_v39 }
 0xbd4   :  { %v4124_v41 = vpop.permute.xlu1 %4123 }
 0xbd5   :  { %v4138_v9 = vadd.f32 %v4124_v41, %v9533_v19  ;;  %v3983_v19 = vsel %vm1118_vm8, %v3980_v16, %v3982_v23 }
 0xbd6   :  { %v3996_v26 = vadd.f32 %v3983_v19, %v3962_v18  ;;  %v9659_v18 = vld [vmem:[%s10833_s5] sm:$0xff]   ;;  %v9677_v19 = vld [vmem:[#allocation7 + $0x34] ss:$8 sps:$4 sm:$0xff]  }
 0xbd7   :  { %v4172_v46 = vadd.f32 %v4158_v40, %v4138_v9 }
 0xbd8   :  { %v4126_v49 = vpop.permute.xlu0 %4125 }
 0xbd9   :  { %v4178_v27 = vmax.f32 %v3995_v12, %v4172_v46  ;;  %v4139_v57 = vadd.f32 %v4126_v49, %v9537_v47  ;;  %v3985_v47 = vsel %vm1118_vm8, %v3982_v23, %v3984_v37  ;;  %v9664_v46 = vld [vmem:[#allocation7 + $0x50] ss:$8 sps:$4 sm:$0xff]   ;;  %v9670_v49 = vld [vmem:[#allocation7 + $0x44] ss:$8 sps:$4 sm:$0xff]   ;;  %v9674_v37 = vld [vmem:[#allocation7 + $0x40] ss:$8 sps:$4 sm:$0xff]  }
 0xbda   :  { %v3997_v1 = vadd.f32 %v3985_v47, %v3963_v17  ;;  %v9712_v47 = vld [vmem:[#allocation7 + $0x10] ss:$8 sps:$4 sm:$0xff]  }
 0xbdb   :  { %v4173_v28 = vadd.f32 %v4160_v20, %v4139_v57  ;;  %v4182_v3 = vpack.c.bf16 %v4178_v27, %v4177_v30  ;;  %v4149_v30 = vrot.slane %v9514_v5, 2  ;;  %v3976_v5 = vsel %vm1118_vm8, %v3973_v21, %v3975_v25  ;;  %v9653_v25 = vld [vmem:[#allocation7 + $0x54] ss:$8 sps:$4 sm:$0xff]   ;;  %v9683_v20 = vld [vmem:[%s10833_s5 + $0x8] sm:$0xff]  }
 0xbdc   :  { %v3941_v52 = vpop.permute.xlu0 %3940  ;;  %v4128_v14 = vpop.permute.xlu1 %4127 }
 0xbdd   :  { %v4179_v29 = vmax.f32 %v3996_v26, %v4173_v28  ;;  %v4140_v53 = vadd.f32 %v4128_v14, %v9545_v45  ;;  %v3958_v61 = vadd.f32 %v3941_v52, %v9351_v51  ;;  %v4151_v50 = vsel %vm1118_vm8, %v4149_v30, %v4150_v4  ;;  %v9694_v28 = vld [vmem:[#allocation7 + $0x24] ss:$8 sps:$4 sm:$0xff]   ;;  %v9698_v52 = vld [vmem:[#allocation7 + $0x20] ss:$8 sps:$4 sm:$0xff]   ;;  %v9701_v14 = vld [vmem:[#allocation7 + $0x14] ss:$8 sps:$4 sm:$0xff]  }
 0xbdf   :  { %v4174_v39 = vadd.f32 %v4162_v24, %v4140_v53  ;;  %v3992_v35 = vadd.f32 %v3974_v22, %v3958_v61  ;;  %v9722_v24 = vld [vmem:[#allocation7] ss:$8 sps:$4 sm:$0xff]  }
 0xbe0   :  { %v4118_v16 = vpop.permute.xlu0 %4117  ;;  %v3943_v33 = vpop.permute.xlu1 %3942 }
 0xbe1   :  { %v4180_v36 = vmax.f32 %v3997_v1, %v4174_v39  ;;  %v4135_v45 = vadd.f32 %v4118_v16, %v9508_v63  ;;  %v3959_v48 = vadd.f32 %v3943_v33, %v9362_v13  ;;  %v4153_v63 = vsel %vm1118_vm8, %v4150_v4, %v4152_v2  ;;  %v9717_v4 = vld [vmem:[#allocation7 + $0x4] ss:$8 sps:$4 sm:$0xff]  }
 0xbe3   :  { %v4169_v56 = vadd.f32 %v4151_v50, %v4135_v45  ;;  %v4183_v41 = vpack.c.bf16 %v4180_v36, %v4179_v29  ;;  %v3993_v54 = vadd.f32 %v3976_v5, %v3959_v48 }
 0xbe4   :  { %v4300_v51 = vpop.permute.xlu0 %4299  ;;  %v4120_v9 = vpop.permute.xlu1 %4119 }
 0xbe5   :  { %v4175_v60 = vmax.f32 %v3992_v35, %v4169_v56  ;;  %v4136_v23 = vadd.f32 %v4120_v9, %v9516_v7  ;;  %7177 = vmatpush3.bf16.msra.mxu1 %v4183_v41 }
 0xbe6   :  { %7178 = vmatprep.subr.bf16.mxu1 %v10886_v38 }
 0xbe7   :  { %v4170_v44 = vadd.f32 %v4153_v63, %v4136_v23 }
 0xbe8   :  { %v9647_v13 = vpop.permute.xlu0 %4484  ;;  %v4302_v40 = vpop.permute.xlu1 %4301 }
 0xbe9   :  { %v4176_v34 = vmax.f32 %v3993_v54, %v4170_v44  ;;  %v4315_v12 = vsel %vm819_vm3, %v4300_v51, %v4302_v40  ;;  %7179 = vmatpush3.bf16.msra.mxu1 %v4182_v3 }
 0xbea   :  { %6845 = vmatmul.mubr.msk.bf16.vlgmr.msra.gmra.mxu0 %vm977_vm2, %v4315_v12  ;;  %7180 = vmatprep.subr.bf16.mxu1 %v10886_v38 }
 0xbeb   :  { %v4181_v7 = vpack.c.bf16 %v4176_v34, %v4175_v60  ;;  %4373 = vmatprep.mubr.bf16.mxu0 %v10887_v8 }
 0xbec   :  { %v4304_v58 = vpop.permute.xlu0 %4303  ;;  %v4487_v0 = vpop.permute.xlu1 %4486 }
 0xbed   :  { %7181 = vmatpush3.bf16.msra.mxu1 %v4181_v7  ;;  %v4500_v1 = vsel %vm1679_vm10, %v9647_v13, %v4487_v0 }
 0xbee   :  { %4520 = vmatprep.subr.bf16.mxu1 %v9653_v25 }
 0xbf0   :  { %v4489_v2 = vpop.permute.xlu0 %4488  ;;  %v4306_v59 = vpop.permute.xlu1 %4305  ;;  %7183 = vmatmul.mubr.msk.bf16.vlgmr.msra.gmra.mxu1 %vm1346_vm9, %v9659_v18 }
 0xbf1   :  { %v4316_v15 = vsel %vm819_vm3, %v4304_v58, %v4306_v59  ;;  %4521 = vmatpush1.bf16.msra.mxu1 %v9664_v46  ;;  %7186 = vmatprep.mubr.msk.bf16.mxu1 %vm7571_vm7, %v10886_v38 }
 0xbf2   :  { %6846 = vmatmul.mubr.msk.bf16.gmra.mxu0 %vm977_vm2, %v4316_v15  ;;  %4522 = vmatprep.subr.bf16.mxu1 %v9670_v49  ;;  %v9792_v15 = vld [vmem:[#allocation8] ss:$0 sm:$0xff] }
 0xbf3   :  { %4383 = vmatprep.mubr.bf16.mxu0 %v10887_v8 }
 0xbf4   :  { %v4308_v27 = vpop.permute.xlu0 %4307  ;;  %v4491_v57 = vpop.permute.xlu1 %4490 }
 0xbf5   :  { %4523 = vmatpush1.bf16.msra.mxu1 %v9674_v37  ;;  %v4501_v61 = vsel %vm1679_vm10, %v4489_v2, %v4491_v57 }
 0xbf6   :  { %4524 = vmatprep.subr.bf16.mxu1 %v9677_v19 }
 0xbf8   :  { %v4310_v43 = vpop.permute.xlu1 %4309  ;;  %7187 = vmatmul.mubr.msk.bf16.gmra.mxu1 %vm1346_vm9, %v9683_v20  ;;  %v4493_v17 = vpop.permute.xlu0 %4492 }
 0xbf9   :  { %v4317_v26 = vsel %vm819_vm3, %v4308_v27, %v4310_v43  ;;  %4525 = vmatpush1.bf16.msra.mxu1 %v9688_v11  ;;  %7190 = vmatprep.mubr.msk.bf16.mxu1 %vm7571_vm7, %v10886_v38 }
 0xbfa   :  { %6847 = vmatmul.mubr.msk.bf16.gmra.mxu0 %vm977_vm2, %v4317_v26  ;;  %4526 = vmatprep.subr.bf16.mxu1 %v9694_v28 }
 0xbfb   :  { %4393 = vmatprep.mubr.bf16.mxu0 %v10887_v8 }
 0xbfc   :  { %v4495_v3 = vpop.permute.xlu1 %4494  ;;  %v4312_v29 = vpop.permute.xlu0 %4311 }
 0xbfd   :  { %4527 = vmatpush1.bf16.msra.mxu1 %v9698_v52  ;;  %v4502_v39 = vsel %vm1679_vm10, %v4493_v17, %v4495_v3 }
 0xbfe   :  { %4528 = vmatprep.subr.bf16.mxu1 %v9701_v14 }
 0xc00   :  { %v4314_v53 = vpop.permute.xlu1 %4313  ;;  %7191 = vmatmul.mubr.msk.bf16.gmra.mxu1 %vm1346_vm9, %v9707_v31  ;;  %v4497_v42 = vpop.permute.xlu0 %4496 }
 0xc01   :  { %v4318_v21 = vsel %vm819_vm3, %v4312_v29, %v4314_v53  ;;  %4529 = vmatpush1.bf16.msra.mxu1 %v9712_v47  ;;  %4548 = vmatprep.mubr.bf16.mxu1 %v10887_v8 }
 0xc02   :  { %6848 = vmatmul.mubr.msk.bf16.gmra.mxu0 %vm977_vm2, %v4318_v21  ;;  %4530 = vmatprep.subr.bf16.mxu1 %v9717_v4 }
 0xc03   :  { %7200 = vmatprep.mubr.msk.bf16.mxu0 %vm7571_vm7, %v10886_v38 }
 0xc04   :  { %v4499_v10 = vpop.permute.xlu1 %4498 }
 0xc05   :  { %4531 = vmatpush1.bf16.msra.mxu1 %v9722_v24  ;;  %v4503_v30 = vsel %vm1679_vm10, %v4497_v42, %v4499_v10 }
 0xc06   :  { %4789 = vmatprep.subr.bf16.mxu1 %v9653_v25 }
 0xc08   :  { %6849 = vmatmul.mubr.msk.bf16.vlgmr.msra.gmra.mxu1 %vm977_vm2, %v4500_v1 }
 0xc09   :  { %4558 = vmatprep.mubr.bf16.mxu1 %v10887_v8  ;;  %4790 = vmatpush1.bf16.msra.mxu1 %v9664_v46 }
 0xc0a   :  { %4791 = vmatprep.subr.bf16.mxu1 %v9670_v49 }
 0xc0d   :  { %4792 = vmatpush1.bf16.msra.mxu1 %v9674_v37 }
 0xc0e   :  { %4793 = vmatprep.subr.bf16.mxu1 %v9677_v19 }
 0xc10   :  { %6850 = vmatmul.mubr.msk.bf16.gmra.mxu1 %vm977_vm2, %v4501_v61 }
 0xc11   :  { %4568 = vmatprep.mubr.bf16.mxu1 %v10887_v8  ;;  %4794 = vmatpush1.bf16.msra.mxu1 %v9688_v11 }
 0xc12   :  { %4795 = vmatprep.subr.bf16.mxu1 %v9694_v28 }
 0xc15   :  { %4796 = vmatpush1.bf16.msra.mxu1 %v9698_v52 }
 0xc16   :  { %4797 = vmatprep.subr.bf16.mxu1 %v9701_v14 }
 0xc18   :  { %6851 = vmatmul.mubr.msk.bf16.gmra.mxu1 %vm977_vm2, %v4502_v39 }
 0xc19   :  { %4578 = vmatprep.mubr.bf16.mxu1 %v10887_v8  ;;  %4798 = vmatpush1.bf16.msra.mxu1 %v9712_v47 }
 0xc1a   :  { %4799 = vmatprep.subr.bf16.mxu1 %v9717_v4 }
 0xc1d   :  { %4800 = vmatpush1.bf16.msra.mxu1 %v9722_v24 }
 0xc1e   :  { %7212 = vmatprep.subr.bf16.mxu1 %v10886_v38 }
 0xc20   :  { %6852 = vmatmul.mubr.msk.bf16.gmra.mxu1 %vm977_vm2, %v4503_v30 }
 0xc21   :  { %4817 = vmatprep.mubr.bf16.mxu1 %v10887_v8 }
 0xc28   :  { %6862 = vmatmul.mubr.msk.bf16.vlgmr.msra.gmra.mxu1 %vm977_vm2, %v9569_v32 }
 0xc29   :  { %4827 = vmatprep.mubr.bf16.mxu1 %v10887_v8 }
 0xc30   :  { %6863 = vmatmul.mubr.msk.bf16.gmra.mxu1 %vm977_vm2, %v9577_v55 }
 0xc31   :  { %4837 = vmatprep.mubr.bf16.mxu1 %v10887_v8 }
 0xc38   :  { %6864 = vmatmul.mubr.msk.bf16.gmra.mxu1 %vm977_vm2, %v9585_v6 }
 0xc39   :  { %4847 = vmatprep.mubr.bf16.mxu1 %v10887_v8 }
 0xc40   :  { %6865 = vmatmul.mubr.msk.bf16.gmra.mxu1 %vm977_vm2, %v9593_v62 }
 0xc41   :  { %7218 = vmatprep.mubr.msk.bf16.mxu1 %vm7571_vm7, %v10886_v38 }
 0xcaa   :  { %v9764_v16 = vpop.f32.mrf.mxu0 }
 0xcac   :  { %v9766_v33 = vpop.f32.mrf.mxu0 }
 0xcae   :  { %v9768_v36 = vpop.f32.mrf.mxu0 }
 0xcb0   :  { %v4218_v45 = vpop.f32.mrf.mxu1  ;;  %v9770_v22 = vpop.f32.mrf.mxu0 }
 0xcb2   :  { %v7184_v50 = vpop.f32.mrf.mxu1  ;;  %v9772_v35 = vpop.f32.mrf.mxu0 }
 0xcb3   :  { %v4415_v9 = vrot.slane %v9772_v35, 1 }
 0xcb4   :  { %v4221_v56 = vpop.f32.mrf.mxu1  ;;  %v9774_v48 = vpop.f32.mrf.mxu0 }
 0xcb5   :  { %v10860_v63 = vrot.slane %v9774_v48, 2 }
 0xcb6   :  { %v7185_v41 = vpop.f32.mrf.mxu1  ;;  %v4379_v51 = vpop.f32.mrf.mxu0 }
 0xcb7   :  { %v4417_v60 = vrot.slane %v4379_v51, 1 }
 0xcb8   :  { %v4226_v23 = vpop.f32.mrf.mxu1  ;;  %v4381_v5 = vpop.f32.mrf.mxu0 }
 0xcb9   :  { %v4463_v54 = vrot.slane %v4381_v5, 2  ;;  %v4418_v44 = vsel %vm1071_vm6, %v4415_v9, %v4417_v60 }
 0xcba   :  { %4430 = vrot.lane.b32.xlu0 %v4418_v44, %s7570_s27  ;;  %v7188_v13 = vpop.f32.mrf.mxu1  ;;  %v9782_v40 = vpop.f32.mrf.mxu0 }
 0xcbb   :  { %v9787_v34 = vsel %vm1118_vm8, %v10860_v63, %v4463_v54  ;;  %v4419_v59 = vrot.slane %v9782_v40, 1 }
 0xcbc   :  { %v4229_v12 = vpop.f32.mrf.mxu1  ;;  %v4387_v7 = vpop.f32.mrf.mxu0 }
 0xcbd   :  { %v4241_v58 = vmax.f32 %v4218_v45, %v4229_v12  ;;  %v4465_v43 = vrot.slane %v4387_v7, 2 }
 0xcbe   :  { %v7189_v0 = vpop.f32.mrf.mxu1  ;;  %v9789_v2 = vpop.f32.mrf.mxu0 }
 0xcbf   :  { %v4244_v27 = vadd.f32 %v9792_v15, %v4241_v58  ;;  %v4420_v57 = vrot.slane %v9789_v2, 1 }
 0xcc0   :  { %v4234_v26 = vpop.f32.mrf.mxu1  ;;  %v4391_v17 = vpop.f32.mrf.mxu0 }
 0xcc1   :  { %v4247_v3 = vmax.f32 %v4244_v27, 0.0  ;;  %v4242_v29 = vmax.f32 %v4221_v56, %v4234_v26  ;;  %v4466_v53 = vrot.slane %v4391_v17, 2  ;;  %v4421_v21 = vsel %vm1071_vm6, %v4419_v59, %v4420_v57 }
 0xcc2   :  { %4432 = vrot.lane.b32.xlu1 %v4421_v21, %s7570_s27  ;;  %v7192_v1 = vpop.f32.mrf.mxu1  ;;  %v9798_v61 = vpop.f32.mrf.mxu0 }
 0xcc3   :  { %v6948_v39 = vpack.c.bf16 %v4247_v3, %v4247_v3  ;;  %v4245_v10 = vadd.f32 %v9792_v15, %v4242_v29  ;;  %v4422_v42 = vrot.slane %v9798_v61, 1  ;;  %v9803_v30 = vsel %vm1118_vm8, %v4465_v43, %v4466_v53 }
 0xcc4   :  { %v4237_v45 = vpop.f32.mrf.mxu1  ;;  %v9805_v50 = vpop.f32.mrf.mxu0 }
 0xcc5   :  { %6842 = vst.msk [vmem:[%s10834_s6 + $0x48] sm:$0xf] %vm1441_vm11, %v6948_v39  ;;  %v4248_v56 = vmax.f32 %v4245_v10, 0.0  ;;  %v4243_v41 = vmax.f32 %v4226_v23, %v4237_v45  ;;  %v10862_v51 = vrot.slane %v9805_v50, 2  ;;  %v4423_v60 = vsel %vm1071_vm6, %v4420_v57, %v4422_v42 }
 0xcc6   :  { %4434 = vrot.lane.b32.xlu0 %v4423_v60, %s7570_s27  ;;  %v7193_v5 = vpop.f32.mrf.mxu1  ;;  %v4399_v54 = vpop.f32.mrf.mxu0 }
 0xcc7   :  { %v6949_v44 = vpack.c.bf16 %v4248_v56, %v4248_v56  ;;  %v4246_v13 = vadd.f32 %v9792_v15, %v4243_v41  ;;  %v4424_v12 = vrot.slane %v4399_v54, 1  ;;  %v9818_v7 = vsel %vm1118_vm8, %v4466_v53, %v10862_v51 }
 0xcc8   :  { %v9820_v58 = vpop.f32.mrf.mxu1 }
 0xcc9   :  { %6843 = vst.msk [vmem:[%s10834_s6 + $0x4c] sm:$0xf] %vm1441_vm11, %v6949_v44  ;;  %v4249_v23 = vmax.f32 %v4246_v13, 0.0  ;;  %v4425_v0 = vsel %vm1071_vm6, %v4422_v42, %v4424_v12 }
 0xcca   :  { %4436 = vrot.lane.b32.xlu1 %v4425_v0, %s7570_s27  ;;  %v4552_v59 = vpop.f32.mrf.mxu1 }
 0xccb   :  { %v6950_v27 = vpack.c.bf16 %v4249_v23, %v4249_v23  ;;  %v4643_v26 = vrot.slane %v4552_v59, 2 }
 0xccc   :  { %v9828_v57 = vpop.f32.mrf.mxu1 }
 0xccd   :  { %6844 = vst.msk [vmem:[%s10834_s6 + $0x50] sm:$0xf] %vm1441_vm11, %v6950_v27 }
 0xcce   :  { %v4556_v43 = vpop.f32.mrf.mxu1 }
 0xccf   :  { %v4644_v17 = vrot.slane %v4556_v43, 2 }
 0xcd0   :  { %v9834_v3 = vpop.f32.mrf.mxu1 }
 0xcd1   :  { %v9837_v29 = vsel %vm1118_vm8, %v4643_v26, %v4644_v17  ;;  %v4600_v39 = vrot.slane %v9834_v3, 1 }
 0xcd2   :  { %v4562_v53 = vpop.f32.mrf.mxu1 }
 0xcd3   :  { %v4646_v21 = vrot.slane %v4562_v53, 2 }
 0xcd4   :  { %v4564_v1 = vpop.f32.mrf.mxu1 }
 0xcd5   :  { %v4602_v10 = vrot.slane %v4564_v1, 1  ;;  %v9841_v42 = vsel %vm1118_vm8, %v4644_v17, %v4646_v21 }
 0xcd6   :  { %v4566_v45 = vpop.f32.mrf.mxu1 }
 0xcd7   :  { %v4648_v56 = vrot.slane %v4566_v45, 2  ;;  %v4603_v41 = vsel %vm1071_vm6, %v4600_v39, %v4602_v10 }
 0xcd8   :  { %4615 = vrot.lane.b32.xlu0 %v4603_v41, %s7570_s27  ;;  %v9845_v60 = vpop.f32.mrf.mxu1 }
 0xcd9   :  { %v9848_v5 = vsel %vm1118_vm8, %v4646_v21, %v4648_v56  ;;  %v4604_v13 = vrot.slane %v9845_v60, 1  ;;  %v4413_v21 = vrot.slane %v9768_v36, 1  ;;  %v4412_v56 = vrot.slane %v9764_v16, 1 }
 0xcda   :  { %v4572_v54 = vpop.f32.mrf.mxu1 }
 0xcdb   :  { %v4650_v0 = vrot.slane %v4572_v54, 2 }
 0xcdc   :  { %v9850_v44 = vpop.f32.mrf.mxu1 }
 0xcdd   :  { %v4605_v12 = vrot.slane %v9850_v44, 1 }
 0xcde   :  { %v4576_v23 = vpop.f32.mrf.mxu1 }
 0xcdf   :  { %v4651_v59 = vrot.slane %v4576_v23, 2  ;;  %v4606_v27 = vsel %vm1071_vm6, %v4604_v13, %v4605_v12  ;;  %v4598_v23 = vrot.slane %v9828_v57, 1 }
 0xce0   :  { %4617 = vrot.lane.b32.xlu1 %v4606_v27, %s7570_s27  ;;  %v9856_v43 = vpop.f32.mrf.mxu1  ;;  %v4414_v27 = vsel %vm1071_vm6, %v4412_v56, %v4413_v21  ;;  %v4416_v56 = vsel %vm1071_vm6, %v4413_v21, %v4415_v9 }
 0xce1   :  { %v4607_v26 = vrot.slane %v9856_v43, 1  ;;  %v9860_v17 = vsel %vm1118_vm8, %v4650_v0, %v4651_v59 }
 0xce2   :  { %v4582_v53 = vpop.f32.mrf.mxu1 }
 0xce3   :  { %v4653_v1 = vrot.slane %v4582_v53, 2  ;;  %v4608_v10 = vsel %vm1071_vm6, %v4605_v12, %v4607_v26  ;;  %v4597_v53 = vrot.slane %v9820_v58, 1 }
 0xce4   :  { %4619 = vrot.lane.b32.xlu0 %v4608_v10, %s7570_s27  ;;  %v4584_v45 = vpop.f32.mrf.mxu1 }
 0xce5   :  { %v4609_v41 = vrot.slane %v4584_v45, 1  ;;  %v9867_v54 = vsel %vm1118_vm8, %v4651_v59, %v4653_v1  ;;  %v4599_v45 = vsel %vm1071_vm6, %v4597_v53, %v4598_v23 }
 0xce6   :  { %v4586_v13 = vpop.f32.mrf.mxu1 }
 0xce7   :  { %v4655_v0 = vrot.slane %v4586_v13, 2  ;;  %v4610_v63 = vsel %vm1071_vm6, %v4607_v26, %v4609_v41 }
 0xce8   :  { %4426 = vrot.lane.b32.xlu0 %v4414_v27, %s7570_s27  ;;  %4621 = vrot.lane.b32.xlu1 %v4610_v63, %s7570_s27  ;;  %v9874_v12 = vpop.f32.mrf.mxu1  ;;  %v4601_v27 = vsel %vm1071_vm6, %v4598_v23, %v4600_v39 }
 0xce9   :  { %v9878_v10 = vsel %vm1118_vm8, %v4653_v1, %v4655_v0 }
 0xcea   :  { %v4821_v59 = vpop.f32.mrf.mxu1 }
 0xceb   :  { %v4912_v41 = vrot.slane %v4821_v59, 2 }
 0xcec   :  { %4611 = vrot.lane.b32.xlu0 %v4599_v45, %s7570_s27  ;;  %4428 = vrot.lane.b32.xlu1 %v4416_v56, %s7570_s27  ;;  %v9886_v26 = vpop.f32.mrf.mxu1 }
 0xcee   :  { %v4825_v63 = vpop.f32.mrf.mxu1 }
 0xcef   :  { %v4913_v13 = vrot.slane %v4825_v63, 2 }
 0xcf0   :  { %4942 = vrot.lane.b32.xlu0 %v9569_v32, %s7569_s0  ;;  %4613 = vrot.lane.b32.xlu1 %v4601_v27, %s7570_s27  ;;  %v9892_v1 = vpop.f32.mrf.mxu1 }
 0xcf1   :  { %v9895_v9 = vsel %vm1118_vm8, %v4912_v41, %v4913_v13  ;;  %v10861_v39 = vrot.slane %v9892_v1, 1 }
 0xcf2   :  { %10945 = vst [vmem:[#allocation14_spill] sm:$0xff] %v9895_v9  ;;  %v4831_v21 = vpop.f32.mrf.mxu1 }
 0xcf3   :  { %v4915_v0 = vrot.slane %v4831_v21, 2 }
 0xcf4   :  { %4946 = vrot.lane.b32.xlu0 %v9585_v6, %s7569_s0  ;;  %4944 = vrot.lane.b32.xlu1 %v9577_v55, %s7569_s0  ;;  %v4833_v53 = vpop.f32.mrf.mxu1 }
 0xcf5   :  { %v4871_v23 = vrot.slane %v4833_v53, 1  ;;  %v9903_v32 = vsel %vm1118_vm8, %v4913_v13, %v4915_v0 }
 0xcf6   :  { %10946 = vst [vmem:[#allocation13_spill] sm:$0xff] %v9903_v32  ;;  %v4835_v59 = vpop.f32.mrf.mxu1 }
 0xcf7   :  { %v4917_v45 = vrot.slane %v4835_v59, 2  ;;  %v4872_v56 = vsel %vm1071_vm6, %v10861_v39, %v4871_v23 }
 0xcf8   :  { %4948 = vrot.lane.b32.xlu1 %v9593_v62, %s7569_s0  ;;  %4884 = vrot.lane.b32.xlu0 %v4872_v56, %s7570_s27  ;;  %v9911_v6 = vpop.f32.mrf.mxu1 }
 0xcf9   :  { %v9914_v55 = vsel %vm1118_vm8, %v4915_v0, %v4917_v45  ;;  %v4873_v13 = vrot.slane %v9911_v6, 1 }
 0xcfa   :  { %v4841_v63 = vpop.f32.mrf.mxu1 }
 0xcfb   :  { %v4919_v53 = vrot.slane %v4841_v63, 2 }
 0xcfc   :  { %v9916_v41 = vpop.f32.mrf.mxu1 }
 0xcfd   :  { %10947 = vst [vmem:[#allocation18_spill] sm:$0xff] %v9916_v41  ;;  %v4874_v27 = vrot.slane %v9916_v41, 1 }
 0xcfe   :  { %v4845_v21 = vpop.f32.mrf.mxu1 }
 0xcff   :  { %v4920_v23 = vrot.slane %v4845_v21, 2  ;;  %v4875_v59 = vsel %vm1071_vm6, %v4873_v13, %v4874_v27 }
 0xd00   :  { %4886 = vrot.lane.b32.xlu1 %v4875_v59, %s7570_s27  ;;  %v9922_v62 = vpop.f32.mrf.mxu1 }
 0xd01   :  { %10948 = vst [vmem:[#allocation17_spill] sm:$0xff] %v9922_v62  ;;  %v4876_v56 = vrot.slane %v9922_v62, 1  ;;  %v9926_v0 = vsel %vm1118_vm8, %v4919_v53, %v4920_v23 }
 0xd02   :  { %10949 = vst [vmem:[#allocation23_spill] sm:$0xff] %v9926_v0  ;;  %v9928_v45 = vpop.f32.mrf.mxu1 }
 0xd03   :  { %10950 = vst [vmem:[#allocation24_spill] sm:$0xff] %v9928_v45  ;;  %v10866_v39 = vrot.slane %v9928_v45, 2  ;;  %v4877_v51 = vsel %vm1071_vm6, %v4874_v27, %v4876_v56 }
 0xd04   :  { %4888 = vrot.lane.b32.xlu0 %v4877_v51, %s7570_s27  ;;  %v4853_v63 = vpop.f32.mrf.mxu1 }
 0xd05   :  { %v4878_v21 = vrot.slane %v4853_v63, 1  ;;  %v9936_v13 = vsel %vm1118_vm8, %v4920_v23, %v10866_v39 }
 0xd06   :  { %10951 = vst [vmem:[#allocation22_spill] sm:$0xff] %v9936_v13 }
 0xd07   :  { %v4879_v59 = vsel %vm1071_vm6, %v4876_v56, %v4878_v21  ;;  %v4401_v21 = vpop.f32.mrf.mxu0 }
 0xd08   :  { %4890 = vrot.lane.b32.xlu1 %v4879_v59, %s7570_s27 }
 0xd2c   :  { %v4431_v53 = vpop.permute.xlu0 %4430 }
 0xd2d   :  { %v4446_v9 = vadd.f32 %v4431_v53, %v9772_v35 }
 0xd2f   :  { %v4480_v51 = vadd.f32 %v9787_v34, %v4446_v9  ;;  %v4470_v9 = vrot.slane %v4401_v21, 2 }
 0xd34   :  { %v4433_v62 = vpop.permute.xlu1 %4432 }
 0xd35   :  { %v4447_v23 = vadd.f32 %v4433_v62, %v9782_v40 }
 0xd37   :  { %v4481_v59 = vadd.f32 %v9803_v30, %v4447_v23 }
 0xd38   :  { %v4435_v32 = vpop.permute.xlu0 %4434 }
 0xd39   :  { %v4448_v35 = vadd.f32 %v4435_v32, %v9789_v2  ;;  %v4459_v2 = vrot.slane %v9770_v22, 2 }
 0xd3c   :  { %v4437_v45 = vpop.permute.xlu1 %4436 }
 0xd4a   :  { %v4616_v41 = vpop.permute.xlu0 %4615 }
 0xd4b   :  { %v4631_v27 = vadd.f32 %v4616_v41, %v9834_v3  ;;  %v4449_v41 = vadd.f32 %v4437_v45, %v9798_v61  ;;  %v4458_v61 = vrot.slane %v9766_v33, 2  ;;  %v10953_v33 = vrot.slane %v9774_v48, 2 }
 0xd4d   :  { %v4665_v63 = vadd.f32 %v9848_v5, %v4631_v27  ;;  %v4482_v5 = vadd.f32 %v9818_v7, %v4448_v35 }
 0xd4f   :  { %v4671_v0 = vmax.f32 %v4480_v51, %v4665_v63 }
 0xd52   :  { %v4618_v39 = vpop.permute.xlu1 %4617 }
 0xd53   :  { %v4632_v56 = vadd.f32 %v4618_v39, %v9845_v60 }
 0xd55   :  { %v4666_v53 = vadd.f32 %v9860_v17, %v4632_v56  ;;  %v10952_v17 = vrot.slane %v9805_v50, 2 }
 0xd56   :  { %v4620_v13 = vpop.permute.xlu0 %4619 }
 0xd57   :  { %v4672_v3 = vmax.f32 %v4481_v59, %v4666_v53  ;;  %v4633_v34 = vadd.f32 %v4620_v13, %v9850_v44  ;;  %v4471_v32 = vsel %vm1118_vm8, %v10952_v17, %v4470_v9 }
 0xd58   :  { %v4483_v44 = vadd.f32 %v4471_v32, %v4449_v41 }
 0xd59   :  { %v4676_v40 = vpack.c.bf16 %v4672_v3, %v4671_v0  ;;  %v4667_v62 = vadd.f32 %v9867_v54, %v4633_v34 }
 0xd5a   :  { %v4427_v60 = vpop.permute.xlu0 %4426  ;;  %v4622_v39 = vpop.permute.xlu1 %4621 }
 0xd5b   :  { %v4673_v27 = vmax.f32 %v4482_v5, %v4667_v62  ;;  %v4634_v30 = vadd.f32 %v4622_v39, %v9856_v43  ;;  %v4444_v13 = vadd.f32 %v4427_v60, %v9764_v16  ;;  %v4460_v43 = vsel %vm1118_vm8, %v4458_v61, %v4459_v2 }
 0xd5d   :  { %v4668_v7 = vadd.f32 %v9878_v10, %v4634_v30  ;;  %v4478_v63 = vadd.f32 %v4460_v43, %v4444_v13  ;;  %v4462_v10 = vsel %vm1118_vm8, %v4459_v2, %v10953_v33 }
 0xd5e   :  { %v4612_v0 = vpop.permute.xlu0 %4611  ;;  %v4429_v54 = vpop.permute.xlu1 %4428 }
 0xd5f   :  { %v4674_v45 = vmax.f32 %v4483_v44, %v4668_v7  ;;  %v4629_v51 = vadd.f32 %v4612_v0, %v9820_v58  ;;  %v4445_v23 = vadd.f32 %v4429_v54, %v9768_v36 }
 0xd61   :  { %v4677_v22 = vpack.c.bf16 %v4674_v45, %v4673_v27  ;;  %v4663_v50 = vadd.f32 %v9837_v29, %v4629_v51  ;;  %v4479_v58 = vadd.f32 %v4462_v10, %v4445_v23 }
 0xd62   :  { %v4614_v56 = vpop.permute.xlu1 %4613 }
 0xd63   :  { %v4669_v21 = vmax.f32 %v4478_v63, %v4663_v50  ;;  %v4630_v16 = vadd.f32 %v4614_v56, %v9828_v57  ;;  %7195 = vmatpush3.bf16.msra.mxu0 %v4677_v22 }
 0xd64   :  { %7196 = vmatprep.subr.bf16.mxu0 %v10886_v38 }
 0xd65   :  { %v4664_v59 = vadd.f32 %v9841_v42, %v4630_v16 }
 0xd67   :  { %v4670_v35 = vmax.f32 %v4479_v58, %v4664_v59  ;;  %7197 = vmatpush3.bf16.msra.mxu0 %v4676_v40 }
 0xd68   :  { %7198 = vmatprep.subr.bf16.mxu0 %v10886_v38 }
 0xd69   :  { %v4675_v29 = vpack.c.bf16 %v4670_v35, %v4669_v21 }
 0xd6b   :  { %7199 = vmatpush3.bf16.msra.mxu0 %v4675_v29 }
 0xd6c   :  { %4966 = vmatprep.subr.bf16.mxu0 %v9653_v25 }
 0xd6e   :  { %7201 = vmatmul.mubr.msk.bf16.vlgmr.msra.gmra.mxu0 %vm1346_vm9, %v9659_v18  ;;  %v4943_v18 = vpop.permute.xlu0 %4942 }
 0xd6f   :  { %4967 = vmatpush1.bf16.msra.mxu0 %v9664_v46  ;;  %7204 = vmatprep.mubr.msk.bf16.mxu0 %vm7571_vm7, %v10886_v38 }
 0xd70   :  { %4968 = vmatprep.subr.bf16.mxu0 %v9670_v49 }
 0xd73   :  { %4969 = vmatpush1.bf16.msra.mxu0 %v9674_v37 }
 0xd74   :  { %4970 = vmatprep.subr.bf16.mxu0 %v9677_v19 }
 0xd76   :  { %7205 = vmatmul.mubr.msk.bf16.gmra.mxu0 %vm1346_vm9, %v9683_v20  ;;  %v4945_v20 = vpop.permute.xlu1 %4944 }
 0xd77   :  { %4971 = vmatpush1.bf16.msra.mxu0 %v9688_v11  ;;  %7208 = vmatprep.mubr.msk.bf16.mxu0 %vm7571_vm7, %v10886_v38 }
 0xd78   :  { %4972 = vmatprep.subr.bf16.mxu0 %v9694_v28 }
 0xd7b   :  { %4973 = vmatpush1.bf16.msra.mxu0 %v9698_v52 }
 0xd7c   :  { %4974 = vmatprep.subr.bf16.mxu0 %v9701_v14 }
 0xd7e   :  { %7209 = vmatmul.mubr.msk.bf16.gmra.mxu0 %vm1346_vm9, %v9707_v31 }
 0xd7f   :  { %4975 = vmatpush1.bf16.msra.mxu0 %v9712_v47  ;;  %4994 = vmatprep.mubr.bf16.mxu0 %v10887_v8 }
 0xd80   :  { %4976 = vmatprep.subr.bf16.mxu0 %v9717_v4 }
 0xd83   :  { %4977 = vmatpush1.bf16.msra.mxu0 %v9722_v24 }
 0xd84   :  { %5275 = vmatprep.subr.bf16.mxu0 %v9653_v25  ;;  %v4947_v25 = vpop.permute.xlu0 %4946 }
 0xd86   :  { %6866 = vmatmul.mubr.msk.bf16.vlgmr.msra.gmra.mxu0 %vm977_vm2, %v4943_v18 }
 0xd87   :  { %5004 = vmatprep.mubr.bf16.mxu0 %v10887_v8  ;;  %5276 = vmatpush1.bf16.msra.mxu0 %v9664_v46  ;;  %v4949_v46 = vpop.permute.xlu1 %4948 }
 0xd88   :  { %5277 = vmatprep.subr.bf16.mxu0 %v9670_v49 }
 0xd8b   :  { %5278 = vmatpush1.bf16.msra.mxu0 %v9674_v37 }
 0xd8c   :  { %5279 = vmatprep.subr.bf16.mxu0 %v9677_v19 }
 0xd8e   :  { %6867 = vmatmul.mubr.msk.bf16.gmra.mxu0 %vm977_vm2, %v4945_v20 }
 0xd8f   :  { %5014 = vmatprep.mubr.bf16.mxu0 %v10887_v8  ;;  %5280 = vmatpush1.bf16.msra.mxu0 %v9688_v11 }
 0xd90   :  { %5281 = vmatprep.subr.bf16.mxu0 %v9694_v28 }
 0xd93   :  { %5282 = vmatpush1.bf16.msra.mxu0 %v9698_v52 }
 0xd94   :  { %5283 = vmatprep.subr.bf16.mxu0 %v9701_v14 }
 0xd96   :  { %6868 = vmatmul.mubr.msk.bf16.gmra.mxu0 %vm977_vm2, %v4947_v25  ;;  %v4867_v25 = vrot.slane %v9886_v26, 1 }
 0xd97   :  { %5024 = vmatprep.mubr.bf16.mxu0 %v10887_v8  ;;  %5284 = vmatpush1.bf16.msra.mxu0 %v9712_v47 }
 0xd98   :  { %5285 = vmatprep.subr.bf16.mxu0 %v9717_v4 }
 0xd9b   :  { %5286 = vmatpush1.bf16.msra.mxu0 %v9722_v24 }
 0xd9c   :  { %7230 = vmatprep.subr.bf16.mxu0 %v10886_v38 }
 0xd9e   :  { %6869 = vmatmul.mubr.msk.bf16.gmra.mxu0 %vm977_vm2, %v4949_v46 }
 0xd9f   :  { %5303 = vmatprep.mubr.bf16.mxu0 %v10887_v8 }
 0xe2e   :  { %v4712_v49 = vpop.f32.mrf.mxu0 }
 0xe30   :  { %v7202_v37 = vpop.f32.mrf.mxu0 }
 0xe32   :  { %v4715_v19 = vpop.f32.mrf.mxu0 }
 0xe34   :  { %v7203_v11 = vpop.f32.mrf.mxu0 }
 0xe36   :  { %v4720_v28 = vpop.f32.mrf.mxu0 }
 0xe38   :  { %v7206_v52 = vpop.f32.mrf.mxu0 }
 0xe3a   :  { %v4723_v14 = vpop.f32.mrf.mxu0 }
 0xe3b   :  { %v4735_v31 = vmax.f32 %v4712_v49, %v4723_v14 }
 0xe3c   :  { %v7207_v47 = vpop.f32.mrf.mxu0 }
 0xe3d   :  { %v4738_v4 = vadd.f32 %v9792_v15, %v4735_v31 }
 0xe3e   :  { %v4728_v36 = vpop.f32.mrf.mxu0 }
 0xe3f   :  { %v4741_v24 = vmax.f32 %v4738_v4, 0.0  ;;  %v4736_v48 = vmax.f32 %v4715_v19, %v4728_v36  ;;  %v4866_v19 = vrot.slane %v9874_v12, 1  ;;  %v10954_v36 = vrot.slane %v9892_v1, 1 }
 0xe40   :  { %v7210_v57 = vpop.f32.mrf.mxu0 }
 0xe41   :  { %v6951_v42 = vpack.c.bf16 %v4741_v24, %v4741_v24  ;;  %v4739_v53 = vadd.f32 %v9792_v15, %v4736_v48  ;;  %v4868_v14 = vsel %vm1071_vm6, %v4866_v19, %v4867_v25  ;;  %v4870_v24 = vsel %vm1071_vm6, %v4867_v25, %v10954_v36  ;;  %v5207_v48 = vld [vmem:[#allocation2 + $0x20] sm:$0xff]  ;;  %v5209_v57 = vld [vmem:[#allocation2 + $0x58] sm:$0xff] }
 0xe42   :  { %v4731_v3 = vpop.f32.mrf.mxu0 }
 0xe43   :  { %6859 = vst.msk [vmem:[%s10834_s6 + $0x54] sm:$0xf] %vm1441_vm11, %v6951_v42  ;;  %v4742_v34 = vmax.f32 %v4739_v53, 0.0  ;;  %v4737_v9 = vmax.f32 %v4720_v28, %v4731_v3  ;;  %v5223_v42 = vpack.c.bf16 %v5209_v57, %v5207_v48  ;;  %v5208_v3 = vld [vmem:[#allocation2 + $0x28] sm:$0xff] }
 0xe44   :  { %v7211_v5 = vpop.f32.mrf.mxu0 }
 0xe45   :  { %v6952_v41 = vpack.c.bf16 %v4742_v34, %v4742_v34  ;;  %v4740_v40 = vadd.f32 %v9792_v15, %v4737_v9  ;;  %v5210_v34 = vld [vmem:[#allocation2 + $0x60] sm:$0xff]  ;;  %v5211_v5 = vld [vmem:[#allocation2 + $0x90] sm:$0xff] }
 0xe46   :  { %v10023_v62 = vpop.f32.mrf.mxu0  ;;  %v10090_v9 = vpack.c.bf16 %v5210_v34, %v5208_v3 }
 0xe47   :  { %6860 = vst.msk [vmem:[%s10834_s6 + $0x58] sm:$0xf] %vm1441_vm11, %v6952_v41  ;;  %v4743_v60 = vmax.f32 %v4740_v40, 0.0  ;;  %v5043_v47 = vrot.slane %v10023_v62, 1  ;;  %v5213_v41 = vld [vmem:[#allocation2 + $0xc8] sm:$0xff] }
 0xe48   :  { %v4998_v39 = vpop.f32.mrf.mxu0  ;;  %v5225_v40 = vpack.c.bf16 %v5213_v41, %v5211_v5 }
 0xe49   :  { %v6953_v27 = vpack.c.bf16 %v4743_v60, %v4743_v60  ;;  %v5089_v17 = vrot.slane %v4998_v39, 2  ;;  %v5212_v60 = vld [vmem:[#allocation2 + $0x98] sm:$0xff]  ;;  %v5214_v39 = vld [vmem:[#allocation2 + $0xd0] sm:$0xff] }
 0xe4a   :  { %v10029_v30 = vpop.f32.mrf.mxu0 }
 0xe4b   :  { %6861 = vst.msk [vmem:[%s10834_s6 + $0x5c] sm:$0xf] %vm1441_vm11, %v6953_v27  ;;  %v5044_v52 = vrot.slane %v10029_v30, 1  ;;  %v10098_v27 = vpack.c.bf16 %v5214_v39, %v5212_v60  ;;  %v10959_v39 = vld [vmem:[#allocation24_spill] sm:$0xff] }
 0xe4c   :  { %v5002_v2 = vpop.f32.mrf.mxu0 }
 0xe4d   :  { %v5090_v15 = vrot.slane %v5002_v2, 2  ;;  %v5045_v4 = vsel %vm1071_vm6, %v5043_v47, %v5044_v52  ;;  %v5215_v2 = vld [vmem:[#allocation2 + $0x100] sm:$0xff] }
 0xe4e   :  { %v10035_v32 = vpop.f32.mrf.mxu0 }
 0xe4f   :  { %v10038_v44 = vsel %vm1118_vm8, %v5089_v17, %v5090_v15  ;;  %v5046_v0 = vrot.slane %v10035_v32, 1  ;;  %v5217_v17 = vld [vmem:[#allocation2 + $0x138] sm:$0xff] }
 0xe50   :  { %v5008_v13 = vpop.f32.mrf.mxu0 }
 0xe51   :  { %v5092_v7 = vrot.slane %v5008_v13, 2  ;;  %v5047_v53 = vsel %vm1071_vm6, %v5044_v52, %v5046_v0  ;;  %v5216_v13 = vld [vmem:[#allocation2 + $0x108] sm:$0xff] }
 0xe52   :  { %v5010_v61 = vpop.f32.mrf.mxu0 }
 0xe53   :  { %v5048_v54 = vrot.slane %v5010_v61, 1  ;;  %v10042_v45 = vsel %vm1118_vm8, %v5090_v15, %v5092_v7  ;;  %v5227_v15 = vpack.c.bf16 %v5217_v17, %v5215_v2 }
 0xe54   :  { %v5012_v51 = vpop.f32.mrf.mxu0 }
 0xe55   :  { %v5094_v43 = vrot.slane %v5012_v51, 2  ;;  %v5049_v63 = vsel %vm1071_vm6, %v5046_v0, %v5048_v54  ;;  %v5219_v0 = vld [vmem:[#allocation2 + $0x170] sm:$0xff]  ;;  %v5221_v54 = vld [vmem:[#allocation2 + $0x1a8] sm:$0xff] }
 0xe56   :  { %5061 = vrot.lane.b32.xlu0 %v5049_v63, %s7570_s27  ;;  %v10046_v22 = vpop.f32.mrf.mxu0  ;;  %v5229_v51 = vpack.c.bf16 %v5221_v54, %v5219_v0  ;;  %v5222_v63 = vld [vmem:[#allocation2 + $0x1b0] sm:$0xff] }
 0xe57   :  { %v10049_v50 = vsel %vm1118_vm8, %v5092_v7, %v5094_v43  ;;  %v5050_v21 = vrot.slane %v10046_v22, 1  ;;  %v5218_v7 = vld [vmem:[#allocation2 + $0x140] sm:$0xff]  ;;  %v5220_v43 = vld [vmem:[#allocation2 + $0x178] sm:$0xff] }
 0xe58   :  { %v5018_v23 = vpop.f32.mrf.mxu0  ;;  %v10106_v61 = vpack.c.bf16 %v5218_v7, %v5216_v13 }
 0xe59   :  { %v5096_v10 = vrot.slane %v5018_v23, 2  ;;  %v10114_v23 = vpack.c.bf16 %v5222_v63, %v5220_v43 }
 0xe5a   :  { %v10051_v56 = vpop.f32.mrf.mxu0 }
 0xe5b   :  { %v5051_v16 = vrot.slane %v10051_v56, 1 }
 0xe5c   :  { %v5022_v33 = vpop.f32.mrf.mxu0 }
 0xe5d   :  { %v5097_v58 = vrot.slane %v5022_v33, 2  ;;  %v5052_v59 = vsel %vm1071_vm6, %v5050_v21, %v5051_v16  ;;  %v4885_v21 = vpop.permute.xlu0 %4884 }
 0xe5e   :  { %5063 = vrot.lane.b32.xlu1 %v5052_v59, %s7570_s27  ;;  %v10057_v35 = vpop.f32.mrf.mxu0  ;;  %v4900_v33 = vadd.f32 %v4885_v21, %v9892_v1 }
 0xe5f   :  { %v5053_v29 = vrot.slane %v10057_v35, 1  ;;  %v10061_v18 = vsel %vm1118_vm8, %v5096_v10, %v5097_v58  ;;  %v4887_v10 = vpop.permute.xlu1 %4886 }
 0xe60   :  { %v10063_v20 = vpop.f32.mrf.mxu0  ;;  %v4901_v19 = vadd.f32 %v4887_v10, %v9911_v6  ;;  %v10958_v6 = vld [vmem:[#allocation17_spill] sm:$0xff] }
 0xe61   :  { %v5099_v46 = vrot.slane %v10063_v20, 2  ;;  %v5054_v49 = vsel %vm1071_vm6, %v5051_v16, %v5053_v29  ;;  %v4889_v16 = vpop.permute.xlu0 %4888 }
 0xe62   :  { %5065 = vrot.lane.b32.xlu0 %v5054_v49, %s7570_s27  ;;  %v5030_v37 = vpop.f32.mrf.mxu0 }
 0xe63   :  { %v5055_v11 = vrot.slane %v5030_v37, 1  ;;  %v10073_v28 = vsel %vm1118_vm8, %v5097_v58, %v5099_v46  ;;  %v4891_v49 = vpop.permute.xlu1 %4890 }
 0xe64   :  { %v5032_v36 = vpop.f32.mrf.mxu0  ;;  %v4903_v3 = vadd.f32 %v4891_v49, %v10958_v6  ;;  %v10156_v49 = vld [vmem:[#allocation7 + $0x54] ss:$8 sps:$4 sm:$0xff]  }
 0xe65   :  { %v5056_v31 = vsel %vm1071_vm6, %v5053_v29, %v5055_v11  ;;  %v4934_v29 = vadd.f32 %v9914_v55, %v4900_v33  ;;  %v5101_v57 = vrot.slane %v5032_v36, 2 }
 0xe66   :  { %4880 = vrot.lane.b32.xlu0 %v4868_v14, %s7570_s27  ;;  %5067 = vrot.lane.b32.xlu1 %v5056_v31, %s7570_s27  ;;  %v4855_v14 = vpop.f32.mrf.mxu1  ;;  %v10955_v31 = vld [vmem:[#allocation23_spill] sm:$0xff] }
 0xe67   :  { %v4935_v47 = vadd.f32 %v10955_v31, %v4901_v19  ;;  %v10162_v19 = vld [vmem:[%s10833_s5] sm:$0xff]  }
 0xe6a   :  { %5057 = vrot.lane.b32.xlu0 %v5045_v4, %s7570_s27  ;;  %4882 = vrot.lane.b32.xlu1 %v4870_v24, %s7570_s27  ;;  %v10956_v4 = vld [vmem:[#allocation18_spill] sm:$0xff] }
 0xe6b   :  { %v4902_v1 = vadd.f32 %v4889_v16, %v10956_v4  ;;  %v10177_v4 = vld [vmem:[#allocation7 + $0x40] ss:$8 sps:$4 sm:$0xff]  }
 0xe6e   :  { %5239 = vrot.lane.b32.xlu0 %v5223_v42, %s7570_s27  ;;  %5059 = vrot.lane.b32.xlu1 %v5047_v53, %s7570_s27 }
 0xe72   :  { %5424 = vrot.lane.b32.xlu0 %v5223_v42, %s7572_s28  ;;  %5241 = vrot.lane.b32.xlu1 %v10090_v9, %s7570_s27  ;;  %v10957_v42 = vld [vmem:[#allocation22_spill] sm:$0xff] }
 0xe73   :  { %v4936_v53 = vadd.f32 %v10957_v42, %v4902_v1  ;;  %v10180_v1 = vld [vmem:[#allocation7 + $0x34] ss:$8 sps:$4 sm:$0xff]   ;;  %v10201_v42 = vld [vmem:[#allocation7 + $0x20] ss:$8 sps:$4 sm:$0xff]  }
 0xe76   :  { %5243 = vrot.lane.b32.xlu0 %v5225_v40, %s7570_s27  ;;  %5426 = vrot.lane.b32.xlu1 %v10090_v9, %s7572_s28 }
 0xe7a   :  { %5428 = vrot.lane.b32.xlu0 %v5225_v40, %s7572_s28  ;;  %5245 = vrot.lane.b32.xlu1 %v10098_v27, %s7570_s27 }
 0xe7e   :  { %5247 = vrot.lane.b32.xlu0 %v5227_v15, %s7570_s27  ;;  %5430 = vrot.lane.b32.xlu1 %v10098_v27, %s7572_s28 }
 0xe82   :  { %5432 = vrot.lane.b32.xlu0 %v5227_v15, %s7572_s28  ;;  %5249 = vrot.lane.b32.xlu1 %v10106_v61, %s7570_s27 }
 0xe86   :  { %5251 = vrot.lane.b32.xlu0 %v5229_v51, %s7570_s27  ;;  %5434 = vrot.lane.b32.xlu1 %v10106_v61, %s7572_s28 }
 0xe8a   :  { %5436 = vrot.lane.b32.xlu0 %v5229_v51, %s7572_s28  ;;  %5253 = vrot.lane.b32.xlu1 %v10114_v23, %s7570_s27  ;;  %v10961_v51 = vld [vmem:[#allocation14_spill] sm:$0xff] }
 0xe8e   :  { %5438 = vrot.lane.b32.xlu1 %v10114_v23, %s7572_s28 }
 0xec8   :  { %v5062_v58 = vpop.permute.xlu0 %5061 }
 0xec9   :  { %v5077_v59 = vadd.f32 %v5062_v58, %v10035_v32 }
 0xecb   :  { %v5111_v25 = vadd.f32 %v10049_v50, %v5077_v59  ;;  %v4924_v50 = vrot.slane %v4855_v14, 2  ;;  %v10173_v14 = vld [vmem:[#allocation7 + $0x44] ss:$8 sps:$4 sm:$0xff]  }
 0xecd   :  { %v5117_v37 = vmax.f32 %v4934_v29, %v5111_v25 }
 0xed0   :  { %v5064_v11 = vpop.permute.xlu1 %5063 }
 0xed1   :  { %v5078_v52 = vadd.f32 %v5064_v11, %v10046_v22 }
 0xed3   :  { %v5112_v24 = vadd.f32 %v10061_v18, %v5078_v52  ;;  %v10960_v18 = vrot.slane %v10959_v39, 2  ;;  %v10167_v52 = vld [vmem:[#allocation7 + $0x50] ss:$8 sps:$4 sm:$0xff]  }
 0xed4   :  { %v5066_v32 = vpop.permute.xlu0 %5065 }
 0xed5   :  { %v5118_v48 = vmax.f32 %v4935_v47, %v5112_v24  ;;  %v5079_v55 = vadd.f32 %v5066_v32, %v10051_v56  ;;  %v4925_v2 = vsel %vm1118_vm8, %v10960_v18, %v4924_v50  ;;  %v5102_v56 = vsel %vm1118_vm8, %v5099_v46, %v5101_v57  ;;  %v10186_v24 = vld [vmem:[%s10833_s5 + $0x8] sm:$0xff]  }
 0xed6   :  { %v4937_v17 = vadd.f32 %v4925_v2, %v4903_v3  ;;  %v10197_v50 = vld [vmem:[#allocation7 + $0x24] ss:$8 sps:$4 sm:$0xff]   ;;  %v10210_v3 = vld [vmem:[%s10833_s5 + $0x10] sm:$0xff]  }
 0xed7   :  { %v5122_v34 = vpack.c.bf16 %v5118_v48, %v5117_v37  ;;  %v5113_v22 = vadd.f32 %v10073_v28, %v5079_v55  ;;  %v10191_v48 = vld [vmem:[#allocation7 + $0x30] ss:$8 sps:$4 sm:$0xff]  }
 0xed8   :  { %v4881_v5 = vpop.permute.xlu0 %4880  ;;  %v5068_v41 = vpop.permute.xlu1 %5067 }
 0xed9   :  { %v5119_v40 = vmax.f32 %v4936_v53, %v5113_v22  ;;  %v5080_v60 = vadd.f32 %v5068_v41, %v10057_v35  ;;  %v4898_v15 = vadd.f32 %v4881_v5, %v9874_v12  ;;  %v10962_v12 = vld [vmem:[#allocation13_spill] sm:$0xff]  ;;  %v10204_v53 = vld [vmem:[#allocation7 + $0x14] ss:$8 sps:$4 sm:$0xff]   ;;  %v10215_v5 = vld [vmem:[#allocation7 + $0x10] ss:$8 sps:$4 sm:$0xff]  }
 0xeda   :  { %v10220_v41 = vld [vmem:[#allocation7 + $0x4] ss:$8 sps:$4 sm:$0xff]  }
 0xedb   :  { %v5114_v13 = vadd.f32 %v5102_v56, %v5080_v60  ;;  %v4932_v43 = vadd.f32 %v10961_v51, %v4898_v15 }
 0xedc   :  { %v5058_v7 = vpop.permute.xlu0 %5057  ;;  %v4883_v0 = vpop.permute.xlu1 %4882 }
 0xedd   :  { %v5120_v28 = vmax.f32 %v4937_v17, %v5114_v13  ;;  %v5075_v54 = vadd.f32 %v5058_v7, %v10023_v62  ;;  %v4899_v21 = vadd.f32 %v4883_v0, %v9886_v26 }
 0xedf   :  { %v5123_v35 = vpack.c.bf16 %v5120_v28, %v5119_v40  ;;  %v5109_v63 = vadd.f32 %v10038_v44, %v5075_v54  ;;  %v4933_v10 = vadd.f32 %v10962_v12, %v4899_v21  ;;  %v10225_v40 = vld [vmem:[#allocation7] ss:$8 sps:$4 sm:$0xff]  }
 0xee0   :  { %v5240_v16 = vpop.permute.xlu0 %5239  ;;  %v5060_v20 = vpop.permute.xlu1 %5059 }
 0xee1   :  { %v5115_v33 = vmax.f32 %v4932_v43, %v5109_v63  ;;  %v5076_v46 = vadd.f32 %v5060_v20, %v10029_v30  ;;  %7213 = vmatpush3.bf16.msra.mxu1 %v5123_v35 }
 0xee2   :  { %7214 = vmatprep.subr.bf16.mxu1 %v10886_v38 }
 0xee3   :  { %v5110_v58 = vadd.f32 %v10042_v45, %v5076_v46 }
 0xee4   :  { %v10150_v62 = vpop.permute.xlu0 %5424  ;;  %v5242_v59 = vpop.permute.xlu1 %5241 }
 0xee5   :  { %v5116_v29 = vmax.f32 %v4933_v10, %v5110_v58  ;;  %v5255_v44 = vsel %vm819_vm3, %v5240_v16, %v5242_v59  ;;  %7215 = vmatpush3.bf16.msra.mxu1 %v5122_v34 }
 0xee6   :  { %6879 = vmatmul.mubr.msk.bf16.vlgmr.msra.gmra.mxu0 %vm977_vm2, %v5255_v44  ;;  %7216 = vmatprep.subr.bf16.mxu1 %v10886_v38 }
 0xee7   :  { %v5121_v26 = vpack.c.bf16 %v5116_v29, %v5115_v33  ;;  %5313 = vmatprep.mubr.bf16.mxu0 %v10887_v8 }
 0xee8   :  { %v5244_v30 = vpop.permute.xlu0 %5243  ;;  %v5427_v25 = vpop.permute.xlu1 %5426 }
 0xee9   :  { %7217 = vmatpush3.bf16.msra.mxu1 %v5121_v26  ;;  %v5440_v60 = vsel %vm1679_vm10, %v10150_v62, %v5427_v25 }
 0xeea   :  { %5460 = vmatprep.subr.bf16.mxu1 %v10156_v49 }
 0xeec   :  { %v5429_v45 = vpop.permute.xlu0 %5428  ;;  %v5246_v37 = vpop.permute.xlu1 %5245  ;;  %7219 = vmatmul.mubr.msk.bf16.vlgmr.msra.gmra.mxu1 %vm1346_vm9, %v10162_v19 }
 0xeed   :  { %v5256_v11 = vsel %vm819_vm3, %v5244_v30, %v5246_v37  ;;  %5461 = vmatpush1.bf16.msra.mxu1 %v10167_v52  ;;  %7222 = vmatprep.mubr.msk.bf16.mxu1 %vm7571_vm7, %v10886_v38 }
 0xeee   :  { %6880 = vmatmul.mubr.msk.bf16.gmra.mxu0 %vm977_vm2, %v5256_v11  ;;  %5462 = vmatprep.subr.bf16.mxu1 %v10173_v14 }
 0xeef   :  { %5323 = vmatprep.mubr.bf16.mxu0 %v10887_v8 }
 0xef0   :  { %v5248_v31 = vpop.permute.xlu0 %5247  ;;  %v5431_v47 = vpop.permute.xlu1 %5430 }
 0xef1   :  { %5463 = vmatpush1.bf16.msra.mxu1 %v10177_v4  ;;  %v5441_v39 = vsel %vm1679_vm10, %v5429_v45, %v5431_v47 }
 0xef2   :  { %5464 = vmatprep.subr.bf16.mxu1 %v10180_v1 }
 0xef4   :  { %v5250_v36 = vpop.permute.xlu1 %5249  ;;  %7223 = vmatmul.mubr.msk.bf16.gmra.mxu1 %vm1346_vm9, %v10186_v24  ;;  %v5433_v55 = vpop.permute.xlu0 %5432 }
 0xef5   :  { %v5257_v32 = vsel %vm819_vm3, %v5248_v31, %v5250_v36  ;;  %5465 = vmatpush1.bf16.msra.mxu1 %v10191_v48  ;;  %7226 = vmatprep.mubr.msk.bf16.mxu1 %vm7571_vm7, %v10886_v38 }
 0xef6   :  { %6881 = vmatmul.mubr.msk.bf16.gmra.mxu0 %vm977_vm2, %v5257_v32  ;;  %5466 = vmatprep.subr.bf16.mxu1 %v10197_v50  ;;  %v10292_v32 = vld [vmem:[#allocation8] ss:$0 sm:$0xff] }
 0xef7   :  { %5333 = vmatprep.mubr.bf16.mxu0 %v10887_v8 }
 0xef8   :  { %v5435_v57 = vpop.permute.xlu1 %5434  ;;  %v5252_v6 = vpop.permute.xlu0 %5251 }
 0xef9   :  { %5467 = vmatpush1.bf16.msra.mxu1 %v10201_v42  ;;  %v5442_v18 = vsel %vm1679_vm10, %v5433_v55, %v5435_v57 }
 0xefa   :  { %5468 = vmatprep.subr.bf16.mxu1 %v10204_v53 }
 0xefc   :  { %7227 = vmatmul.mubr.msk.bf16.gmra.mxu1 %vm1346_vm9, %v10210_v3  ;;  %v5254_v34 = vpop.permute.xlu1 %5253  ;;  %v5437_v56 = vpop.permute.xlu0 %5436 }
 0xefd   :  { %v5258_v22 = vsel %vm819_vm3, %v5252_v6, %v5254_v34  ;;  %5469 = vmatpush1.bf16.msra.mxu1 %v10215_v5  ;;  %5488 = vmatprep.mubr.bf16.mxu1 %v10887_v8 }
 0xefe   :  { %6882 = vmatmul.mubr.msk.bf16.gmra.mxu0 %vm977_vm2, %v5258_v22  ;;  %5470 = vmatprep.subr.bf16.mxu1 %v10220_v41 }
 0xeff   :  { %7236 = vmatprep.mubr.msk.bf16.mxu0 %vm7571_vm7, %v10886_v38 }
 0xf00   :  { %v5439_v2 = vpop.permute.xlu1 %5438 }
 0xf01   :  { %5471 = vmatpush1.bf16.msra.mxu1 %v10225_v40  ;;  %v5443_v17 = vsel %vm1679_vm10, %v5437_v56, %v5439_v2 }
 0xf02   :  { %5729 = vmatprep.subr.bf16.mxu1 %v10156_v49 }
 0xf04   :  { %6883 = vmatmul.mubr.msk.bf16.vlgmr.msra.gmra.mxu1 %vm977_vm2, %v5440_v60 }
 0xf05   :  { %5498 = vmatprep.mubr.bf16.mxu1 %v10887_v8  ;;  %5730 = vmatpush1.bf16.msra.mxu1 %v10167_v52 }
 0xf06   :  { %5731 = vmatprep.subr.bf16.mxu1 %v10173_v14 }
 0xf09   :  { %5732 = vmatpush1.bf16.msra.mxu1 %v10177_v4 }
 0xf0a   :  { %5733 = vmatprep.subr.bf16.mxu1 %v10180_v1 }
 0xf0c   :  { %6884 = vmatmul.mubr.msk.bf16.gmra.mxu1 %vm977_vm2, %v5441_v39 }
 0xf0d   :  { %5508 = vmatprep.mubr.bf16.mxu1 %v10887_v8  ;;  %5734 = vmatpush1.bf16.msra.mxu1 %v10191_v48 }
 0xf0e   :  { %5735 = vmatprep.subr.bf16.mxu1 %v10197_v50 }
 0xf11   :  { %5736 = vmatpush1.bf16.msra.mxu1 %v10201_v42 }
 0xf12   :  { %5737 = vmatprep.subr.bf16.mxu1 %v10204_v53 }
 0xf14   :  { %6885 = vmatmul.mubr.msk.bf16.gmra.mxu1 %vm977_vm2, %v5442_v18 }
 0xf15   :  { %5518 = vmatprep.mubr.bf16.mxu1 %v10887_v8  ;;  %5738 = vmatpush1.bf16.msra.mxu1 %v10215_v5 }
 0xf16   :  { %5739 = vmatprep.subr.bf16.mxu1 %v10220_v41 }
 0xf19   :  { %5740 = vmatpush1.bf16.msra.mxu1 %v10225_v40 }
 0xf1a   :  { %7248 = vmatprep.subr.bf16.mxu1 %v10886_v38 }
 0xf1c   :  { %6886 = vmatmul.mubr.msk.bf16.gmra.mxu1 %vm977_vm2, %v5443_v17 }
 0xf1d   :  { %5757 = vmatprep.mubr.bf16.mxu1 %v10887_v8 }
 0xf24   :  { %6896 = vmatmul.mubr.msk.bf16.vlgmr.msra.gmra.mxu1 %vm977_vm2, %v10090_v9 }
 0xf25   :  { %5767 = vmatprep.mubr.bf16.mxu1 %v10887_v8 }
 0xf2c   :  { %6897 = vmatmul.mubr.msk.bf16.gmra.mxu1 %vm977_vm2, %v10098_v27 }
 0xf2d   :  { %5777 = vmatprep.mubr.bf16.mxu1 %v10887_v8 }
 0xf34   :  { %6898 = vmatmul.mubr.msk.bf16.gmra.mxu1 %vm977_vm2, %v10106_v61 }
 0xf35   :  { %5787 = vmatprep.mubr.bf16.mxu1 %v10887_v8 }
 0xf3c   :  { %6899 = vmatmul.mubr.msk.bf16.gmra.mxu1 %vm977_vm2, %v10114_v23 }
 0xf3d   :  { %7254 = vmatprep.mubr.msk.bf16.mxu1 %vm7571_vm7, %v10886_v38 }
 0xfa6   :  { %v10267_v15 = vpop.f32.mrf.mxu0 }
 0xfa8   :  { %v5307_v13 = vpop.f32.mrf.mxu0 }
 0xfa9   :  { %v5398_v54 = vrot.slane %v5307_v13, 2 }
 0xfaa   :  { %v10269_v7 = vpop.f32.mrf.mxu0 }
 0xfac   :  { %v5158_v0 = vpop.f32.mrf.mxu1  ;;  %v5311_v28 = vpop.f32.mrf.mxu0 }
 0xfad   :  { %v5399_v51 = vrot.slane %v5311_v28, 2 }
 0xfae   :  { %v7220_v43 = vpop.f32.mrf.mxu1  ;;  %v10271_v35 = vpop.f32.mrf.mxu0 }
 0xfaf   :  { %v10274_v63 = vsel %vm1118_vm8, %v5398_v54, %v5399_v51  ;;  %v5355_v12 = vrot.slane %v10271_v35, 1 }
 0xfb0   :  { %v5161_v21 = vpop.f32.mrf.mxu1  ;;  %v5317_v16 = vpop.f32.mrf.mxu0 }
 0xfb1   :  { %v5401_v20 = vrot.slane %v5317_v16, 2 }
 0xfb2   :  { %v7221_v33 = vpop.f32.mrf.mxu1  ;;  %v5319_v46 = vpop.f32.mrf.mxu0 }
 0xfb3   :  { %v5357_v10 = vrot.slane %v5319_v46, 1  ;;  %v10278_v58 = vsel %vm1118_vm8, %v5399_v51, %v5401_v20 }
 0xfb4   :  { %v5166_v62 = vpop.f32.mrf.mxu1  ;;  %v5321_v59 = vpop.f32.mrf.mxu0 }
 0xfb5   :  { %v5403_v29 = vrot.slane %v5321_v59, 2  ;;  %v5358_v44 = vsel %vm1071_vm6, %v5355_v12, %v5357_v10 }
 0xfb6   :  { %5370 = vrot.lane.b32.xlu0 %v5358_v44, %s7570_s27  ;;  %v7224_v26 = vpop.f32.mrf.mxu1  ;;  %v10284_v30 = vpop.f32.mrf.mxu0 }
 0xfb7   :  { %v10287_v25 = vsel %vm1118_vm8, %v5401_v20, %v5403_v29  ;;  %v5359_v36 = vrot.slane %v10284_v30, 1 }
 0xfb8   :  { %v5169_v45 = vpop.f32.mrf.mxu1  ;;  %v5327_v37 = vpop.f32.mrf.mxu0 }
 0xfb9   :  { %v5181_v11 = vmax.f32 %v5158_v0, %v5169_v45  ;;  %v5405_v6 = vrot.slane %v5327_v37, 2 }
 0xfba   :  { %v7225_v31 = vpop.f32.mrf.mxu1  ;;  %v10289_v47 = vpop.f32.mrf.mxu0 }
 0xfbb   :  { %v5184_v55 = vadd.f32 %v10292_v32, %v5181_v11  ;;  %v5360_v57 = vrot.slane %v10289_v47, 1 }
 0xfbc   :  { %v5174_v34 = vpop.f32.mrf.mxu1  ;;  %v5331_v22 = vpop.f32.mrf.mxu0 }
 0xfbd   :  { %v5187_v60 = vmax.f32 %v5184_v55, 0.0  ;;  %v5182_v39 = vmax.f32 %v5161_v21, %v5174_v34  ;;  %v5406_v18 = vrot.slane %v5331_v22, 2  ;;  %v5361_v2 = vsel %vm1071_vm6, %v5359_v36, %v5360_v57 }
 0xfbe   :  { %v7228_v56 = vpop.f32.mrf.mxu1  ;;  %5372 = vrot.lane.b32.xlu1 %v5361_v2, %s7570_s27  ;;  %v10298_v17 = vpop.f32.mrf.mxu0 }
 0xfbf   :  { %v6954_v13 = vpack.c.bf16 %v5187_v60, %v5187_v60  ;;  %v5185_v0 = vadd.f32 %v10292_v32, %v5182_v39  ;;  %v5362_v28 = vrot.slane %v10298_v17, 1  ;;  %v10303_v54 = vsel %vm1118_vm8, %v5405_v6, %v5406_v18 }
 0xfc0   :  { %v5177_v51 = vpop.f32.mrf.mxu1  ;;  %v10305_v43 = vpop.f32.mrf.mxu0 }
 0xfc1   :  { %6876 = vst.msk [vmem:[%s10834_s6 + $0x60] sm:$0xf] %vm1441_vm11, %v6954_v13  ;;  %v5188_v21 = vmax.f32 %v5185_v0, 0.0  ;;  %v5183_v16 = vmax.f32 %v5166_v62, %v5177_v51  ;;  %v10868_v20 = vrot.slane %v10305_v43, 2  ;;  %v5363_v33 = vsel %vm1071_vm6, %v5360_v57, %v5362_v28 }
 0xfc2   :  { %v7229_v46 = vpop.f32.mrf.mxu1  ;;  %5374 = vrot.lane.b32.xlu0 %v5363_v33, %s7570_s27  ;;  %v5339_v10 = vpop.f32.mrf.mxu0 }
 0xfc3   :  { %v6955_v59 = vpack.c.bf16 %v5188_v21, %v5188_v21  ;;  %v5186_v29 = vadd.f32 %v10292_v32, %v5183_v16  ;;  %v5364_v44 = vrot.slane %v5339_v10, 1  ;;  %v10318_v26 = vsel %vm1118_vm8, %v5406_v18, %v10868_v20 }
 0xfc4   :  { %v10320_v45 = vpop.f32.mrf.mxu1 }
 0xfc5   :  { %6877 = vst.msk [vmem:[%s10834_s6 + $0x64] sm:$0xf] %vm1441_vm11, %v6955_v59  ;;  %v5189_v62 = vmax.f32 %v5186_v29, 0.0  ;;  %v5365_v37 = vsel %vm1071_vm6, %v5362_v28, %v5364_v44 }
 0xfc6   :  { %v5492_v11 = vpop.f32.mrf.mxu1  ;;  %5376 = vrot.lane.b32.xlu1 %v5365_v37, %s7570_s27 }
 0xfc7   :  { %v6956_v31 = vpack.c.bf16 %v5189_v62, %v5189_v62  ;;  %v5583_v57 = vrot.slane %v5492_v11, 2 }
 0xfc8   :  { %v10328_v36 = vpop.f32.mrf.mxu1 }
 0xfc9   :  { %6878 = vst.msk [vmem:[%s10834_s6 + $0x68] sm:$0xf] %vm1441_vm11, %v6956_v31 }
 0xfca   :  { %v5496_v55 = vpop.f32.mrf.mxu1 }
 0xfcb   :  { %v5584_v6 = vrot.slane %v5496_v55, 2 }
 0xfcc   :  { %v10334_v34 = vpop.f32.mrf.mxu1 }
 0xfcd   :  { %v10337_v22 = vsel %vm1118_vm8, %v5583_v57, %v5584_v6  ;;  %v5540_v2 = vrot.slane %v10334_v34, 1 }
 0xfce   :  { %v5502_v60 = vpop.f32.mrf.mxu1 }
 0xfcf   :  { %v5586_v39 = vrot.slane %v5502_v60, 2 }
 0xfd0   :  { %v5504_v18 = vpop.f32.mrf.mxu1 }
 0xfd1   :  { %v5542_v56 = vrot.slane %v5504_v18, 1  ;;  %v10341_v13 = vsel %vm1118_vm8, %v5584_v6, %v5586_v39  ;;  %v5353_v6 = vrot.slane %v10269_v7, 1 }
 0xfd2   :  { %v5506_v0 = vpop.f32.mrf.mxu1 }
 0xfd3   :  { %v5588_v28 = vrot.slane %v5506_v0, 2  ;;  %v5543_v51 = vsel %vm1071_vm6, %v5540_v2, %v5542_v56  ;;  %v5352_v56 = vrot.slane %v10267_v15, 1 }
 0xfd4   :  { %v10344_v21 = vpop.f32.mrf.mxu1  ;;  %5555 = vrot.lane.b32.xlu0 %v5543_v51, %s7570_s27 }
 0xfd5   :  { %v10348_v16 = vsel %vm1118_vm8, %v5586_v39, %v5588_v28  ;;  %v5544_v10 = vrot.slane %v10344_v21, 1 }
 0xfd6   :  { %v5512_v33 = vpop.f32.mrf.mxu1 }
 0xfd7   :  { %v5590_v44 = vrot.slane %v5512_v33, 2  ;;  %v5538_v33 = vrot.slane %v10328_v36, 1 }
 0xfd8   :  { %v10350_v46 = vpop.f32.mrf.mxu1 }
 0xfd9   :  { %v5545_v59 = vrot.slane %v10350_v46, 1 }
 0xfda   :  { %v5516_v29 = vpop.f32.mrf.mxu1 }
 0xfdb   :  { %v5591_v62 = vrot.slane %v5516_v29, 2  ;;  %v5546_v37 = vsel %vm1071_vm6, %v5544_v10, %v5545_v59  ;;  %v5354_v29 = vsel %vm1071_vm6, %v5352_v56, %v5353_v6 }
 0xfdc   :  { %5557 = vrot.lane.b32.xlu1 %v5546_v37, %s7570_s27  ;;  %v10356_v11 = vpop.f32.mrf.mxu1  ;;  %v5537_v37 = vrot.slane %v10320_v45, 1 }
 0xfdd   :  { %v5547_v31 = vrot.slane %v10356_v11, 1  ;;  %v10360_v55 = vsel %vm1118_vm8, %v5590_v44, %v5591_v62 }
 0xfde   :  { %v5522_v57 = vpop.f32.mrf.mxu1 }
 0xfdf   :  { %v5593_v60 = vrot.slane %v5522_v57, 2  ;;  %v5548_v39 = vsel %vm1071_vm6, %v5545_v59, %v5547_v31 }
 0xfe0   :  { %5559 = vrot.lane.b32.xlu0 %v5548_v39, %s7570_s27  ;;  %v5524_v18 = vpop.f32.mrf.mxu1  ;;  %v5539_v39 = vsel %vm1071_vm6, %v5537_v37, %v5538_v33 }
 0xfe1   :  { %v5549_v0 = vrot.slane %v5524_v18, 1  ;;  %v10367_v28 = vsel %vm1118_vm8, %v5591_v62, %v5593_v60  ;;  %v5356_v18 = vsel %vm1071_vm6, %v5353_v6, %v5355_v12 }
 0xfe2   :  { %v5526_v51 = vpop.f32.mrf.mxu1 }
 0xfe3   :  { %v5595_v10 = vrot.slane %v5526_v51, 2  ;;  %v5550_v44 = vsel %vm1071_vm6, %v5547_v31, %v5549_v0 }
 0xfe4   :  { %5366 = vrot.lane.b32.xlu0 %v5354_v29, %s7570_s27  ;;  %5561 = vrot.lane.b32.xlu1 %v5550_v44, %s7570_s27  ;;  %v10374_v59 = vpop.f32.mrf.mxu1  ;;  %v5541_v29 = vsel %vm1071_vm6, %v5538_v33, %v5540_v2 }
 0xfe5   :  { %v10378_v57 = vsel %vm1118_vm8, %v5593_v60, %v5595_v10 }
 0xfe6   :  { %v5761_v62 = vpop.f32.mrf.mxu1 }
 0xfe7   :  { %v5852_v0 = vrot.slane %v5761_v62, 2 }
 0xfe8   :  { %5551 = vrot.lane.b32.xlu0 %v5539_v39, %s7570_s27  ;;  %5368 = vrot.lane.b32.xlu1 %v5356_v18, %s7570_s27  ;;  %v10386_v31 = vpop.f32.mrf.mxu1 }
 0xfea   :  { %v5765_v56 = vpop.f32.mrf.mxu1 }
 0xfeb   :  { %v5853_v51 = vrot.slane %v5765_v56, 2 }
 0xfec   :  { %5882 = vrot.lane.b32.xlu0 %v10090_v9, %s7569_s0  ;;  %5553 = vrot.lane.b32.xlu1 %v5541_v29, %s7570_s27  ;;  %v10392_v60 = vpop.f32.mrf.mxu1 }
 0xfed   :  { %v10395_v12 = vsel %vm1118_vm8, %v5852_v0, %v5853_v51  ;;  %v10867_v2 = vrot.slane %v10392_v60, 1 }
 0xfee   :  { %10963 = vst [vmem:[#allocation21_spill] sm:$0xff] %v10395_v12  ;;  %v5771_v6 = vpop.f32.mrf.mxu1 }
 0xfef   :  { %v5855_v10 = vrot.slane %v5771_v6, 2 }
 0xff0   :  { %5886 = vrot.lane.b32.xlu0 %v10106_v61, %s7569_s0  ;;  %5884 = vrot.lane.b32.xlu1 %v10098_v27, %s7569_s0  ;;  %v5773_v44 = vpop.f32.mrf.mxu1 }
 0xff1   :  { %v5811_v33 = vrot.slane %v5773_v44, 1  ;;  %v10403_v9 = vsel %vm1118_vm8, %v5853_v51, %v5855_v10 }
 0xff2   :  { %10964 = vst [vmem:[#allocation19_spill] sm:$0xff] %v10403_v9  ;;  %v5775_v37 = vpop.f32.mrf.mxu1 }
 0xff3   :  { %v5857_v62 = vrot.slane %v5775_v37, 2  ;;  %v5812_v39 = vsel %vm1071_vm6, %v10867_v2, %v5811_v33 }
 0xff4   :  { %5888 = vrot.lane.b32.xlu1 %v10114_v23, %s7569_s0  ;;  %5824 = vrot.lane.b32.xlu0 %v5812_v39, %s7570_s27  ;;  %v10411_v61 = vpop.f32.mrf.mxu1 }
 0xff5   :  { %v10414_v27 = vsel %vm1118_vm8, %v5855_v10, %v5857_v62  ;;  %v5813_v0 = vrot.slane %v10411_v61, 1 }
 0xff6   :  { %v5781_v18 = vpop.f32.mrf.mxu1 }
 0xff7   :  { %v5859_v6 = vrot.slane %v5781_v18, 2 }
 0xff8   :  { %v10416_v56 = vpop.f32.mrf.mxu1 }
 0xff9   :  { %10965 = vst [vmem:[#allocation20_spill] sm:$0xff] %v10416_v56  ;;  %v5814_v51 = vrot.slane %v10416_v56, 1 }
 0xffa   :  { %v5785_v29 = vpop.f32.mrf.mxu1 }
 0xffb   :  { %v5860_v44 = vrot.slane %v5785_v29, 2  ;;  %v5815_v33 = vsel %vm1071_vm6, %v5813_v0, %v5814_v51 }
 0xffc   :  { %5826 = vrot.lane.b32.xlu1 %v5815_v33, %s7570_s27  ;;  %v10422_v23 = vpop.f32.mrf.mxu1 }
 0xffd   :  { %10966 = vst [vmem:[#allocation15_spill] sm:$0xff] %v10422_v23  ;;  %v5816_v37 = vrot.slane %v10422_v23, 1  ;;  %v10426_v10 = vsel %vm1118_vm8, %v5859_v6, %v5860_v44 }
 0xffe   :  { %v10428_v62 = vpop.f32.mrf.mxu1 }
 0xfff   :  { %10967 = vst [vmem:[#allocation16_spill] sm:$0xff] %v10428_v62  ;;  %v10872_v39 = vrot.slane %v10428_v62, 2  ;;  %v5817_v2 = vsel %vm1071_vm6, %v5814_v51, %v5816_v37 }
0x1000   :  { %5828 = vrot.lane.b32.xlu0 %v5817_v2, %s7570_s27  ;;  %v5793_v18 = vpop.f32.mrf.mxu1 }
0x1001   :  { %v5818_v29 = vrot.slane %v5793_v18, 1  ;;  %v10436_v0 = vsel %vm1118_vm8, %v5860_v44, %v10872_v39 }
0x1002   :  { %10968 = vst [vmem:[#allocation23_spill] sm:$0xff] %v10436_v0 }
0x1003   :  { %v5819_v33 = vsel %vm1071_vm6, %v5816_v37, %v5818_v29  ;;  %v5341_v29 = vpop.f32.mrf.mxu0 }
0x1004   :  { %5830 = vrot.lane.b32.xlu1 %v5819_v33, %s7570_s27 }
0x1028   :  { %v5371_v6 = vpop.permute.xlu0 %5370 }
0x1029   :  { %v5386_v9 = vadd.f32 %v5371_v6, %v10271_v35 }
0x102b   :  { %v5420_v2 = vadd.f32 %v10287_v25, %v5386_v9  ;;  %v5410_v9 = vrot.slane %v5341_v29, 2 }
0x1030   :  { %v5373_v12 = vpop.permute.xlu1 %5372 }
0x1031   :  { %v5387_v44 = vadd.f32 %v5373_v12, %v10284_v30 }
0x1033   :  { %v5421_v33 = vadd.f32 %v10303_v54, %v5387_v44 }
0x1034   :  { %v5375_v20 = vpop.permute.xlu0 %5374 }
0x1035   :  { %v5388_v35 = vadd.f32 %v5375_v20, %v10289_v47  ;;  %v10969_v47 = vrot.slane %v10305_v43, 2 }
0x1037   :  { %v5411_v20 = vsel %vm1118_vm8, %v10969_v47, %v5410_v9 }
0x1038   :  { %v5377_v62 = vpop.permute.xlu1 %5376 }
0x1046   :  { %v5556_v23 = vpop.permute.xlu0 %5555 }
0x1047   :  { %v5571_v51 = vadd.f32 %v5556_v23, %v10334_v34  ;;  %v5389_v23 = vadd.f32 %v5377_v62, %v10298_v17 }
0x1049   :  { %v5605_v18 = vadd.f32 %v10348_v16, %v5571_v51  ;;  %v5422_v16 = vadd.f32 %v10318_v26, %v5388_v35 }
0x104b   :  { %v5611_v56 = vmax.f32 %v5420_v2, %v5605_v18 }
0x104e   :  { %v5558_v39 = vpop.permute.xlu1 %5557 }
0x104f   :  { %v5572_v37 = vadd.f32 %v5558_v39, %v10344_v21 }
0x1051   :  { %v5606_v6 = vadd.f32 %v10360_v55, %v5572_v37  ;;  %v5423_v55 = vadd.f32 %v5411_v20, %v5389_v23 }
0x1052   :  { %v5560_v0 = vpop.permute.xlu0 %5559 }
0x1053   :  { %v5612_v34 = vmax.f32 %v5421_v33, %v5606_v6  ;;  %v5573_v25 = vadd.f32 %v5560_v0, %v10350_v46 }
0x1055   :  { %v5616_v30 = vpack.c.bf16 %v5612_v34, %v5611_v56  ;;  %v5607_v12 = vadd.f32 %v10367_v28, %v5573_v25 }
0x1056   :  { %v5367_v21 = vpop.permute.xlu0 %5366  ;;  %v5562_v39 = vpop.permute.xlu1 %5561 }
0x1057   :  { %v5613_v51 = vmax.f32 %v5422_v16, %v5607_v12  ;;  %v5574_v54 = vadd.f32 %v5562_v39, %v10356_v11  ;;  %v5384_v46 = vadd.f32 %v5367_v21, %v10267_v15 }
0x1059   :  { %v5608_v0 = vadd.f32 %v10378_v57, %v5574_v54  ;;  %v5418_v28 = vadd.f32 %v10274_v63, %v5384_v46 }
0x105a   :  { %v5552_v26 = vpop.permute.xlu0 %5551  ;;  %v5369_v2 = vpop.permute.xlu1 %5368 }
0x105b   :  { %v5614_v17 = vmax.f32 %v5423_v55, %v5608_v0  ;;  %v5569_v56 = vadd.f32 %v5552_v26, %v10320_v45  ;;  %v5385_v11 = vadd.f32 %v5369_v2, %v10269_v7 }
0x105d   :  { %v5617_v62 = vpack.c.bf16 %v5614_v17, %v5613_v51  ;;  %v5603_v18 = vadd.f32 %v10337_v22, %v5569_v56  ;;  %v5419_v15 = vadd.f32 %v10278_v58, %v5385_v11 }
0x105e   :  { %v5554_v43 = vpop.permute.xlu1 %5553 }
0x105f   :  { %v5609_v44 = vmax.f32 %v5418_v28, %v5603_v18  ;;  %v5570_v37 = vadd.f32 %v5554_v43, %v10328_v36  ;;  %7231 = vmatpush3.bf16.msra.mxu0 %v5617_v62 }
0x1060   :  { %7232 = vmatprep.subr.bf16.mxu0 %v10886_v38 }
0x1061   :  { %v5604_v57 = vadd.f32 %v10341_v13, %v5570_v37 }
0x1063   :  { %v5610_v29 = vmax.f32 %v5419_v15, %v5604_v57  ;;  %7233 = vmatpush3.bf16.msra.mxu0 %v5616_v30 }
0x1064   :  { %7234 = vmatprep.subr.bf16.mxu0 %v10886_v38 }
0x1065   :  { %v5615_v63 = vpack.c.bf16 %v5610_v29, %v5609_v44 }
0x1067   :  { %7235 = vmatpush3.bf16.msra.mxu0 %v5615_v63 }
0x1068   :  { %5906 = vmatprep.subr.bf16.mxu0 %v10156_v49 }
0x106a   :  { %7237 = vmatmul.mubr.msk.bf16.vlgmr.msra.gmra.mxu0 %vm1346_vm9, %v10162_v19  ;;  %v5883_v19 = vpop.permute.xlu0 %5882 }
0x106b   :  { %5907 = vmatpush1.bf16.msra.mxu0 %v10167_v52  ;;  %7240 = vmatprep.mubr.msk.bf16.mxu0 %vm7571_vm7, %v10886_v38 }
0x106c   :  { %5908 = vmatprep.subr.bf16.mxu0 %v10173_v14 }
0x106f   :  { %5909 = vmatpush1.bf16.msra.mxu0 %v10177_v4 }
0x1070   :  { %5910 = vmatprep.subr.bf16.mxu0 %v10180_v1 }
0x1072   :  { %7241 = vmatmul.mubr.msk.bf16.gmra.mxu0 %vm1346_vm9, %v10186_v24  ;;  %v5885_v24 = vpop.permute.xlu1 %5884 }
0x1073   :  { %5911 = vmatpush1.bf16.msra.mxu0 %v10191_v48  ;;  %7244 = vmatprep.mubr.msk.bf16.mxu0 %vm7571_vm7, %v10886_v38 }
0x1074   :  { %5912 = vmatprep.subr.bf16.mxu0 %v10197_v50 }
0x1077   :  { %5913 = vmatpush1.bf16.msra.mxu0 %v10201_v42 }
0x1078   :  { %5914 = vmatprep.subr.bf16.mxu0 %v10204_v53 }
0x107a   :  { %7245 = vmatmul.mubr.msk.bf16.gmra.mxu0 %vm1346_vm9, %v10210_v3 }
0x107b   :  { %5915 = vmatpush1.bf16.msra.mxu0 %v10215_v5  ;;  %5934 = vmatprep.mubr.bf16.mxu0 %v10887_v8 }
0x107c   :  { %5916 = vmatprep.subr.bf16.mxu0 %v10220_v41 }
0x107f   :  { %5917 = vmatpush1.bf16.msra.mxu0 %v10225_v40 }
0x1080   :  { %6215 = vmatprep.subr.bf16.mxu0 %v10156_v49  ;;  %v5887_v49 = vpop.permute.xlu0 %5886 }
0x1082   :  { %6900 = vmatmul.mubr.msk.bf16.vlgmr.msra.gmra.mxu0 %vm977_vm2, %v5883_v19 }
0x1083   :  { %5944 = vmatprep.mubr.bf16.mxu0 %v10887_v8  ;;  %6216 = vmatpush1.bf16.msra.mxu0 %v10167_v52  ;;  %v5889_v52 = vpop.permute.xlu1 %5888 }
0x1084   :  { %6217 = vmatprep.subr.bf16.mxu0 %v10173_v14 }
0x1087   :  { %6218 = vmatpush1.bf16.msra.mxu0 %v10177_v4 }
0x1088   :  { %6219 = vmatprep.subr.bf16.mxu0 %v10180_v1 }
0x108a   :  { %6901 = vmatmul.mubr.msk.bf16.gmra.mxu0 %vm977_vm2, %v5885_v24 }
0x108b   :  { %5954 = vmatprep.mubr.bf16.mxu0 %v10887_v8  ;;  %6220 = vmatpush1.bf16.msra.mxu0 %v10191_v48 }
0x108c   :  { %6221 = vmatprep.subr.bf16.mxu0 %v10197_v50 }
0x108f   :  { %6222 = vmatpush1.bf16.msra.mxu0 %v10201_v42 }
0x1090   :  { %6223 = vmatprep.subr.bf16.mxu0 %v10204_v53 }
0x1092   :  { %6902 = vmatmul.mubr.msk.bf16.gmra.mxu0 %vm977_vm2, %v5887_v49 }
0x1093   :  { %5964 = vmatprep.mubr.bf16.mxu0 %v10887_v8  ;;  %6224 = vmatpush1.bf16.msra.mxu0 %v10215_v5 }
0x1094   :  { %6225 = vmatprep.subr.bf16.mxu0 %v10220_v41 }
0x1097   :  { %6226 = vmatpush1.bf16.msra.mxu0 %v10225_v40 }
0x1098   :  { %7266 = vmatprep.subr.bf16.mxu0 %v10886_v38 }
0x109a   :  { %6903 = vmatmul.mubr.msk.bf16.gmra.mxu0 %vm977_vm2, %v5889_v52 }
0x109b   :  { %6243 = vmatprep.mubr.bf16.mxu0 %v10887_v8 }
0x112a   :  { %v5652_v14 = vpop.f32.mrf.mxu0 }
0x112c   :  { %v7238_v4 = vpop.f32.mrf.mxu0 }
0x112e   :  { %v5655_v1 = vpop.f32.mrf.mxu0 }
0x1130   :  { %v7239_v48 = vpop.f32.mrf.mxu0 }
0x1132   :  { %v5660_v50 = vpop.f32.mrf.mxu0 }
0x1134   :  { %v7242_v42 = vpop.f32.mrf.mxu0 }
0x1136   :  { %v5663_v53 = vpop.f32.mrf.mxu0 }
0x1137   :  { %v5675_v3 = vmax.f32 %v5652_v14, %v5663_v53  ;;  %v5807_v14 = vrot.slane %v10386_v31, 1 }
0x1138   :  { %v7243_v5 = vpop.f32.mrf.mxu0 }
0x1139   :  { %v5678_v41 = vadd.f32 %v10292_v32, %v5675_v3 }
0x113a   :  { %v5668_v7 = vpop.f32.mrf.mxu0 }
0x113b   :  { %v5681_v40 = vmax.f32 %v5678_v41, 0.0  ;;  %v5676_v58 = vmax.f32 %v5655_v1, %v5668_v7 }
0x113c   :  { %v7246_v45 = vpop.f32.mrf.mxu0 }
0x113d   :  { %v6957_v36 = vpack.c.bf16 %v5681_v40, %v5681_v40  ;;  %v5679_v22 = vadd.f32 %v10292_v32, %v5676_v58  ;;  %v10970_v58 = vrot.slane %v10392_v60, 1 }
0x113e   :  { %v5671_v13 = vpop.f32.mrf.mxu0 }
0x113f   :  { %6893 = vst.msk [vmem:[%s10834_s6 + $0x6c] sm:$0xf] %vm1441_vm11, %v6957_v36  ;;  %v5682_v33 = vmax.f32 %v5679_v22, 0.0  ;;  %v5677_v35 = vmax.f32 %v5660_v50, %v5671_v13  ;;  %v5806_v50 = vrot.slane %v10374_v59, 1  ;;  %v5810_v45 = vsel %vm1071_vm6, %v5807_v14, %v10970_v58  ;;  %v6147_v36 = vld [vmem:[#allocation2 + $0x28] sm:$0xff]  ;;  %v6149_v22 = vld [vmem:[#allocation2 + $0x60] sm:$0xff] }
0x1140   :  { %v7247_v6 = vpop.f32.mrf.mxu0  ;;  %v6163_v13 = vpack.c.bf16 %v6149_v22, %v6147_v36  ;;  %v10971_v58 = vld [vmem:[#allocation20_spill] sm:$0xff] }
0x1141   :  { %v6958_v34 = vpack.c.bf16 %v5682_v33, %v5682_v33  ;;  %v5680_v25 = vadd.f32 %v10292_v32, %v5677_v35  ;;  %v5808_v5 = vsel %vm1071_vm6, %v5806_v50, %v5807_v14  ;;  %v6148_v35 = vld [vmem:[#allocation2 + $0x30] sm:$0xff]  ;;  %v6150_v6 = vld [vmem:[#allocation2 + $0x68] sm:$0xff] }
0x1142   :  { %v10519_v9 = vpop.f32.mrf.mxu0 }
0x1143   :  { %6894 = vst.msk [vmem:[%s10834_s6 + $0x70] sm:$0xf] %vm1441_vm11, %v6958_v34  ;;  %v5683_v16 = vmax.f32 %v5680_v25, 0.0  ;;  %v5983_v7 = vrot.slane %v10519_v9, 1  ;;  %v6164_v34 = vpack.c.bf16 %v6150_v6, %v6148_v35  ;;  %v6151_v25 = vld [vmem:[#allocation2 + $0x98] sm:$0xff] }
0x1144   :  { %v5938_v23 = vpop.f32.mrf.mxu0 }
0x1145   :  { %v6959_v30 = vpack.c.bf16 %v5683_v16, %v5683_v16  ;;  %v6029_v39 = vrot.slane %v5938_v23, 2  ;;  %v6153_v16 = vld [vmem:[#allocation2 + $0xd0] sm:$0xff] }
0x1146   :  { %v10525_v12 = vpop.f32.mrf.mxu0  ;;  %v6165_v23 = vpack.c.bf16 %v6153_v16, %v6151_v25 }
0x1147   :  { %6895 = vst.msk [vmem:[%s10834_s6 + $0x74] sm:$0xf] %vm1441_vm11, %v6959_v30  ;;  %v5984_v3 = vrot.slane %v10525_v12, 1  ;;  %v6152_v30 = vld [vmem:[#allocation2 + $0xa0] sm:$0xff] }
0x1148   :  { %v5942_v21 = vpop.f32.mrf.mxu0 }
0x1149   :  { %v6030_v51 = vrot.slane %v5942_v21, 2  ;;  %v5985_v40 = vsel %vm1071_vm6, %v5983_v7, %v5984_v3  ;;  %v6154_v21 = vld [vmem:[#allocation2 + $0xd8] sm:$0xff]  ;;  %v5795_v7 = vpop.f32.mrf.mxu1 }
0x114a   :  { %v10531_v54 = vpop.f32.mrf.mxu0 }
0x114b   :  { %v10534_v47 = vsel %vm1118_vm8, %v6029_v39, %v6030_v51  ;;  %v5986_v0 = vrot.slane %v10531_v54, 1  ;;  %v6166_v39 = vpack.c.bf16 %v6154_v21, %v6152_v30  ;;  %v10974_v30 = vld [vmem:[#allocation16_spill] sm:$0xff] }
0x114c   :  { %v5948_v20 = vpop.f32.mrf.mxu0 }
0x114d   :  { %v6032_v55 = vrot.slane %v5948_v20, 2  ;;  %v5987_v33 = vsel %vm1071_vm6, %v5984_v3, %v5986_v0  ;;  %v6157_v20 = vld [vmem:[#allocation2 + $0x140] sm:$0xff] }
0x114e   :  { %v5950_v46 = vpop.f32.mrf.mxu0 }
0x114f   :  { %v5988_v26 = vrot.slane %v5950_v46, 1  ;;  %v10538_v2 = vsel %vm1118_vm8, %v6030_v51, %v6032_v55  ;;  %v6155_v51 = vld [vmem:[#allocation2 + $0x108] sm:$0xff]  ;;  %v6156_v46 = vld [vmem:[#allocation2 + $0x110] sm:$0xff] }
0x1150   :  { %v5952_v17 = vpop.f32.mrf.mxu0 }
0x1151   :  { %v6034_v56 = vrot.slane %v5952_v17, 2  ;;  %v5989_v28 = vsel %vm1071_vm6, %v5986_v0, %v5988_v26  ;;  %v6158_v0 = vld [vmem:[#allocation2 + $0x148] sm:$0xff]  ;;  %v6159_v17 = vld [vmem:[#allocation2 + $0x178] sm:$0xff] }
0x1152   :  { %6001 = vrot.lane.b32.xlu0 %v5989_v28, %s7570_s27  ;;  %v10542_v62 = vpop.f32.mrf.mxu0  ;;  %v6168_v26 = vpack.c.bf16 %v6158_v0, %v6156_v46 }
0x1153   :  { %v10545_v18 = vsel %vm1118_vm8, %v6032_v55, %v6034_v56  ;;  %v5990_v44 = vrot.slane %v10542_v62, 1  ;;  %v6167_v55 = vpack.c.bf16 %v6157_v20, %v6155_v51  ;;  %v6161_v56 = vld [vmem:[#allocation2 + $0x1b0] sm:$0xff] }
0x1154   :  { %v5958_v11 = vpop.f32.mrf.mxu0  ;;  %v6169_v28 = vpack.c.bf16 %v6161_v56, %v6159_v17 }
0x1155   :  { %v6036_v57 = vrot.slane %v5958_v11, 2  ;;  %v6160_v11 = vld [vmem:[#allocation2 + $0x180] sm:$0xff] }
0x1156   :  { %v10547_v43 = vpop.f32.mrf.mxu0 }
0x1157   :  { %v5991_v37 = vrot.slane %v10547_v43, 1 }
0x1158   :  { %v5962_v15 = vpop.f32.mrf.mxu0 }
0x1159   :  { %v6037_v29 = vrot.slane %v5962_v15, 2  ;;  %v5992_v63 = vsel %vm1071_vm6, %v5990_v44, %v5991_v37  ;;  %v6162_v44 = vld [vmem:[#allocation2 + $0x1b8] sm:$0xff]  ;;  %v5825_v15 = vpop.permute.xlu0 %5824 }
0x115a   :  { %6003 = vrot.lane.b32.xlu1 %v5992_v63, %s7570_s27  ;;  %v10553_v19 = vpop.f32.mrf.mxu0  ;;  %v5827_v63 = vpop.permute.xlu1 %5826 }
0x115b   :  { %v5993_v24 = vrot.slane %v10553_v19, 1  ;;  %v10557_v49 = vsel %vm1118_vm8, %v6036_v57, %v6037_v29  ;;  %v5841_v3 = vadd.f32 %v5827_v63, %v10411_v61  ;;  %v10973_v61 = vld [vmem:[#allocation15_spill] sm:$0xff] }
0x115c   :  { %v10559_v52 = vpop.f32.mrf.mxu0 }
0x115d   :  { %v6039_v4 = vrot.slane %v10559_v52, 2  ;;  %v5994_v1 = vsel %vm1071_vm6, %v5991_v37, %v5993_v24  ;;  %v6170_v37 = vpack.c.bf16 %v6162_v44, %v6160_v11  ;;  %v5829_v57 = vpop.permute.xlu0 %5828 }
0x115e   :  { %6005 = vrot.lane.b32.xlu0 %v5994_v1, %s7570_s27  ;;  %v5970_v48 = vpop.f32.mrf.mxu0  ;;  %v5831_v50 = vpop.permute.xlu1 %5830 }
0x115f   :  { %v5995_v42 = vrot.slane %v5970_v48, 1  ;;  %v10569_v53 = vsel %vm1118_vm8, %v6037_v29, %v6039_v4  ;;  %v5840_v29 = vadd.f32 %v5825_v15, %v10392_v60  ;;  %v5842_v60 = vadd.f32 %v5829_v57, %v10971_v58 }
0x1160   :  { %v5843_v6 = vadd.f32 %v5831_v50, %v10973_v61  ;;  %v7459_v50 = vld [vmem:[#allocation7 + $0x50] ss:$8 sps:$4 sm:$0xff]  }
0x1161   :  { %v5996_v41 = vsel %vm1071_vm6, %v5993_v24, %v5995_v42  ;;  %v5874_v1 = vadd.f32 %v10414_v27, %v5840_v29 }
0x1162   :  { %5820 = vrot.lane.b32.xlu0 %v5808_v5, %s7570_s27  ;;  %6007 = vrot.lane.b32.xlu1 %v5996_v41, %s7570_s27 }
0x1166   :  { %5997 = vrot.lane.b32.xlu0 %v5985_v40, %s7570_s27  ;;  %5822 = vrot.lane.b32.xlu1 %v5810_v45, %s7570_s27  ;;  %v5875_v40 = vadd.f32 %v10426_v10, %v5841_v3  ;;  %v5972_v45 = vpop.f32.mrf.mxu0 }
0x116a   :  { %6179 = vrot.lane.b32.xlu0 %v6163_v13, %s7570_s27  ;;  %5999 = vrot.lane.b32.xlu1 %v5987_v33, %s7570_s27  ;;  %v10972_v33 = vld [vmem:[#allocation23_spill] sm:$0xff] }
0x116b   :  { %v5876_v35 = vadd.f32 %v10972_v33, %v5842_v60  ;;  %v10663_v33 = vld [vmem:[%s10833_s5 + $0x10] sm:$0xff]  }
0x116e   :  { %6364 = vrot.lane.b32.xlu0 %v6163_v13, %s7572_s28  ;;  %6181 = vrot.lane.b32.xlu1 %v6164_v34, %s7570_s27  ;;  %v6041_v13 = vrot.slane %v5972_v45, 2  ;;  %v7464_v45 = vld [vmem:[#allocation7 + $0x30] ss:$8 sps:$4 sm:$0xff]  }
0x1172   :  { %6183 = vrot.lane.b32.xlu0 %v6165_v23, %s7570_s27  ;;  %6366 = vrot.lane.b32.xlu1 %v6164_v34, %s7572_s28 }
0x1176   :  { %6368 = vrot.lane.b32.xlu0 %v6165_v23, %s7572_s28  ;;  %6185 = vrot.lane.b32.xlu1 %v6166_v39, %s7570_s27 }
0x117a   :  { %6187 = vrot.lane.b32.xlu0 %v6167_v55, %s7570_s27  ;;  %6370 = vrot.lane.b32.xlu1 %v6166_v39, %s7572_s28 }
0x117e   :  { %6372 = vrot.lane.b32.xlu0 %v6167_v55, %s7572_s28  ;;  %6189 = vrot.lane.b32.xlu1 %v6168_v26, %s7570_s27 }
0x1182   :  { %6191 = vrot.lane.b32.xlu0 %v6169_v28, %s7570_s27  ;;  %6374 = vrot.lane.b32.xlu1 %v6168_v26, %s7572_s28  ;;  %v10976_v26 = vld [vmem:[#allocation21_spill] sm:$0xff] }
0x1186   :  { %6376 = vrot.lane.b32.xlu0 %v6169_v28, %s7572_s28  ;;  %6193 = vrot.lane.b32.xlu1 %v6170_v37, %s7570_s27 }
0x118a   :  { %6378 = vrot.lane.b32.xlu1 %v6170_v37, %s7572_s28 }
0x11c4   :  { %v6002_v24 = vpop.permute.xlu0 %6001 }
0x11c5   :  { %v6017_v14 = vadd.f32 %v6002_v24, %v10531_v54  ;;  %v7457_v24 = vld [vmem:[#allocation7 + $0x54] ss:$8 sps:$4 sm:$0xff]  }
0x11c7   :  { %v6051_v48 = vadd.f32 %v10545_v18, %v6017_v14  ;;  %v5864_v18 = vrot.slane %v5795_v7, 2  ;;  %v10639_v14 = vld [vmem:[%s10833_s5] sm:$0xff]   ;;  %v7462_v7 = vld [vmem:[#allocation7 + $0x34] ss:$8 sps:$4 sm:$0xff]  }
0x11c9   :  { %v6057_v42 = vmax.f32 %v5874_v1, %v6051_v48 }
0x11cc   :  { %v6004_v5 = vpop.permute.xlu1 %6003 }
0x11cd   :  { %v6018_v41 = vadd.f32 %v6004_v5, %v10542_v62 }
0x11cf   :  { %v6052_v36 = vadd.f32 %v10557_v49, %v6018_v41  ;;  %v10975_v49 = vrot.slane %v10974_v30, 2  ;;  %v7461_v41 = vld [vmem:[#allocation7 + $0x40] ss:$8 sps:$4 sm:$0xff]  }
0x11d0   :  { %v6006_v54 = vpop.permute.xlu0 %6005 }
0x11d1   :  { %v6058_v22 = vmax.f32 %v5875_v40, %v6052_v36  ;;  %v6019_v27 = vadd.f32 %v6006_v54, %v10547_v43  ;;  %v5865_v21 = vsel %vm1118_vm8, %v10975_v49, %v5864_v18  ;;  %v6042_v43 = vsel %vm1118_vm8, %v6039_v4, %v6041_v13  ;;  %v10651_v40 = vld [vmem:[%s10833_s5 + $0x8] sm:$0xff]   ;;  %v7467_v18 = vld [vmem:[#allocation7 + $0x14] ss:$8 sps:$4 sm:$0xff]  }
0x11d2   :  { %v5877_v39 = vadd.f32 %v5865_v21, %v5843_v6  ;;  %v7465_v54 = vld [vmem:[#allocation7 + $0x24] ss:$8 sps:$4 sm:$0xff]   ;;  %v7469_v6 = vld [vmem:[#allocation7 + $0x10] ss:$8 sps:$4 sm:$0xff]  }
0x11d3   :  { %v6062_v34 = vpack.c.bf16 %v6058_v22, %v6057_v42  ;;  %v6053_v62 = vadd.f32 %v10569_v53, %v6019_v27  ;;  %v7460_v42 = vld [vmem:[#allocation7 + $0x44] ss:$8 sps:$4 sm:$0xff]   ;;  %v7466_v27 = vld [vmem:[#allocation7 + $0x20] ss:$8 sps:$4 sm:$0xff]  }
0x11d4   :  { %v5821_v25 = vpop.permute.xlu0 %5820  ;;  %v6008_v10 = vpop.permute.xlu1 %6007 }
0x11d5   :  { %v6059_v16 = vmax.f32 %v5876_v35, %v6053_v62  ;;  %v6020_v23 = vadd.f32 %v6008_v10, %v10553_v19  ;;  %v5838_v51 = vadd.f32 %v5821_v25, %v10374_v59  ;;  %v10977_v59 = vld [vmem:[#allocation19_spill] sm:$0xff]  ;;  %v7471_v62 = vld [vmem:[#allocation7] ss:$8 sps:$4 sm:$0xff]  }
0x11d7   :  { %v6054_v20 = vadd.f32 %v6042_v43, %v6020_v23  ;;  %v5872_v17 = vadd.f32 %v10976_v26, %v5838_v51 }
0x11d8   :  { %v5998_v55 = vpop.permute.xlu0 %5997  ;;  %v5823_v46 = vpop.permute.xlu1 %5822 }
0x11d9   :  { %v6060_v53 = vmax.f32 %v5877_v39, %v6054_v20  ;;  %v6015_v0 = vadd.f32 %v5998_v55, %v10519_v9  ;;  %v5839_v28 = vadd.f32 %v5823_v46, %v10386_v31 }
0x11db   :  { %v6063_v19 = vpack.c.bf16 %v6060_v53, %v6059_v16  ;;  %v6049_v56 = vadd.f32 %v10534_v47, %v6015_v0  ;;  %v5873_v37 = vadd.f32 %v10977_v59, %v5839_v28 }
0x11dc   :  { %v6180_v11 = vpop.permute.xlu0 %6179  ;;  %v6000_v52 = vpop.permute.xlu1 %5999 }
0x11dd   :  { %v6055_v44 = vmax.f32 %v5872_v17, %v6049_v56  ;;  %v6016_v4 = vadd.f32 %v6000_v52, %v10525_v12  ;;  %7249 = vmatpush3.bf16.msra.mxu1 %v6063_v19 }
0x11de   :  { %7250 = vmatprep.subr.bf16.mxu1 %v10886_v38 }
0x11df   :  { %v6050_v15 = vadd.f32 %v10538_v2, %v6016_v4 }
0x11e0   :  { %v10630_v9 = vpop.permute.xlu0 %6364  ;;  %v6182_v57 = vpop.permute.xlu1 %6181 }
0x11e1   :  { %v6056_v29 = vmax.f32 %v5873_v37, %v6050_v15  ;;  %v6195_v47 = vsel %vm819_vm3, %v6180_v11, %v6182_v57  ;;  %7251 = vmatpush3.bf16.msra.mxu1 %v6062_v34  ;;  %v7470_v34 = vld [vmem:[#allocation7 + $0x4] ss:$8 sps:$4 sm:$0xff]  }
0x11e2   :  { %6913 = vmatmul.mubr.msk.bf16.vlgmr.msra.gmra.mxu0 %vm977_vm2, %v6195_v47  ;;  %7252 = vmatprep.subr.bf16.mxu1 %v10886_v38 }
0x11e3   :  { %v6061_v31 = vpack.c.bf16 %v6056_v29, %v6055_v44  ;;  %6253 = vmatprep.mubr.bf16.mxu0 %v10887_v8 }
0x11e4   :  { %v6184_v12 = vpop.permute.xlu0 %6183  ;;  %v6367_v63 = vpop.permute.xlu1 %6366 }
0x11e5   :  { %7253 = vmatpush3.bf16.msra.mxu1 %v6061_v31  ;;  %v6380_v25 = vsel %vm1679_vm10, %v10630_v9, %v6367_v63 }
0x11e6   :  { %6400 = vmatprep.subr.bf16.mxu1 %v7457_v24 }
0x11e8   :  { %v6369_v2 = vpop.permute.xlu0 %6368  ;;  %7255 = vmatmul.mubr.msk.bf16.vlgmr.msra.gmra.mxu1 %vm1346_vm9, %v10639_v14  ;;  %v6186_v1 = vpop.permute.xlu1 %6185 }
0x11e9   :  { %v6196_v48 = vsel %vm819_vm3, %v6184_v12, %v6186_v1  ;;  %6401 = vmatpush1.bf16.msra.mxu1 %v7459_v50  ;;  %7258 = vmatprep.mubr.msk.bf16.mxu1 %vm7571_vm7, %v10886_v38 }
0x11ea   :  { %6914 = vmatmul.mubr.msk.bf16.gmra.mxu0 %vm977_vm2, %v6196_v48  ;;  %6402 = vmatprep.subr.bf16.mxu1 %v7460_v42 }
0x11eb   :  { %6263 = vmatprep.mubr.bf16.mxu0 %v10887_v8 }
0x11ec   :  { %v6188_v3 = vpop.permute.xlu0 %6187  ;;  %v6371_v5 = vpop.permute.xlu1 %6370 }
0x11ed   :  { %6403 = vmatpush1.bf16.msra.mxu1 %v7461_v41  ;;  %v6381_v10 = vsel %vm1679_vm10, %v6369_v2, %v6371_v5 }
0x11ee   :  { %6404 = vmatprep.subr.bf16.mxu1 %v7462_v7 }
0x11f0   :  { %7259 = vmatmul.mubr.msk.bf16.gmra.mxu1 %vm1346_vm9, %v10651_v40  ;;  %v6190_v58 = vpop.permute.xlu1 %6189  ;;  %v6373_v36 = vpop.permute.xlu0 %6372 }
0x11f1   :  { %v6197_v60 = vsel %vm819_vm3, %v6188_v3, %v6190_v58  ;;  %6405 = vmatpush1.bf16.msra.mxu1 %v7464_v45  ;;  %7262 = vmatprep.mubr.msk.bf16.mxu1 %vm7571_vm7, %v10886_v38 }
0x11f2   :  { %6915 = vmatmul.mubr.msk.bf16.gmra.mxu0 %vm977_vm2, %v6197_v60  ;;  %6406 = vmatprep.subr.bf16.mxu1 %v7465_v54 }
0x11f3   :  { %6273 = vmatprep.mubr.bf16.mxu0 %v10887_v8 }
0x11f4   :  { %v6375_v22 = vpop.permute.xlu1 %6374  ;;  %v6192_v13 = vpop.permute.xlu0 %6191 }
0x11f5   :  { %6407 = vmatpush1.bf16.msra.mxu1 %v7466_v27  ;;  %v6382_v16 = vsel %vm1679_vm10, %v6373_v36, %v6375_v22 }
0x11f6   :  { %6408 = vmatprep.subr.bf16.mxu1 %v7467_v18 }
0x11f8   :  { %7263 = vmatmul.mubr.msk.bf16.gmra.mxu1 %vm1346_vm9, %v10663_v33  ;;  %v6194_v35 = vpop.permute.xlu1 %6193  ;;  %v6377_v30 = vpop.permute.xlu0 %6376 }
0x11f9   :  { %v6198_v61 = vsel %vm819_vm3, %v6192_v13, %v6194_v35  ;;  %6409 = vmatpush1.bf16.msra.mxu1 %v7469_v6  ;;  %6428 = vmatprep.mubr.bf16.mxu1 %v10887_v8 }
0x11fa   :  { %6916 = vmatmul.mubr.msk.bf16.gmra.mxu0 %vm977_vm2, %v6198_v61  ;;  %6410 = vmatprep.subr.bf16.mxu1 %v7470_v34 }
0x11fb   :  { %7272 = vmatprep.mubr.msk.bf16.mxu0 %vm7571_vm7, %v10886_v38 }
0x11fc   :  { %v6379_v23 = vpop.permute.xlu1 %6378 }
0x11fd   :  { %6411 = vmatpush1.bf16.msra.mxu1 %v7471_v62  ;;  %v6383_v49 = vsel %vm1679_vm10, %v6377_v30, %v6379_v23 }
0x1200   :  { %6917 = vmatmul.mubr.msk.bf16.vlgmr.msra.gmra.mxu1 %vm977_vm2, %v6380_v25 }
0x1201   :  { %6438 = vmatprep.mubr.bf16.mxu1 %v10887_v8 }
0x1208   :  { %6918 = vmatmul.mubr.msk.bf16.gmra.mxu1 %vm977_vm2, %v6381_v10  ;;  %v10729_v10 = vld [vmem:[#allocation8] ss:$0 sm:$0xff] }
0x1209   :  { %6448 = vmatprep.mubr.bf16.mxu1 %v10887_v8 }
0x1210   :  { %6919 = vmatmul.mubr.msk.bf16.gmra.mxu1 %vm977_vm2, %v6382_v16 }
0x1211   :  { %6458 = vmatprep.mubr.bf16.mxu1 %v10887_v8 }
0x1218   :  { %6920 = vmatmul.mubr.msk.bf16.gmra.mxu1 %vm977_vm2, %v6383_v49 }
0x12a2   :  { %v10684_v21 = vpop.f32.mrf.mxu0 }
0x12a4   :  { %v6247_v43 = vpop.f32.mrf.mxu0 }
0x12a5   :  { %v6338_v55 = vrot.slane %v6247_v43, 2 }
0x12a6   :  { %v10686_v39 = vpop.f32.mrf.mxu0 }
0x12a8   :  { %v6098_v51 = vpop.f32.mrf.mxu1  ;;  %v6251_v20 = vpop.f32.mrf.mxu0 }
0x12a9   :  { %v6339_v46 = vrot.slane %v6251_v20, 2 }
0x12aa   :  { %v7256_v53 = vpop.f32.mrf.mxu1  ;;  %v10688_v0 = vpop.f32.mrf.mxu0 }
0x12ab   :  { %v10691_v8 = vsel %vm1118_vm8, %v6338_v55, %v6339_v46  ;;  %v6295_v11 = vrot.slane %v10688_v0, 1 }
0x12ac   :  { %v6101_v26 = vpop.f32.mrf.mxu1  ;;  %v6257_v17 = vpop.f32.mrf.mxu0 }
0x12ad   :  { %v6341_v19 = vrot.slane %v6257_v17, 2 }
0x12ae   :  { %v7257_v56 = vpop.f32.mrf.mxu1  ;;  %v6259_v28 = vpop.f32.mrf.mxu0 }
0x12af   :  { %v6297_v52 = vrot.slane %v6259_v28, 1  ;;  %v10695_v44 = vsel %vm1118_vm8, %v6339_v46, %v6341_v19 }
0x12b0   :  { %v6106_v4 = vpop.f32.mrf.mxu1  ;;  %v6261_v59 = vpop.f32.mrf.mxu0 }
0x12b1   :  { %v6343_v37 = vrot.slane %v6261_v59, 2  ;;  %v6298_v15 = vsel %vm1071_vm6, %v6295_v11, %v6297_v52 }
0x12b2   :  { %v7260_v9 = vpop.f32.mrf.mxu1  ;;  %6310 = vrot.lane.b32.xlu0 %v6298_v15, %s7570_s27  ;;  %v10701_v57 = vpop.f32.mrf.mxu0 }
0x12b3   :  { %v10704_v29 = vsel %vm1118_vm8, %v6341_v19, %v6343_v37  ;;  %v6299_v2 = vrot.slane %v10701_v57, 1 }
0x12b4   :  { %v6109_v47 = vpop.f32.mrf.mxu1  ;;  %v6267_v31 = vpop.f32.mrf.mxu0 }
0x12b5   :  { %v6121_v12 = vmax.f32 %v6098_v51, %v6109_v47  ;;  %v6345_v50 = vrot.slane %v6267_v31, 2 }
0x12b6   :  { %v7261_v63 = vpop.f32.mrf.mxu1  ;;  %v10706_v24 = vpop.f32.mrf.mxu0 }
0x12b7   :  { %v6124_v1 = vadd.f32 %v10292_v32, %v6121_v12  ;;  %v6300_v48 = vrot.slane %v10706_v24, 1 }
0x12b8   :  { %v6114_v42 = vpop.f32.mrf.mxu1  ;;  %v6271_v3 = vpop.f32.mrf.mxu0 }
0x12b9   :  { %v6127_v5 = vmax.f32 %v6124_v1, 0.0  ;;  %v6122_v41 = vmax.f32 %v6101_v26, %v6114_v42  ;;  %v6346_v7 = vrot.slane %v6271_v3, 2  ;;  %v6301_v58 = vsel %vm1071_vm6, %v6299_v2, %v6300_v48 }
0x12ba   :  { %v7264_v60 = vpop.f32.mrf.mxu1  ;;  %6312 = vrot.lane.b32.xlu1 %v6301_v58, %s7570_s27  ;;  %v10713_v45 = vpop.f32.mrf.mxu0 }
0x12bb   :  { %v6960_v36 = vpack.c.bf16 %v6127_v5, %v6127_v5  ;;  %v6125_v54 = vadd.f32 %v10292_v32, %v6122_v41  ;;  %v6302_v22 = vrot.slane %v10713_v45, 1  ;;  %v10718_v27 = vsel %vm1118_vm8, %v6345_v50, %v6346_v7 }
0x12bc   :  { %v6117_v18 = vpop.f32.mrf.mxu1  ;;  %v10720_v13 = vpop.f32.mrf.mxu0 }
0x12bd   :  { %6910 = vst.msk [vmem:[%s10834_s6 + $0x78] sm:$0xf] %vm1441_vm11, %v6960_v36  ;;  %v6128_v35 = vmax.f32 %v6125_v54, 0.0  ;;  %v6123_v61 = vmax.f32 %v6106_v4, %v6117_v18  ;;  %v6348_v6 = vrot.slane %v10720_v13, 2  ;;  %v6303_v34 = vsel %vm1071_vm6, %v6300_v48, %v6302_v22 }
0x12be   :  { %v7265_v32 = vpop.f32.mrf.mxu1  ;;  %6314 = vrot.lane.b32.xlu0 %v6303_v34, %s7570_s27  ;;  %v6279_v62 = vpop.f32.mrf.mxu0  ;;  %v6293_v54 = vrot.slane %v10686_v39, 1 }
0x12bf   :  { %v6961_v25 = vpack.c.bf16 %v6128_v35, %v6128_v35  ;;  %v6126_v16 = vadd.f32 %v10729_v10, %v6123_v61  ;;  %v6304_v23 = vrot.slane %v6279_v62, 1  ;;  %v10735_v30 = vsel %vm1118_vm8, %v6346_v7, %v6348_v6 }
0x12c0   :  { %v10737_v49 = vpop.f32.mrf.mxu1  ;;  %v6292_v61 = vrot.slane %v10684_v21, 1 }
0x12c1   :  { %6911 = vst.msk [vmem:[%s10834_s6 + $0x7c] sm:$0xf] %vm1441_vm11, %v6961_v25  ;;  %v6129_v43 = vmax.f32 %v6126_v16, 0.0  ;;  %v6305_v51 = vsel %vm1071_vm6, %v6302_v22, %v6304_v23  ;;  %v6477_v23 = vrot.slane %v10737_v49, 1 }
0x12c2   :  { %v6432_v20 = vpop.f32.mrf.mxu1  ;;  %6316 = vrot.lane.b32.xlu1 %v6305_v51, %s7570_s27  ;;  %v6294_v25 = vsel %vm1071_vm6, %v6292_v61, %v6293_v54  ;;  %v6296_v51 = vsel %vm1071_vm6, %v6293_v54, %v6295_v11 }
0x12c3   :  { %v6962_v55 = vpack.c.bf16 %v6129_v43, %v6129_v43  ;;  %v6523_v26 = vrot.slane %v6432_v20, 2 }
0x12c4   :  { %v10745_v46 = vpop.f32.mrf.mxu1 }
0x12c5   :  { %6912 = vst.msk [vmem:[%s10834_s6 + $0x80] sm:$0xf] %vm1441_vm11, %v6962_v55  ;;  %v6478_v62 = vrot.slane %v10745_v46, 1 }
0x12c6   :  { %v6436_v53 = vpop.f32.mrf.mxu1 }
0x12c7   :  { %v6524_v17 = vrot.slane %v6436_v53, 2  ;;  %v6479_v43 = vsel %vm1071_vm6, %v6477_v23, %v6478_v62 }
0x12c8   :  { %v6440_v19 = vpop.f32.mrf.mxu1 }
0x12c9   :  { %v10752_v56 = vsel %vm1118_vm8, %v6523_v26, %v6524_v17  ;;  %v6480_v59 = vrot.slane %v6440_v19, 1 }
0x12ca   :  { %v6442_v28 = vpop.f32.mrf.mxu1 }
0x12cb   :  { %v6526_v52 = vrot.slane %v6442_v28, 2  ;;  %v6481_v20 = vsel %vm1071_vm6, %v6478_v62, %v6480_v59 }
0x12cc   :  { %v6444_v4 = vpop.f32.mrf.mxu1 }
0x12cd   :  { %v6482_v37 = vrot.slane %v6444_v4, 1  ;;  %v10755_v15 = vsel %vm1118_vm8, %v6524_v17, %v6526_v52 }
0x12ce   :  { %v6446_v9 = vpop.f32.mrf.mxu1 }
0x12cf   :  { %v6528_v47 = vrot.slane %v6446_v9, 2  ;;  %v6483_v31 = vsel %vm1071_vm6, %v6480_v59, %v6482_v37 }
0x12d0   :  { %v6450_v12 = vpop.f32.mrf.mxu1  ;;  %6495 = vrot.lane.b32.xlu0 %v6483_v31, %s7570_s27 }
0x12d1   :  { %v6529_v63 = vsel %vm1118_vm8, %v6526_v52, %v6528_v47  ;;  %v6484_v48 = vrot.slane %v6450_v12, 1 }
0x12d2   :  { %v6452_v2 = vpop.f32.mrf.mxu1 }
0x12d3   :  { %v6530_v3 = vrot.slane %v6452_v2, 2 }
0x12d4   :  { %v6454_v1 = vpop.f32.mrf.mxu1 }
0x12d5   :  { %v6485_v50 = vrot.slane %v6454_v1, 1 }
0x12d6   :  { %v6456_v42 = vpop.f32.mrf.mxu1 }
0x12d7   :  { %v6531_v5 = vrot.slane %v6456_v42, 2  ;;  %v6486_v41 = vsel %vm1071_vm6, %v6484_v48, %v6485_v50  ;;  %v6281_v48 = vpop.f32.mrf.mxu0 }
0x12d8   :  { %6497 = vrot.lane.b32.xlu1 %v6486_v41, %s7570_s27  ;;  %v6460_v7 = vpop.f32.mrf.mxu1 }
0x12d9   :  { %v6487_v58 = vrot.slane %v6460_v7, 1  ;;  %v6532_v60 = vsel %vm1118_vm8, %v6530_v3, %v6531_v5 }
0x12da   :  { %v6462_v36 = vpop.f32.mrf.mxu1 }
0x12db   :  { %v6533_v22 = vrot.slane %v6462_v36, 2  ;;  %v6488_v18 = vsel %vm1071_vm6, %v6485_v50, %v6487_v58 }
0x12dc   :  { %6499 = vrot.lane.b32.xlu0 %v6488_v18, %s7570_s27  ;;  %v6464_v35 = vpop.f32.mrf.mxu1 }
0x12dd   :  { %v6489_v34 = vrot.slane %v6464_v35, 1  ;;  %v6534_v32 = vsel %vm1118_vm8, %v6531_v5, %v6533_v22 }
0x12de   :  { %v6466_v59 = vpop.f32.mrf.mxu1 }
0x12df   :  { %v6490_v16 = vsel %vm1071_vm6, %v6487_v58, %v6489_v34  ;;  %v6535_v58 = vrot.slane %v6466_v59, 2 }
0x12e0   :  { %6306 = vrot.lane.b32.xlu0 %v6294_v25, %s7570_s27  ;;  %6501 = vrot.lane.b32.xlu1 %v6490_v16, %s7570_s27 }
0x12e4   :  { %6491 = vrot.lane.b32.xlu0 %v6479_v43, %s7570_s27  ;;  %6308 = vrot.lane.b32.xlu1 %v6296_v51, %s7570_s27 }
0x12e8   :  { %6493 = vrot.lane.b32.xlu1 %v6481_v20, %s7570_s27 }
0x1324   :  { %v6311_v55 = vpop.permute.xlu0 %6310 }
0x1325   :  { %v6326_v26 = vadd.f32 %v6311_v55, %v10688_v0 }
0x1327   :  { %v6360_v4 = vadd.f32 %v10704_v29, %v6326_v26 }
0x132c   :  { %v6313_v17 = vpop.permute.xlu1 %6312 }
0x132d   :  { %v6327_v47 = vadd.f32 %v6313_v17, %v10701_v57 }
0x132f   :  { %v6361_v50 = vadd.f32 %v10718_v27, %v6327_v47  ;;  %v6536_v27 = vsel %vm1118_vm8, %v6533_v22, %v6535_v58 }
0x1330   :  { %v6315_v53 = vpop.permute.xlu0 %6314 }
0x1331   :  { %v6328_v42 = vadd.f32 %v6315_v53, %v10706_v24 }
0x1333   :  { %v6362_v29 = vadd.f32 %v10735_v30, %v6328_v42 }
0x1334   :  { %v6317_v9 = vpop.permute.xlu1 %6316 }
0x1342   :  { %v6496_v28 = vpop.permute.xlu0 %6495 }
0x1343   :  { %v6511_v52 = vadd.f32 %v6496_v28, %v6440_v19  ;;  %v6350_v19 = vrot.slane %v6281_v48, 2 }
0x1345   :  { %v6545_v37 = vadd.f32 %v6529_v63, %v6511_v52  ;;  %v6329_v63 = vadd.f32 %v6317_v9, %v10713_v45  ;;  %v6351_v24 = vsel %vm1118_vm8, %v6348_v6, %v6350_v19 }
0x1347   :  { %v6551_v11 = vmax.f32 %v6360_v4, %v6545_v37 }
0x134a   :  { %v6498_v31 = vpop.permute.xlu1 %6497 }
0x134b   :  { %v6512_v2 = vadd.f32 %v6498_v31, %v6450_v12 }
0x134d   :  { %v6546_v3 = vadd.f32 %v6532_v60, %v6512_v2  ;;  %v6363_v60 = vadd.f32 %v6351_v24, %v6329_v63 }
0x134e   :  { %v6500_v0 = vpop.permute.xlu0 %6499 }
0x134f   :  { %v6552_v5 = vmax.f32 %v6361_v50, %v6546_v3  ;;  %v6513_v41 = vadd.f32 %v6500_v0, %v6454_v1 }
0x1351   :  { %v6556_v36 = vpack.c.bf16 %v6552_v5, %v6551_v11  ;;  %v6547_v57 = vadd.f32 %v6534_v32, %v6513_v41 }
0x1352   :  { %v6307_v54 = vpop.permute.xlu0 %6306  ;;  %v6502_v12 = vpop.permute.xlu1 %6501 }
0x1353   :  { %v6553_v18 = vmax.f32 %v6362_v29, %v6547_v57  ;;  %v6514_v35 = vadd.f32 %v6502_v12, %v6460_v7  ;;  %v6324_v1 = vadd.f32 %v6307_v54, %v10684_v21 }
0x1355   :  { %v6548_v61 = vadd.f32 %v6536_v27, %v6514_v35  ;;  %v6358_v32 = vadd.f32 %v10691_v8, %v6324_v1 }
0x1356   :  { %v6492_v34 = vpop.permute.xlu0 %6491  ;;  %v6309_v30 = vpop.permute.xlu1 %6308 }
0x1357   :  { %v6554_v62 = vmax.f32 %v6363_v60, %v6548_v61  ;;  %v6509_v45 = vadd.f32 %v6492_v34, %v10737_v49  ;;  %v6325_v13 = vadd.f32 %v6309_v30, %v10686_v39 }
0x1359   :  { %v6557_v25 = vpack.c.bf16 %v6554_v62, %v6553_v18  ;;  %v6543_v7 = vadd.f32 %v10752_v56, %v6509_v45  ;;  %v6359_v21 = vadd.f32 %v10695_v44, %v6325_v13 }
0x135a   :  { %v6494_v16 = vpop.permute.xlu1 %6493 }
0x135b   :  { %v6549_v6 = vmax.f32 %v6358_v32, %v6543_v7  ;;  %v6510_v22 = vadd.f32 %v6494_v16, %v10745_v46  ;;  %7267 = vmatpush3.bf16.msra.mxu0 %v6557_v25 }
0x135c   :  { %7268 = vmatprep.subr.bf16.mxu0 %v10886_v38 }
0x135d   :  { %v6544_v23 = vadd.f32 %v10755_v15, %v6510_v22 }
0x135f   :  { %v6550_v43 = vmax.f32 %v6359_v21, %v6544_v23  ;;  %7269 = vmatpush3.bf16.msra.mxu0 %v6556_v36 }
0x1360   :  { %7270 = vmatprep.subr.bf16.mxu0 %v10886_v38 }
0x1361   :  { %v6555_v8 = vpack.c.bf16 %v6550_v43, %v6549_v6 }
0x1363   :  { %7271 = vmatpush3.bf16.msra.mxu0 %v6555_v8 }
0x1366   :  { %7273 = vmatmul.mubr.msk.bf16.vlgmr.msra.gmra.mxu0 %vm1346_vm9, %v10639_v14 }
0x1367   :  { %7276 = vmatprep.mubr.msk.bf16.mxu0 %vm7571_vm7, %v10886_v38 }
0x136e   :  { %7277 = vmatmul.mubr.msk.bf16.gmra.mxu0 %vm1346_vm9, %v10651_v40 }
0x136f   :  { %7280 = vmatprep.mubr.msk.bf16.mxu0 %vm7571_vm7, %v10886_v38 }
0x1376   :  { %7281 = vmatmul.mubr.msk.bf16.gmra.mxu0 %vm1346_vm9, %v10663_v33 }
0x1426   :  { %v6592_v39 = vpop.f32.mrf.mxu0 }
0x1428   :  { %v7274_v44 = vpop.f32.mrf.mxu0 }
0x142a   :  { %v6595_v49 = vpop.f32.mrf.mxu0 }
0x142c   :  { %v7275_v46 = vpop.f32.mrf.mxu0 }
0x142e   :  { %v6600_v56 = vpop.f32.mrf.mxu0 }
0x1430   :  { %v7278_v15 = vpop.f32.mrf.mxu0 }
0x1432   :  { %v6603_v51 = vpop.f32.mrf.mxu0 }
0x1433   :  { %v6615_v14 = vmax.f32 %v6592_v39, %v6603_v51 }
0x1434   :  { %v7279_v20 = vpop.f32.mrf.mxu0 }
0x1435   :  { %v6618_v55 = vadd.f32 %v10729_v10, %v6615_v14 }
0x1436   :  { %v6608_v53 = vpop.f32.mrf.mxu0 }
0x1437   :  { %v6621_v26 = vmax.f32 %v6618_v55, 0.0  ;;  %v6616_v40 = vmax.f32 %v6595_v49, %v6608_v53 }
0x1438   :  { %v7282_v17 = vpop.f32.mrf.mxu0 }
0x1439   :  { %v6963_v28 = vpack.c.bf16 %v6621_v26, %v6621_v26  ;;  %v6619_v38 = vadd.f32 %v10729_v10, %v6616_v40 }
0x143a   :  { %v6611_v52 = vpop.f32.mrf.mxu0 }
0x143b   :  { %6927 = vst.msk [vmem:[%s10834_s6 + $0x84] sm:$0xf] %vm1441_vm11, %v6963_v28  ;;  %v6622_v33 = vmax.f32 %v6619_v38, 0.0  ;;  %v6617_v4 = vmax.f32 %v6600_v56, %v6611_v52 }
0x143c   :  { %v7283_v37 = vpop.f32.mrf.mxu0 }
0x143d   :  { %v6964_v9 = vpack.c.bf16 %v6622_v33, %v6622_v33  ;;  %v6620_v11 = vadd.f32 %v10729_v10, %v6617_v4 }
0x143f   :  { %6928 = vst.msk [vmem:[%s10834_s6 + $0x88] sm:$0xf] %vm1441_vm11, %v6964_v9  ;;  %v6623_v47 = vmax.f32 %v6620_v11, 0.0 }
0x1441   :  { %v6965_v31 = vpack.c.bf16 %v6623_v47, %v6623_v47 }
0x1443   :  { %6929 = vst.msk [vmem:[%s10834_s6 + $0x8c] sm:$0xf] %vm1441_vm11, %v6965_v31 }
0x1444   :  { %6645 = vsyncpa [#allocation4], 1 }
0x1445   :  { %6646 = vsyncpa [#allocation6], 1 }
0x1446   :  { %6647 = vsyncpa [#allocation9], 1 }

// kernel: net_forward.3
= control target key start
LH: loop header
LB: loop body
LE: loop exit
PB: predicated region body
PF: predicated region fallthrough
CT: control target
= control target key end

     0   :  { %10 = vsyncpa [#allocation3], 0  ;;  %s9125_s0 = inlined_call_operand.vmem [shape: bf16[2,9216], index: 0, kind: input, shape index: {}]   ;;  %s9126_s1 = inlined_call_operand.hbm [shape: bf16[9216,128], index: 1, kind: input, shape index: {}]   ;;  %s9127_s2 = inlined_call_operand.hbm [shape: f32[1,128], index: 2, kind: input, shape index: {}]   ;;  %s9128_s3 = inlined_call_operand.vmem [shape: bf16[128,10], index: 3, kind: input, shape index: {}]   ;;  %s9129_s4 = inlined_call_operand.hbm [shape: f32[1,10], index: 4, kind: input, shape index: {}]   ;;  %s9130_s5 = inlined_call_operand.hbm [shape: f32[2,10], index: 5, kind: output, shape index: {}]  }
   0x1   :  { %11 = vsyncpa [#allocation6], 0 }
   0x2   :  { %12 = vsyncpa [#allocation4], 0  ;;  %s8889_s18 = smov [#allocation5]   ;;  %s8890_s20 = smov [#allocation2]  }
   0x3   :  { %s33_s19 = sshll.u32 %s8889_s18, 4  ;;  %s20_s21 = sshll.u32 %s8890_s20, 4  ;;  %s34_s19 = int_to_ptr.vmem [resolvable:$true] %s33_s19  ;;  %s21_s21 = int_to_ptr.vmem [resolvable:$true] %s20_s21 }
   0x4   :  { %s8811_s22 = scalar_lea.vmem %s34_s19, 16  ;;  %s8815_s23 = scalar_lea.vmem %s34_s19, 32 }
   0x5   :  { %p8812_p0 = scmp.ne.s32.totalorder %s34_s19, %s8811_s22  ;;  %p8816_p1 = scmp.lt.s32.totalorder %s34_s19, %s34_s19 }
   0x6   :  { %p8817_p2 = scmp.lt.s32.totalorder %s8815_s23, %s8811_s22 }
   0x8   :  { %p8818_p3 = por %p8817_p2, %p8816_p1 }
   0xa   :  { %p8819_p4 = pnand %p8818_p3, %p8812_p0 }
   0xc   :  { %8822 = shalt.err (!%p8819_p4)
}
   0xd   :  { %36 = dma.hbm_to_vmem [thread:$0]  %s9127_s2, 16, %s34_s19, [#allocation6]  }
   0xe   :  { %s8831_s26 = scalar_lea.vmem %s21_s21, 73728  ;;  %p8836_p6 = scmp.lt.s32.totalorder %s21_s21, %s21_s21 }
   0xf   :  { %p8832_p5 = scmp.ne.s32.totalorder %s21_s21, %s8831_s26  ;;  %p8837_p7 = scmp.lt.s32.totalorder %s8831_s26, %s8831_s26 }
  0x11   :  { %p8838_p8 = por %p8837_p7, %p8836_p6 }
  0x13   :  { %p8839_p9 = pnand %p8838_p8, %p8832_p5 }
  0x15   :  { %8842 = shalt.err (!%p8839_p9)
}
  0x16   :  { %s8891_s27 = smov 64   ;;  %s8892_s28 = smov 4  }
  0x17   :  { %26 = dma.hbm_to_vmem [thread:$0]  %s9126_s1, 73728, %s21_s21, [#allocation3], %s8891_s27, %s8891_s27, %s8892_s28  }
  0x18   :  { %s8893_s6 = smov [#allocation7]  }
  0x19   :  { %s45_s7 = sshll.u32 %s8893_s6, 4  ;;  %s46_s7 = int_to_ptr.vmem [resolvable:$true] %s45_s7 }
  0x1a   :  { %s8851_s8 = scalar_lea.vmem %s46_s7, 16  ;;  %s8855_s9 = scalar_lea.vmem %s46_s7, 32 }
  0x1b   :  { %p8852_p10 = scmp.ne.s32.totalorder %s46_s7, %s8851_s8  ;;  %p8856_p11 = scmp.lt.s32.totalorder %s46_s7, %s46_s7 }
  0x1c   :  { %p8857_p12 = scmp.lt.s32.totalorder %s8855_s9, %s8851_s8 }
  0x1e   :  { %p8858_p13 = por %p8857_p12, %p8856_p11 }
  0x20   :  { %p8859_p0 = pnand %p8858_p13, %p8852_p10 }
  0x22   :  { %8862 = shalt.err (!%p8859_p0)
}
  0x23   :  { %48 = dma.hbm_to_vmem [thread:$0]  %s9129_s4, 16, %s46_s7, [#allocation6]  }
  0x24   :  { %8883 = dma.done.wait [#allocation3], 73728  }
  0x25   :  { %8884 = vsyncadd [#allocation3], 4294893568 }
  0x26   :  { %8885 = dma.done.wait [#allocation6], 32  }
  0x27   :  { %8886 = vsyncadd [#allocation6], 4294967264  ;;  %v8206_v0 = vld [vmem:[#allocation2 + $0x78] sm:$0xff]   ;;  %v8210_v4 = vld [vmem:[#allocation2 + $0x70] sm:$0xff]   ;;  %v8894_v22 = vmov 1966171168   ;;  %v1240_v24 = vlaneseq }
  0x28   :  { %v8207_v1 = vld [vmem:[#allocation2 + $0xf8] sm:$0xff]   ;;  %7376 = vmatprep.subr.bf16.mxu0 %v8206_v0  ;;  %v8211_v5 = vld [vmem:[#allocation2 + $0xf0] sm:$0xff]   ;;  %v8214_v8 = vld [vmem:[#allocation2 + $0x68] sm:$0xff]   ;;  %v1238_v23 = vunpack.c.l.s4 %v8894_v22  ;;  %vm8896_vm0 = vmmov 0   ;;  %vm6759_vm1 = vcmask 74752  }
  0x29   :  { %v8208_v2 = vld [vmem:[#allocation2 + $0x38] sm:$0xff]   ;;  %7398 = vmatprep.subr.bf16.mxu1 %v8207_v1  ;;  %v8212_v6 = vld [vmem:[#allocation2 + $0x30] sm:$0xff]   ;;  %v8215_v9 = vld [vmem:[#allocation2 + $0xe8] sm:$0xff]   ;;  %v1241_v30 = vshrl.u32 %v1240_v24, 7 }
  0x2a   :  { %v8209_v3 = vld [vmem:[#allocation2 + $0xb8] sm:$0xff]   ;;  %7377 = vmatpush3.bf16.msra.mxu0 %v8208_v2  ;;  %v8213_v7 = vld [vmem:[#allocation2 + $0xb0] sm:$0xff]   ;;  %v8216_v10 = vld [vmem:[#allocation2 + $0x28] sm:$0xff]   ;;  %v1239_v29 = vunpack.c.0.s8 %v1238_v23 }
  0x2b   :  { %7399 = vmatpush3.bf16.msra.mxu1 %v8209_v3  ;;  %7378 = vmatprep.subr.bf16.mxu0 %v8210_v4  ;;  %v8217_v11 = vld [vmem:[#allocation2 + $0xa8] sm:$0xff]   ;;  %v8218_v12 = vld [vmem:[#allocation2 + $0x60] sm:$0xff]   ;;  %v8222_v16 = vld [vmem:[#allocation2 + $0x58] sm:$0xff]  }
  0x2c   :  { %7400 = vmatprep.subr.bf16.mxu1 %v8211_v5  ;;  %v8219_v13 = vld [vmem:[#allocation2 + $0xe0] sm:$0xff]   ;;  %v8223_v17 = vld [vmem:[#allocation2 + $0xd8] sm:$0xff]   ;;  %v8226_v20 = vld [vmem:[#allocation2 + $0x50] sm:$0xff]   ;;  %v8937_v35 = vsub.s32 %v1239_v29, %v1241_v30 }
  0x2d   :  { %v8220_v14 = vld [vmem:[#allocation2 + $0x20] sm:$0xff]   ;;  %v8224_v18 = vld [vmem:[#allocation2 + $0x18] sm:$0xff]   ;;  %v8227_v21 = vld [vmem:[#allocation2 + $0xd0] sm:$0xff]  }
  0x2e   :  { %7379 = vmatpush3.bf16.msra.mxu0 %v8212_v6  ;;  %v8221_v15 = vld [vmem:[#allocation2 + $0xa0] sm:$0xff]   ;;  %v8225_v19 = vld [vmem:[#allocation2 + $0x98] sm:$0xff]   ;;  %v8228_v25 = vld [vmem:[#allocation2 + $0x10] sm:$0xff]  }
  0x2f   :  { %7401 = vmatpush3.bf16.msra.mxu1 %v8213_v7  ;;  %7380 = vmatprep.subr.bf16.mxu0 %v8214_v8  ;;  %v8229_v26 = vld [vmem:[#allocation2 + $0x90] sm:$0xff]   ;;  %v8230_v27 = vld [vmem:[#allocation2 + $0x48] sm:$0xff]   ;;  %v8234_v33 = vld [vmem:[#allocation2 + $0x40] sm:$0xff]  }
  0x30   :  { %7402 = vmatprep.subr.bf16.mxu1 %v8215_v9  ;;  %v8231_v28 = vld [vmem:[#allocation2 + $0xc8] sm:$0xff]   ;;  %v8235_v34 = vld [vmem:[#allocation2 + $0xc0] sm:$0xff]   ;;  %v8239_v41 = vld [vmem:[#allocation2 + $0x178] sm:$0xff]  }
  0x31   :  { %v8232_v31 = vld [vmem:[#allocation2 + $0x8] sm:$0xff]   ;;  %v8236_v36 = vld [vmem:[#allocation2] sm:$0xff]   ;;  %v8240_v42 = vld [vmem:[#allocation2 + $0x1f8] sm:$0xff]  }
  0x32   :  { %7381 = vmatpush3.bf16.msra.mxu0 %v8216_v10  ;;  %v8233_v32 = vld [vmem:[#allocation2 + $0x88] sm:$0xff]   ;;  %v8237_v37 = vld [vmem:[#allocation2 + $0x80] sm:$0xff]   ;;  %v8241_v46 = vld [vmem:[#allocation2 + $0x138] sm:$0xff]  }
  0x33   :  { %7403 = vmatpush3.bf16.msra.mxu1 %v8217_v11  ;;  %7382 = vmatprep.subr.bf16.mxu0 %v8218_v12  ;;  %v59_v38 = vld [vmem:[%s9125_s0] sm:$0xff]  ;;  %v8242_v48 = vld [vmem:[#allocation2 + $0x1b8] sm:$0xff]   ;;  %v8243_v51 = vld [vmem:[#allocation2 + $0x170] sm:$0xff]  }
  0x34   :  { %7404 = vmatprep.subr.bf16.mxu1 %v8219_v13  ;;  %v1236_v39 = vcombine.high %v59_v38, %v59_v38  ;;  %v1243_v40 = vrot.slane %v59_v38, %v8937_v35  ;;  %v8244_v53 = vld [vmem:[#allocation2 + $0x1f0] sm:$0xff]   ;;  %v8247_v58 = vld [vmem:[#allocation2 + $0x168] sm:$0xff]   ;;  %v8251_v62 = vld [vmem:[#allocation2 + $0x160] sm:$0xff]  }
  0x35   :  { %v8245_v55 = vld [vmem:[#allocation2 + $0x130] sm:$0xff]   ;;  %v8248_v59 = vld [vmem:[#allocation2 + $0x1e8] sm:$0xff]   ;;  %v8252_v63 = vld [vmem:[#allocation2 + $0x1e0] sm:$0xff]  }
  0x36   :  { %7383 = vmatpush3.bf16.msra.mxu0 %v8220_v14  ;;  %v1251_v43 = vcombine.high %v1243_v40, %v1243_v40  ;;  %v1259_v44 = vrot.slane %v1243_v40, %v8937_v35  ;;  %v8945_v45 = vrot.slane %v1236_v39, %v8937_v35  ;;  %v8246_v56 = vld [vmem:[#allocation2 + $0x1b0] sm:$0xff]   ;;  %v8249_v60 = vld [vmem:[#allocation2 + $0x128] sm:$0xff]   ;;  %v8253_v0 = vld [vmem:[#allocation2 + $0x120] sm:$0xff]  }
  0x37   :  { %7405 = vmatpush3.bf16.msra.mxu1 %v8221_v15  ;;  %7384 = vmatprep.subr.bf16.mxu0 %v8222_v16  ;;  %v8250_v61 = vld [vmem:[#allocation2 + $0x1a8] sm:$0xff]   ;;  %v8254_v1 = vld [vmem:[#allocation2 + $0x1a0] sm:$0xff]   ;;  %v8255_v2 = vld [vmem:[#allocation2 + $0x158] sm:$0xff]  }
  0x38   :  { %7406 = vmatprep.subr.bf16.mxu1 %v8223_v17  ;;  %v1273_v47 = vrot.slane %v1251_v43, %v8937_v35  ;;  %v1252_v49 = vcombine.high %v8945_v45, %v8945_v45  ;;  %v1281_v50 = vcombine.high %v1259_v44, %v1259_v44  ;;  %v8256_v3 = vld [vmem:[#allocation2 + $0x1d8] sm:$0xff]   ;;  %v8259_v6 = vld [vmem:[#allocation2 + $0x150] sm:$0xff]   ;;  %v8263_v10 = vld [vmem:[#allocation2 + $0x148] sm:$0xff]  }
  0x39   :  { %v8257_v4 = vld [vmem:[#allocation2 + $0x118] sm:$0xff]   ;;  %v8260_v7 = vld [vmem:[#allocation2 + $0x1d0] sm:$0xff]   ;;  %v8264_v11 = vld [vmem:[#allocation2 + $0x1c8] sm:$0xff]  }
  0x3a   :  { %7385 = vmatpush3.bf16.msra.mxu0 %v8224_v18  ;;  %5237 = vmatprep.mubr.bf16.mxu0 %v1273_v47  ;;  %v1283_v52 = vcombine.high %v1273_v47, %v1273_v47  ;;  %v1280_v54 = vrot.slane %v1252_v49, %v8937_v35  ;;  %v8258_v5 = vld [vmem:[#allocation2 + $0x198] sm:$0xff]   ;;  %v8261_v8 = vld [vmem:[#allocation2 + $0x110] sm:$0xff]   ;;  %v8265_v12 = vld [vmem:[#allocation2 + $0x108] sm:$0xff]   ;;  %v1266_v18 = vrot.slane %v8945_v45, %v8937_v35 }
  0x3b   :  { %7407 = vmatpush3.bf16.msra.mxu1 %v8225_v19  ;;  %7386 = vmatprep.subr.bf16.mxu0 %v8226_v20  ;;  %v8262_v9 = vld [vmem:[#allocation2 + $0x190] sm:$0xff]   ;;  %v8266_v13 = vld [vmem:[#allocation2 + $0x188] sm:$0xff]   ;;  %v8267_v14 = vld [vmem:[#allocation2 + $0x140] sm:$0xff]  }
  0x3c   :  { %7408 = vmatprep.subr.bf16.mxu1 %v8227_v21  ;;  %5277 = vmatprep.mubr.bf16.mxu1 %v1283_v52  ;;  %v1284_v57 = vcombine.high %v1280_v54, %v1280_v54  ;;  %v8268_v15 = vld [vmem:[#allocation2 + $0x1c0] sm:$0xff]   ;;  %v8271_v19 = vld [vmem:[#allocation2 + $0x278] sm:$0xff]   ;;  %v1282_v23 = vcombine.high %v1266_v18, %v1266_v18  ;;  %v8275_v24 = vld [vmem:[#allocation2 + $0x270] sm:$0xff]  }
  0x3d   :  { %v8269_v16 = vld [vmem:[#allocation2 + $0x100] sm:$0xff]   ;;  %v8272_v20 = vld [vmem:[#allocation2 + $0x2f8] sm:$0xff]   ;;  %v8280_v29 = vld [vmem:[#allocation2 + $0x2e8] sm:$0xff]  }
  0x3e   :  { %7387 = vmatpush3.bf16.msra.mxu0 %v8228_v25  ;;  %v8270_v17 = vld [vmem:[#allocation2 + $0x180] sm:$0xff]   ;;  %v8273_v21 = vld [vmem:[#allocation2 + $0x238] sm:$0xff]   ;;  %v8276_v25 = vld [vmem:[#allocation2 + $0x2f0] sm:$0xff]  }
  0x3f   :  { %7409 = vmatpush3.bf16.msra.mxu1 %v8229_v26  ;;  %7388 = vmatprep.subr.bf16.mxu0 %v8230_v27  ;;  %v8274_v22 = vld [vmem:[#allocation2 + $0x2b8] sm:$0xff]   ;;  %v8277_v26 = vld [vmem:[#allocation2 + $0x230] sm:$0xff]   ;;  %v8281_v30 = vld [vmem:[#allocation2 + $0x228] sm:$0xff]  }
  0x40   :  { %7410 = vmatprep.subr.bf16.mxu1 %v8231_v28  ;;  %v8278_v27 = vld [vmem:[#allocation2 + $0x2b0] sm:$0xff]   ;;  %v8279_v28 = vld [vmem:[#allocation2 + $0x268] sm:$0xff]   ;;  %v8288_v38 = vld [vmem:[#allocation2 + $0x2d8] sm:$0xff]  }
  0x41   :  { %v8289_v39 = vld [vmem:[#allocation2 + $0x218] sm:$0xff]   ;;  %v8293_v43 = vld [vmem:[#allocation2 + $0x210] sm:$0xff]   ;;  %v8295_v45 = vld [vmem:[#allocation2 + $0x248] sm:$0xff]  }
  0x42   :  { %7389 = vmatpush3.bf16.msra.mxu0 %v8232_v31  ;;  %v8282_v31 = vld [vmem:[#allocation2 + $0x2a8] sm:$0xff]   ;;  %v8290_v40 = vld [vmem:[#allocation2 + $0x298] sm:$0xff]   ;;  %v8299_v49 = vld [vmem:[#allocation2 + $0x240] sm:$0xff]  }
  0x43   :  { %7411 = vmatpush3.bf16.msra.mxu1 %v8233_v32  ;;  %7390 = vmatprep.subr.bf16.mxu0 %v8234_v33  ;;  %v8283_v32 = vld [vmem:[#allocation2 + $0x260] sm:$0xff]   ;;  %v8297_v47 = vld [vmem:[#allocation2 + $0x208] sm:$0xff]  }
  0x44   :  { %7412 = vmatprep.subr.bf16.mxu1 %v8235_v34  ;;  %v8284_v33 = vld [vmem:[#allocation2 + $0x2e0] sm:$0xff]   ;;  %v60_v52 = vld [vmem:[%s9125_s0 + $0x8] sm:$0xff] }
  0x45   :  { %v8285_v34 = vld [vmem:[#allocation2 + $0x220] sm:$0xff]  }
  0x46   :  { %7391 = vmatpush3.bf16.msra.mxu0 %v8236_v36  ;;  %v8286_v36 = vld [vmem:[#allocation2 + $0x2a0] sm:$0xff]  }
  0x47   :  { %7413 = vmatpush3.bf16.msra.mxu1 %v8237_v37  ;;  %7420 = vmatprep.subr.bf16.mxu0 %v8239_v41  ;;  %v8287_v37 = vld [vmem:[#allocation2 + $0x258] sm:$0xff]   ;;  %v8291_v41 = vld [vmem:[#allocation2 + $0x250] sm:$0xff]  }
  0x48   :  { %7442 = vmatprep.subr.bf16.mxu1 %v8240_v42  ;;  %v8292_v42 = vld [vmem:[#allocation2 + $0x2d0] sm:$0xff]  }
  0x49   :  { %5238 = vmatmul.mubr.bf16.vlgmr.msra.gmra.mxu0 %v1259_v44  ;;  %v8294_v44 = vld [vmem:[#allocation2 + $0x290] sm:$0xff]  }
  0x4a   :  { %7421 = vmatpush3.bf16.msra.mxu0 %v8241_v46  ;;  %5278 = vmatmul.mubr.bf16.vlgmr.msra.gmra.mxu1 %v1281_v50  ;;  %v8296_v46 = vld [vmem:[#allocation2 + $0x2c8] sm:$0xff]   ;;  %v8300_v50 = vld [vmem:[#allocation2 + $0x2c0] sm:$0xff]  }
  0x4b   :  { %7422 = vmatprep.subr.bf16.mxu0 %v8243_v51  ;;  %7443 = vmatpush3.bf16.msra.mxu1 %v8242_v48  ;;  %v8298_v48 = vld [vmem:[#allocation2 + $0x288] sm:$0xff]   ;;  %v8301_v51 = vld [vmem:[#allocation2 + $0x200] sm:$0xff]  }
  0x4c   :  { %5317 = vmatprep.mubr.bf16.mxu0 %v1280_v54  ;;  %7444 = vmatprep.subr.bf16.mxu1 %v8244_v53  ;;  %v8302_v53 = vld [vmem:[#allocation2 + $0x280] sm:$0xff]   ;;  %v1292_v54 = vrot.slane %v60_v52, %v8937_v35 }
  0x4d   :  { %5357 = vmatprep.mubr.bf16.mxu1 %v1284_v57 }
  0x4e   :  { %7423 = vmatpush3.bf16.msra.mxu0 %v8245_v55  ;;  %v1285_v55 = vcombine.high %v60_v52, %v60_v52  ;;  %v1300_v57 = vcombine.high %v1292_v54, %v1292_v54  ;;  %v8352_v52 = vld [vmem:[#allocation2 + $0x458] sm:$0xff]  }
  0x4f   :  { %7424 = vmatprep.subr.bf16.mxu0 %v8247_v58  ;;  %7445 = vmatpush3.bf16.msra.mxu1 %v8246_v56  ;;  %v8303_v56 = vld [vmem:[#allocation2 + $0x378] sm:$0xff]   ;;  %v1308_v58 = vrot.slane %v1292_v54, %v8937_v35 }
  0x50   :  { %7446 = vmatprep.subr.bf16.mxu1 %v8248_v59  ;;  %v8304_v59 = vld [vmem:[#allocation2 + $0x3f8] sm:$0xff]  }
  0x51   :  { %v8354_v54 = vld [vmem:[#allocation2 + $0x418] sm:$0xff]  }
  0x52   :  { %7425 = vmatpush3.bf16.msra.mxu0 %v8249_v60  ;;  %v8959_v60 = vrot.slane %v1285_v55, %v8937_v35  ;;  %v8355_v55 = vld [vmem:[#allocation2 + $0x498] sm:$0xff]  }
  0x53   :  { %7426 = vmatprep.subr.bf16.mxu0 %v8251_v62  ;;  %7447 = vmatpush3.bf16.msra.mxu1 %v8250_v61  ;;  %v8305_v61 = vld [vmem:[#allocation2 + $0x338] sm:$0xff]   ;;  %v1322_v62 = vrot.slane %v1300_v57, %v8937_v35  ;;  %v8357_v57 = vld [vmem:[#allocation2 + $0x4d0] sm:$0xff]  }
  0x54   :  { %7448 = vmatprep.subr.bf16.mxu1 %v8252_v63  ;;  %v8306_v63 = vld [vmem:[#allocation2 + $0x3b8] sm:$0xff]  }
  0x56   :  { %7427 = vmatpush3.bf16.msra.mxu0 %v8253_v0  ;;  %v1301_v0 = vcombine.high %v8959_v60, %v8959_v60 }
  0x57   :  { %7428 = vmatprep.subr.bf16.mxu0 %v8255_v2  ;;  %7449 = vmatpush3.bf16.msra.mxu1 %v8254_v1  ;;  %v1330_v1 = vcombine.high %v1308_v58, %v1308_v58  ;;  %v8307_v2 = vld [vmem:[#allocation2 + $0x370] sm:$0xff]  }
  0x58   :  { %7450 = vmatprep.subr.bf16.mxu1 %v8256_v3  ;;  %v1332_v3 = vcombine.high %v1322_v62, %v1322_v62 }
  0x5a   :  { %7429 = vmatpush3.bf16.msra.mxu0 %v8257_v4  ;;  %v8308_v4 = vld [vmem:[#allocation2 + $0x3f0] sm:$0xff]  }
  0x5b   :  { %7430 = vmatprep.subr.bf16.mxu0 %v8259_v6  ;;  %7451 = vmatpush3.bf16.msra.mxu1 %v8258_v5  ;;  %v1329_v5 = vrot.slane %v1301_v0, %v8937_v35  ;;  %v8309_v6 = vld [vmem:[#allocation2 + $0x330] sm:$0xff]   ;;  %v8364_v0 = vld [vmem:[#allocation2 + $0x440] sm:$0xff]  }
  0x5c   :  { %7452 = vmatprep.subr.bf16.mxu1 %v8260_v7  ;;  %v8310_v7 = vld [vmem:[#allocation2 + $0x3b0] sm:$0xff]  }
  0x5e   :  { %7431 = vmatpush3.bf16.msra.mxu0 %v8261_v8  ;;  %v1333_v8 = vcombine.high %v1329_v5, %v1329_v5 }
  0x5f   :  { %7432 = vmatprep.subr.bf16.mxu0 %v8263_v10  ;;  %7453 = vmatpush3.bf16.msra.mxu1 %v8262_v9  ;;  %v8311_v9 = vld [vmem:[#allocation2 + $0x368] sm:$0xff]  }
  0x60   :  { %7454 = vmatprep.subr.bf16.mxu1 %v8264_v11  ;;  %v8312_v10 = vld [vmem:[#allocation2 + $0x3e8] sm:$0xff]  }
  0x61   :  { %v8313_v11 = vld [vmem:[#allocation2 + $0x328] sm:$0xff]  }
  0x62   :  { %7433 = vmatpush3.bf16.msra.mxu0 %v8265_v12  ;;  %v8314_v12 = vld [vmem:[#allocation2 + $0x3a8] sm:$0xff]  }
  0x63   :  { %7434 = vmatprep.subr.bf16.mxu0 %v8267_v14  ;;  %7455 = vmatpush3.bf16.msra.mxu1 %v8266_v13  ;;  %v8315_v13 = vld [vmem:[#allocation2 + $0x360] sm:$0xff]  }
  0x64   :  { %7456 = vmatprep.subr.bf16.mxu1 %v8268_v15  ;;  %v8316_v14 = vld [vmem:[#allocation2 + $0x3e0] sm:$0xff]  }
  0x65   :  { %v8317_v15 = vld [vmem:[#allocation2 + $0x320] sm:$0xff]  }
  0x66   :  { %7435 = vmatpush3.bf16.msra.mxu0 %v8269_v16  ;;  %v8318_v16 = vld [vmem:[#allocation2 + $0x3a0] sm:$0xff]  }
  0x67   :  { %7464 = vmatprep.subr.bf16.mxu0 %v8271_v19  ;;  %7457 = vmatpush3.bf16.msra.mxu1 %v8270_v17  ;;  %v8319_v17 = vld [vmem:[#allocation2 + $0x358] sm:$0xff]  }
  0x68   :  { %7486 = vmatprep.subr.bf16.mxu1 %v8272_v20  ;;  %v8321_v19 = vld [vmem:[#allocation2 + $0x318] sm:$0xff]  }
  0x69   :  { %5318 = vmatmul.mubr.bf16.vlgmr.msra.gmra.mxu0 %v1266_v18  ;;  %v8320_v18 = vld [vmem:[#allocation2 + $0x3d8] sm:$0xff]  }
  0x6a   :  { %7465 = vmatpush3.bf16.msra.mxu0 %v8273_v21  ;;  %5358 = vmatmul.mubr.bf16.vlgmr.msra.gmra.mxu1 %v1282_v23  ;;  %v8322_v20 = vld [vmem:[#allocation2 + $0x398] sm:$0xff]   ;;  %v8323_v21 = vld [vmem:[#allocation2 + $0x350] sm:$0xff]  }
  0x6b   :  { %7466 = vmatprep.subr.bf16.mxu0 %v8275_v24  ;;  %7487 = vmatpush3.bf16.msra.mxu1 %v8274_v22  ;;  %v8324_v22 = vld [vmem:[#allocation2 + $0x3d0] sm:$0xff]  }
  0x6c   :  { %7488 = vmatprep.subr.bf16.mxu1 %v8276_v25  ;;  %5397 = vmatprep.mubr.bf16.mxu0 %v1322_v62  ;;  %v8325_v23 = vld [vmem:[#allocation2 + $0x310] sm:$0xff]   ;;  %v8327_v25 = vld [vmem:[#allocation2 + $0x348] sm:$0xff]  }
  0x6d   :  { %5437 = vmatprep.mubr.bf16.mxu1 %v1332_v3  ;;  %v8326_v24 = vld [vmem:[#allocation2 + $0x390] sm:$0xff]   ;;  %v8362_v62 = vld [vmem:[#allocation2 + $0x408] sm:$0xff]  }
  0x6e   :  { %7467 = vmatpush3.bf16.msra.mxu0 %v8277_v26  ;;  %v8328_v26 = vld [vmem:[#allocation2 + $0x3c8] sm:$0xff]   ;;  %v61_v3 = vld [vmem:[%s9125_s0 + $0x10] sm:$0xff] }
  0x6f   :  { %7468 = vmatprep.subr.bf16.mxu0 %v8279_v28  ;;  %7489 = vmatpush3.bf16.msra.mxu1 %v8278_v27  ;;  %v8329_v27 = vld [vmem:[#allocation2 + $0x308] sm:$0xff]  }
  0x70   :  { %7490 = vmatprep.subr.bf16.mxu1 %v8280_v29  ;;  %v8330_v28 = vld [vmem:[#allocation2 + $0x388] sm:$0xff]   ;;  %v8331_v29 = vld [vmem:[#allocation2 + $0x340] sm:$0xff]  }
  0x72   :  { %7469 = vmatpush3.bf16.msra.mxu0 %v8281_v30  ;;  %v8332_v30 = vld [vmem:[#allocation2 + $0x3c0] sm:$0xff]  }
  0x73   :  { %7470 = vmatprep.subr.bf16.mxu0 %v8283_v32  ;;  %7491 = vmatpush3.bf16.msra.mxu1 %v8282_v31  ;;  %v8333_v31 = vld [vmem:[#allocation2 + $0x300] sm:$0xff]  }
  0x74   :  { %7492 = vmatprep.subr.bf16.mxu1 %v8284_v33  ;;  %v8334_v32 = vld [vmem:[#allocation2 + $0x380] sm:$0xff]   ;;  %v1315_v33 = vrot.slane %v8959_v60, %v8937_v35  ;;  %v8360_v60 = vld [vmem:[#allocation2 + $0x448] sm:$0xff]  }
  0x76   :  { %7471 = vmatpush3.bf16.msra.mxu0 %v8285_v34  ;;  %v8336_v34 = vld [vmem:[#allocation2 + $0x478] sm:$0xff]  }
  0x77   :  { %7472 = vmatprep.subr.bf16.mxu0 %v8287_v37  ;;  %7493 = vmatpush3.bf16.msra.mxu1 %v8286_v36  ;;  %v8337_v36 = vld [vmem:[#allocation2 + $0x4f8] sm:$0xff]  }
  0x78   :  { %7494 = vmatprep.subr.bf16.mxu1 %v8288_v38  ;;  %v8338_v37 = vld [vmem:[#allocation2 + $0x438] sm:$0xff]  }
  0x79   :  { %v8339_v38 = vld [vmem:[#allocation2 + $0x4b8] sm:$0xff]  }
  0x7a   :  { %7473 = vmatpush3.bf16.msra.mxu0 %v8289_v39  ;;  %v1331_v39 = vcombine.high %v1315_v33, %v1315_v33 }
  0x7b   :  { %7474 = vmatprep.subr.bf16.mxu0 %v8291_v41  ;;  %7495 = vmatpush3.bf16.msra.mxu1 %v8290_v40  ;;  %v8340_v40 = vld [vmem:[#allocation2 + $0x470] sm:$0xff]  }
  0x7c   :  { %7496 = vmatprep.subr.bf16.mxu1 %v8292_v42  ;;  %v8341_v41 = vld [vmem:[#allocation2 + $0x4f0] sm:$0xff]  }
  0x7d   :  { %v8342_v42 = vld [vmem:[#allocation2 + $0x430] sm:$0xff]  }
  0x7e   :  { %7475 = vmatpush3.bf16.msra.mxu0 %v8293_v43  ;;  %v8343_v43 = vld [vmem:[#allocation2 + $0x4b0] sm:$0xff]  }
  0x7f   :  { %7476 = vmatprep.subr.bf16.mxu0 %v8295_v45  ;;  %7497 = vmatpush3.bf16.msra.mxu1 %v8294_v44  ;;  %v8344_v44 = vld [vmem:[#allocation2 + $0x468] sm:$0xff]  }
  0x80   :  { %7498 = vmatprep.subr.bf16.mxu1 %v8296_v46  ;;  %v8345_v45 = vld [vmem:[#allocation2 + $0x4e8] sm:$0xff]  }
  0x81   :  { %v8346_v46 = vld [vmem:[#allocation2 + $0x428] sm:$0xff]  }
  0x82   :  { %7477 = vmatpush3.bf16.msra.mxu0 %v8297_v47  ;;  %v8347_v47 = vld [vmem:[#allocation2 + $0x4a8] sm:$0xff]  }
  0x83   :  { %7478 = vmatprep.subr.bf16.mxu0 %v8299_v49  ;;  %7499 = vmatpush3.bf16.msra.mxu1 %v8298_v48  ;;  %v8348_v48 = vld [vmem:[#allocation2 + $0x460] sm:$0xff]  }
  0x84   :  { %7500 = vmatprep.subr.bf16.mxu1 %v8300_v50  ;;  %v8349_v49 = vld [vmem:[#allocation2 + $0x4e0] sm:$0xff]  }
  0x85   :  { %v8350_v50 = vld [vmem:[#allocation2 + $0x420] sm:$0xff]  }
  0x86   :  { %7479 = vmatpush3.bf16.msra.mxu0 %v8301_v51  ;;  %v8351_v51 = vld [vmem:[#allocation2 + $0x4a0] sm:$0xff]  }
  0x87   :  { %7508 = vmatprep.subr.bf16.mxu0 %v8303_v56  ;;  %7501 = vmatpush3.bf16.msra.mxu1 %v8302_v53  ;;  %v8353_v53 = vld [vmem:[#allocation2 + $0x4d8] sm:$0xff]   ;;  %v8356_v56 = vld [vmem:[#allocation2 + $0x450] sm:$0xff]  }
  0x88   :  { %7530 = vmatprep.subr.bf16.mxu1 %v8304_v59  ;;  %v8359_v59 = vld [vmem:[#allocation2 + $0x490] sm:$0xff]  }
  0x89   :  { %5398 = vmatmul.mubr.bf16.vlgmr.msra.gmra.mxu0 %v1308_v58  ;;  %v8358_v58 = vld [vmem:[#allocation2 + $0x410] sm:$0xff]  }
  0x8a   :  { %7509 = vmatpush3.bf16.msra.mxu0 %v8305_v61  ;;  %5438 = vmatmul.mubr.bf16.vlgmr.msra.gmra.mxu1 %v1330_v1  ;;  %v8361_v61 = vld [vmem:[#allocation2 + $0x4c8] sm:$0xff]   ;;  %v8365_v1 = vld [vmem:[#allocation2 + $0x4c0] sm:$0xff]  }
  0x8b   :  { %7510 = vmatprep.subr.bf16.mxu0 %v8307_v2  ;;  %7531 = vmatpush3.bf16.msra.mxu1 %v8306_v63  ;;  %v8363_v63 = vld [vmem:[#allocation2 + $0x488] sm:$0xff]   ;;  %v8366_v2 = vld [vmem:[#allocation2 + $0x400] sm:$0xff]  }
  0x8c   :  { %5477 = vmatprep.mubr.bf16.mxu0 %v1329_v5  ;;  %7532 = vmatprep.subr.bf16.mxu1 %v8308_v4  ;;  %v8367_v4 = vld [vmem:[#allocation2 + $0x480] sm:$0xff]   ;;  %v1341_v5 = vrot.slane %v61_v3, %v8937_v35 }
  0x8d   :  { %5517 = vmatprep.mubr.bf16.mxu1 %v1333_v8 }
  0x8e   :  { %7511 = vmatpush3.bf16.msra.mxu0 %v8309_v6  ;;  %v1334_v6 = vcombine.high %v61_v3, %v61_v3  ;;  %v1349_v8 = vcombine.high %v1341_v5, %v1341_v5  ;;  %v8417_v3 = vld [vmem:[#allocation2 + $0x658] sm:$0xff]  }
  0x8f   :  { %7512 = vmatprep.subr.bf16.mxu0 %v8311_v9  ;;  %7533 = vmatpush3.bf16.msra.mxu1 %v8310_v7  ;;  %v8368_v7 = vld [vmem:[#allocation2 + $0x578] sm:$0xff]   ;;  %v1357_v9 = vrot.slane %v1341_v5, %v8937_v35 }
  0x90   :  { %7534 = vmatprep.subr.bf16.mxu1 %v8312_v10  ;;  %v8369_v10 = vld [vmem:[#allocation2 + $0x5f8] sm:$0xff]  }
  0x91   :  { %v8419_v5 = vld [vmem:[#allocation2 + $0x618] sm:$0xff]  }
  0x92   :  { %7513 = vmatpush3.bf16.msra.mxu0 %v8313_v11  ;;  %v8973_v11 = vrot.slane %v1334_v6, %v8937_v35  ;;  %v8420_v6 = vld [vmem:[#allocation2 + $0x698] sm:$0xff]  }
  0x93   :  { %7514 = vmatprep.subr.bf16.mxu0 %v8315_v13  ;;  %7535 = vmatpush3.bf16.msra.mxu1 %v8314_v12  ;;  %v8370_v12 = vld [vmem:[#allocation2 + $0x538] sm:$0xff]   ;;  %v1371_v13 = vrot.slane %v1349_v8, %v8937_v35  ;;  %v8422_v8 = vld [vmem:[#allocation2 + $0x6d0] sm:$0xff]  }
  0x94   :  { %7536 = vmatprep.subr.bf16.mxu1 %v8316_v14  ;;  %v8371_v14 = vld [vmem:[#allocation2 + $0x5b8] sm:$0xff]  }
  0x96   :  { %7515 = vmatpush3.bf16.msra.mxu0 %v8317_v15  ;;  %v1350_v15 = vcombine.high %v8973_v11, %v8973_v11 }
  0x97   :  { %7516 = vmatprep.subr.bf16.mxu0 %v8319_v17  ;;  %7537 = vmatpush3.bf16.msra.mxu1 %v8318_v16  ;;  %v1379_v16 = vcombine.high %v1357_v9, %v1357_v9  ;;  %v8372_v17 = vld [vmem:[#allocation2 + $0x570] sm:$0xff]  }
  0x98   :  { %7538 = vmatprep.subr.bf16.mxu1 %v8320_v18  ;;  %v1381_v18 = vcombine.high %v1371_v13, %v1371_v13 }
  0x9a   :  { %7517 = vmatpush3.bf16.msra.mxu0 %v8321_v19  ;;  %v8373_v19 = vld [vmem:[#allocation2 + $0x5f0] sm:$0xff]  }
  0x9b   :  { %7518 = vmatprep.subr.bf16.mxu0 %v8323_v21  ;;  %7539 = vmatpush3.bf16.msra.mxu1 %v8322_v20  ;;  %v1378_v20 = vrot.slane %v1350_v15, %v8937_v35  ;;  %v8374_v21 = vld [vmem:[#allocation2 + $0x530] sm:$0xff]   ;;  %v8429_v15 = vld [vmem:[#allocation2 + $0x640] sm:$0xff]  }
  0x9c   :  { %7540 = vmatprep.subr.bf16.mxu1 %v8324_v22  ;;  %v8375_v22 = vld [vmem:[#allocation2 + $0x5b0] sm:$0xff]  }
  0x9e   :  { %7519 = vmatpush3.bf16.msra.mxu0 %v8325_v23  ;;  %v1382_v23 = vcombine.high %v1378_v20, %v1378_v20 }
  0x9f   :  { %7520 = vmatprep.subr.bf16.mxu0 %v8327_v25  ;;  %7541 = vmatpush3.bf16.msra.mxu1 %v8326_v24  ;;  %v8376_v24 = vld [vmem:[#allocation2 + $0x568] sm:$0xff]  }
  0xa0   :  { %7542 = vmatprep.subr.bf16.mxu1 %v8328_v26  ;;  %v8377_v25 = vld [vmem:[#allocation2 + $0x5e8] sm:$0xff]  }
  0xa1   :  { %v8378_v26 = vld [vmem:[#allocation2 + $0x528] sm:$0xff]  }
  0xa2   :  { %7521 = vmatpush3.bf16.msra.mxu0 %v8329_v27  ;;  %v8379_v27 = vld [vmem:[#allocation2 + $0x5a8] sm:$0xff]  }
  0xa3   :  { %7522 = vmatprep.subr.bf16.mxu0 %v8331_v29  ;;  %7543 = vmatpush3.bf16.msra.mxu1 %v8330_v28  ;;  %v8380_v28 = vld [vmem:[#allocation2 + $0x560] sm:$0xff]  }
  0xa4   :  { %7544 = vmatprep.subr.bf16.mxu1 %v8332_v30  ;;  %v8381_v29 = vld [vmem:[#allocation2 + $0x5e0] sm:$0xff]  }
  0xa5   :  { %v8382_v30 = vld [vmem:[#allocation2 + $0x520] sm:$0xff]  }
  0xa6   :  { %7523 = vmatpush3.bf16.msra.mxu0 %v8333_v31  ;;  %v8383_v31 = vld [vmem:[#allocation2 + $0x5a0] sm:$0xff]  }
  0xa7   :  { %7552 = vmatprep.subr.bf16.mxu0 %v8336_v34  ;;  %7545 = vmatpush3.bf16.msra.mxu1 %v8334_v32  ;;  %v8384_v32 = vld [vmem:[#allocation2 + $0x558] sm:$0xff]  }
  0xa8   :  { %7574 = vmatprep.subr.bf16.mxu1 %v8337_v36  ;;  %v8386_v34 = vld [vmem:[#allocation2 + $0x518] sm:$0xff]  }
  0xa9   :  { %5478 = vmatmul.mubr.bf16.vlgmr.msra.gmra.mxu0 %v1315_v33  ;;  %v8385_v33 = vld [vmem:[#allocation2 + $0x5d8] sm:$0xff]  }
  0xaa   :  { %7553 = vmatpush3.bf16.msra.mxu0 %v8338_v37  ;;  %5518 = vmatmul.mubr.bf16.vlgmr.msra.gmra.mxu1 %v1331_v39  ;;  %v8387_v36 = vld [vmem:[#allocation2 + $0x598] sm:$0xff]   ;;  %v8388_v37 = vld [vmem:[#allocation2 + $0x550] sm:$0xff]  }
  0xab   :  { %7554 = vmatprep.subr.bf16.mxu0 %v8340_v40  ;;  %7575 = vmatpush3.bf16.msra.mxu1 %v8339_v38  ;;  %v8389_v38 = vld [vmem:[#allocation2 + $0x5d0] sm:$0xff]  }
  0xac   :  { %7576 = vmatprep.subr.bf16.mxu1 %v8341_v41  ;;  %5557 = vmatprep.mubr.bf16.mxu0 %v1371_v13  ;;  %v8390_v39 = vld [vmem:[#allocation2 + $0x510] sm:$0xff]   ;;  %v8392_v41 = vld [vmem:[#allocation2 + $0x548] sm:$0xff]  }
  0xad   :  { %5597 = vmatprep.mubr.bf16.mxu1 %v1381_v18  ;;  %v8391_v40 = vld [vmem:[#allocation2 + $0x590] sm:$0xff]   ;;  %v8427_v13 = vld [vmem:[#allocation2 + $0x608] sm:$0xff]   ;;  %v62_v18 = vld [vmem:[%s9125_s0 + $0x18] sm:$0xff] }
  0xae   :  { %7555 = vmatpush3.bf16.msra.mxu0 %v8342_v42  ;;  %v8393_v42 = vld [vmem:[#allocation2 + $0x5c8] sm:$0xff]  }
  0xaf   :  { %7556 = vmatprep.subr.bf16.mxu0 %v8344_v44  ;;  %7577 = vmatpush3.bf16.msra.mxu1 %v8343_v43  ;;  %v8394_v43 = vld [vmem:[#allocation2 + $0x508] sm:$0xff]  }
  0xb0   :  { %7578 = vmatprep.subr.bf16.mxu1 %v8345_v45  ;;  %v8395_v44 = vld [vmem:[#allocation2 + $0x588] sm:$0xff]   ;;  %v8396_v45 = vld [vmem:[#allocation2 + $0x540] sm:$0xff]  }
  0xb2   :  { %7557 = vmatpush3.bf16.msra.mxu0 %v8346_v46  ;;  %v8397_v46 = vld [vmem:[#allocation2 + $0x5c0] sm:$0xff]  }
  0xb3   :  { %7558 = vmatprep.subr.bf16.mxu0 %v8348_v48  ;;  %7579 = vmatpush3.bf16.msra.mxu1 %v8347_v47  ;;  %v8398_v47 = vld [vmem:[#allocation2 + $0x500] sm:$0xff]  }
  0xb4   :  { %7580 = vmatprep.subr.bf16.mxu1 %v8349_v49  ;;  %v8399_v48 = vld [vmem:[#allocation2 + $0x580] sm:$0xff]   ;;  %v1364_v49 = vrot.slane %v8973_v11, %v8937_v35  ;;  %v8425_v11 = vld [vmem:[#allocation2 + $0x648] sm:$0xff]  }
  0xb6   :  { %7559 = vmatpush3.bf16.msra.mxu0 %v8350_v50  ;;  %v8401_v50 = vld [vmem:[#allocation2 + $0x678] sm:$0xff]  }
  0xb7   :  { %7560 = vmatprep.subr.bf16.mxu0 %v8352_v52  ;;  %7581 = vmatpush3.bf16.msra.mxu1 %v8351_v51  ;;  %v8402_v51 = vld [vmem:[#allocation2 + $0x6f8] sm:$0xff]  }
  0xb8   :  { %7582 = vmatprep.subr.bf16.mxu1 %v8353_v53  ;;  %v8403_v52 = vld [vmem:[#allocation2 + $0x638] sm:$0xff]  }
  0xb9   :  { %v8404_v53 = vld [vmem:[#allocation2 + $0x6b8] sm:$0xff]  }
  0xba   :  { %7561 = vmatpush3.bf16.msra.mxu0 %v8354_v54  ;;  %v1380_v54 = vcombine.high %v1364_v49, %v1364_v49 }
  0xbb   :  { %7562 = vmatprep.subr.bf16.mxu0 %v8356_v56  ;;  %7583 = vmatpush3.bf16.msra.mxu1 %v8355_v55  ;;  %v8405_v55 = vld [vmem:[#allocation2 + $0x670] sm:$0xff]  }
  0xbc   :  { %7584 = vmatprep.subr.bf16.mxu1 %v8357_v57  ;;  %v8406_v56 = vld [vmem:[#allocation2 + $0x6f0] sm:$0xff]  }
  0xbd   :  { %v8407_v57 = vld [vmem:[#allocation2 + $0x630] sm:$0xff]  }
  0xbe   :  { %7563 = vmatpush3.bf16.msra.mxu0 %v8358_v58  ;;  %v8408_v58 = vld [vmem:[#allocation2 + $0x6b0] sm:$0xff]  }
  0xbf   :  { %7564 = vmatprep.subr.bf16.mxu0 %v8360_v60  ;;  %7585 = vmatpush3.bf16.msra.mxu1 %v8359_v59  ;;  %v8409_v59 = vld [vmem:[#allocation2 + $0x668] sm:$0xff]  }
  0xc0   :  { %7586 = vmatprep.subr.bf16.mxu1 %v8361_v61  ;;  %v8410_v60 = vld [vmem:[#allocation2 + $0x6e8] sm:$0xff]  }
  0xc1   :  { %v8411_v61 = vld [vmem:[#allocation2 + $0x628] sm:$0xff]  }
  0xc2   :  { %7565 = vmatpush3.bf16.msra.mxu0 %v8362_v62  ;;  %v8412_v62 = vld [vmem:[#allocation2 + $0x6a8] sm:$0xff]  }
  0xc3   :  { %7566 = vmatprep.subr.bf16.mxu0 %v8364_v0  ;;  %7587 = vmatpush3.bf16.msra.mxu1 %v8363_v63  ;;  %v8413_v63 = vld [vmem:[#allocation2 + $0x660] sm:$0xff]  }
  0xc4   :  { %7588 = vmatprep.subr.bf16.mxu1 %v8365_v1  ;;  %v8414_v0 = vld [vmem:[#allocation2 + $0x6e0] sm:$0xff]  }
  0xc5   :  { %v8415_v1 = vld [vmem:[#allocation2 + $0x620] sm:$0xff]  }
  0xc6   :  { %7567 = vmatpush3.bf16.msra.mxu0 %v8366_v2  ;;  %v8416_v2 = vld [vmem:[#allocation2 + $0x6a0] sm:$0xff]  }
  0xc7   :  { %7596 = vmatprep.subr.bf16.mxu0 %v8368_v7  ;;  %7589 = vmatpush3.bf16.msra.mxu1 %v8367_v4  ;;  %v8418_v4 = vld [vmem:[#allocation2 + $0x6d8] sm:$0xff]   ;;  %v8421_v7 = vld [vmem:[#allocation2 + $0x650] sm:$0xff]  }
  0xc8   :  { %7618 = vmatprep.subr.bf16.mxu1 %v8369_v10  ;;  %v8424_v10 = vld [vmem:[#allocation2 + $0x690] sm:$0xff]  }
  0xc9   :  { %5558 = vmatmul.mubr.bf16.vlgmr.msra.gmra.mxu0 %v1357_v9  ;;  %v8423_v9 = vld [vmem:[#allocation2 + $0x610] sm:$0xff]  }
  0xca   :  { %7597 = vmatpush3.bf16.msra.mxu0 %v8370_v12  ;;  %5598 = vmatmul.mubr.bf16.vlgmr.msra.gmra.mxu1 %v1379_v16  ;;  %v8426_v12 = vld [vmem:[#allocation2 + $0x6c8] sm:$0xff]   ;;  %v8430_v16 = vld [vmem:[#allocation2 + $0x6c0] sm:$0xff]  }
  0xcb   :  { %7598 = vmatprep.subr.bf16.mxu0 %v8372_v17  ;;  %7619 = vmatpush3.bf16.msra.mxu1 %v8371_v14  ;;  %v8428_v14 = vld [vmem:[#allocation2 + $0x688] sm:$0xff]   ;;  %v8431_v17 = vld [vmem:[#allocation2 + $0x600] sm:$0xff]  }
  0xcc   :  { %5637 = vmatprep.mubr.bf16.mxu0 %v1378_v20  ;;  %7620 = vmatprep.subr.bf16.mxu1 %v8373_v19  ;;  %v1390_v19 = vrot.slane %v62_v18, %v8937_v35  ;;  %v8433_v20 = vld [vmem:[#allocation2 + $0x778] sm:$0xff]  }
  0xcd   :  { %5677 = vmatprep.mubr.bf16.mxu1 %v1382_v23 }
  0xce   :  { %7599 = vmatpush3.bf16.msra.mxu0 %v8374_v21  ;;  %v1383_v21 = vcombine.high %v62_v18, %v62_v18  ;;  %v1398_v23 = vcombine.high %v1390_v19, %v1390_v19 }
  0xcf   :  { %7600 = vmatprep.subr.bf16.mxu0 %v8376_v24  ;;  %7621 = vmatpush3.bf16.msra.mxu1 %v8375_v22  ;;  %v8432_v22 = vld [vmem:[#allocation2 + $0x680] sm:$0xff]   ;;  %v1406_v24 = vrot.slane %v1390_v19, %v8937_v35  ;;  %v8470_v19 = vld [vmem:[#allocation2 + $0x870] sm:$0xff]  }
  0xd0   :  { %7622 = vmatprep.subr.bf16.mxu1 %v8377_v25  ;;  %v8434_v25 = vld [vmem:[#allocation2 + $0x7f8] sm:$0xff]  }
  0xd2   :  { %7601 = vmatpush3.bf16.msra.mxu0 %v8378_v26  ;;  %v8987_v26 = vrot.slane %v1383_v21, %v8937_v35  ;;  %v8471_v21 = vld [vmem:[#allocation2 + $0x8f0] sm:$0xff]  }
  0xd3   :  { %7602 = vmatprep.subr.bf16.mxu0 %v8380_v28  ;;  %7623 = vmatpush3.bf16.msra.mxu1 %v8379_v27  ;;  %v8435_v27 = vld [vmem:[#allocation2 + $0x738] sm:$0xff]   ;;  %v1420_v28 = vrot.slane %v1398_v23, %v8937_v35 }
  0xd4   :  { %7624 = vmatprep.subr.bf16.mxu1 %v8381_v29  ;;  %v8436_v29 = vld [vmem:[#allocation2 + $0x7b8] sm:$0xff]  }
  0xd6   :  { %7603 = vmatpush3.bf16.msra.mxu0 %v8382_v30  ;;  %v1399_v30 = vcombine.high %v8987_v26, %v8987_v26 }
  0xd7   :  { %7604 = vmatprep.subr.bf16.mxu0 %v8384_v32  ;;  %7625 = vmatpush3.bf16.msra.mxu1 %v8383_v31  ;;  %v1428_v31 = vcombine.high %v1406_v24, %v1406_v24  ;;  %v8437_v32 = vld [vmem:[#allocation2 + $0x770] sm:$0xff]  }
  0xd8   :  { %7626 = vmatprep.subr.bf16.mxu1 %v8385_v33  ;;  %v1430_v33 = vcombine.high %v1420_v28, %v1420_v28 }
  0xda   :  { %7605 = vmatpush3.bf16.msra.mxu0 %v8386_v34 }
  0xdb   :  { %7606 = vmatprep.subr.bf16.mxu0 %v8388_v37  ;;  %7627 = vmatpush3.bf16.msra.mxu1 %v8387_v36  ;;  %v6790_v36 = vld [vmem:[#allocation5] ss:$0 sm:$0xff]  ;;  %v8438_v37 = vld [vmem:[#allocation2 + $0x7f0] sm:$0xff]  }
  0xdc   :  { %7628 = vmatprep.subr.bf16.mxu1 %v8389_v38  ;;  %v1427_v38 = vrot.slane %v1399_v30, %v8937_v35  ;;  %v8475_v30 = vld [vmem:[#allocation2 + $0x8e8] sm:$0xff]  }
  0xde   :  { %7607 = vmatpush3.bf16.msra.mxu0 %v8390_v39  ;;  %v8439_v39 = vld [vmem:[#allocation2 + $0x730] sm:$0xff]  }
  0xdf   :  { %7608 = vmatprep.subr.bf16.mxu0 %v8392_v41  ;;  %7629 = vmatpush3.bf16.msra.mxu1 %v8391_v40 }
  0xe0   :  { %7630 = vmatprep.subr.bf16.mxu1 %v8393_v42  ;;  %v8440_v42 = vld [vmem:[#allocation2 + $0x7b0] sm:$0xff]  }
  0xe2   :  { %7609 = vmatpush3.bf16.msra.mxu0 %v8394_v43  ;;  %v1431_v43 = vcombine.high %v1427_v38, %v1427_v38 }
  0xe3   :  { %7610 = vmatprep.subr.bf16.mxu0 %v8396_v45  ;;  %7631 = vmatpush3.bf16.msra.mxu1 %v8395_v44  ;;  %v8441_v45 = vld [vmem:[#allocation2 + $0x768] sm:$0xff]  }
  0xe4   :  { %7632 = vmatprep.subr.bf16.mxu1 %v8397_v46 }
  0xe6   :  { %7611 = vmatpush3.bf16.msra.mxu0 %v8398_v47 }
  0xe7   :  { %7640 = vmatprep.subr.bf16.mxu0 %v8401_v50  ;;  %7633 = vmatpush3.bf16.msra.mxu1 %v8399_v48  ;;  %v8442_v48 = vld [vmem:[#allocation2 + $0x7e8] sm:$0xff]  }
  0xe8   :  { %7662 = vmatprep.subr.bf16.mxu1 %v8402_v51  ;;  %v8443_v51 = vld [vmem:[#allocation2 + $0x728] sm:$0xff]  }
  0xe9   :  { %5638 = vmatmul.mubr.bf16.vlgmr.msra.gmra.mxu0 %v1364_v49 }
  0xea   :  { %7641 = vmatpush3.bf16.msra.mxu0 %v8403_v52  ;;  %5678 = vmatmul.mubr.bf16.vlgmr.msra.gmra.mxu1 %v1380_v54  ;;  %v8444_v54 = vld [vmem:[#allocation2 + $0x7a8] sm:$0xff]  }
  0xeb   :  { %7642 = vmatprep.subr.bf16.mxu0 %v8405_v55  ;;  %7663 = vmatpush3.bf16.msra.mxu1 %v8404_v53 }
  0xec   :  { %7664 = vmatprep.subr.bf16.mxu1 %v8406_v56  ;;  %5717 = vmatprep.mubr.bf16.mxu0 %v1420_v28  ;;  %v8445_v56 = vld [vmem:[#allocation2 + $0x760] sm:$0xff]  }
  0xed   :  { %5757 = vmatprep.mubr.bf16.mxu1 %v1430_v33  ;;  %v8476_v33 = vld [vmem:[#allocation2 + $0x828] sm:$0xff]  }
  0xee   :  { %7643 = vmatpush3.bf16.msra.mxu0 %v8407_v57 }
  0xef   :  { %7644 = vmatprep.subr.bf16.mxu0 %v8409_v59  ;;  %7665 = vmatpush3.bf16.msra.mxu1 %v8408_v58  ;;  %v8446_v58 = vld [vmem:[#allocation2 + $0x7e0] sm:$0xff]  }
  0xf0   :  { %7666 = vmatprep.subr.bf16.mxu1 %v8410_v60  ;;  %v8447_v59 = vld [vmem:[#allocation2 + $0x720] sm:$0xff]  }
  0xf1   :  { %v8448_v60 = vld [vmem:[#allocation2 + $0x7a0] sm:$0xff]  }
  0xf2   :  { %7645 = vmatpush3.bf16.msra.mxu0 %v8411_v61  ;;  %v8449_v61 = vld [vmem:[#allocation2 + $0x758] sm:$0xff]  }
  0xf3   :  { %7646 = vmatprep.subr.bf16.mxu0 %v8413_v63  ;;  %7667 = vmatpush3.bf16.msra.mxu1 %v8412_v62  ;;  %v8450_v62 = vld [vmem:[#allocation2 + $0x7d8] sm:$0xff]  }
  0xf4   :  { %7668 = vmatprep.subr.bf16.mxu1 %v8414_v0  ;;  %v8451_v63 = vld [vmem:[#allocation2 + $0x718] sm:$0xff]  }
  0xf5   :  { %v8452_v0 = vld [vmem:[#allocation2 + $0x798] sm:$0xff]  }
  0xf6   :  { %7647 = vmatpush3.bf16.msra.mxu0 %v8415_v1  ;;  %v8453_v1 = vld [vmem:[#allocation2 + $0x750] sm:$0xff]  }
  0xf7   :  { %7648 = vmatprep.subr.bf16.mxu0 %v8417_v3  ;;  %7669 = vmatpush3.bf16.msra.mxu1 %v8416_v2  ;;  %v8454_v2 = vld [vmem:[#allocation2 + $0x7d0] sm:$0xff]  }
  0xf8   :  { %7670 = vmatprep.subr.bf16.mxu1 %v8418_v4  ;;  %v8455_v3 = vld [vmem:[#allocation2 + $0x710] sm:$0xff]  }
  0xf9   :  { %v8456_v4 = vld [vmem:[#allocation2 + $0x790] sm:$0xff]  }
  0xfa   :  { %7649 = vmatpush3.bf16.msra.mxu0 %v8419_v5  ;;  %v8457_v5 = vld [vmem:[#allocation2 + $0x748] sm:$0xff]  }
  0xfb   :  { %7650 = vmatprep.subr.bf16.mxu0 %v8421_v7  ;;  %7671 = vmatpush3.bf16.msra.mxu1 %v8420_v6  ;;  %v8458_v6 = vld [vmem:[#allocation2 + $0x7c8] sm:$0xff]  }
  0xfc   :  { %7672 = vmatprep.subr.bf16.mxu1 %v8422_v8  ;;  %v8459_v7 = vld [vmem:[#allocation2 + $0x708] sm:$0xff]  }
  0xfd   :  { %v8460_v8 = vld [vmem:[#allocation2 + $0x788] sm:$0xff]  }
  0xfe   :  { %7651 = vmatpush3.bf16.msra.mxu0 %v8423_v9  ;;  %v8461_v9 = vld [vmem:[#allocation2 + $0x740] sm:$0xff]  }
  0xff   :  { %7652 = vmatprep.subr.bf16.mxu0 %v8425_v11  ;;  %7673 = vmatpush3.bf16.msra.mxu1 %v8424_v10  ;;  %v8462_v10 = vld [vmem:[#allocation2 + $0x7c0] sm:$0xff]  }
 0x100   :  { %7674 = vmatprep.subr.bf16.mxu1 %v8426_v12  ;;  %v8463_v11 = vld [vmem:[#allocation2 + $0x700] sm:$0xff]  }
 0x101   :  { %v8464_v12 = vld [vmem:[#allocation2 + $0x780] sm:$0xff]  }
 0x102   :  { %7653 = vmatpush3.bf16.msra.mxu0 %v8427_v13  ;;  %v1413_v13 = vrot.slane %v8987_v26, %v8937_v35 }
 0x103   :  { %7654 = vmatprep.subr.bf16.mxu0 %v8429_v15  ;;  %7675 = vmatpush3.bf16.msra.mxu1 %v8428_v14  ;;  %v8466_v14 = vld [vmem:[#allocation2 + $0x878] sm:$0xff]  }
 0x104   :  { %7676 = vmatprep.subr.bf16.mxu1 %v8430_v16  ;;  %v8467_v15 = vld [vmem:[#allocation2 + $0x8f8] sm:$0xff]   ;;  %v1429_v18 = vcombine.high %v1413_v13, %v1413_v13 }
 0x105   :  { %v8468_v16 = vld [vmem:[#allocation2 + $0x838] sm:$0xff]  }
 0x106   :  { %7655 = vmatpush3.bf16.msra.mxu0 %v8431_v17  ;;  %v8469_v17 = vld [vmem:[#allocation2 + $0x8b8] sm:$0xff]  }
 0x107   :  { %7684 = vmatprep.subr.bf16.mxu0 %v8433_v20  ;;  %7677 = vmatpush3.bf16.msra.mxu1 %v8432_v22  ;;  %v8472_v22 = vld [vmem:[#allocation2 + $0x830] sm:$0xff]  }
 0x108   :  { %7706 = vmatprep.subr.bf16.mxu1 %v8434_v25  ;;  %v8473_v25 = vld [vmem:[#allocation2 + $0x8b0] sm:$0xff]  }
 0x109   :  { %v7392_v34 = vpop.f32.mrf.mxu0  ;;  %5718 = vmatmul.mubr.bf16.vlgmr.msra.gmra.mxu0 %v1406_v24 }
 0x10a   :  { %v7414_v40 = vpop.f32.mrf.mxu1  ;;  %7685 = vmatpush3.bf16.msra.mxu0 %v8435_v27  ;;  %5758 = vmatmul.mubr.bf16.vlgmr.msra.gmra.mxu1 %v1428_v31  ;;  %v8474_v27 = vld [vmem:[#allocation2 + $0x868] sm:$0xff]  }
 0x10b   :  { %v7393_v41 = vpop.f32.mrf.mxu0  ;;  %7686 = vmatprep.subr.bf16.mxu0 %v8437_v32  ;;  %7707 = vmatpush3.bf16.msra.mxu1 %v8436_v29 }
 0x10c   :  { %v7394_v44 = vadd.f32 %v7393_v41, %v7392_v34  ;;  %v7415_v46 = vpop.f32.mrf.mxu1  ;;  %5797 = vmatprep.mubr.bf16.mxu0 %v1427_v38  ;;  %7708 = vmatprep.subr.bf16.mxu1 %v8438_v37  ;;  %v8477_v37 = vld [vmem:[#allocation2 + $0x8a8] sm:$0xff]   ;;  %v8479_v41 = vld [vmem:[#allocation2 + $0x8e0] sm:$0xff]  }
 0x10d   :  { %v7395_v47 = vpop.f32.mrf.mxu0  ;;  %v7416_v50 = vadd.f32 %v7415_v46, %v7414_v40  ;;  %5837 = vmatprep.mubr.bf16.mxu1 %v1431_v43  ;;  %v8481_v43 = vld [vmem:[#allocation2 + $0x8a0] sm:$0xff]   ;;  %v8484_v46 = vld [vmem:[#allocation2 + $0x818] sm:$0xff]  }
 0x10e   :  { %v5240_v49 = vadd.f32 %v7394_v44, %v6790_v36  ;;  %v7417_v52 = vpop.f32.mrf.mxu1  ;;  %7687 = vmatpush3.bf16.msra.mxu0 %v8439_v39  ;;  %v8478_v39 = vld [vmem:[#allocation2 + $0x860] sm:$0xff]   ;;  %v8482_v44 = vld [vmem:[#allocation2 + $0x858] sm:$0xff]  }
 0x10f   :  { %v7396_v53 = vpop.f32.mrf.mxu0  ;;  %7688 = vmatprep.subr.bf16.mxu0 %v8441_v45  ;;  %7709 = vmatpush3.bf16.msra.mxu1 %v8440_v42  ;;  %v8480_v42 = vld [vmem:[#allocation2 + $0x820] sm:$0xff]   ;;  %v8483_v45 = vld [vmem:[#allocation2 + $0x8d8] sm:$0xff]   ;;  %v8490_v52 = vld [vmem:[#allocation2 + $0x848] sm:$0xff]  }
 0x110   :  { %v8993_v55 = vadd.f32 %v7416_v50, %v5240_v49  ;;  %v7418_v57 = vpop.f32.mrf.mxu1  ;;  %7710 = vmatprep.subr.bf16.mxu1 %v8442_v48  ;;  %v8485_v47 = vld [vmem:[#allocation2 + $0x898] sm:$0xff]   ;;  %v8486_v48 = vld [vmem:[#allocation2 + $0x850] sm:$0xff]   ;;  %v8491_v53 = vld [vmem:[#allocation2 + $0x8c8] sm:$0xff]  }
 0x111   :  { %v8487_v49 = vld [vmem:[#allocation2 + $0x8d0] sm:$0xff]   ;;  %v8495_v57 = vld [vmem:[#allocation2 + $0x8c0] sm:$0xff]  }
 0x112   :  { %7689 = vmatpush3.bf16.msra.mxu0 %v8443_v51  ;;  %v8488_v50 = vld [vmem:[#allocation2 + $0x810] sm:$0xff]  }
 0x113   :  { %7690 = vmatprep.subr.bf16.mxu0 %v8445_v56  ;;  %7711 = vmatpush3.bf16.msra.mxu1 %v8444_v54  ;;  %v8489_v51 = vld [vmem:[#allocation2 + $0x890] sm:$0xff]   ;;  %v8492_v54 = vld [vmem:[#allocation2 + $0x808] sm:$0xff]   ;;  %v8494_v56 = vld [vmem:[#allocation2 + $0x840] sm:$0xff]  }
 0x114   :  { %7712 = vmatprep.subr.bf16.mxu1 %v8446_v58  ;;  %v8496_v58 = vld [vmem:[#allocation2 + $0x800] sm:$0xff]  }
 0x116   :  { %7691 = vmatpush3.bf16.msra.mxu0 %v8447_v59  ;;  %v63_v59 = vld [vmem:[%s9125_s0 + $0x20] sm:$0xff] }
 0x117   :  { %7692 = vmatprep.subr.bf16.mxu0 %v8449_v61  ;;  %7713 = vmatpush3.bf16.msra.mxu1 %v8448_v60  ;;  %v8497_v60 = vld [vmem:[#allocation2 + $0x880] sm:$0xff]   ;;  %v1439_v61 = vrot.slane %v63_v59, %v8937_v35 }
 0x118   :  { %7714 = vmatprep.subr.bf16.mxu1 %v8450_v62  ;;  %v1432_v62 = vcombine.high %v63_v59, %v63_v59  ;;  %v8535_v59 = vld [vmem:[#allocation2 + $0xa70] sm:$0xff]  }
 0x11a   :  { %7693 = vmatpush3.bf16.msra.mxu0 %v8451_v63  ;;  %v8498_v63 = vld [vmem:[#allocation2 + $0x978] sm:$0xff]  }
 0x11b   :  { %7694 = vmatprep.subr.bf16.mxu0 %v8453_v1  ;;  %7715 = vmatpush3.bf16.msra.mxu1 %v8452_v0  ;;  %v1447_v0 = vcombine.high %v1439_v61, %v1439_v61  ;;  %v1455_v1 = vrot.slane %v1439_v61, %v8937_v35  ;;  %v8536_v61 = vld [vmem:[#allocation2 + $0xaf0] sm:$0xff]  }
 0x11c   :  { %7716 = vmatprep.subr.bf16.mxu1 %v8454_v2  ;;  %v8499_v2 = vld [vmem:[#allocation2 + $0x9f8] sm:$0xff]  }
 0x11e   :  { %7695 = vmatpush3.bf16.msra.mxu0 %v8455_v3  ;;  %v9006_v3 = vrot.slane %v1432_v62, %v8937_v35  ;;  %v8537_v62 = vld [vmem:[#allocation2 + $0xa30] sm:$0xff]  }
 0x11f   :  { %7696 = vmatprep.subr.bf16.mxu0 %v8457_v5  ;;  %7717 = vmatpush3.bf16.msra.mxu1 %v8456_v4  ;;  %v8500_v4 = vld [vmem:[#allocation2 + $0x938] sm:$0xff]   ;;  %v1469_v5 = vrot.slane %v1447_v0, %v8937_v35 }
 0x120   :  { %7718 = vmatprep.subr.bf16.mxu1 %v8458_v6  ;;  %v8501_v6 = vld [vmem:[#allocation2 + $0x9b8] sm:$0xff]  }
 0x122   :  { %7697 = vmatpush3.bf16.msra.mxu0 %v8459_v7  ;;  %v1448_v7 = vcombine.high %v9006_v3, %v9006_v3 }
 0x123   :  { %7698 = vmatprep.subr.bf16.mxu0 %v8461_v9  ;;  %7719 = vmatpush3.bf16.msra.mxu1 %v8460_v8  ;;  %v1477_v8 = vcombine.high %v1455_v1, %v1455_v1  ;;  %v8502_v9 = vld [vmem:[#allocation2 + $0x970] sm:$0xff]  }
 0x124   :  { %7720 = vmatprep.subr.bf16.mxu1 %v8462_v10  ;;  %v1479_v10 = vcombine.high %v1469_v5, %v1469_v5 }
 0x126   :  { %7699 = vmatpush3.bf16.msra.mxu0 %v8463_v11 }
 0x127   :  { %7728 = vmatprep.subr.bf16.mxu0 %v8466_v14  ;;  %7721 = vmatpush3.bf16.msra.mxu1 %v8464_v12  ;;  %v8503_v12 = vld [vmem:[#allocation2 + $0x9f0] sm:$0xff]  }
 0x128   :  { %7750 = vmatprep.subr.bf16.mxu1 %v8467_v15  ;;  %v8504_v14 = vld [vmem:[#allocation2 + $0x930] sm:$0xff]  }
 0x129   :  { %v7436_v20 = vpop.f32.mrf.mxu0  ;;  %5798 = vmatmul.mubr.bf16.vlgmr.msra.gmra.mxu0 %v1413_v13  ;;  %v1476_v13 = vrot.slane %v1448_v7, %v8937_v35 }
 0x12a   :  { %v7458_v23 = vpop.f32.mrf.mxu1  ;;  %7729 = vmatpush3.bf16.msra.mxu0 %v8468_v16  ;;  %5838 = vmatmul.mubr.bf16.vlgmr.msra.gmra.mxu1 %v1429_v18 }
 0x12b   :  { %v7437_v24 = vpop.f32.mrf.mxu0  ;;  %7730 = vmatprep.subr.bf16.mxu0 %v8470_v19  ;;  %7751 = vmatpush3.bf16.msra.mxu1 %v8469_v17  ;;  %v8505_v17 = vld [vmem:[#allocation2 + $0x9b0] sm:$0xff]   ;;  %v1480_v18 = vcombine.high %v1476_v13, %v1476_v13 }
 0x12c   :  { %v7438_v26 = vadd.f32 %v7437_v24, %v7436_v20  ;;  %v7459_v28 = vpop.f32.mrf.mxu1  ;;  %7752 = vmatprep.subr.bf16.mxu1 %v8471_v21  ;;  %5877 = vmatprep.mubr.bf16.mxu0 %v1469_v5  ;;  %v8506_v20 = vld [vmem:[#allocation2 + $0x968] sm:$0xff]  }
 0x12d   :  { %v7439_v29 = vpop.f32.mrf.mxu0  ;;  %v7460_v32 = vadd.f32 %v7459_v28, %v7458_v23  ;;  %5917 = vmatprep.mubr.bf16.mxu1 %v1479_v10  ;;  %v8507_v23 = vld [vmem:[#allocation2 + $0x9e8] sm:$0xff]  }
 0x12e   :  { %v5320_v31 = vadd.f32 %v7438_v26, %v8993_v55  ;;  %v7461_v34 = vpop.f32.mrf.mxu1  ;;  %7731 = vmatpush3.bf16.msra.mxu0 %v8472_v22  ;;  %v8493_v55 = vld [vmem:[#allocation2 + $0x888] sm:$0xff]  }
 0x12f   :  { %v7440_v36 = vpop.f32.mrf.mxu0  ;;  %7732 = vmatprep.subr.bf16.mxu0 %v8474_v27  ;;  %7753 = vmatpush3.bf16.msra.mxu1 %v8473_v25  ;;  %v8508_v26 = vld [vmem:[#allocation2 + $0x928] sm:$0xff]   ;;  %v8512_v34 = vld [vmem:[#allocation2 + $0x920] sm:$0xff]  }
 0x130   :  { %v8998_v38 = vadd.f32 %v7460_v32, %v5320_v31  ;;  %v7462_v40 = vpop.f32.mrf.mxu1  ;;  %7754 = vmatprep.subr.bf16.mxu1 %v8475_v30  ;;  %v8509_v29 = vld [vmem:[#allocation2 + $0x9a8] sm:$0xff]   ;;  %v8510_v31 = vld [vmem:[#allocation2 + $0x960] sm:$0xff]  }
 0x131   :  { %v8513_v36 = vld [vmem:[#allocation2 + $0x9a0] sm:$0xff]   ;;  %v8517_v40 = vld [vmem:[#allocation2 + $0x998] sm:$0xff]  }
 0x132   :  { %7733 = vmatpush3.bf16.msra.mxu0 %v8476_v33  ;;  %v8511_v33 = vld [vmem:[#allocation2 + $0x9e0] sm:$0xff]  }
 0x133   :  { %7734 = vmatprep.subr.bf16.mxu0 %v8478_v39  ;;  %7755 = vmatpush3.bf16.msra.mxu1 %v8477_v37  ;;  %v8514_v37 = vld [vmem:[#allocation2 + $0x958] sm:$0xff]  }
 0x134   :  { %7756 = vmatprep.subr.bf16.mxu1 %v8479_v41  ;;  %v8516_v39 = vld [vmem:[#allocation2 + $0x918] sm:$0xff]   ;;  %v8518_v41 = vld [vmem:[#allocation2 + $0x950] sm:$0xff]  }
 0x136   :  { %7735 = vmatpush3.bf16.msra.mxu0 %v8480_v42  ;;  %v8519_v42 = vld [vmem:[#allocation2 + $0x9d0] sm:$0xff]  }
 0x137   :  { %7736 = vmatprep.subr.bf16.mxu0 %v8482_v44  ;;  %7757 = vmatpush3.bf16.msra.mxu1 %v8481_v43  ;;  %v8520_v43 = vld [vmem:[#allocation2 + $0x910] sm:$0xff]  }
 0x138   :  { %7758 = vmatprep.subr.bf16.mxu1 %v8483_v45  ;;  %v8521_v44 = vld [vmem:[#allocation2 + $0x990] sm:$0xff]   ;;  %v8522_v45 = vld [vmem:[#allocation2 + $0x948] sm:$0xff]  }
 0x13a   :  { %7737 = vmatpush3.bf16.msra.mxu0 %v8484_v46  ;;  %v8523_v46 = vld [vmem:[#allocation2 + $0x9c8] sm:$0xff]  }
 0x13b   :  { %7738 = vmatprep.subr.bf16.mxu0 %v8486_v48  ;;  %7759 = vmatpush3.bf16.msra.mxu1 %v8485_v47  ;;  %v8524_v47 = vld [vmem:[#allocation2 + $0x908] sm:$0xff]  }
 0x13c   :  { %7760 = vmatprep.subr.bf16.mxu1 %v8487_v49  ;;  %v8525_v48 = vld [vmem:[#allocation2 + $0x988] sm:$0xff]   ;;  %v8526_v49 = vld [vmem:[#allocation2 + $0x940] sm:$0xff]  }
 0x13e   :  { %7739 = vmatpush3.bf16.msra.mxu0 %v8488_v50  ;;  %v8527_v50 = vld [vmem:[#allocation2 + $0x9c0] sm:$0xff]  }
 0x13f   :  { %7740 = vmatprep.subr.bf16.mxu0 %v8490_v52  ;;  %7761 = vmatpush3.bf16.msra.mxu1 %v8489_v51  ;;  %v8528_v51 = vld [vmem:[#allocation2 + $0x900] sm:$0xff]  }
 0x140   :  { %7762 = vmatprep.subr.bf16.mxu1 %v8491_v53  ;;  %v8529_v52 = vld [vmem:[#allocation2 + $0x980] sm:$0xff]   ;;  %v1462_v53 = vrot.slane %v9006_v3, %v8937_v35  ;;  %v8539_v3 = vld [vmem:[#allocation2 + $0xa68] sm:$0xff]  }
 0x142   :  { %7741 = vmatpush3.bf16.msra.mxu0 %v8492_v54  ;;  %v8531_v54 = vld [vmem:[#allocation2 + $0xa78] sm:$0xff]  }
 0x143   :  { %7742 = vmatprep.subr.bf16.mxu0 %v8494_v56  ;;  %7763 = vmatpush3.bf16.msra.mxu1 %v8493_v55  ;;  %v8532_v55 = vld [vmem:[#allocation2 + $0xaf8] sm:$0xff]  }
 0x144   :  { %7764 = vmatprep.subr.bf16.mxu1 %v8495_v57  ;;  %v8533_v56 = vld [vmem:[#allocation2 + $0xa38] sm:$0xff]  }
 0x145   :  { %v8534_v57 = vld [vmem:[#allocation2 + $0xab8] sm:$0xff]  }
 0x146   :  { %7743 = vmatpush3.bf16.msra.mxu0 %v8496_v58  ;;  %v1478_v58 = vcombine.high %v1462_v53, %v1462_v53 }
 0x147   :  { %7772 = vmatprep.subr.bf16.mxu0 %v8498_v63  ;;  %7765 = vmatpush3.bf16.msra.mxu1 %v8497_v60 }
 0x148   :  { %7794 = vmatprep.subr.bf16.mxu1 %v8499_v2 }
 0x149   :  { %v7480_v11 = vpop.f32.mrf.mxu0  ;;  %5878 = vmatmul.mubr.bf16.vlgmr.msra.gmra.mxu0 %v1455_v1  ;;  %v8538_v1 = vld [vmem:[#allocation2 + $0xab0] sm:$0xff]  }
 0x14a   :  { %v7502_v15 = vpop.f32.mrf.mxu1  ;;  %7773 = vmatpush3.bf16.msra.mxu0 %v8500_v4  ;;  %5918 = vmatmul.mubr.bf16.vlgmr.msra.gmra.mxu1 %v1477_v8 }
 0x14b   :  { %v7481_v16 = vpop.f32.mrf.mxu0  ;;  %7774 = vmatprep.subr.bf16.mxu0 %v8502_v9  ;;  %7795 = vmatpush3.bf16.msra.mxu1 %v8501_v6  ;;  %v8540_v6 = vld [vmem:[#allocation2 + $0xae8] sm:$0xff]  }
 0x14c   :  { %v7482_v19 = vadd.f32 %v7481_v16, %v7480_v11  ;;  %v7503_v21 = vpop.f32.mrf.mxu1  ;;  %5957 = vmatprep.mubr.bf16.mxu0 %v1476_v13  ;;  %7796 = vmatprep.subr.bf16.mxu1 %v8503_v12  ;;  %v8541_v9 = vld [vmem:[#allocation2 + $0xa28] sm:$0xff]   ;;  %v8544_v16 = vld [vmem:[#allocation2 + $0xae0] sm:$0xff]  }
 0x14d   :  { %v7483_v22 = vpop.f32.mrf.mxu0  ;;  %v7504_v25 = vadd.f32 %v7503_v21, %v7502_v15  ;;  %5997 = vmatprep.mubr.bf16.mxu1 %v1480_v18  ;;  %v8542_v12 = vld [vmem:[#allocation2 + $0xaa8] sm:$0xff]   ;;  %v8546_v18 = vld [vmem:[#allocation2 + $0xaa0] sm:$0xff]   ;;  %v8549_v21 = vld [vmem:[#allocation2 + $0xa18] sm:$0xff]  }
 0x14e   :  { %v5400_v24 = vadd.f32 %v7482_v19, %v8998_v38  ;;  %v7505_v27 = vpop.f32.mrf.mxu1  ;;  %7775 = vmatpush3.bf16.msra.mxu0 %v8504_v14  ;;  %v8515_v38 = vld [vmem:[#allocation2 + $0x9d8] sm:$0xff]   ;;  %v8543_v14 = vld [vmem:[#allocation2 + $0xa60] sm:$0xff]  }
 0x14f   :  { %v7484_v28 = vpop.f32.mrf.mxu0  ;;  %7776 = vmatprep.subr.bf16.mxu0 %v8506_v20  ;;  %7797 = vmatpush3.bf16.msra.mxu1 %v8505_v17  ;;  %v8545_v17 = vld [vmem:[#allocation2 + $0xa20] sm:$0xff]   ;;  %v8547_v19 = vld [vmem:[#allocation2 + $0xa58] sm:$0xff]   ;;  %v8555_v27 = vld [vmem:[#allocation2 + $0xa48] sm:$0xff]  }
 0x150   :  { %v9013_v30 = vadd.f32 %v7504_v25, %v5400_v24  ;;  %v7506_v32 = vpop.f32.mrf.mxu1  ;;  %7798 = vmatprep.subr.bf16.mxu1 %v8507_v23  ;;  %v8548_v20 = vld [vmem:[#allocation2 + $0xad8] sm:$0xff]   ;;  %v8551_v23 = vld [vmem:[#allocation2 + $0xa50] sm:$0xff]   ;;  %v8556_v28 = vld [vmem:[#allocation2 + $0xac8] sm:$0xff]  }
 0x151   :  { %v8550_v22 = vld [vmem:[#allocation2 + $0xa98] sm:$0xff]   ;;  %v8552_v24 = vld [vmem:[#allocation2 + $0xad0] sm:$0xff]   ;;  %v8560_v32 = vld [vmem:[#allocation2 + $0xac0] sm:$0xff]  }
 0x152   :  { %7777 = vmatpush3.bf16.msra.mxu0 %v8508_v26  ;;  %v8553_v25 = vld [vmem:[#allocation2 + $0xa10] sm:$0xff]  }
 0x153   :  { %7778 = vmatprep.subr.bf16.mxu0 %v8510_v31  ;;  %7799 = vmatpush3.bf16.msra.mxu1 %v8509_v29  ;;  %v8554_v26 = vld [vmem:[#allocation2 + $0xa90] sm:$0xff]   ;;  %v8557_v29 = vld [vmem:[#allocation2 + $0xa08] sm:$0xff]   ;;  %v8559_v31 = vld [vmem:[#allocation2 + $0xa40] sm:$0xff]  }
 0x154   :  { %7800 = vmatprep.subr.bf16.mxu1 %v8511_v33  ;;  %v8561_v33 = vld [vmem:[#allocation2 + $0xa00] sm:$0xff]  }
 0x156   :  { %7779 = vmatpush3.bf16.msra.mxu0 %v8512_v34  ;;  %v64_v34 = vld [vmem:[%s9125_s0 + $0x28] sm:$0xff] }
 0x157   :  { %7780 = vmatprep.subr.bf16.mxu0 %v8514_v37  ;;  %7801 = vmatpush3.bf16.msra.mxu1 %v8513_v36  ;;  %v1488_v36 = vrot.slane %v64_v34, %v8937_v35  ;;  %v8563_v37 = vld [vmem:[#allocation2 + $0xb78] sm:$0xff]  }
 0x158   :  { %7802 = vmatprep.subr.bf16.mxu1 %v8515_v38  ;;  %v1481_v38 = vcombine.high %v64_v34, %v64_v34 }
 0x15a   :  { %7781 = vmatpush3.bf16.msra.mxu0 %v8516_v39  ;;  %v8562_v39 = vld [vmem:[#allocation2 + $0xa80] sm:$0xff]  }
 0x15b   :  { %7782 = vmatprep.subr.bf16.mxu0 %v8518_v41  ;;  %7803 = vmatpush3.bf16.msra.mxu1 %v8517_v40  ;;  %v1496_v40 = vcombine.high %v1488_v36, %v1488_v36  ;;  %v1504_v41 = vrot.slane %v1488_v36, %v8937_v35  ;;  %v8600_v36 = vld [vmem:[#allocation2 + $0xc70] sm:$0xff]  }
 0x15c   :  { %7804 = vmatprep.subr.bf16.mxu1 %v8519_v42  ;;  %v8564_v42 = vld [vmem:[#allocation2 + $0xbf8] sm:$0xff]  }
 0x15e   :  { %7783 = vmatpush3.bf16.msra.mxu0 %v8520_v43  ;;  %v9026_v43 = vrot.slane %v1481_v38, %v8937_v35 }
 0x15f   :  { %7784 = vmatprep.subr.bf16.mxu0 %v8522_v45  ;;  %7805 = vmatpush3.bf16.msra.mxu1 %v8521_v44  ;;  %v8565_v44 = vld [vmem:[#allocation2 + $0xb38] sm:$0xff]   ;;  %v1518_v45 = vrot.slane %v1496_v40, %v8937_v35  ;;  %v8602_v40 = vld [vmem:[#allocation2 + $0xc30] sm:$0xff]  }
 0x160   :  { %7806 = vmatprep.subr.bf16.mxu1 %v8523_v46  ;;  %v8566_v46 = vld [vmem:[#allocation2 + $0xbb8] sm:$0xff]  }
 0x162   :  { %7785 = vmatpush3.bf16.msra.mxu0 %v8524_v47  ;;  %v1497_v47 = vcombine.high %v9026_v43, %v9026_v43 }
 0x163   :  { %7786 = vmatprep.subr.bf16.mxu0 %v8526_v49  ;;  %7807 = vmatpush3.bf16.msra.mxu1 %v8525_v48  ;;  %v1526_v49 = vcombine.high %v1504_v41, %v1504_v41 }
 0x164   :  { %7808 = vmatprep.subr.bf16.mxu1 %v8527_v50  ;;  %v8567_v50 = vld [vmem:[#allocation2 + $0xb70] sm:$0xff]  }
 0x166   :  { %7787 = vmatpush3.bf16.msra.mxu0 %v8528_v51  ;;  %v1528_v51 = vcombine.high %v1518_v45, %v1518_v45 }
 0x167   :  { %7816 = vmatprep.subr.bf16.mxu0 %v8531_v54  ;;  %7809 = vmatpush3.bf16.msra.mxu1 %v8529_v52  ;;  %v8568_v52 = vld [vmem:[#allocation2 + $0xbf0] sm:$0xff]  }
 0x168   :  { %7838 = vmatprep.subr.bf16.mxu1 %v8532_v55 }
 0x169   :  { %v7524_v60 = vpop.f32.mrf.mxu0  ;;  %5958 = vmatmul.mubr.bf16.vlgmr.msra.gmra.mxu0 %v1462_v53  ;;  %v1525_v53 = vrot.slane %v1497_v47, %v8937_v35 }
 0x16a   :  { %v7546_v63 = vpop.f32.mrf.mxu1  ;;  %7817 = vmatpush3.bf16.msra.mxu0 %v8533_v56  ;;  %5998 = vmatmul.mubr.bf16.vlgmr.msra.gmra.mxu1 %v1478_v58  ;;  %v8569_v56 = vld [vmem:[#allocation2 + $0xb30] sm:$0xff]  }
 0x16b   :  { %v7525_v0 = vpop.f32.mrf.mxu0  ;;  %7818 = vmatprep.subr.bf16.mxu0 %v8535_v59  ;;  %7839 = vmatpush3.bf16.msra.mxu1 %v8534_v57  ;;  %v8570_v58 = vld [vmem:[#allocation2 + $0xbb0] sm:$0xff]   ;;  %v1529_v59 = vcombine.high %v1525_v53, %v1525_v53 }
 0x16c   :  { %v7526_v2 = vadd.f32 %v7525_v0, %v7524_v60  ;;  %v7547_v4 = vpop.f32.mrf.mxu1  ;;  %7840 = vmatprep.subr.bf16.mxu1 %v8536_v61  ;;  %6037 = vmatprep.mubr.bf16.mxu0 %v1518_v45  ;;  %v8604_v45 = vld [vmem:[#allocation2 + $0xc68] sm:$0xff]  }
 0x16d   :  { %v7527_v5 = vpop.f32.mrf.mxu0  ;;  %v7548_v8 = vadd.f32 %v7547_v4, %v7546_v63  ;;  %6077 = vmatprep.mubr.bf16.mxu1 %v1528_v51  ;;  %v8573_v4 = vld [vmem:[#allocation2 + $0xb28] sm:$0xff]  }
 0x16e   :  { %v5480_v7 = vadd.f32 %v7526_v2, %v9013_v30  ;;  %v7549_v10 = vpop.f32.mrf.mxu1  ;;  %7819 = vmatpush3.bf16.msra.mxu0 %v8537_v62  ;;  %v8558_v30 = vld [vmem:[#allocation2 + $0xa88] sm:$0xff]  }
 0x16f   :  { %v7528_v11 = vpop.f32.mrf.mxu0  ;;  %7820 = vmatprep.subr.bf16.mxu0 %v8539_v3  ;;  %7841 = vmatpush3.bf16.msra.mxu1 %v8538_v1  ;;  %v8571_v62 = vld [vmem:[#allocation2 + $0xb68] sm:$0xff]   ;;  %v8577_v10 = vld [vmem:[#allocation2 + $0xb20] sm:$0xff]  }
 0x170   :  { %v9018_v13 = vadd.f32 %v7548_v8, %v5480_v7  ;;  %v7550_v15 = vpop.f32.mrf.mxu1  ;;  %7842 = vmatprep.subr.bf16.mxu1 %v8540_v6  ;;  %v8572_v1 = vld [vmem:[#allocation2 + $0xbe8] sm:$0xff]   ;;  %v8575_v8 = vld [vmem:[#allocation2 + $0xb60] sm:$0xff]  }
 0x171   :  { %v8574_v6 = vld [vmem:[#allocation2 + $0xba8] sm:$0xff]   ;;  %v8578_v11 = vld [vmem:[#allocation2 + $0xba0] sm:$0xff]   ;;  %v8582_v15 = vld [vmem:[#allocation2 + $0xb98] sm:$0xff]  }
 0x172   :  { %7821 = vmatpush3.bf16.msra.mxu0 %v8541_v9  ;;  %v8576_v9 = vld [vmem:[#allocation2 + $0xbe0] sm:$0xff]   ;;  %v8606_v51 = vld [vmem:[#allocation2 + $0xc28] sm:$0xff]  }
 0x173   :  { %7822 = vmatprep.subr.bf16.mxu0 %v8543_v14  ;;  %7843 = vmatpush3.bf16.msra.mxu1 %v8542_v12  ;;  %v8579_v12 = vld [vmem:[#allocation2 + $0xb58] sm:$0xff]  }
 0x174   :  { %7844 = vmatprep.subr.bf16.mxu1 %v8544_v16  ;;  %v8581_v14 = vld [vmem:[#allocation2 + $0xb18] sm:$0xff]   ;;  %v8583_v16 = vld [vmem:[#allocation2 + $0xb50] sm:$0xff]  }
 0x176   :  { %7823 = vmatpush3.bf16.msra.mxu0 %v8545_v17  ;;  %v8584_v17 = vld [vmem:[#allocation2 + $0xbd0] sm:$0xff]  }
 0x177   :  { %7824 = vmatprep.subr.bf16.mxu0 %v8547_v19  ;;  %7845 = vmatpush3.bf16.msra.mxu1 %v8546_v18  ;;  %v8585_v18 = vld [vmem:[#allocation2 + $0xb10] sm:$0xff]  }
 0x178   :  { %7846 = vmatprep.subr.bf16.mxu1 %v8548_v20  ;;  %v8586_v19 = vld [vmem:[#allocation2 + $0xb90] sm:$0xff]   ;;  %v8587_v20 = vld [vmem:[#allocation2 + $0xb48] sm:$0xff]  }
 0x17a   :  { %7825 = vmatpush3.bf16.msra.mxu0 %v8549_v21  ;;  %v8588_v21 = vld [vmem:[#allocation2 + $0xbc8] sm:$0xff]  }
 0x17b   :  { %7826 = vmatprep.subr.bf16.mxu0 %v8551_v23  ;;  %7847 = vmatpush3.bf16.msra.mxu1 %v8550_v22  ;;  %v8589_v22 = vld [vmem:[#allocation2 + $0xb08] sm:$0xff]  }
 0x17c   :  { %7848 = vmatprep.subr.bf16.mxu1 %v8552_v24  ;;  %v8590_v23 = vld [vmem:[#allocation2 + $0xb88] sm:$0xff]   ;;  %v8591_v24 = vld [vmem:[#allocation2 + $0xb40] sm:$0xff]  }
 0x17e   :  { %7827 = vmatpush3.bf16.msra.mxu0 %v8553_v25  ;;  %v8592_v25 = vld [vmem:[#allocation2 + $0xbc0] sm:$0xff]  }
 0x17f   :  { %7828 = vmatprep.subr.bf16.mxu0 %v8555_v27  ;;  %7849 = vmatpush3.bf16.msra.mxu1 %v8554_v26  ;;  %v8593_v26 = vld [vmem:[#allocation2 + $0xb00] sm:$0xff]  }
 0x180   :  { %7850 = vmatprep.subr.bf16.mxu1 %v8556_v28  ;;  %v8594_v27 = vld [vmem:[#allocation2 + $0xb80] sm:$0xff]   ;;  %v1511_v28 = vrot.slane %v9026_v43, %v8937_v35 }
 0x182   :  { %7829 = vmatpush3.bf16.msra.mxu0 %v8557_v29  ;;  %v8596_v29 = vld [vmem:[#allocation2 + $0xc78] sm:$0xff]   ;;  %v1527_v34 = vcombine.high %v1511_v28, %v1511_v28 }
 0x183   :  { %7830 = vmatprep.subr.bf16.mxu0 %v8559_v31  ;;  %7851 = vmatpush3.bf16.msra.mxu1 %v8558_v30  ;;  %v8597_v30 = vld [vmem:[#allocation2 + $0xcf8] sm:$0xff]  }
 0x184   :  { %7852 = vmatprep.subr.bf16.mxu1 %v8560_v32  ;;  %v8598_v31 = vld [vmem:[#allocation2 + $0xc38] sm:$0xff]  }
 0x185   :  { %v8599_v32 = vld [vmem:[#allocation2 + $0xcb8] sm:$0xff]  }
 0x186   :  { %7831 = vmatpush3.bf16.msra.mxu0 %v8561_v33 }
 0x187   :  { %7860 = vmatprep.subr.bf16.mxu0 %v8563_v37  ;;  %7853 = vmatpush3.bf16.msra.mxu1 %v8562_v39  ;;  %v8601_v37 = vld [vmem:[#allocation2 + $0xcf0] sm:$0xff]  }
 0x188   :  { %7882 = vmatprep.subr.bf16.mxu1 %v8564_v42  ;;  %v8603_v42 = vld [vmem:[#allocation2 + $0xcb0] sm:$0xff]  }
 0x189   :  { %v7568_v48 = vpop.f32.mrf.mxu0  ;;  %6038 = vmatmul.mubr.bf16.vlgmr.msra.gmra.mxu0 %v1504_v41 }
 0x18a   :  { %v7590_v54 = vpop.f32.mrf.mxu1  ;;  %7861 = vmatpush3.bf16.msra.mxu0 %v8565_v44  ;;  %6078 = vmatmul.mubr.bf16.vlgmr.msra.gmra.mxu1 %v1526_v49 }
 0x18b   :  { %v7569_v55 = vpop.f32.mrf.mxu0  ;;  %7862 = vmatprep.subr.bf16.mxu0 %v8567_v50  ;;  %7883 = vmatpush3.bf16.msra.mxu1 %v8566_v46 }
 0x18c   :  { %v7570_v57 = vadd.f32 %v7569_v55, %v7568_v48  ;;  %v7591_v60 = vpop.f32.mrf.mxu1  ;;  %6117 = vmatprep.mubr.bf16.mxu0 %v1525_v53  ;;  %7884 = vmatprep.subr.bf16.mxu1 %v8568_v52  ;;  %v8605_v48 = vld [vmem:[#allocation2 + $0xce8] sm:$0xff]   ;;  %v8608_v55 = vld [vmem:[#allocation2 + $0xc60] sm:$0xff]  }
 0x18d   :  { %v7571_v61 = vpop.f32.mrf.mxu0  ;;  %v7592_v0 = vadd.f32 %v7591_v60, %v7590_v54  ;;  %6157 = vmatprep.mubr.bf16.mxu1 %v1529_v59  ;;  %v8607_v53 = vld [vmem:[#allocation2 + $0xca8] sm:$0xff]   ;;  %v8612_v59 = vld [vmem:[#allocation2 + $0xc58] sm:$0xff]  }
 0x18e   :  { %v5560_v63 = vadd.f32 %v7570_v57, %v9018_v13  ;;  %v7593_v2 = vpop.f32.mrf.mxu1  ;;  %7863 = vmatpush3.bf16.msra.mxu0 %v8569_v56  ;;  %v8580_v13 = vld [vmem:[#allocation2 + $0xbd8] sm:$0xff]   ;;  %v8609_v56 = vld [vmem:[#allocation2 + $0xce0] sm:$0xff]  }
 0x18f   :  { %v7572_v3 = vpop.f32.mrf.mxu0  ;;  %7864 = vmatprep.subr.bf16.mxu0 %v8571_v62  ;;  %7885 = vmatpush3.bf16.msra.mxu1 %v8570_v58  ;;  %v8610_v57 = vld [vmem:[#allocation2 + $0xc20] sm:$0xff]   ;;  %v8613_v60 = vld [vmem:[#allocation2 + $0xcd8] sm:$0xff]   ;;  %v8619_v2 = vld [vmem:[#allocation2 + $0xc90] sm:$0xff]  }
 0x190   :  { %v9033_v5 = vadd.f32 %v7592_v0, %v5560_v63  ;;  %v7594_v7 = vpop.f32.mrf.mxu1  ;;  %7886 = vmatprep.subr.bf16.mxu1 %v8572_v1  ;;  %v8611_v58 = vld [vmem:[#allocation2 + $0xca0] sm:$0xff]   ;;  %v8614_v61 = vld [vmem:[#allocation2 + $0xc18] sm:$0xff]   ;;  %v8616_v63 = vld [vmem:[#allocation2 + $0xc50] sm:$0xff]  }
 0x191   :  { %v8615_v62 = vld [vmem:[#allocation2 + $0xc98] sm:$0xff]   ;;  %v8617_v0 = vld [vmem:[#allocation2 + $0xcd0] sm:$0xff]   ;;  %v8620_v3 = vld [vmem:[#allocation2 + $0xc48] sm:$0xff]  }
 0x192   :  { %7865 = vmatpush3.bf16.msra.mxu0 %v8573_v4  ;;  %v8618_v1 = vld [vmem:[#allocation2 + $0xc10] sm:$0xff]   ;;  %v8621_v4 = vld [vmem:[#allocation2 + $0xcc8] sm:$0xff]   ;;  %v8624_v7 = vld [vmem:[#allocation2 + $0xc40] sm:$0xff]  }
 0x193   :  { %7866 = vmatprep.subr.bf16.mxu0 %v8575_v8  ;;  %7887 = vmatpush3.bf16.msra.mxu1 %v8574_v6  ;;  %v8623_v6 = vld [vmem:[#allocation2 + $0xc88] sm:$0xff]   ;;  %v8625_v8 = vld [vmem:[#allocation2 + $0xcc0] sm:$0xff]  }
 0x194   :  { %7888 = vmatprep.subr.bf16.mxu1 %v8576_v9  ;;  %v8626_v9 = vld [vmem:[#allocation2 + $0xc00] sm:$0xff]  }
 0x196   :  { %7867 = vmatpush3.bf16.msra.mxu0 %v8577_v10  ;;  %v65_v10 = vld [vmem:[%s9125_s0 + $0x30] sm:$0xff] }
 0x197   :  { %7868 = vmatprep.subr.bf16.mxu0 %v8579_v12  ;;  %7889 = vmatpush3.bf16.msra.mxu1 %v8578_v11  ;;  %v8627_v11 = vld [vmem:[#allocation2 + $0xc80] sm:$0xff]   ;;  %v1537_v12 = vrot.slane %v65_v10, %v8937_v35 }
 0x198   :  { %7890 = vmatprep.subr.bf16.mxu1 %v8580_v13  ;;  %v1530_v13 = vcombine.high %v65_v10, %v65_v10  ;;  %v8665_v10 = vld [vmem:[#allocation2 + $0xe70] sm:$0xff]  }
 0x19a   :  { %7869 = vmatpush3.bf16.msra.mxu0 %v8581_v14  ;;  %v8628_v14 = vld [vmem:[#allocation2 + $0xd78] sm:$0xff]  }
 0x19b   :  { %7870 = vmatprep.subr.bf16.mxu0 %v8583_v16  ;;  %7891 = vmatpush3.bf16.msra.mxu1 %v8582_v15  ;;  %v1545_v15 = vcombine.high %v1537_v12, %v1537_v12  ;;  %v1553_v16 = vrot.slane %v1537_v12, %v8937_v35  ;;  %v8666_v12 = vld [vmem:[#allocation2 + $0xef0] sm:$0xff]  }
 0x19c   :  { %7892 = vmatprep.subr.bf16.mxu1 %v8584_v17  ;;  %v8629_v17 = vld [vmem:[#allocation2 + $0xdf8] sm:$0xff]  }
 0x19e   :  { %7871 = vmatpush3.bf16.msra.mxu0 %v8585_v18  ;;  %v9046_v18 = vrot.slane %v1530_v13, %v8937_v35  ;;  %v8667_v13 = vld [vmem:[#allocation2 + $0xe30] sm:$0xff]  }
 0x19f   :  { %7872 = vmatprep.subr.bf16.mxu0 %v8587_v20  ;;  %7893 = vmatpush3.bf16.msra.mxu1 %v8586_v19  ;;  %v8630_v19 = vld [vmem:[#allocation2 + $0xd38] sm:$0xff]   ;;  %v1567_v20 = vrot.slane %v1545_v15, %v8937_v35 }
 0x1a0   :  { %7894 = vmatprep.subr.bf16.mxu1 %v8588_v21  ;;  %v8631_v21 = vld [vmem:[#allocation2 + $0xdb8] sm:$0xff]  }
 0x1a2   :  { %7873 = vmatpush3.bf16.msra.mxu0 %v8589_v22  ;;  %v1546_v22 = vcombine.high %v9046_v18, %v9046_v18 }
 0x1a3   :  { %7874 = vmatprep.subr.bf16.mxu0 %v8591_v24  ;;  %7895 = vmatpush3.bf16.msra.mxu1 %v8590_v23  ;;  %v1575_v23 = vcombine.high %v1553_v16, %v1553_v16  ;;  %v8632_v24 = vld [vmem:[#allocation2 + $0xd70] sm:$0xff]  }
 0x1a4   :  { %7896 = vmatprep.subr.bf16.mxu1 %v8592_v25  ;;  %v1577_v25 = vcombine.high %v1567_v20, %v1567_v20 }
 0x1a6   :  { %7875 = vmatpush3.bf16.msra.mxu0 %v8593_v26 }
 0x1a7   :  { %7904 = vmatprep.subr.bf16.mxu0 %v8596_v29  ;;  %7897 = vmatpush3.bf16.msra.mxu1 %v8594_v27  ;;  %v8633_v27 = vld [vmem:[#allocation2 + $0xdf0] sm:$0xff]  }
 0x1a8   :  { %7926 = vmatprep.subr.bf16.mxu1 %v8597_v30  ;;  %v8634_v29 = vld [vmem:[#allocation2 + $0xd30] sm:$0xff]  }
 0x1a9   :  { %v7612_v33 = vpop.f32.mrf.mxu0  ;;  %6118 = vmatmul.mubr.bf16.vlgmr.msra.gmra.mxu0 %v1511_v28  ;;  %v1574_v28 = vrot.slane %v1546_v22, %v8937_v35 }
 0x1aa   :  { %v7634_v38 = vpop.f32.mrf.mxu1  ;;  %7905 = vmatpush3.bf16.msra.mxu0 %v8598_v31  ;;  %6158 = vmatmul.mubr.bf16.vlgmr.msra.gmra.mxu1 %v1527_v34 }
 0x1ab   :  { %v7613_v39 = vpop.f32.mrf.mxu0  ;;  %7906 = vmatprep.subr.bf16.mxu0 %v8600_v36  ;;  %7927 = vmatpush3.bf16.msra.mxu1 %v8599_v32  ;;  %v8635_v32 = vld [vmem:[#allocation2 + $0xdb0] sm:$0xff]   ;;  %v8636_v36 = vld [vmem:[#allocation2 + $0xd68] sm:$0xff]  }
 0x1ac   :  { %v7614_v41 = vadd.f32 %v7613_v39, %v7612_v33  ;;  %v7635_v43 = vpop.f32.mrf.mxu1  ;;  %7928 = vmatprep.subr.bf16.mxu1 %v8601_v37  ;;  %6197 = vmatprep.mubr.bf16.mxu0 %v1567_v20  ;;  %v1578_v33 = vcombine.high %v1574_v28, %v1574_v28  ;;  %v8637_v39 = vld [vmem:[#allocation2 + $0xde8] sm:$0xff]  }
 0x1ad   :  { %v7615_v44 = vpop.f32.mrf.mxu0  ;;  %v7636_v47 = vadd.f32 %v7635_v43, %v7634_v38  ;;  %6237 = vmatprep.mubr.bf16.mxu1 %v1577_v25 }
 0x1ae   :  { %v5640_v46 = vadd.f32 %v7614_v41, %v9033_v5  ;;  %v7637_v49 = vpop.f32.mrf.mxu1  ;;  %7907 = vmatpush3.bf16.msra.mxu0 %v8602_v40  ;;  %v8622_v5 = vld [vmem:[#allocation2 + $0xc08] sm:$0xff]  }
 0x1af   :  { %v7616_v50 = vpop.f32.mrf.mxu0  ;;  %7908 = vmatprep.subr.bf16.mxu0 %v8604_v45  ;;  %7929 = vmatpush3.bf16.msra.mxu1 %v8603_v42  ;;  %v8638_v42 = vld [vmem:[#allocation2 + $0xd28] sm:$0xff]   ;;  %v8641_v49 = vld [vmem:[#allocation2 + $0xde0] sm:$0xff]  }
 0x1b0   :  { %v9038_v52 = vadd.f32 %v7636_v47, %v5640_v46  ;;  %v7638_v54 = vpop.f32.mrf.mxu1  ;;  %7930 = vmatprep.subr.bf16.mxu1 %v8605_v48  ;;  %v8639_v45 = vld [vmem:[#allocation2 + $0xda8] sm:$0xff]   ;;  %v8640_v47 = vld [vmem:[#allocation2 + $0xd60] sm:$0xff]  }
 0x1b1   :  { %v8642_v50 = vld [vmem:[#allocation2 + $0xd20] sm:$0xff]   ;;  %v8646_v54 = vld [vmem:[#allocation2 + $0xd18] sm:$0xff]  }
 0x1b2   :  { %7909 = vmatpush3.bf16.msra.mxu0 %v8606_v51  ;;  %v8643_v51 = vld [vmem:[#allocation2 + $0xda0] sm:$0xff]  }
 0x1b3   :  { %7910 = vmatprep.subr.bf16.mxu0 %v8608_v55  ;;  %7931 = vmatpush3.bf16.msra.mxu1 %v8607_v53  ;;  %v8645_v53 = vld [vmem:[#allocation2 + $0xdd8] sm:$0xff]  }
 0x1b4   :  { %7932 = vmatprep.subr.bf16.mxu1 %v8609_v56  ;;  %v8647_v55 = vld [vmem:[#allocation2 + $0xd98] sm:$0xff]   ;;  %v8648_v56 = vld [vmem:[#allocation2 + $0xd50] sm:$0xff]  }
 0x1b6   :  { %7911 = vmatpush3.bf16.msra.mxu0 %v8610_v57  ;;  %v8649_v57 = vld [vmem:[#allocation2 + $0xdd0] sm:$0xff]  }
 0x1b7   :  { %7912 = vmatprep.subr.bf16.mxu0 %v8612_v59  ;;  %7933 = vmatpush3.bf16.msra.mxu1 %v8611_v58  ;;  %v8650_v58 = vld [vmem:[#allocation2 + $0xd10] sm:$0xff]  }
 0x1b8   :  { %7934 = vmatprep.subr.bf16.mxu1 %v8613_v60  ;;  %v8651_v59 = vld [vmem:[#allocation2 + $0xd90] sm:$0xff]   ;;  %v8652_v60 = vld [vmem:[#allocation2 + $0xd48] sm:$0xff]  }
 0x1ba   :  { %7913 = vmatpush3.bf16.msra.mxu0 %v8614_v61  ;;  %v8653_v61 = vld [vmem:[#allocation2 + $0xdc8] sm:$0xff]  }
 0x1bb   :  { %7914 = vmatprep.subr.bf16.mxu0 %v8616_v63  ;;  %7935 = vmatpush3.bf16.msra.mxu1 %v8615_v62  ;;  %v8654_v62 = vld [vmem:[#allocation2 + $0xd08] sm:$0xff]  }
 0x1bc   :  { %7936 = vmatprep.subr.bf16.mxu1 %v8617_v0  ;;  %v8655_v63 = vld [vmem:[#allocation2 + $0xd88] sm:$0xff]   ;;  %v8656_v0 = vld [vmem:[#allocation2 + $0xd40] sm:$0xff]  }
 0x1be   :  { %7915 = vmatpush3.bf16.msra.mxu0 %v8618_v1  ;;  %v8657_v1 = vld [vmem:[#allocation2 + $0xdc0] sm:$0xff]  }
 0x1bf   :  { %7916 = vmatprep.subr.bf16.mxu0 %v8620_v3  ;;  %7937 = vmatpush3.bf16.msra.mxu1 %v8619_v2  ;;  %v8658_v2 = vld [vmem:[#allocation2 + $0xd00] sm:$0xff]  }
 0x1c0   :  { %7938 = vmatprep.subr.bf16.mxu1 %v8621_v4  ;;  %v8659_v3 = vld [vmem:[#allocation2 + $0xd80] sm:$0xff]   ;;  %v1560_v4 = vrot.slane %v9046_v18, %v8937_v35  ;;  %v8669_v18 = vld [vmem:[#allocation2 + $0xe68] sm:$0xff]  }
 0x1c2   :  { %7917 = vmatpush3.bf16.msra.mxu0 %v8622_v5  ;;  %v8661_v5 = vld [vmem:[#allocation2 + $0xe78] sm:$0xff]  }
 0x1c3   :  { %7918 = vmatprep.subr.bf16.mxu0 %v8624_v7  ;;  %7939 = vmatpush3.bf16.msra.mxu1 %v8623_v6  ;;  %v8662_v6 = vld [vmem:[#allocation2 + $0xef8] sm:$0xff]  }
 0x1c4   :  { %7940 = vmatprep.subr.bf16.mxu1 %v8625_v8  ;;  %v8663_v7 = vld [vmem:[#allocation2 + $0xe38] sm:$0xff]  }
 0x1c5   :  { %v8664_v8 = vld [vmem:[#allocation2 + $0xeb8] sm:$0xff]  }
 0x1c6   :  { %7919 = vmatpush3.bf16.msra.mxu0 %v8626_v9  ;;  %v1576_v9 = vcombine.high %v1560_v4, %v1560_v4 }
 0x1c7   :  { %7948 = vmatprep.subr.bf16.mxu0 %v8628_v14  ;;  %7941 = vmatpush3.bf16.msra.mxu1 %v8627_v11 }
 0x1c8   :  { %7970 = vmatprep.subr.bf16.mxu1 %v8629_v17 }
 0x1c9   :  { %v7656_v26 = vpop.f32.mrf.mxu0  ;;  %6198 = vmatmul.mubr.bf16.vlgmr.msra.gmra.mxu0 %v1553_v16  ;;  %v8668_v16 = vld [vmem:[#allocation2 + $0xeb0] sm:$0xff]  }
 0x1ca   :  { %v7678_v30 = vpop.f32.mrf.mxu1  ;;  %7949 = vmatpush3.bf16.msra.mxu0 %v8630_v19  ;;  %6238 = vmatmul.mubr.bf16.vlgmr.msra.gmra.mxu1 %v1575_v23 }
 0x1cb   :  { %v7657_v31 = vpop.f32.mrf.mxu0  ;;  %7950 = vmatprep.subr.bf16.mxu0 %v8632_v24  ;;  %7971 = vmatpush3.bf16.msra.mxu1 %v8631_v21  ;;  %v8670_v21 = vld [vmem:[#allocation2 + $0xee8] sm:$0xff]  }
 0x1cc   :  { %v7658_v34 = vadd.f32 %v7657_v31, %v7656_v26  ;;  %v7679_v37 = vpop.f32.mrf.mxu1  ;;  %6277 = vmatprep.mubr.bf16.mxu0 %v1574_v28  ;;  %7972 = vmatprep.subr.bf16.mxu1 %v8633_v27  ;;  %v8671_v24 = vld [vmem:[#allocation2 + $0xe28] sm:$0xff]   ;;  %v8674_v31 = vld [vmem:[#allocation2 + $0xee0] sm:$0xff]  }
 0x1cd   :  { %v7659_v38 = vpop.f32.mrf.mxu0  ;;  %v7680_v41 = vadd.f32 %v7679_v37, %v7678_v30  ;;  %6317 = vmatprep.mubr.bf16.mxu1 %v1578_v33  ;;  %v8672_v27 = vld [vmem:[#allocation2 + $0xea8] sm:$0xff]   ;;  %v8676_v33 = vld [vmem:[#allocation2 + $0xea0] sm:$0xff]   ;;  %v8679_v37 = vld [vmem:[#allocation2 + $0xe18] sm:$0xff]  }
 0x1ce   :  { %v5720_v40 = vadd.f32 %v7658_v34, %v9038_v52  ;;  %v7681_v43 = vpop.f32.mrf.mxu1  ;;  %7951 = vmatpush3.bf16.msra.mxu0 %v8634_v29  ;;  %v8644_v52 = vld [vmem:[#allocation2 + $0xd58] sm:$0xff]   ;;  %v8673_v29 = vld [vmem:[#allocation2 + $0xe60] sm:$0xff]  }
 0x1cf   :  { %v7660_v44 = vpop.f32.mrf.mxu0  ;;  %7952 = vmatprep.subr.bf16.mxu0 %v8636_v36  ;;  %7973 = vmatpush3.bf16.msra.mxu1 %v8635_v32  ;;  %v8675_v32 = vld [vmem:[#allocation2 + $0xe20] sm:$0xff]   ;;  %v8677_v34 = vld [vmem:[#allocation2 + $0xe58] sm:$0xff]   ;;  %v8685_v43 = vld [vmem:[#allocation2 + $0xe48] sm:$0xff]  }
 0x1d0   :  { %v9053_v46 = vadd.f32 %v7680_v41, %v5720_v40  ;;  %v7682_v48 = vpop.f32.mrf.mxu1  ;;  %7974 = vmatprep.subr.bf16.mxu1 %v8637_v39  ;;  %v8678_v36 = vld [vmem:[#allocation2 + $0xed8] sm:$0xff]   ;;  %v8681_v39 = vld [vmem:[#allocation2 + $0xe50] sm:$0xff]   ;;  %v8686_v44 = vld [vmem:[#allocation2 + $0xec8] sm:$0xff]  }
 0x1d1   :  { %v8680_v38 = vld [vmem:[#allocation2 + $0xe98] sm:$0xff]   ;;  %v8682_v40 = vld [vmem:[#allocation2 + $0xed0] sm:$0xff]   ;;  %v8690_v48 = vld [vmem:[#allocation2 + $0xec0] sm:$0xff]  }
 0x1d2   :  { %7953 = vmatpush3.bf16.msra.mxu0 %v8638_v42  ;;  %v8683_v41 = vld [vmem:[#allocation2 + $0xe10] sm:$0xff]  }
 0x1d3   :  { %7954 = vmatprep.subr.bf16.mxu0 %v8640_v47  ;;  %7975 = vmatpush3.bf16.msra.mxu1 %v8639_v45  ;;  %v8684_v42 = vld [vmem:[#allocation2 + $0xe90] sm:$0xff]   ;;  %v8687_v45 = vld [vmem:[#allocation2 + $0xe08] sm:$0xff]   ;;  %v8689_v47 = vld [vmem:[#allocation2 + $0xe40] sm:$0xff]  }
 0x1d4   :  { %7976 = vmatprep.subr.bf16.mxu1 %v8641_v49  ;;  %v8691_v49 = vld [vmem:[#allocation2 + $0xe00] sm:$0xff]  }
 0x1d6   :  { %7955 = vmatpush3.bf16.msra.mxu0 %v8642_v50  ;;  %v66_v50 = vld [vmem:[%s9125_s0 + $0x38] sm:$0xff] }
 0x1d7   :  { %7956 = vmatprep.subr.bf16.mxu0 %v8644_v52  ;;  %7977 = vmatpush3.bf16.msra.mxu1 %v8643_v51  ;;  %v8692_v51 = vld [vmem:[#allocation2 + $0xe80] sm:$0xff]   ;;  %v1586_v52 = vrot.slane %v66_v50, %v8937_v35 }
 0x1d8   :  { %7978 = vmatprep.subr.bf16.mxu1 %v8645_v53  ;;  %v1579_v53 = vcombine.high %v66_v50, %v66_v50  ;;  %v8730_v50 = vld [vmem:[#allocation2 + $0x1070] sm:$0xff]  }
 0x1da   :  { %7957 = vmatpush3.bf16.msra.mxu0 %v8646_v54  ;;  %v8693_v54 = vld [vmem:[#allocation2 + $0xf78] sm:$0xff]  }
 0x1db   :  { %7958 = vmatprep.subr.bf16.mxu0 %v8648_v56  ;;  %7979 = vmatpush3.bf16.msra.mxu1 %v8647_v55  ;;  %v1594_v55 = vcombine.high %v1586_v52, %v1586_v52  ;;  %v1602_v56 = vrot.slane %v1586_v52, %v8937_v35  ;;  %v8731_v52 = vld [vmem:[#allocation2 + $0x10f0] sm:$0xff]  }
 0x1dc   :  { %7980 = vmatprep.subr.bf16.mxu1 %v8649_v57  ;;  %v8694_v57 = vld [vmem:[#allocation2 + $0xff8] sm:$0xff]  }
 0x1de   :  { %7959 = vmatpush3.bf16.msra.mxu0 %v8650_v58  ;;  %v9066_v58 = vrot.slane %v1579_v53, %v8937_v35  ;;  %v8732_v53 = vld [vmem:[#allocation2 + $0x1030] sm:$0xff]  }
 0x1df   :  { %7960 = vmatprep.subr.bf16.mxu0 %v8652_v60  ;;  %7981 = vmatpush3.bf16.msra.mxu1 %v8651_v59  ;;  %v8695_v59 = vld [vmem:[#allocation2 + $0xf38] sm:$0xff]   ;;  %v1616_v60 = vrot.slane %v1594_v55, %v8937_v35 }
 0x1e0   :  { %7982 = vmatprep.subr.bf16.mxu1 %v8653_v61  ;;  %v8696_v61 = vld [vmem:[#allocation2 + $0xfb8] sm:$0xff]  }
 0x1e2   :  { %7961 = vmatpush3.bf16.msra.mxu0 %v8654_v62  ;;  %v1595_v62 = vcombine.high %v9066_v58, %v9066_v58 }
 0x1e3   :  { %7962 = vmatprep.subr.bf16.mxu0 %v8656_v0  ;;  %7983 = vmatpush3.bf16.msra.mxu1 %v8655_v63  ;;  %v1624_v63 = vcombine.high %v1602_v56, %v1602_v56  ;;  %v8697_v0 = vld [vmem:[#allocation2 + $0xf70] sm:$0xff]  }
 0x1e4   :  { %7984 = vmatprep.subr.bf16.mxu1 %v8657_v1  ;;  %v1626_v1 = vcombine.high %v1616_v60, %v1616_v60 }
 0x1e6   :  { %7963 = vmatpush3.bf16.msra.mxu0 %v8658_v2 }
 0x1e7   :  { %7992 = vmatprep.subr.bf16.mxu0 %v8661_v5  ;;  %7985 = vmatpush3.bf16.msra.mxu1 %v8659_v3  ;;  %v8698_v3 = vld [vmem:[#allocation2 + $0xff0] sm:$0xff]  }
 0x1e8   :  { %8014 = vmatprep.subr.bf16.mxu1 %v8662_v6  ;;  %v8699_v5 = vld [vmem:[#allocation2 + $0xf30] sm:$0xff]  }
 0x1e9   :  { %v7700_v11 = vpop.f32.mrf.mxu0  ;;  %6278 = vmatmul.mubr.bf16.vlgmr.msra.gmra.mxu0 %v1560_v4  ;;  %v1623_v4 = vrot.slane %v1595_v62, %v8937_v35 }
 0x1ea   :  { %v7722_v14 = vpop.f32.mrf.mxu1  ;;  %7993 = vmatpush3.bf16.msra.mxu0 %v8663_v7  ;;  %6318 = vmatmul.mubr.bf16.vlgmr.msra.gmra.mxu1 %v1576_v9 }
 0x1eb   :  { %v7701_v15 = vpop.f32.mrf.mxu0  ;;  %7994 = vmatprep.subr.bf16.mxu0 %v8665_v10  ;;  %8015 = vmatpush3.bf16.msra.mxu1 %v8664_v8  ;;  %v8700_v8 = vld [vmem:[#allocation2 + $0xfb0] sm:$0xff]   ;;  %v1627_v9 = vcombine.high %v1623_v4, %v1623_v4 }
 0x1ec   :  { %v7702_v17 = vadd.f32 %v7701_v15, %v7700_v11  ;;  %v7723_v19 = vpop.f32.mrf.mxu1  ;;  %8016 = vmatprep.subr.bf16.mxu1 %v8666_v12  ;;  %6357 = vmatprep.mubr.bf16.mxu0 %v1616_v60  ;;  %v8701_v11 = vld [vmem:[#allocation2 + $0xf68] sm:$0xff]  }
 0x1ed   :  { %v7703_v20 = vpop.f32.mrf.mxu0  ;;  %v7724_v23 = vadd.f32 %v7723_v19, %v7722_v14  ;;  %6397 = vmatprep.mubr.bf16.mxu1 %v1626_v1  ;;  %v8702_v14 = vld [vmem:[#allocation2 + $0xfe8] sm:$0xff]  }
 0x1ee   :  { %v5800_v22 = vadd.f32 %v7702_v17, %v9053_v46  ;;  %v7725_v25 = vpop.f32.mrf.mxu1  ;;  %7995 = vmatpush3.bf16.msra.mxu0 %v8667_v13  ;;  %v8688_v46 = vld [vmem:[#allocation2 + $0xe88] sm:$0xff]  }
 0x1ef   :  { %v7704_v26 = vpop.f32.mrf.mxu0  ;;  %7996 = vmatprep.subr.bf16.mxu0 %v8669_v18  ;;  %8017 = vmatpush3.bf16.msra.mxu1 %v8668_v16  ;;  %v8703_v17 = vld [vmem:[#allocation2 + $0xf28] sm:$0xff]   ;;  %v8707_v25 = vld [vmem:[#allocation2 + $0xf20] sm:$0xff]  }
 0x1f0   :  { %v9058_v28 = vadd.f32 %v7724_v23, %v5800_v22  ;;  %v7726_v30 = vpop.f32.mrf.mxu1  ;;  %8018 = vmatprep.subr.bf16.mxu1 %v8670_v21  ;;  %v8704_v20 = vld [vmem:[#allocation2 + $0xfa8] sm:$0xff]   ;;  %v8705_v22 = vld [vmem:[#allocation2 + $0xf60] sm:$0xff]  }
 0x1f1   :  { %v8708_v26 = vld [vmem:[#allocation2 + $0xfa0] sm:$0xff]   ;;  %v8712_v30 = vld [vmem:[#allocation2 + $0xf98] sm:$0xff]  }
 0x1f2   :  { %7997 = vmatpush3.bf16.msra.mxu0 %v8671_v24  ;;  %v8706_v24 = vld [vmem:[#allocation2 + $0xfe0] sm:$0xff]  }
 0x1f3   :  { %7998 = vmatprep.subr.bf16.mxu0 %v8673_v29  ;;  %8019 = vmatpush3.bf16.msra.mxu1 %v8672_v27  ;;  %v8709_v27 = vld [vmem:[#allocation2 + $0xf58] sm:$0xff]  }
 0x1f4   :  { %8020 = vmatprep.subr.bf16.mxu1 %v8674_v31  ;;  %v8711_v29 = vld [vmem:[#allocation2 + $0xf18] sm:$0xff]   ;;  %v8713_v31 = vld [vmem:[#allocation2 + $0xf50] sm:$0xff]  }
 0x1f6   :  { %7999 = vmatpush3.bf16.msra.mxu0 %v8675_v32  ;;  %v8714_v32 = vld [vmem:[#allocation2 + $0xfd0] sm:$0xff]  }
 0x1f7   :  { %8000 = vmatprep.subr.bf16.mxu0 %v8677_v34  ;;  %8021 = vmatpush3.bf16.msra.mxu1 %v8676_v33  ;;  %v8715_v33 = vld [vmem:[#allocation2 + $0xf10] sm:$0xff]  }
 0x1f8   :  { %8022 = vmatprep.subr.bf16.mxu1 %v8678_v36  ;;  %v8716_v34 = vld [vmem:[#allocation2 + $0xf90] sm:$0xff]   ;;  %v8717_v36 = vld [vmem:[#allocation2 + $0xf48] sm:$0xff]  }
 0x1fa   :  { %8001 = vmatpush3.bf16.msra.mxu0 %v8679_v37  ;;  %v8718_v37 = vld [vmem:[#allocation2 + $0xfc8] sm:$0xff]  }
 0x1fb   :  { %8002 = vmatprep.subr.bf16.mxu0 %v8681_v39  ;;  %8023 = vmatpush3.bf16.msra.mxu1 %v8680_v38  ;;  %v8719_v38 = vld [vmem:[#allocation2 + $0xf08] sm:$0xff]  }
 0x1fc   :  { %8024 = vmatprep.subr.bf16.mxu1 %v8682_v40  ;;  %v8720_v39 = vld [vmem:[#allocation2 + $0xf88] sm:$0xff]   ;;  %v8721_v40 = vld [vmem:[#allocation2 + $0xf40] sm:$0xff]  }
 0x1fe   :  { %8003 = vmatpush3.bf16.msra.mxu0 %v8683_v41  ;;  %v8722_v41 = vld [vmem:[#allocation2 + $0xfc0] sm:$0xff]  }
 0x1ff   :  { %8004 = vmatprep.subr.bf16.mxu0 %v8685_v43  ;;  %8025 = vmatpush3.bf16.msra.mxu1 %v8684_v42  ;;  %v8723_v42 = vld [vmem:[#allocation2 + $0xf00] sm:$0xff]  }
 0x200   :  { %8026 = vmatprep.subr.bf16.mxu1 %v8686_v44  ;;  %v8724_v43 = vld [vmem:[#allocation2 + $0xf80] sm:$0xff]   ;;  %v1609_v44 = vrot.slane %v9066_v58, %v8937_v35  ;;  %v8734_v58 = vld [vmem:[#allocation2 + $0x1068] sm:$0xff]  }
 0x202   :  { %8005 = vmatpush3.bf16.msra.mxu0 %v8687_v45  ;;  %v8726_v45 = vld [vmem:[#allocation2 + $0x1078] sm:$0xff]  }
 0x203   :  { %8006 = vmatprep.subr.bf16.mxu0 %v8689_v47  ;;  %8027 = vmatpush3.bf16.msra.mxu1 %v8688_v46  ;;  %v8727_v46 = vld [vmem:[#allocation2 + $0x10f8] sm:$0xff]  }
 0x204   :  { %8028 = vmatprep.subr.bf16.mxu1 %v8690_v48  ;;  %v8728_v47 = vld [vmem:[#allocation2 + $0x1038] sm:$0xff]  }
 0x205   :  { %v8729_v48 = vld [vmem:[#allocation2 + $0x10b8] sm:$0xff]  }
 0x206   :  { %8007 = vmatpush3.bf16.msra.mxu0 %v8691_v49  ;;  %v1625_v49 = vcombine.high %v1609_v44, %v1609_v44 }
 0x207   :  { %8036 = vmatprep.subr.bf16.mxu0 %v8693_v54  ;;  %8029 = vmatpush3.bf16.msra.mxu1 %v8692_v51 }
 0x208   :  { %8058 = vmatprep.subr.bf16.mxu1 %v8694_v57 }
 0x209   :  { %v7744_v2 = vpop.f32.mrf.mxu0  ;;  %6358 = vmatmul.mubr.bf16.vlgmr.msra.gmra.mxu0 %v1602_v56  ;;  %v8733_v56 = vld [vmem:[#allocation2 + $0x10b0] sm:$0xff]  }
 0x20a   :  { %v7766_v6 = vpop.f32.mrf.mxu1  ;;  %8037 = vmatpush3.bf16.msra.mxu0 %v8695_v59  ;;  %6398 = vmatmul.mubr.bf16.vlgmr.msra.gmra.mxu1 %v1624_v63 }
 0x20b   :  { %v7745_v7 = vpop.f32.mrf.mxu0  ;;  %8038 = vmatprep.subr.bf16.mxu0 %v8697_v0  ;;  %8059 = vmatpush3.bf16.msra.mxu1 %v8696_v61  ;;  %v8735_v61 = vld [vmem:[#allocation2 + $0x10e8] sm:$0xff]  }
 0x20c   :  { %v7746_v10 = vadd.f32 %v7745_v7, %v7744_v2  ;;  %v7767_v12 = vpop.f32.mrf.mxu1  ;;  %6437 = vmatprep.mubr.bf16.mxu0 %v1623_v4  ;;  %8060 = vmatprep.subr.bf16.mxu1 %v8698_v3  ;;  %v8736_v0 = vld [vmem:[#allocation2 + $0x1028] sm:$0xff]   ;;  %v8739_v7 = vld [vmem:[#allocation2 + $0x10e0] sm:$0xff]  }
 0x20d   :  { %v7747_v13 = vpop.f32.mrf.mxu0  ;;  %v7768_v16 = vadd.f32 %v7767_v12, %v7766_v6  ;;  %6477 = vmatprep.mubr.bf16.mxu1 %v1627_v9  ;;  %v8737_v3 = vld [vmem:[#allocation2 + $0x10a8] sm:$0xff]   ;;  %v8741_v9 = vld [vmem:[#allocation2 + $0x10a0] sm:$0xff]   ;;  %v8744_v12 = vld [vmem:[#allocation2 + $0x1018] sm:$0xff]  }
 0x20e   :  { %v5880_v15 = vadd.f32 %v7746_v10, %v9058_v28  ;;  %v7769_v18 = vpop.f32.mrf.mxu1  ;;  %8039 = vmatpush3.bf16.msra.mxu0 %v8699_v5  ;;  %v8710_v28 = vld [vmem:[#allocation2 + $0xfd8] sm:$0xff]   ;;  %v8738_v5 = vld [vmem:[#allocation2 + $0x1060] sm:$0xff]  }
 0x20f   :  { %v7748_v19 = vpop.f32.mrf.mxu0  ;;  %8040 = vmatprep.subr.bf16.mxu0 %v8701_v11  ;;  %8061 = vmatpush3.bf16.msra.mxu1 %v8700_v8  ;;  %v8740_v8 = vld [vmem:[#allocation2 + $0x1020] sm:$0xff]   ;;  %v8742_v10 = vld [vmem:[#allocation2 + $0x1058] sm:$0xff]   ;;  %v8750_v18 = vld [vmem:[#allocation2 + $0x1048] sm:$0xff]  }
 0x210   :  { %v9073_v21 = vadd.f32 %v7768_v16, %v5880_v15  ;;  %v7770_v23 = vpop.f32.mrf.mxu1  ;;  %8062 = vmatprep.subr.bf16.mxu1 %v8702_v14  ;;  %v8743_v11 = vld [vmem:[#allocation2 + $0x10d8] sm:$0xff]   ;;  %v8746_v14 = vld [vmem:[#allocation2 + $0x1050] sm:$0xff]   ;;  %v8751_v19 = vld [vmem:[#allocation2 + $0x10c8] sm:$0xff]  }
 0x211   :  { %v8745_v13 = vld [vmem:[#allocation2 + $0x1098] sm:$0xff]   ;;  %v8747_v15 = vld [vmem:[#allocation2 + $0x10d0] sm:$0xff]   ;;  %v8755_v23 = vld [vmem:[#allocation2 + $0x10c0] sm:$0xff]  }
 0x212   :  { %8041 = vmatpush3.bf16.msra.mxu0 %v8703_v17  ;;  %v8748_v16 = vld [vmem:[#allocation2 + $0x1010] sm:$0xff]  }
 0x213   :  { %8042 = vmatprep.subr.bf16.mxu0 %v8705_v22  ;;  %8063 = vmatpush3.bf16.msra.mxu1 %v8704_v20  ;;  %v8749_v17 = vld [vmem:[#allocation2 + $0x1090] sm:$0xff]   ;;  %v8752_v20 = vld [vmem:[#allocation2 + $0x1008] sm:$0xff]   ;;  %v8754_v22 = vld [vmem:[#allocation2 + $0x1040] sm:$0xff]  }
 0x214   :  { %8064 = vmatprep.subr.bf16.mxu1 %v8706_v24  ;;  %v8756_v24 = vld [vmem:[#allocation2 + $0x1000] sm:$0xff]  }
 0x216   :  { %8043 = vmatpush3.bf16.msra.mxu0 %v8707_v25  ;;  %v67_v25 = vld [vmem:[%s9125_s0 + $0x40] sm:$0xff] }
 0x217   :  { %8044 = vmatprep.subr.bf16.mxu0 %v8709_v27  ;;  %8065 = vmatpush3.bf16.msra.mxu1 %v8708_v26  ;;  %v1635_v26 = vrot.slane %v67_v25, %v8937_v35  ;;  %v8758_v27 = vld [vmem:[#allocation2 + $0x1178] sm:$0xff]  }
 0x218   :  { %8066 = vmatprep.subr.bf16.mxu1 %v8710_v28  ;;  %v1628_v28 = vcombine.high %v67_v25, %v67_v25 }
 0x21a   :  { %8045 = vmatpush3.bf16.msra.mxu0 %v8711_v29  ;;  %v8757_v29 = vld [vmem:[#allocation2 + $0x1080] sm:$0xff]  }
 0x21b   :  { %8046 = vmatprep.subr.bf16.mxu0 %v8713_v31  ;;  %8067 = vmatpush3.bf16.msra.mxu1 %v8712_v30  ;;  %v1643_v30 = vcombine.high %v1635_v26, %v1635_v26  ;;  %v1651_v31 = vrot.slane %v1635_v26, %v8937_v35 }
 0x21c   :  { %8068 = vmatprep.subr.bf16.mxu1 %v8714_v32  ;;  %v8759_v32 = vld [vmem:[#allocation2 + $0x11f8] sm:$0xff]  }
 0x21e   :  { %8047 = vmatpush3.bf16.msra.mxu0 %v8715_v33  ;;  %v9086_v33 = vrot.slane %v1628_v28, %v8937_v35 }
 0x21f   :  { %8048 = vmatprep.subr.bf16.mxu0 %v8717_v36  ;;  %8069 = vmatpush3.bf16.msra.mxu1 %v8716_v34  ;;  %v8760_v34 = vld [vmem:[#allocation2 + $0x1138] sm:$0xff]   ;;  %v1665_v36 = vrot.slane %v1643_v30, %v8937_v35 }
 0x220   :  { %8070 = vmatprep.subr.bf16.mxu1 %v8718_v37  ;;  %v8761_v37 = vld [vmem:[#allocation2 + $0x11b8] sm:$0xff]  }
 0x222   :  { %8049 = vmatpush3.bf16.msra.mxu0 %v8719_v38  ;;  %v1644_v38 = vcombine.high %v9086_v33, %v9086_v33 }
 0x223   :  { %8050 = vmatprep.subr.bf16.mxu0 %v8721_v40  ;;  %8071 = vmatpush3.bf16.msra.mxu1 %v8720_v39  ;;  %v1673_v39 = vcombine.high %v1651_v31, %v1651_v31  ;;  %v8762_v40 = vld [vmem:[#allocation2 + $0x1170] sm:$0xff]  }
 0x224   :  { %8072 = vmatprep.subr.bf16.mxu1 %v8722_v41  ;;  %v1675_v41 = vcombine.high %v1665_v36, %v1665_v36 }
 0x226   :  { %8051 = vmatpush3.bf16.msra.mxu0 %v8723_v42 }
 0x227   :  { %8080 = vmatprep.subr.bf16.mxu0 %v8726_v45  ;;  %8073 = vmatpush3.bf16.msra.mxu1 %v8724_v43  ;;  %v8763_v43 = vld [vmem:[#allocation2 + $0x11f0] sm:$0xff]  }
 0x228   :  { %8102 = vmatprep.subr.bf16.mxu1 %v8727_v46  ;;  %v8764_v45 = vld [vmem:[#allocation2 + $0x1130] sm:$0xff]  }
 0x229   :  { %v7788_v51 = vpop.f32.mrf.mxu0  ;;  %6438 = vmatmul.mubr.bf16.vlgmr.msra.gmra.mxu0 %v1609_v44  ;;  %v1672_v44 = vrot.slane %v1644_v38, %v8937_v35 }
 0x22a   :  { %v7810_v54 = vpop.f32.mrf.mxu1  ;;  %8081 = vmatpush3.bf16.msra.mxu0 %v8728_v47  ;;  %6478 = vmatmul.mubr.bf16.vlgmr.msra.gmra.mxu1 %v1625_v49 }
 0x22b   :  { %v7789_v55 = vpop.f32.mrf.mxu0  ;;  %8082 = vmatprep.subr.bf16.mxu0 %v8730_v50  ;;  %8103 = vmatpush3.bf16.msra.mxu1 %v8729_v48  ;;  %v8765_v48 = vld [vmem:[#allocation2 + $0x11b0] sm:$0xff]   ;;  %v1676_v49 = vcombine.high %v1672_v44, %v1672_v44 }
 0x22c   :  { %v7790_v57 = vadd.f32 %v7789_v55, %v7788_v51  ;;  %v7811_v59 = vpop.f32.mrf.mxu1  ;;  %8104 = vmatprep.subr.bf16.mxu1 %v8731_v52  ;;  %6517 = vmatprep.mubr.bf16.mxu0 %v1665_v36  ;;  %v8766_v51 = vld [vmem:[#allocation2 + $0x1168] sm:$0xff]  }
 0x22d   :  { %v7791_v60 = vpop.f32.mrf.mxu0  ;;  %v7812_v63 = vadd.f32 %v7811_v59, %v7810_v54  ;;  %6557 = vmatprep.mubr.bf16.mxu1 %v1675_v41  ;;  %v8767_v54 = vld [vmem:[#allocation2 + $0x11e8] sm:$0xff]  }
 0x22e   :  { %v5960_v62 = vadd.f32 %v7790_v57, %v9073_v21  ;;  %v7813_v1 = vpop.f32.mrf.mxu1  ;;  %8083 = vmatpush3.bf16.msra.mxu0 %v8732_v53  ;;  %v8753_v21 = vld [vmem:[#allocation2 + $0x1088] sm:$0xff]  }
 0x22f   :  { %v7792_v2 = vpop.f32.mrf.mxu0  ;;  %8084 = vmatprep.subr.bf16.mxu0 %v8734_v58  ;;  %8105 = vmatpush3.bf16.msra.mxu1 %v8733_v56  ;;  %v8768_v57 = vld [vmem:[#allocation2 + $0x1128] sm:$0xff]   ;;  %v8772_v1 = vld [vmem:[#allocation2 + $0x1120] sm:$0xff]  }
 0x230   :  { %v9078_v4 = vadd.f32 %v7812_v63, %v5960_v62  ;;  %v7814_v6 = vpop.f32.mrf.mxu1  ;;  %8106 = vmatprep.subr.bf16.mxu1 %v8735_v61  ;;  %v8769_v60 = vld [vmem:[#allocation2 + $0x11a8] sm:$0xff]   ;;  %v8770_v62 = vld [vmem:[#allocation2 + $0x1160] sm:$0xff]  }
 0x231   :  { %v8773_v2 = vld [vmem:[#allocation2 + $0x11a0] sm:$0xff]   ;;  %v8777_v6 = vld [vmem:[#allocation2 + $0x1198] sm:$0xff]  }
 0x232   :  { %8085 = vmatpush3.bf16.msra.mxu0 %v8736_v0  ;;  %v8771_v0 = vld [vmem:[#allocation2 + $0x11e0] sm:$0xff]  }
 0x233   :  { %8086 = vmatprep.subr.bf16.mxu0 %v8738_v5  ;;  %8107 = vmatpush3.bf16.msra.mxu1 %v8737_v3  ;;  %v8774_v3 = vld [vmem:[#allocation2 + $0x1158] sm:$0xff]  }
 0x234   :  { %8108 = vmatprep.subr.bf16.mxu1 %v8739_v7  ;;  %v8776_v5 = vld [vmem:[#allocation2 + $0x1118] sm:$0xff]   ;;  %v8778_v7 = vld [vmem:[#allocation2 + $0x1150] sm:$0xff]  }
 0x236   :  { %8087 = vmatpush3.bf16.msra.mxu0 %v8740_v8  ;;  %v8779_v8 = vld [vmem:[#allocation2 + $0x11d0] sm:$0xff]  }
 0x237   :  { %8088 = vmatprep.subr.bf16.mxu0 %v8742_v10  ;;  %8109 = vmatpush3.bf16.msra.mxu1 %v8741_v9  ;;  %v8780_v9 = vld [vmem:[#allocation2 + $0x1110] sm:$0xff]  }
 0x238   :  { %8110 = vmatprep.subr.bf16.mxu1 %v8743_v11  ;;  %v8781_v10 = vld [vmem:[#allocation2 + $0x1190] sm:$0xff]   ;;  %v8782_v11 = vld [vmem:[#allocation2 + $0x1148] sm:$0xff]  }
 0x23a   :  { %8089 = vmatpush3.bf16.msra.mxu0 %v8744_v12  ;;  %v8783_v12 = vld [vmem:[#allocation2 + $0x11c8] sm:$0xff]  }
 0x23b   :  { %8090 = vmatprep.subr.bf16.mxu0 %v8746_v14  ;;  %8111 = vmatpush3.bf16.msra.mxu1 %v8745_v13  ;;  %v8784_v13 = vld [vmem:[#allocation2 + $0x1108] sm:$0xff]  }
 0x23c   :  { %8112 = vmatprep.subr.bf16.mxu1 %v8747_v15  ;;  %v8785_v14 = vld [vmem:[#allocation2 + $0x1188] sm:$0xff]   ;;  %v8786_v15 = vld [vmem:[#allocation2 + $0x1140] sm:$0xff]  }
 0x23e   :  { %8091 = vmatpush3.bf16.msra.mxu0 %v8748_v16  ;;  %v8787_v16 = vld [vmem:[#allocation2 + $0x11c0] sm:$0xff]  }
 0x23f   :  { %8092 = vmatprep.subr.bf16.mxu0 %v8750_v18  ;;  %8113 = vmatpush3.bf16.msra.mxu1 %v8749_v17  ;;  %v8788_v17 = vld [vmem:[#allocation2 + $0x1100] sm:$0xff]  }
 0x240   :  { %8114 = vmatprep.subr.bf16.mxu1 %v8751_v19  ;;  %v8789_v18 = vld [vmem:[#allocation2 + $0x1180] sm:$0xff]   ;;  %v1658_v19 = vrot.slane %v9086_v33, %v8937_v35 }
 0x242   :  { %8093 = vmatpush3.bf16.msra.mxu0 %v8752_v20  ;;  %v1674_v20 = vcombine.high %v1658_v19, %v1658_v19 }
 0x243   :  { %8094 = vmatprep.subr.bf16.mxu0 %v8754_v22  ;;  %8115 = vmatpush3.bf16.msra.mxu1 %v8753_v21 }
 0x244   :  { %8116 = vmatprep.subr.bf16.mxu1 %v8755_v23 }
 0x246   :  { %8095 = vmatpush3.bf16.msra.mxu0 %v8756_v24 }
 0x247   :  { %8124 = vmatprep.subr.bf16.mxu0 %v8758_v27  ;;  %8117 = vmatpush3.bf16.msra.mxu1 %v8757_v29 }
 0x248   :  { %8146 = vmatprep.subr.bf16.mxu1 %v8759_v32 }
 0x249   :  { %v7832_v42 = vpop.f32.mrf.mxu0  ;;  %6518 = vmatmul.mubr.bf16.vlgmr.msra.gmra.mxu0 %v1651_v31 }
 0x24a   :  { %v7854_v46 = vpop.f32.mrf.mxu1  ;;  %8125 = vmatpush3.bf16.msra.mxu0 %v8760_v34  ;;  %6558 = vmatmul.mubr.bf16.vlgmr.msra.gmra.mxu1 %v1673_v39 }
 0x24b   :  { %v7833_v47 = vpop.f32.mrf.mxu0  ;;  %8126 = vmatprep.subr.bf16.mxu0 %v8762_v40  ;;  %8147 = vmatpush3.bf16.msra.mxu1 %v8761_v37 }
 0x24c   :  { %v7834_v50 = vadd.f32 %v7833_v47, %v7832_v42  ;;  %v7855_v52 = vpop.f32.mrf.mxu1  ;;  %6597 = vmatprep.mubr.bf16.mxu0 %v1672_v44  ;;  %8148 = vmatprep.subr.bf16.mxu1 %v8763_v43  ;;  %v8792_v47 = vld [vmem:[%s9128_s3 + $0x30] sm:$0xff]  }
 0x24d   :  { %v7835_v53 = vpop.f32.mrf.mxu0  ;;  %v7856_v56 = vadd.f32 %v7855_v52, %v7854_v46  ;;  %6637 = vmatprep.mubr.bf16.mxu1 %v1676_v49  ;;  %v8895_v46 = vmov 0.0   ;;  %v8794_v49 = vld [vmem:[%s9128_s3 + $0x20] sm:$0xff]  }
 0x24e   :  { %v6040_v55 = vadd.f32 %v7834_v50, %v9078_v4  ;;  %v7857_v58 = vpop.f32.mrf.mxu1  ;;  %8127 = vmatpush3.bf16.msra.mxu0 %v8764_v45  ;;  %v8775_v4 = vld [vmem:[#allocation2 + $0x11d8] sm:$0xff]  }
 0x24f   :  { %v7836_v59 = vpop.f32.mrf.mxu0  ;;  %8128 = vmatprep.subr.bf16.mxu0 %v8766_v51  ;;  %8149 = vmatpush3.bf16.msra.mxu1 %v8765_v48  ;;  %v8791_v45 = vld [vmem:[%s9128_s3 + $0x38] sm:$0xff]   ;;  %v8793_v48 = vld [vmem:[%s9128_s3 + $0x28] sm:$0xff]  }
 0x250   :  { %v6080_v61 = vadd.f32 %v7856_v56, %v6040_v55  ;;  %v7858_v63 = vpop.f32.mrf.mxu1  ;;  %8150 = vmatprep.subr.bf16.mxu1 %v8767_v54  ;;  %v8795_v50 = vld [vmem:[%s9128_s3 + $0x18] sm:$0xff]   ;;  %v8796_v55 = vld [vmem:[%s9128_s3 + $0x10] sm:$0xff]  }
 0x251   :  { %v8797_v63 = vld [vmem:[%s9128_s3 + $0x8] sm:$0xff]  }
 0x252   :  { %8129 = vmatpush3.bf16.msra.mxu0 %v8768_v57 }
 0x253   :  { %8130 = vmatprep.subr.bf16.mxu0 %v8770_v62  ;;  %8151 = vmatpush3.bf16.msra.mxu1 %v8769_v60 }
 0x254   :  { %8152 = vmatprep.subr.bf16.mxu1 %v8771_v0 }
 0x256   :  { %8131 = vmatpush3.bf16.msra.mxu0 %v8772_v1  ;;  %v8798_v1 = vld [vmem:[%s9128_s3] sm:$0xff]   ;;  %s8897_s3 = smov [#allocation8]  }
 0x257   :  { %8132 = vmatprep.subr.bf16.mxu0 %v8774_v3  ;;  %8153 = vmatpush3.bf16.msra.mxu1 %v8773_v2  ;;  %s6780_s14 = sshll.u32 %s8897_s3, 4  ;;  %s6781_s14 = int_to_ptr.vmem [resolvable:$true] %s6780_s14 }
 0x258   :  { %8154 = vmatprep.subr.bf16.mxu1 %v8775_v4  ;;  %s8863_s15 = scalar_lea.vmem %s6781_s14, 32  ;;  %p8868_p2 = scmp.lt.s32.totalorder %s6781_s14, %s6781_s14 }
 0x259   :  { %p8864_p1 = scmp.ne.s32.totalorder %s6781_s14, %s8863_s15  ;;  %p8869_p3 = scmp.lt.s32.totalorder %s8863_s15, %s8863_s15 }
 0x25a   :  { %8133 = vmatpush3.bf16.msra.mxu0 %v8776_v5 }
 0x25b   :  { %8134 = vmatprep.subr.bf16.mxu0 %v8778_v7  ;;  %8155 = vmatpush3.bf16.msra.mxu1 %v8777_v6  ;;  %p8870_p4 = por %p8869_p3, %p8868_p2 }
 0x25c   :  { %8156 = vmatprep.subr.bf16.mxu1 %v8779_v8 }
 0x25d   :  { %p8871_p5 = pnand %p8870_p4, %p8864_p1 }
 0x25e   :  { %8135 = vmatpush3.bf16.msra.mxu0 %v8780_v9 }
 0x25f   :  { %8136 = vmatprep.subr.bf16.mxu0 %v8782_v11  ;;  %8157 = vmatpush3.bf16.msra.mxu1 %v8781_v10 }
 0x260   :  { %8158 = vmatprep.subr.bf16.mxu1 %v8783_v12 }
 0x262   :  { %8137 = vmatpush3.bf16.msra.mxu0 %v8784_v13 }
 0x263   :  { %8138 = vmatprep.subr.bf16.mxu0 %v8786_v15  ;;  %8159 = vmatpush3.bf16.msra.mxu1 %v8785_v14 }
 0x264   :  { %8160 = vmatprep.subr.bf16.mxu1 %v8787_v16 }
 0x266   :  { %8139 = vmatpush3.bf16.msra.mxu0 %v8788_v17 }
 0x267   :  { %8161 = vmatpush3.bf16.msra.mxu1 %v8789_v18  ;;  %8177 = vmatprep.subr.bf16.mxu0 %v8895_v46 }
 0x269   :  { %v7876_v21 = vpop.f32.mrf.mxu0  ;;  %6598 = vmatmul.mubr.bf16.vlgmr.msra.gmra.mxu0 %v1658_v19 }
 0x26a   :  { %v7898_v22 = vpop.f32.mrf.mxu1  ;;  %6638 = vmatmul.mubr.bf16.vlgmr.msra.gmra.mxu1 %v1674_v20  ;;  %8178 = vmatpush3.bf16.msra.mxu0 %v8791_v45 }
 0x26b   :  { %v7877_v23 = vpop.f32.mrf.mxu0  ;;  %8179 = vmatprep.subr.bf16.mxu0 %v8895_v46  ;;  %8193 = vmatprep.mubr.msk.bf16.mxu0 %vm8896_vm0, %v8895_v46 }
 0x26c   :  { %v7878_v24 = vadd.f32 %v7877_v23, %v7876_v21  ;;  %v7899_v25 = vpop.f32.mrf.mxu1 }
 0x26d   :  { %v7879_v26 = vpop.f32.mrf.mxu0  ;;  %v7900_v28 = vadd.f32 %v7899_v25, %v7898_v22 }
 0x26e   :  { %v6120_v27 = vadd.f32 %v7878_v24, %v6080_v61  ;;  %v7901_v29 = vpop.f32.mrf.mxu1  ;;  %8180 = vmatpush3.bf16.msra.mxu0 %v8792_v47 }
 0x26f   :  { %v7880_v30 = vpop.f32.mrf.mxu0  ;;  %8181 = vmatprep.subr.bf16.mxu0 %v8895_v46 }
 0x270   :  { %v6160_v31 = vadd.f32 %v7900_v28, %v6120_v27  ;;  %v7902_v32 = vpop.f32.mrf.mxu1 }
 0x272   :  { %8182 = vmatpush3.bf16.msra.mxu0 %v8793_v48 }
 0x273   :  { %8183 = vmatprep.subr.bf16.mxu0 %v8895_v46 }
 0x276   :  { %8184 = vmatpush3.bf16.msra.mxu0 %v8794_v49 }
 0x277   :  { %8185 = vmatprep.subr.bf16.mxu0 %v8895_v46 }
 0x27a   :  { %8186 = vmatpush3.bf16.msra.mxu0 %v8795_v50 }
 0x27b   :  { %8187 = vmatprep.subr.bf16.mxu0 %v8895_v46 }
 0x27e   :  { %8188 = vmatpush3.bf16.msra.mxu0 %v8796_v55 }
 0x27f   :  { %8189 = vmatprep.subr.bf16.mxu0 %v8895_v46 }
 0x282   :  { %8190 = vmatpush3.bf16.msra.mxu0 %v8797_v63 }
 0x283   :  { %8191 = vmatprep.subr.bf16.mxu0 %v8895_v46 }
 0x286   :  { %8192 = vmatpush3.bf16.msra.mxu0 %v8798_v1 }
 0x289   :  { %v7920_v35 = vpop.f32.mrf.mxu0 }
 0x28a   :  { %v7942_v33 = vpop.f32.mrf.mxu1 }
 0x28b   :  { %v7921_v34 = vpop.f32.mrf.mxu0 }
 0x28c   :  { %v7922_v36 = vadd.f32 %v7921_v34, %v7920_v35  ;;  %v7943_v37 = vpop.f32.mrf.mxu1 }
 0x28d   :  { %v7923_v38 = vpop.f32.mrf.mxu0  ;;  %v7944_v40 = vadd.f32 %v7943_v37, %v7942_v33 }
 0x28e   :  { %v6200_v39 = vadd.f32 %v7922_v36, %v6160_v31  ;;  %v7945_v41 = vpop.f32.mrf.mxu1 }
 0x28f   :  { %v7924_v42 = vpop.f32.mrf.mxu0 }
 0x290   :  { %v6240_v43 = vadd.f32 %v7944_v40, %v6200_v39  ;;  %v7946_v44 = vpop.f32.mrf.mxu1 }
 0x2a9   :  { %v7964_v51 = vpop.f32.mrf.mxu0 }
 0x2aa   :  { %v7986_v52 = vpop.f32.mrf.mxu1 }
 0x2ab   :  { %v7965_v53 = vpop.f32.mrf.mxu0 }
 0x2ac   :  { %v7966_v54 = vadd.f32 %v7965_v53, %v7964_v51  ;;  %v7987_v56 = vpop.f32.mrf.mxu1 }
 0x2ad   :  { %v7967_v57 = vpop.f32.mrf.mxu0  ;;  %v7988_v59 = vadd.f32 %v7987_v56, %v7986_v52  ;;  %v7367_v52 = vld [vmem:[#allocation7] ss:$0 sm:$0xff] }
 0x2ae   :  { %v6280_v58 = vadd.f32 %v7966_v54, %v6240_v43  ;;  %v7989_v60 = vpop.f32.mrf.mxu1 }
 0x2af   :  { %v7968_v61 = vpop.f32.mrf.mxu0 }
 0x2b0   :  { %v6320_v62 = vadd.f32 %v7988_v59, %v6280_v58  ;;  %v7990_v0 = vpop.f32.mrf.mxu1 }
 0x2c9   :  { %v8008_v2 = vpop.f32.mrf.mxu0 }
 0x2ca   :  { %v8030_v3 = vpop.f32.mrf.mxu1 }
 0x2cb   :  { %v8009_v4 = vpop.f32.mrf.mxu0 }
 0x2cc   :  { %v8010_v5 = vadd.f32 %v8009_v4, %v8008_v2  ;;  %v8031_v6 = vpop.f32.mrf.mxu1 }
 0x2cd   :  { %v8011_v7 = vpop.f32.mrf.mxu0  ;;  %v8032_v9 = vadd.f32 %v8031_v6, %v8030_v3 }
 0x2ce   :  { %v6360_v8 = vadd.f32 %v8010_v5, %v6320_v62  ;;  %v8033_v10 = vpop.f32.mrf.mxu1 }
 0x2cf   :  { %v8012_v11 = vpop.f32.mrf.mxu0 }
 0x2d0   :  { %v6400_v12 = vadd.f32 %v8032_v9, %v6360_v8  ;;  %v8034_v13 = vpop.f32.mrf.mxu1 }
 0x2e9   :  { %v8052_v14 = vpop.f32.mrf.mxu0 }
 0x2ea   :  { %v8074_v15 = vpop.f32.mrf.mxu1 }
 0x2eb   :  { %v8053_v16 = vpop.f32.mrf.mxu0 }
 0x2ec   :  { %v8075_v17 = vpop.f32.mrf.mxu1  ;;  %v8054_v30 = vadd.f32 %v8053_v16, %v8052_v14 }
 0x2ed   :  { %v8055_v18 = vpop.f32.mrf.mxu0  ;;  %v8076_v32 = vadd.f32 %v8075_v17, %v8074_v15 }
 0x2ee   :  { %v8077_v19 = vpop.f32.mrf.mxu1  ;;  %v6440_v31 = vadd.f32 %v8054_v30, %v6400_v12 }
 0x2ef   :  { %v8056_v20 = vpop.f32.mrf.mxu0 }
 0x2f0   :  { %v8078_v21 = vpop.f32.mrf.mxu1  ;;  %v6480_v33 = vadd.f32 %v8076_v32, %v6440_v31 }
 0x309   :  { %v8096_v22 = vpop.f32.mrf.mxu0 }
 0x30a   :  { %v8118_v23 = vpop.f32.mrf.mxu1 }
 0x30b   :  { %v8097_v24 = vpop.f32.mrf.mxu0 }
 0x30c   :  { %v8119_v25 = vpop.f32.mrf.mxu1  ;;  %v8098_v35 = vadd.f32 %v8097_v24, %v8096_v22 }
 0x30d   :  { %v8099_v26 = vpop.f32.mrf.mxu0  ;;  %v8120_v36 = vadd.f32 %v8119_v25, %v8118_v23 }
 0x30e   :  { %v8121_v27 = vpop.f32.mrf.mxu1  ;;  %v6520_v34 = vadd.f32 %v8098_v35, %v6480_v33 }
 0x30f   :  { %v8100_v28 = vpop.f32.mrf.mxu0 }
 0x310   :  { %v8122_v29 = vpop.f32.mrf.mxu1  ;;  %v6560_v40 = vadd.f32 %v8120_v36, %v6520_v34 }
 0x329   :  { %v8140_v37 = vpop.f32.mrf.mxu0 }
 0x32a   :  { %v8162_v38 = vpop.f32.mrf.mxu1 }
 0x32b   :  { %v8141_v39 = vpop.f32.mrf.mxu0 }
 0x32c   :  { %v8142_v41 = vadd.f32 %v8141_v39, %v8140_v37  ;;  %v8163_v42 = vpop.f32.mrf.mxu1 }
 0x32d   :  { %v8143_v43 = vpop.f32.mrf.mxu0  ;;  %v8164_v45 = vadd.f32 %v8163_v42, %v8162_v38 }
 0x32e   :  { %v6600_v44 = vadd.f32 %v8142_v41, %v6560_v40  ;;  %v8165_v46 = vpop.f32.mrf.mxu1 }
 0x32f   :  { %v8144_v47 = vpop.f32.mrf.mxu0 }
 0x330   :  { %v6640_v48 = vadd.f32 %v8164_v45, %v6600_v44  ;;  %v8166_v49 = vpop.f32.mrf.mxu1 }
 0x332   :  { %v6645_v50 = vmax.f32 %v6640_v48, 0.0 }
 0x334   :  { %v6646_v51 = vpack.c.bf16 %v6645_v50, %v6645_v50 }
 0x336   :  { %8194 = vmatmul.mubr.bf16.vlgmr.msra.gmra.mxu0 %v6646_v51 }
 0x3f6   :  { %v6752_v53 = vpop.f32.mrf.mxu0 }
 0x3f7   :  { %v6753_v54 = vadd.f32 %v7367_v52, %v6752_v53 }
 0x3f8   :  { %v8195_v55 = vpop.f32.mrf.mxu0 }
 0x3f9   :  { %v6758_v56 = vmax.f32 %v6753_v54, 0.0 }
 0x3fa   :  { %v6755_v57 = vpop.f32.mrf.mxu0 }
 0x3fb   :  { %v6760_v58 = vsel %vm6759_vm1, %v6758_v56, -inf }
 0x3fc   :  { %6761 = vmax.xlane.f32.xlu0 %v6760_v58  ;;  %v8196_v59 = vpop.f32.mrf.mxu0 }
 0x485   :  { %v6762_v60 = vpop.xlane.xlu0 %6761 }
 0x486   :  { %v6763_v61 = vsub.f32 %v6758_v56, %v6762_v60 }
 0x488   :  { %v6764_v62 = vmul.f32 1.442695, %v6763_v61 }
 0x48a   :  { %8799 = vpow2.f32 %v6764_v62 }
 0x497   :  { %v8800_v63 = vpop.eup %8799 }
 0x498   :  { %v6766_v0 = vsel %vm6759_vm1, %v8800_v63, 0.0 }
 0x499   :  { %6767 = vadd.xlane.f32.xlu0 %v6766_v0 }
 0x522   :  { %v6768_v1 = vpop.xlane.xlu0 %6767 }
 0x523   :  { %8801 = vlog2.f32 %v6768_v1 }
 0x530   :  { %v8802_v2 = vpop.eup %8801 }
 0x531   :  { %v6770_v3 = vmul.f32 0.6931472, %v8802_v2 }
 0x533   :  { %v6771_v4 = vadd.f32 %v6770_v3, %v6762_v60 }
 0x535   :  { %v6772_v5 = vsub.f32 %v6758_v56, %v6771_v4 }
 0x537   :  { %6773 = vst.msk [vmem:[#allocation8] sm:$0x3] %vm6759_vm1, %v6772_v5 }
 0x538   :  { %8874 = shalt.err (!%p8871_p5)
}
 0x539   :  { %6783 = dma.vmem_to_hbm [thread:$0]  %s6781_s14, 32, %s9130_s5, [#allocation4]  }
 0x53a   :  { %8887 = dma.done.wait [#allocation4], 32  }
 0x53b   :  { %8888 = vsyncadd [#allocation4], 4294967264 }
 0x53c   :  { %6787 = vsyncpa [#allocation3], 1 }
 0x53d   :  { %6788 = vsyncpa [#allocation6], 1 }
 0x53e   :  { %6789 = vsyncpa [#allocation4], 1 }

</bundles_post_ra>
